<compile_context>
chip_gen: v7x
topology: tpu7x:2x2x1
jax: 0.10.0
libtpu: 0.0.40
codegen_flags: <defaults>
</compile_context>

<pallas_src>
import functools

import jax
import jax.numpy as jnp
from jax.experimental import pallas as pl
from jax.experimental.pallas import tpu as pltpu


def _round_up(x, m):
    return (x + m - 1) // m * m


# ----------------------------------------------------------------------------
# Shared 3x3 "same" conv accumulation: 9 MXU matmuls, f32 accumulator.
# `load_window(dy, dx)` returns the shifted (H, W, Cin) slab of the
# halo-padded input for that tap.
# ----------------------------------------------------------------------------
def _conv3x3_accumulate(load_window, w_ref, h, w, cin, cout):
    acc = jnp.zeros((h * w, cout), jnp.float32)
    for dy in range(3):
        for dx in range(3):
            win = load_window(dy, dx).reshape(h * w, cin)
            acc = acc + jnp.dot(win, w_ref[dy, dx],
                                preferred_element_type=jnp.float32)
    return acc


# ----------------------------------------------------------------------------
# Fused kernel: conv1 + bias1 + ReLU -> VMEM scratch -> conv2 + bias2 + ReLU.
# One grid step processes one batch image, all channels.
# ----------------------------------------------------------------------------
def _double_conv_fused_kernel(x_ref, w1_ref, b1_ref, w2_ref, b2_ref,
                              o_ref, mid_ref):
    # x_ref:   (1, H+2, W+2, Cin_p)   bf16  (spatially halo-padded image)
    # w1_ref:  (3, 3, Cin_p, Cmid_p)  bf16
    # b1_ref:  (1, Cmid_p)            f32
    # w2_ref:  (3, 3, Cmid_p, Cout_p) bf16
    # b2_ref:  (1, Cout_p)            f32
    # o_ref:   (1, H, W, Cout_p)      f32
    # mid_ref: (H+2, W+2, Cmid_p)     bf16 VMEM scratch (halo-padded interm.)
    h, w = o_ref.shape[1], o_ref.shape[2]
    cin = x_ref.shape[3]
    cmid = mid_ref.shape[2]
    cout = o_ref.shape[3]

    # ---- first conv + bias + ReLU -> bf16 intermediate with zero halo ----
    acc1 = _conv3x3_accumulate(
        lambda dy, dx: x_ref[0, dy:dy + h, dx:dx + w, :],
        w1_ref, h, w, cin, cmid)
    y1 = jnp.maximum(acc1 + b1_ref[...], 0.0).astype(mid_ref.dtype)

    mid_ref[...] = jnp.zeros_like(mid_ref)            # zero the halo border
    mid_ref[1:1 + h, 1:1 + w, :] = y1.reshape(h, w, cmid)

    # ---- second conv + bias + ReLU -> output ----
    acc2 = _conv3x3_accumulate(
        lambda dy, dx: mid_ref[dy:dy + h, dx:dx + w, :],
        w2_ref, h, w, cmid, cout)
    out = jnp.maximum(acc2 + b2_ref[...], 0.0)
    o_ref[...] = out.reshape(o_ref.shape).astype(o_ref.dtype)


def double_conv_fused(x_nhwc, w1, b1, w2, b2, *, out_dtype=jnp.float32):
    """x: (N,H,W,Cin_p) bf16; w1: (3,3,Cin_p,Cmid_p); w2: (3,3,Cmid_p,Cout_p)
    bf16; biases f32.  Returns (N,H,W,Cout_p) in out_dtype."""
    n, h, width, cin_p = x_nhwc.shape
    cmid_p = w1.shape[-1]
    cout_p = w2.shape[-1]

    # Single spatial halo pad (the only per-call activation copy in HBM).
    xp = jnp.pad(x_nhwc, ((0, 0), (1, 1), (1, 1), (0, 0)))
    b1_2d = b1.reshape(1, cmid_p).astype(jnp.float32)
    b2_2d = b2.reshape(1, cout_p).astype(jnp.float32)

    flops = 2 * n * h * width * 9 * (cin_p * cmid_p + cmid_p * cout_p)
    bytes_accessed = (xp.size * xp.dtype.itemsize
                      + w1.size * w1.dtype.itemsize
                      + w2.size * w2.dtype.itemsize
                      + (b1_2d.size + b2_2d.size) * 4
                      + n * h * width * cout_p * jnp.dtype(out_dtype).itemsize)

    return pl.pallas_call(
        _double_conv_fused_kernel,
        out_shape=jax.ShapeDtypeStruct((n, h, width, cout_p), out_dtype),
        grid_spec=pltpu.PrefetchScalarGridSpec(
            num_scalar_prefetch=0,
            grid=(n,),
            in_specs=[
                pl.BlockSpec((1, h + 2, width + 2, cin_p),
                             lambda i: (i, 0, 0, 0)),
                pl.BlockSpec((3, 3, cin_p, cmid_p), lambda i: (0, 0, 0, 0)),
                pl.BlockSpec((1, cmid_p), lambda i: (0, 0)),
                pl.BlockSpec((3, 3, cmid_p, cout_p), lambda i: (0, 0, 0, 0)),
                pl.BlockSpec((1, cout_p), lambda i: (0, 0)),
            ],
            out_specs=pl.BlockSpec((1, h, width, cout_p),
                                   lambda i: (i, 0, 0, 0)),
            scratch_shapes=[
                pltpu.VMEM((h + 2, width + 2, cmid_p), jnp.bfloat16)],
        ),
        compiler_params=pltpu.CompilerParams(
            dimension_semantics=("parallel",)),
        cost_estimate=pl.CostEstimate(flops=flops, transcendentals=0,
                                      bytes_accessed=bytes_accessed),
    )(xp, w1, b1_2d, w2, b2_2d)


# ----------------------------------------------------------------------------
# Fallback per-layer kernel (Cout-tiled), used when the fused working set
# would exceed the scoped VMEM budget.
# ----------------------------------------------------------------------------
def _conv3x3_bias_relu_kernel(x_ref, w_ref, b_ref, o_ref, *, apply_relu):
    h, w = o_ref.shape[1], o_ref.shape[2]
    cin = x_ref.shape[3]
    tn = o_ref.shape[3]
    acc = _conv3x3_accumulate(
        lambda dy, dx: x_ref[0, dy:dy + h, dx:dx + w, :],
        w_ref, h, w, cin, tn)
    out = acc + b_ref[...]
    if apply_relu:
        out = jnp.maximum(out, 0.0)
    o_ref[...] = out.reshape(o_ref.shape).astype(o_ref.dtype)


def conv3x3_bias_relu(x_nhwc, w_hwio, bias, *, apply_relu=True,
                      out_dtype=jnp.float32, tn=None):
    n, h, width, cin_p = x_nhwc.shape
    cout_p = w_hwio.shape[-1]
    if tn is None:
        tn = 256 if cout_p % 256 == 0 else 128
        tn = min(tn, cout_p)

    xp = jnp.pad(x_nhwc, ((0, 0), (1, 1), (1, 1), (0, 0)))
    bias2d = bias.reshape(1, cout_p).astype(jnp.float32)

    flops = 2 * n * h * width * 9 * cin_p * cout_p
    bytes_accessed = (xp.size * xp.dtype.itemsize
                      + w_hwio.size * w_hwio.dtype.itemsize
                      + bias2d.size * 4
                      + n * h * width * cout_p * jnp.dtype(out_dtype).itemsize)

    kernel = functools.partial(_conv3x3_bias_relu_kernel,
                               apply_relu=apply_relu)
    return pl.pallas_call(
        kernel,
        out_shape=jax.ShapeDtypeStruct((n, h, width, cout_p), out_dtype),
        grid_spec=pltpu.PrefetchScalarGridSpec(
            num_scalar_prefetch=0,
            grid=(n, cout_p // tn),
            in_specs=[
                pl.BlockSpec((1, h + 2, width + 2, cin_p),
                             lambda i, j: (i, 0, 0, 0)),
                pl.BlockSpec((3, 3, cin_p, tn), lambda i, j: (0, 0, 0, j)),
                pl.BlockSpec((1, tn), lambda i, j: (0, j)),
            ],
            out_specs=pl.BlockSpec((1, h, width, tn),
                                   lambda i, j: (i, 0, 0, j)),
        ),
        compiler_params=pltpu.CompilerParams(
            dimension_semantics=("parallel", "parallel")),
        cost_estimate=pl.CostEstimate(flops=flops, transcendentals=0,
                                      bytes_accessed=bytes_accessed),
    )(xp, w_hwio, bias2d)


def _fused_vmem_bytes(h, w, cin_p, cmid_p, cout_p, out_dtype):
    x_blk = (h + 2) * (w + 2) * cin_p * 2
    w_blk = 9 * (cin_p * cmid_p + cmid_p * cout_p) * 2
    b_blk = (cmid_p + cout_p) * 4
    o_blk = h * w * cout_p * jnp.dtype(out_dtype).itemsize
    mid = (h + 2) * (w + 2) * cmid_p * 2
    # inputs/outputs are double-buffered by the BlockSpec pipeline
    return 2 * (x_blk + w_blk + b_blk + o_blk) + mid


# ----------------------------------------------------------------------------
# Parameters (weights channel-padded to lane-dense sizes ONCE, stored in bf16)
# ----------------------------------------------------------------------------
def init_double_conv_params(key, in_channels, out_channels):
    cin_p = _round_up(in_channels, 128)
    cout_p = _round_up(out_channels, 128)
    k1w, k1b, k2w, k2b = jax.random.split(key, 4)

    def conv_params(kw, kb, cin, cout, cin_pad, cout_pad):
        std = (2.0 / (cin * 9)) ** 0.5
        w = jax.random.normal(kw, (3, 3, cin, cout), jnp.float32) * std
        b = jax.random.normal(kb, (cout,), jnp.float32) * 0.01
        w_p = (jnp.zeros((3, 3, cin_pad, cout_pad), jnp.float32)
               .at[:, :, :cin, :cout].set(w))
        b_p = jnp.zeros((cout_pad,), jnp.float32).at[:cout].set(b)
        return w_p.astype(jnp.bfloat16), b_p

    w1, b1 = conv_params(k1w, k1b, in_channels, out_channels, cin_p, cout_p)
    # Second conv consumes the (already cout_p-padded) output of the first.
    w2, b2 = conv_params(k2w, k2b, out_channels, out_channels, cout_p, cout_p)
    return {"w1": w1, "b1": b1, "w2": w2, "b2": b2}


# ----------------------------------------------------------------------------
# DoubleConvolution forward (NCHW in / NCHW out, like the PyTorch module)
# ----------------------------------------------------------------------------
@functools.partial(jax.jit, static_argnames=("out_channels",))
def double_convolution_forward(params, x_nchw, *, out_channels):
    x = jnp.transpose(x_nchw, (0, 2, 3, 1))            # NCHW -> NHWC
    cin = x.shape[-1]
    cin_p = params["w1"].shape[2]
    if cin_p != cin:
        x = jnp.pad(x, ((0, 0), (0, 0), (0, 0), (0, cin_p - cin)))
    x = x.astype(jnp.bfloat16)

    cmid_p = params["w1"].shape[3]
    cout_p = params["w2"].shape[3]
    _, h, w, _ = x.shape

    if _fused_vmem_bytes(h, w, cin_p, cmid_p, cout_p,
                         jnp.float32) <= 24 * 1024 * 1024:
        y = double_conv_fused(x, params["w1"], params["b1"],
                              params["w2"], params["b2"],
                              out_dtype=jnp.float32)
    else:
        # Per-layer path: intermediate activation round-trips HBM in bf16.
        y = conv3x3_bias_relu(x, params["w1"], params["b1"],
                              apply_relu=True, out_dtype=jnp.bfloat16)
        y = conv3x3_bias_relu(y, params["w2"], params["b2"],
                              apply_relu=True, out_dtype=jnp.float32)

    y = y[..., :out_channels]
    return jnp.transpose(y, (0, 3, 1, 2))               # NHWC -> NCHW


# ----------------------------------------------------------------------------
# Pure-XLA reference (same bf16 inputs / f32 accumulation) for validation
# ----------------------------------------------------------------------------
def reference_forward(params, x_nchw, out_channels):
    x = jnp.transpose(x_nchw, (0, 2, 3, 1))
    cin = x.shape[-1]
    cin_p = params["w1"].shape[2]
    if cin_p != cin:
        x = jnp.pad(x, ((0, 0), (0, 0), (0, 0), (0, cin_p - cin)))
    x = x.astype(jnp.bfloat16)

    def conv(inp, w, b):
        y = jax.lax.conv_general_dilated(
            inp, w, window_strides=(1, 1), padding="SAME",
            dimension_numbers=("NHWC", "HWIO", "NHWC"),
            preferred_element_type=jnp.float32)
        return jnp.maximum(y + b[None, None, None, :], 0.0)

    y = conv(x, params["w1"], params["b1"]).astype(jnp.bfloat16)
    y = conv(y, params["w2"], params["b2"])
    y = y[..., :out_channels]
    return jnp.transpose(y, (0, 3, 1, 2))


if __name__ == "__main__":
    batch, in_channels, out_channels, spatial = 2, 4, 8, 16
    key = jax.random.PRNGKey(0)
    k_param, k_x = jax.random.split(key)

    params = init_double_conv_params(k_param, in_channels, out_channels)
    x = jax.random.normal(k_x, (batch, in_channels, spatial, spatial),
                          jnp.float32)

    y = double_convolution_forward(params, x, out_channels=out_channels)
    y = jax.block_until_ready(y)

    assert y.shape == (batch, out_channels, spatial, spatial), y.shape
    assert bool(jnp.all(jnp.isfinite(y)))

    y_ref = reference_forward(params, x, out_channels)
    max_err = float(jnp.max(jnp.abs(y - y_ref)))
    assert jnp.allclose(y, y_ref, rtol=5e-2, atol=5e-2), max_err

    print("KERNEL_OK")
</pallas_src>

<mosaic_0001>
module attributes {stable_mosaic.version = 11 : i64} {
  func.func @_double_conv_fused_kernel(%arg0: i32, %arg1: memref<1x18x18x128xbf16, #tpu.memory_space<vmem>>, %arg2: memref<3x3x128x128xbf16, #tpu.memory_space<vmem>>, %arg3: memref<1x128xf32, #tpu.memory_space<vmem>>, %arg4: memref<3x3x128x128xbf16, #tpu.memory_space<vmem>>, %arg5: memref<1x128xf32, #tpu.memory_space<vmem>>, %arg6: memref<1x16x16x128xf32, #tpu.memory_space<vmem>>, %arg7: memref<18x18x128xbf16, #tpu.memory_space<vmem>>) attributes {dimension_semantics = [#tpu.dimension_semantics<parallel>], iteration_bounds = array<i64: 2>, scalar_prefetch = 0 : i64, scratch_operands = 1 : i64, tpu.core_type = #tpu.core_type<tc>, window_params = [{transform_indices = @transform_0, window_bounds = array<i64: 1, 18, 18, 128>}, {pipeline_mode = #tpu.pipeline_mode<synchronous>, transform_indices = @transform_1, window_bounds = array<i64: 3, 3, 128, 128>}, {pipeline_mode = #tpu.pipeline_mode<synchronous>, transform_indices = @transform_2, window_bounds = array<i64: 1, 128>}, {pipeline_mode = #tpu.pipeline_mode<synchronous>, transform_indices = @transform_3, window_bounds = array<i64: 3, 3, 128, 128>}, {pipeline_mode = #tpu.pipeline_mode<synchronous>, transform_indices = @transform_4, window_bounds = array<i64: 1, 128>}, {transform_indices = @transform_5, window_bounds = array<i64: 1, 16, 16, 128>}]} {
    %cst = arith.constant 0.000000e+00 : f32
    %0 = vector.broadcast %cst : f32 to vector<256x128xf32>
    %c0 = arith.constant 0 : index
    %c0_0 = arith.constant 0 : index
    %c0_1 = arith.constant 0 : index
    %c0_2 = arith.constant 0 : index
    %1 = vector.load %arg1[%c0, %c0_0, %c0_1, %c0_2] : memref<1x18x18x128xbf16, #tpu.memory_space<vmem>>, vector<1x16x16x128xbf16>
    %2 = vector.shape_cast %1 : vector<1x16x16x128xbf16> to vector<16x16x128xbf16>
    %3 = vector.shape_cast %2 : vector<16x16x128xbf16> to vector<256x128xbf16>
    %c0_3 = arith.constant 0 : index
    %c0_4 = arith.constant 0 : index
    %c0_5 = arith.constant 0 : index
    %c0_6 = arith.constant 0 : index
    %4 = vector.load %arg2[%c0_3, %c0_4, %c0_5, %c0_6] : memref<3x3x128x128xbf16, #tpu.memory_space<vmem>>, vector<1x1x128x128xbf16>
    %5 = vector.shape_cast %4 : vector<1x1x128x128xbf16> to vector<128x128xbf16>
    %cst_7 = arith.constant dense<0.000000e+00> : vector<256x128xf32>
    %6 = tpu.matmul %3, %5, %cst_7 {dimension_numbers = #tpu.dot_dimension_numbers<[1], [0], [0], [1], [0, 0, 1, 1], [], []>} : vector<256x128xbf16>, vector<128x128xbf16>, vector<256x128xf32> -> vector<256x128xf32>
    %7 = arith.addf %0, %6 : vector<256x128xf32>
    %c0_8 = arith.constant 0 : index
    %c0_9 = arith.constant 0 : index
    %c1 = arith.constant 1 : index
    %c0_10 = arith.constant 0 : index
    %8 = vector.load %arg1[%c0_8, %c0_9, %c1, %c0_10] : memref<1x18x18x128xbf16, #tpu.memory_space<vmem>>, vector<1x16x16x128xbf16>
    %9 = vector.shape_cast %8 : vector<1x16x16x128xbf16> to vector<16x16x128xbf16>
    %10 = vector.shape_cast %9 : vector<16x16x128xbf16> to vector<256x128xbf16>
    %c0_11 = arith.constant 0 : index
    %c1_12 = arith.constant 1 : index
    %c0_13 = arith.constant 0 : index
    %c0_14 = arith.constant 0 : index
    %11 = vector.load %arg2[%c0_11, %c1_12, %c0_13, %c0_14] : memref<3x3x128x128xbf16, #tpu.memory_space<vmem>>, vector<1x1x128x128xbf16>
    %12 = vector.shape_cast %11 : vector<1x1x128x128xbf16> to vector<128x128xbf16>
    %cst_15 = arith.constant dense<0.000000e+00> : vector<256x128xf32>
    %13 = tpu.matmul %10, %12, %cst_15 {dimension_numbers = #tpu.dot_dimension_numbers<[1], [0], [0], [1], [0, 0, 1, 1], [], []>} : vector<256x128xbf16>, vector<128x128xbf16>, vector<256x128xf32> -> vector<256x128xf32>
    %14 = arith.addf %7, %13 : vector<256x128xf32>
    %c0_16 = arith.constant 0 : index
    %c0_17 = arith.constant 0 : index
    %c2 = arith.constant 2 : index
    %c0_18 = arith.constant 0 : index
    %15 = vector.load %arg1[%c0_16, %c0_17, %c2, %c0_18] : memref<1x18x18x128xbf16, #tpu.memory_space<vmem>>, vector<1x16x16x128xbf16>
    %16 = vector.shape_cast %15 : vector<1x16x16x128xbf16> to vector<16x16x128xbf16>
    %17 = vector.shape_cast %16 : vector<16x16x128xbf16> to vector<256x128xbf16>
    %c0_19 = arith.constant 0 : index
    %c2_20 = arith.constant 2 : index
    %c0_21 = arith.constant 0 : index
    %c0_22 = arith.constant 0 : index
    %18 = vector.load %arg2[%c0_19, %c2_20, %c0_21, %c0_22] : memref<3x3x128x128xbf16, #tpu.memory_space<vmem>>, vector<1x1x128x128xbf16>
    %19 = vector.shape_cast %18 : vector<1x1x128x128xbf16> to vector<128x128xbf16>
    %cst_23 = arith.constant dense<0.000000e+00> : vector<256x128xf32>
    %20 = tpu.matmul %17, %19, %cst_23 {dimension_numbers = #tpu.dot_dimension_numbers<[1], [0], [0], [1], [0, 0, 1, 1], [], []>} : vector<256x128xbf16>, vector<128x128xbf16>, vector<256x128xf32> -> vector<256x128xf32>
    %21 = arith.addf %14, %20 : vector<256x128xf32>
    %c0_24 = arith.constant 0 : index
    %c1_25 = arith.constant 1 : index
    %c0_26 = arith.constant 0 : index
    %c0_27 = arith.constant 0 : index
    %22 = vector.load %arg1[%c0_24, %c1_25, %c0_26, %c0_27] : memref<1x18x18x128xbf16, #tpu.memory_space<vmem>>, vector<1x16x16x128xbf16>
    %23 = vector.shape_cast %22 : vector<1x16x16x128xbf16> to vector<16x16x128xbf16>
    %24 = vector.shape_cast %23 : vector<16x16x128xbf16> to vector<256x128xbf16>
    %c1_28 = arith.constant 1 : index
    %c0_29 = arith.constant 0 : index
    %c0_30 = arith.constant 0 : index
    %c0_31 = arith.constant 0 : index
    %25 = vector.load %arg2[%c1_28, %c0_29, %c0_30, %c0_31] : memref<3x3x128x128xbf16, #tpu.memory_space<vmem>>, vector<1x1x128x128xbf16>
    %26 = vector.shape_cast %25 : vector<1x1x128x128xbf16> to vector<128x128xbf16>
    %cst_32 = arith.constant dense<0.000000e+00> : vector<256x128xf32>
    %27 = tpu.matmul %24, %26, %cst_32 {dimension_numbers = #tpu.dot_dimension_numbers<[1], [0], [0], [1], [0, 0, 1, 1], [], []>} : vector<256x128xbf16>, vector<128x128xbf16>, vector<256x128xf32> -> vector<256x128xf32>
    %28 = arith.addf %21, %27 : vector<256x128xf32>
    %c0_33 = arith.constant 0 : index
    %c1_34 = arith.constant 1 : index
    %c1_35 = arith.constant 1 : index
    %c0_36 = arith.constant 0 : index
    %29 = vector.load %arg1[%c0_33, %c1_34, %c1_35, %c0_36] : memref<1x18x18x128xbf16, #tpu.memory_space<vmem>>, vector<1x16x16x128xbf16>
    %30 = vector.shape_cast %29 : vector<1x16x16x128xbf16> to vector<16x16x128xbf16>
    %31 = vector.shape_cast %30 : vector<16x16x128xbf16> to vector<256x128xbf16>
    %c1_37 = arith.constant 1 : index
    %c1_38 = arith.constant 1 : index
    %c0_39 = arith.constant 0 : index
    %c0_40 = arith.constant 0 : index
    %32 = vector.load %arg2[%c1_37, %c1_38, %c0_39, %c0_40] : memref<3x3x128x128xbf16, #tpu.memory_space<vmem>>, vector<1x1x128x128xbf16>
    %33 = vector.shape_cast %32 : vector<1x1x128x128xbf16> to vector<128x128xbf16>
    %cst_41 = arith.constant dense<0.000000e+00> : vector<256x128xf32>
    %34 = tpu.matmul %31, %33, %cst_41 {dimension_numbers = #tpu.dot_dimension_numbers<[1], [0], [0], [1], [0, 0, 1, 1], [], []>} : vector<256x128xbf16>, vector<128x128xbf16>, vector<256x128xf32> -> vector<256x128xf32>
    %35 = arith.addf %28, %34 : vector<256x128xf32>
    %c0_42 = arith.constant 0 : index
    %c1_43 = arith.constant 1 : index
    %c2_44 = arith.constant 2 : index
    %c0_45 = arith.constant 0 : index
    %36 = vector.load %arg1[%c0_42, %c1_43, %c2_44, %c0_45] : memref<1x18x18x128xbf16, #tpu.memory_space<vmem>>, vector<1x16x16x128xbf16>
    %37 = vector.shape_cast %36 : vector<1x16x16x128xbf16> to vector<16x16x128xbf16>
    %38 = vector.shape_cast %37 : vector<16x16x128xbf16> to vector<256x128xbf16>
    %c1_46 = arith.constant 1 : index
    %c2_47 = arith.constant 2 : index
    %c0_48 = arith.constant 0 : index
    %c0_49 = arith.constant 0 : index
    %39 = vector.load %arg2[%c1_46, %c2_47, %c0_48, %c0_49] : memref<3x3x128x128xbf16, #tpu.memory_space<vmem>>, vector<1x1x128x128xbf16>
    %40 = vector.shape_cast %39 : vector<1x1x128x128xbf16> to vector<128x128xbf16>
    %cst_50 = arith.constant dense<0.000000e+00> : vector<256x128xf32>
    %41 = tpu.matmul %38, %40, %cst_50 {dimension_numbers = #tpu.dot_dimension_numbers<[1], [0], [0], [1], [0, 0, 1, 1], [], []>} : vector<256x128xbf16>, vector<128x128xbf16>, vector<256x128xf32> -> vector<256x128xf32>
    %42 = arith.addf %35, %41 : vector<256x128xf32>
    %c0_51 = arith.constant 0 : index
    %c2_52 = arith.constant 2 : index
    %c0_53 = arith.constant 0 : index
    %c0_54 = arith.constant 0 : index
    %43 = vector.load %arg1[%c0_51, %c2_52, %c0_53, %c0_54] : memref<1x18x18x128xbf16, #tpu.memory_space<vmem>>, vector<1x16x16x128xbf16>
    %44 = vector.shape_cast %43 : vector<1x16x16x128xbf16> to vector<16x16x128xbf16>
    %45 = vector.shape_cast %44 : vector<16x16x128xbf16> to vector<256x128xbf16>
    %c2_55 = arith.constant 2 : index
    %c0_56 = arith.constant 0 : index
    %c0_57 = arith.constant 0 : index
    %c0_58 = arith.constant 0 : index
    %46 = vector.load %arg2[%c2_55, %c0_56, %c0_57, %c0_58] : memref<3x3x128x128xbf16, #tpu.memory_space<vmem>>, vector<1x1x128x128xbf16>
    %47 = vector.shape_cast %46 : vector<1x1x128x128xbf16> to vector<128x128xbf16>
    %cst_59 = arith.constant dense<0.000000e+00> : vector<256x128xf32>
    %48 = tpu.matmul %45, %47, %cst_59 {dimension_numbers = #tpu.dot_dimension_numbers<[1], [0], [0], [1], [0, 0, 1, 1], [], []>} : vector<256x128xbf16>, vector<128x128xbf16>, vector<256x128xf32> -> vector<256x128xf32>
    %49 = arith.addf %42, %48 : vector<256x128xf32>
    %c0_60 = arith.constant 0 : index
    %c2_61 = arith.constant 2 : index
    %c1_62 = arith.constant 1 : index
    %c0_63 = arith.constant 0 : index
    %50 = vector.load %arg1[%c0_60, %c2_61, %c1_62, %c0_63] : memref<1x18x18x128xbf16, #tpu.memory_space<vmem>>, vector<1x16x16x128xbf16>
    %51 = vector.shape_cast %50 : vector<1x16x16x128xbf16> to vector<16x16x128xbf16>
    %52 = vector.shape_cast %51 : vector<16x16x128xbf16> to vector<256x128xbf16>
    %c2_64 = arith.constant 2 : index
    %c1_65 = arith.constant 1 : index
    %c0_66 = arith.constant 0 : index
    %c0_67 = arith.constant 0 : index
    %53 = vector.load %arg2[%c2_64, %c1_65, %c0_66, %c0_67] : memref<3x3x128x128xbf16, #tpu.memory_space<vmem>>, vector<1x1x128x128xbf16>
    %54 = vector.shape_cast %53 : vector<1x1x128x128xbf16> to vector<128x128xbf16>
    %cst_68 = arith.constant dense<0.000000e+00> : vector<256x128xf32>
    %55 = tpu.matmul %52, %54, %cst_68 {dimension_numbers = #tpu.dot_dimension_numbers<[1], [0], [0], [1], [0, 0, 1, 1], [], []>} : vector<256x128xbf16>, vector<128x128xbf16>, vector<256x128xf32> -> vector<256x128xf32>
    %56 = arith.addf %49, %55 : vector<256x128xf32>
    %c0_69 = arith.constant 0 : index
    %c2_70 = arith.constant 2 : index
    %c2_71 = arith.constant 2 : index
    %c0_72 = arith.constant 0 : index
    %57 = vector.load %arg1[%c0_69, %c2_70, %c2_71, %c0_72] : memref<1x18x18x128xbf16, #tpu.memory_space<vmem>>, vector<1x16x16x128xbf16>
    %58 = vector.shape_cast %57 : vector<1x16x16x128xbf16> to vector<16x16x128xbf16>
    %59 = vector.shape_cast %58 : vector<16x16x128xbf16> to vector<256x128xbf16>
    %c2_73 = arith.constant 2 : index
    %c2_74 = arith.constant 2 : index
    %c0_75 = arith.constant 0 : index
    %c0_76 = arith.constant 0 : index
    %60 = vector.load %arg2[%c2_73, %c2_74, %c0_75, %c0_76] : memref<3x3x128x128xbf16, #tpu.memory_space<vmem>>, vector<1x1x128x128xbf16>
    %61 = vector.shape_cast %60 : vector<1x1x128x128xbf16> to vector<128x128xbf16>
    %cst_77 = arith.constant dense<0.000000e+00> : vector<256x128xf32>
    %62 = tpu.matmul %59, %61, %cst_77 {dimension_numbers = #tpu.dot_dimension_numbers<[1], [0], [0], [1], [0, 0, 1, 1], [], []>} : vector<256x128xbf16>, vector<128x128xbf16>, vector<256x128xf32> -> vector<256x128xf32>
    %63 = arith.addf %56, %62 : vector<256x128xf32>
    %c0_78 = arith.constant 0 : index
    %c0_79 = arith.constant 0 : index
    %64 = vector.load %arg3[%c0_78, %c0_79] : memref<1x128xf32, #tpu.memory_space<vmem>>, vector<1x128xf32>
    %65 = vector.broadcast %64 : vector<1x128xf32> to vector<256x128xf32>
    %66 = arith.addf %63, %65 : vector<256x128xf32>
    %cst_80 = arith.constant 0.000000e+00 : f32
    %67 = vector.broadcast %cst_80 : f32 to vector<256x128xf32>
    %68 = arith.maximumf %66, %67 : vector<256x128xf32>
    %69 = arith.truncf %68 : vector<256x128xf32> to vector<256x128xbf16>
    %cst_81 = arith.constant 0.000000e+00 : bf16
    %70 = vector.broadcast %cst_81 : bf16 to vector<18x18x128xbf16>
    %c0_82 = arith.constant 0 : index
    %c0_83 = arith.constant 0 : index
    %c0_84 = arith.constant 0 : index
    %71 = vector.load %arg7[%c0_82, %c0_83, %c0_84] : memref<18x18x128xbf16, #tpu.memory_space<vmem>>, vector<18x18x128xbf16>
    tpu.vector_store %arg7[%c0_82, %c0_83, %c0_84], %70 {strides = array<i32>} : memref<18x18x128xbf16, #tpu.memory_space<vmem>>, vector<18x18x128xbf16>,
    %72 = vector.shape_cast %69 : vector<256x128xbf16> to vector<16x16x128xbf16>
    %c1_85 = arith.constant 1 : index
    %c1_86 = arith.constant 1 : index
    %c0_87 = arith.constant 0 : index
    %73 = vector.load %arg7[%c1_85, %c1_86, %c0_87] : memref<18x18x128xbf16, #tpu.memory_space<vmem>>, vector<16x16x128xbf16>
    tpu.vector_store %arg7[%c1_85, %c1_86, %c0_87], %72 {strides = array<i32>} : memref<18x18x128xbf16, #tpu.memory_space<vmem>>, vector<16x16x128xbf16>,
    %cst_88 = arith.constant 0.000000e+00 : f32
    %74 = vector.broadcast %cst_88 : f32 to vector<256x128xf32>
    %c0_89 = arith.constant 0 : index
    %c0_90 = arith.constant 0 : index
    %c0_91 = arith.constant 0 : index
    %75 = vector.load %arg7[%c0_89, %c0_90, %c0_91] : memref<18x18x128xbf16, #tpu.memory_space<vmem>>, vector<16x16x128xbf16>
    %76 = vector.shape_cast %75 : vector<16x16x128xbf16> to vector<256x128xbf16>
    %c0_92 = arith.constant 0 : index
    %c0_93 = arith.constant 0 : index
    %c0_94 = arith.constant 0 : index
    %c0_95 = arith.constant 0 : index
    %77 = vector.load %arg4[%c0_92, %c0_93, %c0_94, %c0_95] : memref<3x3x128x128xbf16, #tpu.memory_space<vmem>>, vector<1x1x128x128xbf16>
    %78 = vector.shape_cast %77 : vector<1x1x128x128xbf16> to vector<128x128xbf16>
    %cst_96 = arith.constant dense<0.000000e+00> : vector<256x128xf32>
    %79 = tpu.matmul %76, %78, %cst_96 {dimension_numbers = #tpu.dot_dimension_numbers<[1], [0], [0], [1], [0, 0, 1, 1], [], []>} : vector<256x128xbf16>, vector<128x128xbf16>, vector<256x128xf32> -> vector<256x128xf32>
    %80 = arith.addf %74, %79 : vector<256x128xf32>
    %c0_97 = arith.constant 0 : index
    %c1_98 = arith.constant 1 : index
    %c0_99 = arith.constant 0 : index
    %81 = vector.load %arg7[%c0_97, %c1_98, %c0_99] : memref<18x18x128xbf16, #tpu.memory_space<vmem>>, vector<16x16x128xbf16>
    %82 = vector.shape_cast %81 : vector<16x16x128xbf16> to vector<256x128xbf16>
    %c0_100 = arith.constant 0 : index
    %c1_101 = arith.constant 1 : index
    %c0_102 = arith.constant 0 : index
    %c0_103 = arith.constant 0 : index
    %83 = vector.load %arg4[%c0_100, %c1_101, %c0_102, %c0_103] : memref<3x3x128x128xbf16, #tpu.memory_space<vmem>>, vector<1x1x128x128xbf16>
    %84 = vector.shape_cast %83 : vector<1x1x128x128xbf16> to vector<128x128xbf16>
    %cst_104 = arith.constant dense<0.000000e+00> : vector<256x128xf32>
    %85 = tpu.matmul %82, %84, %cst_104 {dimension_numbers = #tpu.dot_dimension_numbers<[1], [0], [0], [1], [0, 0, 1, 1], [], []>} : vector<256x128xbf16>, vector<128x128xbf16>, vector<256x128xf32> -> vector<256x128xf32>
    %86 = arith.addf %80, %85 : vector<256x128xf32>
    %c0_105 = arith.constant 0 : index
    %c2_106 = arith.constant 2 : index
    %c0_107 = arith.constant 0 : index
    %87 = vector.load %arg7[%c0_105, %c2_106, %c0_107] : memref<18x18x128xbf16, #tpu.memory_space<vmem>>, vector<16x16x128xbf16>
    %88 = vector.shape_cast %87 : vector<16x16x128xbf16> to vector<256x128xbf16>
    %c0_108 = arith.constant 0 : index
    %c2_109 = arith.constant 2 : index
    %c0_110 = arith.constant 0 : index
    %c0_111 = arith.constant 0 : index
    %89 = vector.load %arg4[%c0_108, %c2_109, %c0_110, %c0_111] : memref<3x3x128x128xbf16, #tpu.memory_space<vmem>>, vector<1x1x128x128xbf16>
    %90 = vector.shape_cast %89 : vector<1x1x128x128xbf16> to vector<128x128xbf16>
    %cst_112 = arith.constant dense<0.000000e+00> : vector<256x128xf32>
    %91 = tpu.matmul %88, %90, %cst_112 {dimension_numbers = #tpu.dot_dimension_numbers<[1], [0], [0], [1], [0, 0, 1, 1], [], []>} : vector<256x128xbf16>, vector<128x128xbf16>, vector<256x128xf32> -> vector<256x128xf32>
    %92 = arith.addf %86, %91 : vector<256x128xf32>
    %c1_113 = arith.constant 1 : index
    %c0_114 = arith.constant 0 : index
    %c0_115 = arith.constant 0 : index
    %93 = vector.load %arg7[%c1_113, %c0_114, %c0_115] : memref<18x18x128xbf16, #tpu.memory_space<vmem>>, vector<16x16x128xbf16>
    %94 = vector.shape_cast %93 : vector<16x16x128xbf16> to vector<256x128xbf16>
    %c1_116 = arith.constant 1 : index
    %c0_117 = arith.constant 0 : index
    %c0_118 = arith.constant 0 : index
    %c0_119 = arith.constant 0 : index
    %95 = vector.load %arg4[%c1_116, %c0_117, %c0_118, %c0_119] : memref<3x3x128x128xbf16, #tpu.memory_space<vmem>>, vector<1x1x128x128xbf16>
    %96 = vector.shape_cast %95 : vector<1x1x128x128xbf16> to vector<128x128xbf16>
    %cst_120 = arith.constant dense<0.000000e+00> : vector<256x128xf32>
    %97 = tpu.matmul %94, %96, %cst_120 {dimension_numbers = #tpu.dot_dimension_numbers<[1], [0], [0], [1], [0, 0, 1, 1], [], []>} : vector<256x128xbf16>, vector<128x128xbf16>, vector<256x128xf32> -> vector<256x128xf32>
    %98 = arith.addf %92, %97 : vector<256x128xf32>
    %c1_121 = arith.constant 1 : index
    %c1_122 = arith.constant 1 : index
    %c0_123 = arith.constant 0 : index
    %99 = vector.load %arg7[%c1_121, %c1_122, %c0_123] : memref<18x18x128xbf16, #tpu.memory_space<vmem>>, vector<16x16x128xbf16>
    %100 = vector.shape_cast %99 : vector<16x16x128xbf16> to vector<256x128xbf16>
    %c1_124 = arith.constant 1 : index
    %c1_125 = arith.constant 1 : index
    %c0_126 = arith.constant 0 : index
    %c0_127 = arith.constant 0 : index
    %101 = vector.load %arg4[%c1_124, %c1_125, %c0_126, %c0_127] : memref<3x3x128x128xbf16, #tpu.memory_space<vmem>>, vector<1x1x128x128xbf16>
    %102 = vector.shape_cast %101 : vector<1x1x128x128xbf16> to vector<128x128xbf16>
    %cst_128 = arith.constant dense<0.000000e+00> : vector<256x128xf32>
    %103 = tpu.matmul %100, %102, %cst_128 {dimension_numbers = #tpu.dot_dimension_numbers<[1], [0], [0], [1], [0, 0, 1, 1], [], []>} : vector<256x128xbf16>, vector<128x128xbf16>, vector<256x128xf32> -> vector<256x128xf32>
    %104 = arith.addf %98, %103 : vector<256x128xf32>
    %c1_129 = arith.constant 1 : index
    %c2_130 = arith.constant 2 : index
    %c0_131 = arith.constant 0 : index
    %105 = vector.load %arg7[%c1_129, %c2_130, %c0_131] : memref<18x18x128xbf16, #tpu.memory_space<vmem>>, vector<16x16x128xbf16>
    %106 = vector.shape_cast %105 : vector<16x16x128xbf16> to vector<256x128xbf16>
    %c1_132 = arith.constant 1 : index
    %c2_133 = arith.constant 2 : index
    %c0_134 = arith.constant 0 : index
    %c0_135 = arith.constant 0 : index
    %107 = vector.load %arg4[%c1_132, %c2_133, %c0_134, %c0_135] : memref<3x3x128x128xbf16, #tpu.memory_space<vmem>>, vector<1x1x128x128xbf16>
    %108 = vector.shape_cast %107 : vector<1x1x128x128xbf16> to vector<128x128xbf16>
    %cst_136 = arith.constant dense<0.000000e+00> : vector<256x128xf32>
    %109 = tpu.matmul %106, %108, %cst_136 {dimension_numbers = #tpu.dot_dimension_numbers<[1], [0], [0], [1], [0, 0, 1, 1], [], []>} : vector<256x128xbf16>, vector<128x128xbf16>, vector<256x128xf32> -> vector<256x128xf32>
    %110 = arith.addf %104, %109 : vector<256x128xf32>
    %c2_137 = arith.constant 2 : index
    %c0_138 = arith.constant 0 : index
    %c0_139 = arith.constant 0 : index
    %111 = vector.load %arg7[%c2_137, %c0_138, %c0_139] : memref<18x18x128xbf16, #tpu.memory_space<vmem>>, vector<16x16x128xbf16>
    %112 = vector.shape_cast %111 : vector<16x16x128xbf16> to vector<256x128xbf16>
    %c2_140 = arith.constant 2 : index
    %c0_141 = arith.constant 0 : index
    %c0_142 = arith.constant 0 : index
    %c0_143 = arith.constant 0 : index
    %113 = vector.load %arg4[%c2_140, %c0_141, %c0_142, %c0_143] : memref<3x3x128x128xbf16, #tpu.memory_space<vmem>>, vector<1x1x128x128xbf16>
    %114 = vector.shape_cast %113 : vector<1x1x128x128xbf16> to vector<128x128xbf16>
    %cst_144 = arith.constant dense<0.000000e+00> : vector<256x128xf32>
    %115 = tpu.matmul %112, %114, %cst_144 {dimension_numbers = #tpu.dot_dimension_numbers<[1], [0], [0], [1], [0, 0, 1, 1], [], []>} : vector<256x128xbf16>, vector<128x128xbf16>, vector<256x128xf32> -> vector<256x128xf32>
    %116 = arith.addf %110, %115 : vector<256x128xf32>
    %c2_145 = arith.constant 2 : index
    %c1_146 = arith.constant 1 : index
    %c0_147 = arith.constant 0 : index
    %117 = vector.load %arg7[%c2_145, %c1_146, %c0_147] : memref<18x18x128xbf16, #tpu.memory_space<vmem>>, vector<16x16x128xbf16>
    %118 = vector.shape_cast %117 : vector<16x16x128xbf16> to vector<256x128xbf16>
    %c2_148 = arith.constant 2 : index
    %c1_149 = arith.constant 1 : index
    %c0_150 = arith.constant 0 : index
    %c0_151 = arith.constant 0 : index
    %119 = vector.load %arg4[%c2_148, %c1_149, %c0_150, %c0_151] : memref<3x3x128x128xbf16, #tpu.memory_space<vmem>>, vector<1x1x128x128xbf16>
    %120 = vector.shape_cast %119 : vector<1x1x128x128xbf16> to vector<128x128xbf16>
    %cst_152 = arith.constant dense<0.000000e+00> : vector<256x128xf32>
    %121 = tpu.matmul %118, %120, %cst_152 {dimension_numbers = #tpu.dot_dimension_numbers<[1], [0], [0], [1], [0, 0, 1, 1], [], []>} : vector<256x128xbf16>, vector<128x128xbf16>, vector<256x128xf32> -> vector<256x128xf32>
    %122 = arith.addf %116, %121 : vector<256x128xf32>
    %c2_153 = arith.constant 2 : index
    %c2_154 = arith.constant 2 : index
    %c0_155 = arith.constant 0 : index
    %123 = vector.load %arg7[%c2_153, %c2_154, %c0_155] : memref<18x18x128xbf16, #tpu.memory_space<vmem>>, vector<16x16x128xbf16>
    %124 = vector.shape_cast %123 : vector<16x16x128xbf16> to vector<256x128xbf16>
    %c2_156 = arith.constant 2 : index
    %c2_157 = arith.constant 2 : index
    %c0_158 = arith.constant 0 : index
    %c0_159 = arith.constant 0 : index
    %125 = vector.load %arg4[%c2_156, %c2_157, %c0_158, %c0_159] : memref<3x3x128x128xbf16, #tpu.memory_space<vmem>>, vector<1x1x128x128xbf16>
    %126 = vector.shape_cast %125 : vector<1x1x128x128xbf16> to vector<128x128xbf16>
    %cst_160 = arith.constant dense<0.000000e+00> : vector<256x128xf32>
    %127 = tpu.matmul %124, %126, %cst_160 {dimension_numbers = #tpu.dot_dimension_numbers<[1], [0], [0], [1], [0, 0, 1, 1], [], []>} : vector<256x128xbf16>, vector<128x128xbf16>, vector<256x128xf32> -> vector<256x128xf32>
    %128 = arith.addf %122, %127 : vector<256x128xf32>
    %c0_161 = arith.constant 0 : index
    %c0_162 = arith.constant 0 : index
    %129 = vector.load %arg5[%c0_161, %c0_162] : memref<1x128xf32, #tpu.memory_space<vmem>>, vector<1x128xf32>
    %130 = vector.broadcast %129 : vector<1x128xf32> to vector<256x128xf32>
    %131 = arith.addf %128, %130 : vector<256x128xf32>
    %cst_163 = arith.constant 0.000000e+00 : f32
    %132 = vector.broadcast %cst_163 : f32 to vector<256x128xf32>
    %133 = arith.maximumf %131, %132 : vector<256x128xf32>
    %134 = vector.shape_cast %133 : vector<256x128xf32> to vector<1x16x16x128xf32>
    %c0_164 = arith.constant 0 : index
    %c0_165 = arith.constant 0 : index
    %c0_166 = arith.constant 0 : index
    %c0_167 = arith.constant 0 : index
    %135 = vector.load %arg6[%c0_164, %c0_165, %c0_166, %c0_167] : memref<1x16x16x128xf32, #tpu.memory_space<vmem>>, vector<1x16x16x128xf32>
    tpu.vector_store %arg6[%c0_164, %c0_165, %c0_166, %c0_167], %134 {strides = array<i32>} : memref<1x16x16x128xf32, #tpu.memory_space<vmem>>, vector<1x16x16x128xf32>,
    return
  }
  func.func @transform_0(%arg0: i32) -> (i32, i32, i32, i32) {
    %c0_i32 = arith.constant 0 : i32
    %c0_i32_0 = arith.constant 0 : i32
    %c0_i32_1 = arith.constant 0 : i32
    %c0_i32_2 = arith.constant 0 : i32
    return %arg0, %c0_i32, %c0_i32_0, %c0_i32_1 : i32, i32, i32, i32
  }
  func.func @transform_1(%arg0: i32) -> (i32, i32, i32, i32) {
    %c0_i32 = arith.constant 0 : i32
    %c0_i32_0 = arith.constant 0 : i32
    %c0_i32_1 = arith.constant 0 : i32
    %c0_i32_2 = arith.constant 0 : i32
    %c0_i32_3 = arith.constant 0 : i32
    return %c0_i32, %c0_i32_0, %c0_i32_1, %c0_i32_2 : i32, i32, i32, i32
  }
  func.func @transform_2(%arg0: i32) -> (i32, i32) {
    %c0_i32 = arith.constant 0 : i32
    %c0_i32_0 = arith.constant 0 : i32
    %c0_i32_1 = arith.constant 0 : i32
    return %c0_i32, %c0_i32_0 : i32, i32
  }
  func.func @transform_3(%arg0: i32) -> (i32, i32, i32, i32) {
    %c0_i32 = arith.constant 0 : i32
    %c0_i32_0 = arith.constant 0 : i32
    %c0_i32_1 = arith.constant 0 : i32
    %c0_i32_2 = arith.constant 0 : i32
    %c0_i32_3 = arith.constant 0 : i32
    return %c0_i32, %c0_i32_0, %c0_i32_1, %c0_i32_2 : i32, i32, i32, i32
  }
  func.func @transform_4(%arg0: i32) -> (i32, i32) {
    %c0_i32 = arith.constant 0 : i32
    %c0_i32_0 = arith.constant 0 : i32
    %c0_i32_1 = arith.constant 0 : i32
    return %c0_i32, %c0_i32_0 : i32, i32
  }
  func.func @transform_5(%arg0: i32) -> (i32, i32, i32, i32) {
    %c0_i32 = arith.constant 0 : i32
    %c0_i32_0 = arith.constant 0 : i32
    %c0_i32_1 = arith.constant 0 : i32
    %c0_i32_2 = arith.constant 0 : i32
    return %arg0, %c0_i32, %c0_i32_0, %c0_i32_1 : i32, i32, i32, i32
  }
}

</mosaic_0001>

<bundles_post_ra>
// kernel: double_convolution_forward.1
= control target key start
LH: loop header
LB: loop body
LE: loop exit
PB: predicated region body
PF: predicated region fallthrough
CT: control target
= control target key end

     0   :  { %s13864_s18 = smov 0   ;;  %s17578_s0 = inlined_call_operand.vmem [shape: bf16[2,18,18,128], index: 0, kind: input, shape index: {}]   ;;  %s17579_s1 = inlined_call_operand.vmem [shape: bf16[3,3,128,128], index: 1, kind: input, shape index: {}]   ;;  %s17580_s2 = inlined_call_operand.vmem [shape: f32[1,128], index: 2, kind: input, shape index: {}]   ;;  %s17581_s3 = inlined_call_operand.vmem [shape: bf16[3,3,128,128], index: 3, kind: input, shape index: {}]   ;;  %s17582_s4 = inlined_call_operand.vmem [shape: f32[1,128], index: 4, kind: input, shape index: {}]   ;;  %s17583_s5 = inlined_call_operand.vmem [shape: f32[2,16,16,128], index: 5, kind: output, shape index: {}]  }
   0x1 LB: > { %s10657_s19 = sadd.s32 4294967295, %s13831_s18   ;;  %p10661_p0 = scmp.ge.s32.totalorder %s13831_s18, 1  ;;  %s13831_s18 = sphi %s13864_s18, %s15_s18  }
   0x2   : > { %p187_p1 = scmp.lt.s32.totalorder %s13831_s18, 3 }
   0x4   : > { %p188_p2 = pnand %p10661_p0, %p187_p1 }
   0x6   : > { %191 = sbr.rel (%p188_p2) target bundleno = 1653 (0x675), region = 40 }
   0xd   : > { %v13528_v0 = vld [vmem:[%s17579_s1 + $0x40] sm:$0xff]   ;;  %p215_p3 = scmp.lt.s32.totalorder %s10657_s19, 1  ;;  %v13529_v1 = vld [vmem:[%s17579_s1 + $0x48] sm:$0xff]   ;;  %v13530_v2 = vld [vmem:[%s17579_s1 + $0x50] sm:$0xff]   ;;  %vm290_vm0 = vsmask.f32 3328 }
   0xe   : > { %12142 = vmatprep.subr.bf16.mxu0 %v13528_v0  ;;  %v13531_v3 = vld [vmem:[%s17579_s1 + $0x58] sm:$0xff]   ;;  %vm291_vm1 = vsmask.f32 7440  ;;  %v13532_v17 = vld [vmem:[%s17579_s1 + $0x60] sm:$0xff]   ;;  %v17688_v25 = vmov 0  ;;  %v13533_v36 = vld [vmem:[%s17579_s1 + $0x68] sm:$0xff]  }
   0xf   : > { %s17979_s19 = smov (!%p215_p3, %s10657_s19), 1  ;;  %12143 = vmatpush3.bf16.msra.mxu0 %v13528_v0  ;;  %vm13919_vm2 = vmor %vm290_vm0, %vm291_vm1  ;;  %v13534_v56 = vld [vmem:[%s17579_s1 + $0x70] sm:$0xff]   ;;  %vm1320_vm3 = vcmask 1042432   ;;  %vm1321_vm4 = vcmask 1046532   ;;  %vm5580_vm6 = vcmask 1043456   ;;  %vm5587_vm10 = vcmask 1040384  }
  0x10   : > { %12144 = vmatprep.subr.bf16.mxu0 %v13529_v1  ;;  %s13518_s26 = smul.u32 216, %s17979_s19  ;;  %v17689_v25 = vsel %vm13919_vm2, 4294967295, %v17688_v25  ;;  %vm14252_vm5 = vmor %vm1320_vm3, %vm1321_vm4  ;;  %vm5581_vm7 = vsmask.f32 7938  ;;  %vm5256_vm8 = vsmask.f32 256 }
  0x11   : > { %17690 = vst [vmem:[#allocation3_spill] sm:$0xff] %v17689_v25  ;;  %vm5257_vm9 = vsmask.f32 4368  ;;  %vm15808_vm11 = vmand %vm5580_vm6, %vm5581_vm7  ;;  %s11677_s24 = sshll.u32 %s17979_s19, 8 }
  0x12   : > { %s13887_s29 = scalar_lea.vmem %s17578_s0, %s13518_s26  ;;  %vm15815_vm12 = vmor %vm5256_vm8, %vm5257_vm9  ;;  %s17510_s27 = scalar_lea.vmem %s17583_s5, %s11677_s24 }
  0x13   : > { %12145 = vmatpush3.bf16.msra.mxu0 %v13529_v1  ;;  %v13893_v4 = vld [vmem:[%s13887_s29] sm:$0xf]  ;;  %v13896_v5 = vld [vmem:[%s13887_s29 + $0x4] sm:$0xf]  ;;  %v274_v6 = vld [vmem:[%s13887_s29 + $0x8] sm:$0x1] }
  0x14   : > { %12146 = vmatprep.subr.bf16.mxu0 %v13530_v2  ;;  %v294_v7 = vshrl.u32 %v13893_v4, 16  ;;  %v297_v8 = vshll.u32 %v13893_v4, 16  ;;  %v303_v9 = vshll.u32 %v13896_v5, 16  ;;  %v307_v10 = vshrl.u32 %v13896_v5, 16  ;;  %v13904_v12 = vld [vmem:[%s13887_s29 + $0xc] sm:$0xf]  ;;  %vm15821_vm13 = vmand %vm5587_vm10, %vm5256_vm8 }
  0x15   : > { %v313_v11 = vshll.u32 %v274_v6, 16  ;;  %v13907_v15 = vld [vmem:[%s13887_s29 + $0x10] sm:$0xf]  ;;  %v275_v16 = vld [vmem:[%s13887_s29 + $0x14] sm:$0x1]  ;;  %v318_v20 = vshrl.u32 %v13904_v12, 16 }
  0x16   : > { %v296_v13 = vrot.slane %v294_v7, 4  ;;  %v299_v14 = vrot.slane %v297_v8, 5  ;;  %v305_v18 = vrot.slane %v303_v9, 5  ;;  %v309_v19 = vrot.slane %v307_v10, 4  ;;  %v13924_v30 = vld [vmem:[%s13887_s29 + $0x18] sm:$0xf] }
  0x17   : > { %12147 = vmatpush3.bf16.msra.mxu0 %v13530_v2  ;;  %v321_v22 = vshll.u32 %v13904_v12, 16  ;;  %v327_v23 = vshll.u32 %v13907_v15, 16  ;;  %v331_v24 = vshrl.u32 %v13907_v15, 16  ;;  %v315_v27 = vrot.slane %v313_v11, 5  ;;  %v13927_v35 = vld [vmem:[%s13887_s29 + $0x1c] sm:$0xf] }
  0x18   : > { %12148 = vmatprep.subr.bf16.mxu0 %v13531_v3  ;;  %v300_v21 = vor.u32 %v299_v14, %v296_v13  ;;  %v310_v26 = vor.u32 %v309_v19, %v305_v18  ;;  %v320_v28 = vrot.slane %v318_v20, 4  ;;  %v337_v29 = vshll.u32 %v275_v16, 16  ;;  %v276_v44 = vld [vmem:[%s13887_s29 + $0x20] sm:$0x1]  ;;  %v13939_v46 = vld [vmem:[%s13887_s29 + $0x24] sm:$0xf] }
  0x19   : > { %v323_v32 = vrot.slane %v321_v22, 5  ;;  %v329_v33 = vrot.slane %v327_v23, 5  ;;  %v333_v34 = vrot.slane %v331_v24, 4  ;;  %v342_v39 = vshrl.u32 %v13924_v30, 16  ;;  %v13945_v51 = vld [vmem:[%s13887_s29 + $0x28] sm:$0xf] }
  0x1a   : > { %v301_v31 = vrot.slane %v300_v21, 4  ;;  %v311_v37 = vrot.slane %v310_v26, 4  ;;  %v339_v38 = vrot.slane %v337_v29, 5  ;;  %v345_v40 = vshll.u32 %v13924_v30, 16  ;;  %v13956_v63 = vld [vmem:[%s13887_s29 + $0x2c] sm:$0x1] }
  0x1b   : > { %12149 = vmatpush3.bf16.msra.mxu0 %v13531_v3  ;;  %v324_v42 = vor.u32 %v323_v32, %v320_v28  ;;  %v334_v43 = vor.u32 %v333_v34, %v329_v33  ;;  %v351_v45 = vshll.u32 %v13927_v35, 16  ;;  %v344_v48 = vrot.slane %v342_v39, 4  ;;  %v13961_v2 = vld [vmem:[%s13887_s29 + $0x30] sm:$0xf]  ;;  %v13966_v9 = vld [vmem:[%s13887_s29 + $0x34] sm:$0xf] }
  0x1c   : > { %12150 = vmatprep.subr.bf16.mxu0 %v13532_v17  ;;  %v306_v41 = vsel %vm13919_vm2, %v301_v31, %v305_v18  ;;  %v316_v47 = vsel %vm13919_vm2, %v311_v37, %v315_v27  ;;  %v347_v49 = vrot.slane %v345_v40, 5  ;;  %v355_v50 = vshrl.u32 %v13927_v35, 16  ;;  %v13970_v16 = vld [vmem:[%s13887_s29 + $0x38] sm:$0x1]  ;;  %v13980_v22 = vld [vmem:[%s13887_s29 + $0x3c] sm:$0xf] }
  0x1d   : > { %v10681_v52 = vcombine.low %v306_v41, %v316_v47  ;;  %v325_v53 = vrot.slane %v324_v42, 4  ;;  %v335_v54 = vrot.slane %v334_v43, 4  ;;  %v353_v55 = vrot.slane %v351_v45, 5  ;;  %v13536_v39 = vld [vmem:[%s17579_s1] sm:$0xff]  }
  0x1e   : > { %v348_v57 = vor.u32 %v347_v49, %v344_v48  ;;  %v357_v58 = vrot.slane %v355_v50, 4  ;;  %v361_v59 = vshll.u32 %v276_v44, 16  ;;  %v366_v60 = vshrl.u32 %v13939_v46, 16  ;;  %v13998_v48 = vld [vmem:[%s13887_s29 + $0x44] sm:$0x1] }
  0x1f   : > { %12151 = vmatpush3.bf16.msra.mxu0 %v13532_v17  ;;  %12158 = vmatprep.mubr.bf16.mxu0 %v10681_v52  ;;  %v330_v61 = vsel %vm13919_vm2, %v325_v53, %v329_v33  ;;  %v340_v62 = vsel %vm13919_vm2, %v335_v54, %v339_v38  ;;  %v369_v0 = vshll.u32 %v13939_v46, 16  ;;  %v375_v1 = vshll.u32 %v13945_v51, 16  ;;  %v13535_v17 = vld [vmem:[%s17579_s1 + $0x78] sm:$0xff]   ;;  %v13988_v38 = vld [vmem:[%s13887_s29 + $0x40] sm:$0xf] }
  0x20   : > { %12152 = vmatprep.subr.bf16.mxu0 %v13533_v36  ;;  %v13963_v3 = vcombine.low %v330_v61, %v340_v62  ;;  %v349_v6 = vrot.slane %v348_v57, 4  ;;  %v358_v7 = vor.u32 %v357_v58, %v353_v55  ;;  %v363_v8 = vrot.slane %v361_v59, 5  ;;  %v14002_v50 = vld [vmem:[%s13887_s29 + $0x48] sm:$0xf] }
  0x21   : > { %v368_v10 = vrot.slane %v366_v60, 4  ;;  %v371_v11 = vrot.slane %v369_v0, 5  ;;  %v377_v13 = vrot.slane %v375_v1, 5  ;;  %v379_v14 = vshrl.u32 %v13945_v51, 16  ;;  %v13537_v62 = vld [vmem:[%s17579_s1 + $0x8] sm:$0xff]  }
  0x22   : > { %v354_v18 = vsel %vm13919_vm2, %v349_v6, %v353_v55  ;;  %v359_v19 = vrot.slane %v358_v7, 4  ;;  %v385_v20 = vshll.u32 %v13956_v63, 16  ;;  %v390_v21 = vshrl.u32 %v13961_v2, 16 }
  0x23   : > { %12153 = vmatpush3.bf16.msra.mxu0 %v13533_v36  ;;  %v372_v23 = vor.u32 %v371_v11, %v368_v10  ;;  %v381_v24 = vrot.slane %v379_v14, 4  ;;  %v393_v26 = vshll.u32 %v13961_v2, 16  ;;  %v399_v27 = vshll.u32 %v13966_v9, 16  ;;  %v14018_v11 = vld [vmem:[%s13887_s29 + $0x50] sm:$0x1] }
  0x24   : > { %12154 = vmatprep.subr.bf16.mxu0 %v13534_v56  ;;  %v364_v28 = vsel %vm13919_vm2, %v359_v19, %v363_v8  ;;  %v387_v29 = vrot.slane %v385_v20, 5  ;;  %v392_v31 = vrot.slane %v390_v21, 4  ;;  %v403_v32 = vshrl.u32 %v13966_v9, 16  ;;  %v14027_v20 = vld [vmem:[%s13887_s29 + $0x54] sm:$0xf] }
  0x25   : > { %v10683_v33 = vcombine.low %v354_v18, %v364_v28  ;;  %v373_v34 = vrot.slane %v372_v23, 4  ;;  %v382_v36 = vor.u32 %v381_v24, %v377_v13  ;;  %v395_v37 = vrot.slane %v393_v26, 5 }
  0x26   : > { %v401_v40 = vrot.slane %v399_v27, 5  ;;  %v405_v41 = vrot.slane %v403_v32, 4  ;;  %v409_v42 = vshll.u32 %v13970_v16, 16  ;;  %v414_v43 = vshrl.u32 %v13980_v22, 16  ;;  %v14033_v27 = vld [vmem:[%s13887_s29 + $0x58] sm:$0xf] }
  0x27   : > { %12155 = vmatpush3.bf16.msra.mxu0 %v13534_v56  ;;  %v378_v44 = vsel %vm13919_vm2, %v373_v34, %v377_v13  ;;  %v383_v45 = vrot.slane %v382_v36, 4  ;;  %v396_v47 = vor.u32 %v395_v37, %v392_v31  ;;  %v417_v49 = vshll.u32 %v13980_v22, 16  ;;  %v14006_v56 = vld [vmem:[%s13887_s29 + $0x4c] sm:$0xf]  ;;  %v14038_v34 = vld [vmem:[%s13887_s29 + $0x5c] sm:$0x1] }
  0x28   : > { %12156 = vmatprep.subr.bf16.mxu0 %v13535_v17  ;;  %v406_v52 = vor.u32 %v405_v41, %v401_v40  ;;  %v411_v53 = vrot.slane %v409_v42, 5  ;;  %v416_v54 = vrot.slane %v414_v43, 4  ;;  %v423_v55 = vshll.u32 %v13988_v38, 16 }
  0x29   : > { %v388_v57 = vsel %vm13919_vm2, %v383_v45, %v387_v29  ;;  %v397_v58 = vrot.slane %v396_v47, 4  ;;  %v419_v59 = vrot.slane %v417_v49, 5  ;;  %v427_v60 = vshrl.u32 %v13988_v38, 16 }
  0x2a   : > { %v10684_v61 = vcombine.low %v378_v44, %v388_v57  ;;  %v407_v0 = vrot.slane %v406_v52, 4  ;;  %v425_v1 = vrot.slane %v423_v55, 5  ;;  %v433_v6 = vshll.u32 %v13998_v48, 16 }
  0x2b   : > { %12157 = vmatpush3.bf16.msra.mxu0 %v13535_v17  ;;  %v402_v7 = vsel %vm13919_vm2, %v397_v58, %v401_v40  ;;  %v420_v8 = vor.u32 %v419_v59, %v416_v54  ;;  %v429_v10 = vrot.slane %v427_v60, 4  ;;  %v438_v13 = vshrl.u32 %v14002_v50, 16  ;;  %v13539_v59 = vld [vmem:[%s17579_s1 + $0x18] sm:$0xff]  }
  0x2c   : > { %12190 = vmatprep.subr.bf16.mxu0 %v13536_v39  ;;  %v412_v14 = vsel %vm13919_vm2, %v407_v0, %v411_v53  ;;  %v435_v17 = vrot.slane %v433_v6, 5  ;;  %v441_v18 = vshll.u32 %v14002_v50, 16  ;;  %v447_v19 = vshll.u32 %v14006_v56, 16  ;;  %v14052_v53 = vld [vmem:[%s13887_s29 + $0x64] sm:$0xf] }
  0x2d   : > { %v10685_v21 = vcombine.low %v402_v7, %v412_v14  ;;  %v421_v23 = vrot.slane %v420_v8, 4  ;;  %v430_v24 = vor.u32 %v429_v10, %v425_v1  ;;  %v440_v26 = vrot.slane %v438_v13, 4  ;;  %v14067_v14 = vld [vmem:[%s13887_s29 + $0x6c] sm:$0xf] }
  0x2e   : > { %12159 = vmatmul.mubr.bf16.vlgmr.msra.gmra.mrb[0].mxu0 %v13963_v3  ;;  %v13538_v3 = vld [vmem:[%s17579_s1 + $0x10] sm:$0xff]   ;;  %v443_v28 = vrot.slane %v441_v18, 5  ;;  %v449_v29 = vrot.slane %v447_v19, 5  ;;  %v451_v31 = vshrl.u32 %v14006_v56, 16  ;;  %v457_v32 = vshll.u32 %v14018_v11, 16 }
  0x2f   : > { %12191 = vmatpush3.bf16.msra.mxu0 %v13536_v39  ;;  %12162 = vmatprep.mubr.bf16.mxu0 %v10683_v33  ;;  %v14041_v33 = vld [vmem:[%s13887_s29 + $0x60] sm:$0xf]  ;;  %v426_v36 = vsel %vm13919_vm2, %v421_v23, %v425_v1  ;;  %v431_v37 = vrot.slane %v430_v24, 4  ;;  %v462_v39 = vshrl.u32 %v14027_v20, 16  ;;  %v465_v40 = vshll.u32 %v14027_v20, 16 }
  0x30   : > { %12192 = vmatprep.subr.bf16.mxu0 %v13537_v62  ;;  %v444_v41 = vor.u32 %v443_v28, %v440_v26  ;;  %v453_v42 = vrot.slane %v451_v31, 4  ;;  %v459_v43 = vrot.slane %v457_v32, 5  ;;  %v471_v44 = vshll.u32 %v14033_v27, 16  ;;  %v14059_v1 = vld [vmem:[%s13887_s29 + $0x68] sm:$0x1] }
  0x31   : > { %v436_v45 = vsel %vm13919_vm2, %v431_v37, %v435_v17  ;;  %v464_v47 = vrot.slane %v462_v39, 4  ;;  %v467_v49 = vrot.slane %v465_v40, 5  ;;  %v475_v52 = vshrl.u32 %v14033_v27, 16  ;;  %17691 = vst [vmem:[#allocation4_spill] sm:$0xff] %v14059_v1  ;;  %v14070_v24 = vld [vmem:[%s13887_s29 + $0x70] sm:$0xf] }
  0x32   : > { %v10686_v54 = vcombine.low %v426_v36, %v436_v45  ;;  %v445_v55 = vrot.slane %v444_v41, 4  ;;  %v454_v57 = vor.u32 %v453_v42, %v449_v29  ;;  %v473_v58 = vrot.slane %v471_v44, 5  ;;  %v14082_v40 = vld [vmem:[%s13887_s29 + $0x74] sm:$0x1] }
  0x33   : > { %12193 = vmatpush3.bf16.msra.mxu0 %v13537_v62  ;;  %v468_v60 = vor.u32 %v467_v49, %v464_v47  ;;  %v477_v62 = vrot.slane %v475_v52, 4  ;;  %v481_v0 = vshll.u32 %v14038_v34, 16  ;;  %v486_v6 = vshrl.u32 %v14041_v33, 16  ;;  %17692 = vst [vmem:[#allocation5_spill] sm:$0xff] %v14082_v40  ;;  %v14091_v49 = vld [vmem:[%s13887_s29 + $0x78] sm:$0xf] }
  0x34   : > { %12194 = vmatprep.subr.bf16.mxu0 %v13538_v3  ;;  %v450_v7 = vsel %vm13919_vm2, %v445_v55, %v449_v29  ;;  %v455_v8 = vrot.slane %v454_v57, 4  ;;  %v489_v10 = vshll.u32 %v14041_v33, 16  ;;  %v495_v13 = vshll.u32 %v14052_v53, 16 }
  0x35   : > { %v469_v17 = vrot.slane %v468_v60, 4  ;;  %v478_v18 = vor.u32 %v477_v62, %v473_v58  ;;  %v483_v19 = vrot.slane %v481_v0, 5  ;;  %v488_v23 = vrot.slane %v486_v6, 4  ;;  %v14094_v60 = vld [vmem:[%s13887_s29 + $0x7c] sm:$0xf]  ;;  %v13541_v62 = vld [vmem:[%s17579_s1 + $0x28] sm:$0xff]  }
  0x36   : > { %12163 = vmatmul.mubr.bf16.gmra.mrb[4].mxu0 %v10684_v61  ;;  %v460_v61 = vsel %vm13919_vm2, %v455_v8, %v459_v43  ;;  %v491_v26 = vrot.slane %v489_v10, 5  ;;  %v497_v28 = vrot.slane %v495_v13, 5  ;;  %v499_v29 = vshrl.u32 %v14052_v53, 16  ;;  %v14101_v8 = vld [vmem:[%s13887_s29 + $0x80] sm:$0x1] }
  0x37   : > { %12166 = vmatprep.mubr.bf16.mxu0 %v10685_v21  ;;  %12195 = vmatpush3.bf16.msra.mxu0 %v13538_v3  ;;  %v13540_v21 = vld [vmem:[%s17579_s1 + $0x20] sm:$0xff]   ;;  %v10687_v3 = vcombine.low %v450_v7, %v460_v61  ;;  %v474_v31 = vsel %vm13919_vm2, %v469_v17, %v473_v58  ;;  %v479_v32 = vrot.slane %v478_v18, 4  ;;  %v505_v36 = vshll.u32 %v14059_v1, 16  ;;  %17693 = vst [vmem:[#allocation6_spill] sm:$0xff] %v14101_v8 }
  0x38   : > { %12196 = vmatprep.subr.bf16.mxu0 %v13539_v59  ;;  %v492_v37 = vor.u32 %v491_v26, %v488_v23  ;;  %v501_v39 = vrot.slane %v499_v29, 4  ;;  %v510_v41 = vshrl.u32 %v14067_v14, 16  ;;  %v513_v42 = vshll.u32 %v14067_v14, 16  ;;  %v14109_v29 = vld [vmem:[%s13887_s29 + $0x84] sm:$0xf] }
  0x39   : > { %v484_v43 = vsel %vm13919_vm2, %v479_v32, %v483_v19  ;;  %v507_v44 = vrot.slane %v505_v36, 5  ;;  %v519_v45 = vshll.u32 %v14070_v24, 16  ;;  %v523_v47 = vshrl.u32 %v14070_v24, 16  ;;  %v14115_v36 = vld [vmem:[%s13887_s29 + $0x88] sm:$0xf] }
  0x3a   : > { %v10688_v52 = vcombine.low %v474_v31, %v484_v43  ;;  %v493_v55 = vrot.slane %v492_v37, 4  ;;  %v502_v57 = vor.u32 %v501_v39, %v497_v28  ;;  %v512_v58 = vrot.slane %v510_v41, 4 }
  0x3b   : > { %12197 = vmatpush3.bf16.msra.mxu0 %v13539_v59  ;;  %v515_v59 = vrot.slane %v513_v42, 5  ;;  %v521_v0 = vrot.slane %v519_v45, 5  ;;  %v525_v6 = vrot.slane %v523_v47, 4  ;;  %v529_v7 = vshll.u32 %v14082_v40, 16  ;;  %v14122_v45 = vld [vmem:[%s13887_s29 + $0x8c] sm:$0x1] }
  0x3c   : > { %12198 = vmatprep.subr.bf16.mxu0 %v13540_v21  ;;  %v498_v10 = vsel %vm13919_vm2, %v493_v55, %v497_v28  ;;  %v503_v13 = vrot.slane %v502_v57, 4  ;;  %v534_v17 = vshrl.u32 %v14091_v49, 16  ;;  %v537_v18 = vshll.u32 %v14091_v49, 16  ;;  %17694 = vst [vmem:[#allocation7_spill] sm:$0xff] %v14122_v45  ;;  %v13543_v55 = vld [vmem:[%s17579_s1 + $0x38] sm:$0xff]  }
  0x3d   : > { %v516_v19 = vor.u32 %v515_v59, %v512_v58  ;;  %v526_v23 = vor.u32 %v525_v6, %v521_v0  ;;  %v531_v61 = vrot.slane %v529_v7, 5  ;;  %v543_v26 = vshll.u32 %v14094_v60, 16  ;;  %v14135_v7 = vld [vmem:[%s13887_s29 + $0x90] sm:$0xf] }
  0x3e   : > { %12167 = vmatmul.mubr.bf16.gmra.mrb[8].mxu0 %v10686_v54  ;;  %v508_v54 = vsel %vm13919_vm2, %v503_v13, %v507_v44  ;;  %v536_v31 = vrot.slane %v534_v17, 4  ;;  %v539_v28 = vrot.slane %v537_v18, 5  ;;  %v547_v32 = vshrl.u32 %v14094_v60, 16 }
  0x3f   : > { %12170 = vmatprep.mubr.bf16.mxu0 %v10687_v3  ;;  %12199 = vmatpush3.bf16.msra.mxu0 %v13540_v21  ;;  %v13542_v3 = vld [vmem:[%s17579_s1 + $0x30] sm:$0xff]   ;;  %v10689_v21 = vcombine.low %v498_v10, %v508_v54  ;;  %v517_v37 = vrot.slane %v516_v19, 4  ;;  %v527_v39 = vrot.slane %v526_v23, 4  ;;  %v545_v41 = vrot.slane %v543_v26, 5  ;;  %v14142_v54 = vld [vmem:[%s13887_s29 + $0x98] sm:$0x1] }
  0x40   : > { %12200 = vmatprep.subr.bf16.mxu0 %v13541_v62  ;;  %v540_v42 = vor.u32 %v539_v28, %v536_v31  ;;  %v549_v43 = vrot.slane %v547_v32, 4  ;;  %v553_v44 = vshll.u32 %v14101_v8, 16  ;;  %v558_v47 = vshrl.u32 %v14109_v29, 16  ;;  %v14138_v10 = vld [vmem:[%s13887_s29 + $0x94] sm:$0xf]  ;;  %17695 = vst [vmem:[#allocation8_spill] sm:$0xff] %v14142_v54 }
  0x41   : > { %v522_v57 = vsel %vm13919_vm2, %v517_v37, %v521_v0  ;;  %v532_v58 = vsel %vm13919_vm2, %v527_v39, %v531_v61  ;;  %v561_v59 = vshll.u32 %v14109_v29, 16  ;;  %v567_v6 = vshll.u32 %v14115_v36, 16  ;;  %v14145_v31 = vld [vmem:[%s13887_s29 + $0x9c] sm:$0xf] }
  0x42   : > { %v10690_v13 = vcombine.low %v522_v57, %v532_v58  ;;  %v541_v17 = vrot.slane %v540_v42, 4  ;;  %v550_v18 = vor.u32 %v549_v43, %v545_v41  ;;  %v555_v19 = vrot.slane %v553_v44, 5 }
  0x43   : > { %12201 = vmatpush3.bf16.msra.mxu0 %v13541_v62  ;;  %v560_v0 = vrot.slane %v558_v47, 4  ;;  %v563_v23 = vrot.slane %v561_v59, 5  ;;  %v569_v26 = vrot.slane %v567_v6, 5  ;;  %v571_v61 = vshrl.u32 %v14115_v36, 16  ;;  %v14154_v47 = vld [vmem:[%s13887_s29 + $0xa0] sm:$0xf] }
  0x44   : > { %12202 = vmatprep.subr.bf16.mxu0 %v13542_v3  ;;  %v546_v62 = vsel %vm13919_vm2, %v541_v17, %v545_v41  ;;  %v551_v28 = vrot.slane %v550_v18, 4  ;;  %v577_v32 = vshll.u32 %v14122_v45, 16  ;;  %v582_v37 = vshrl.u32 %v14135_v7, 16 }
  0x45   : > { %v564_v39 = vor.u32 %v563_v23, %v560_v0  ;;  %v573_v42 = vrot.slane %v571_v61, 4  ;;  %v585_v43 = vshll.u32 %v14135_v7, 16  ;;  %v591_v44 = vshll.u32 %v14138_v10, 16 }
  0x46   : > { %12171 = vmatmul.mubr.bf16.gmra.mrb[12].mxu0 %v10688_v52  ;;  %v556_v52 = vsel %vm13919_vm2, %v551_v28, %v555_v19  ;;  %v579_v41 = vrot.slane %v577_v32, 5  ;;  %v584_v57 = vrot.slane %v582_v37, 4  ;;  %v595_v58 = vshrl.u32 %v14138_v10, 16  ;;  %v14170_v28 = vld [vmem:[%s13887_s29 + $0xa8] sm:$0xf] }
  0x47   : > { %12174 = vmatprep.mubr.bf16.mxu0 %v10689_v21  ;;  %12203 = vmatpush3.bf16.msra.mxu0 %v13542_v3  ;;  %v14162_v21 = vld [vmem:[%s17579_s1 + $0x80] sm:$0xff]   ;;  %v10691_v59 = vcombine.low %v546_v62, %v556_v52  ;;  %v565_v6 = vrot.slane %v564_v39, 4  ;;  %v574_v17 = vor.u32 %v573_v42, %v569_v26  ;;  %v587_v18 = vrot.slane %v585_v43, 5  ;;  %v14176_v39 = vld [vmem:[%s13887_s29 + $0xac] sm:$0xf] }
  0x48   : > { %12204 = vmatprep.subr.bf16.mxu0 %v13543_v55  ;;  %17696 = vst [vmem:[#allocation9_spill] sm:$0xff] %v14162_v21  ;;  %v14165_v3 = vld [vmem:[%s13887_s29 + $0xa4] sm:$0x1]  ;;  %v593_v0 = vrot.slane %v591_v44, 5  ;;  %v597_v23 = vrot.slane %v595_v58, 4  ;;  %v601_v19 = vshll.u32 %v14142_v54, 16 }
  0x49   : > { %17697 = vst [vmem:[#allocation10_spill] sm:$0xff] %v14165_v3  ;;  %v606_v61 = vshrl.u32 %v14145_v31, 16  ;;  %v570_v32 = vsel %vm13919_vm2, %v565_v6, %v569_v26  ;;  %v575_v37 = vrot.slane %v574_v17, 4  ;;  %v588_v45 = vor.u32 %v587_v18, %v584_v57  ;;  %v14184_v6 = vld [vmem:[%s13887_s29 + $0xb0] sm:$0x1] }
  0x4a   : > { %v609_v62 = vshll.u32 %v14145_v31, 16  ;;  %v598_v42 = vor.u32 %v597_v23, %v593_v0  ;;  %v603_v43 = vrot.slane %v601_v19, 5  ;;  %v615_v52 = vshll.u32 %v14154_v47, 16  ;;  %17698 = vst [vmem:[#allocation11_spill] sm:$0xff] %v14184_v6  ;;  %v14188_v23 = vld [vmem:[%s13887_s29 + $0xb4] sm:$0xf] }
  0x4b   : > { %12205 = vmatpush3.bf16.msra.mxu0 %v13543_v55  ;;  %v608_v44 = vrot.slane %v606_v61, 4  ;;  %v580_v58 = vsel %vm13919_vm2, %v575_v37, %v579_v41  ;;  %v589_v54 = vrot.slane %v588_v45, 4  ;;  %v619_v57 = vshrl.u32 %v14154_v47, 16 }
  0x4c   : > { %12238 = vmatprep.subr.bf16.mxu0 %v14162_v21  ;;  %v611_v26 = vrot.slane %v609_v62, 5  ;;  %v599_v17 = vrot.slane %v598_v42, 4  ;;  %v617_v55 = vrot.slane %v615_v52, 5  ;;  %v625_v18 = vshll.u32 %v14165_v3, 16  ;;  %v14198_v42 = vld [vmem:[%s13887_s29 + $0xb8] sm:$0xf] }
  0x4d   : > { %v10692_v19 = vcombine.low %v570_v32, %v580_v58  ;;  %v621_v8 = vrot.slane %v619_v57, 4  ;;  %v630_v41 = vshrl.u32 %v14170_v28, 16  ;;  %v594_v45 = vsel %vm13919_vm2, %v589_v54, %v593_v0 }
  0x4e   : > { %12175 = vmatmul.mubr.bf16.gmra.mrb[16].mxu0 %v10690_v13  ;;  %v612_v61 = vor.u32 %v611_v26, %v608_v44  ;;  %v604_v37 = vsel %vm13919_vm2, %v599_v17, %v603_v43  ;;  %v633_v13 = vshll.u32 %v14170_v28, 16  ;;  %v639_v62 = vshll.u32 %v14176_v39, 16 }
  0x4f   : > { %12178 = vmatprep.mubr.bf16.mxu0 %v10691_v59  ;;  %v622_v59 = vor.u32 %v621_v8, %v617_v55  ;;  %v627_v32 = vrot.slane %v625_v18, 5  ;;  %v632_v44 = vrot.slane %v630_v41, 4  ;;  %v643_v57 = vshrl.u32 %v14176_v39, 16  ;;  %v14207_v8 = vld [vmem:[%s13887_s29 + $0xbc] sm:$0x1] }
  0x50   : > { %v613_v52 = vrot.slane %v612_v61, 4  ;;  %v635_v58 = vrot.slane %v633_v13, 5  ;;  %v641_v26 = vrot.slane %v639_v62, 5  ;;  %v649_v54 = vshll.u32 %v14184_v6, 16 }
  0x51   : > { %v10693_v0 = vcombine.low %v594_v45, %v604_v37  ;;  %v623_v3 = vrot.slane %v622_v59, 4  ;;  %v654_v43 = vshrl.u32 %v14188_v23, 16  ;;  %v657_v17 = vshll.u32 %v14188_v23, 16 }
  0x52   : > { %v618_v21 = vsel %vm13919_vm2, %v613_v52, %v617_v55  ;;  %v636_v40 = vor.u32 %v635_v58, %v632_v44  ;;  %v645_v61 = vrot.slane %v643_v57, 4  ;;  %v663_v18 = vshll.u32 %v14198_v42, 16 }
  0x53   : > { %v651_v41 = vrot.slane %v649_v54, 5  ;;  %v656_v13 = vrot.slane %v654_v43, 4  ;;  %v659_v62 = vrot.slane %v657_v17, 5  ;;  %v667_v6 = vshrl.u32 %v14198_v42, 16  ;;  %v1287_v54 = vld [vmem:[%s13887_s29 + $0xb4] sm:$0xe] }
  0x54   : > { %v628_v45 = vsel %vm13919_vm2, %v623_v3, %v627_v32  ;;  %v637_v37 = vrot.slane %v636_v40, 4  ;;  %v646_v59 = vor.u32 %v645_v61, %v641_v26  ;;  %v665_v1 = vrot.slane %v663_v18, 5 }
  0x55   : > { %v660_v55 = vor.u32 %v659_v62, %v656_v13  ;;  %v669_v52 = vrot.slane %v667_v6, 4  ;;  %v673_v44 = vshll.u32 %v14207_v8, 16  ;;  %v10694_v43 = vcombine.low %v618_v21, %v628_v45 }
  0x56   : > { %12179 = vmatmul.mubr.bf16.gmra.mrb[20].mxu0 %v10692_v19  ;;  %v642_v58 = vsel %vm13919_vm2, %v637_v37, %v641_v26  ;;  %v647_v57 = vrot.slane %v646_v59, 4  ;;  %v1277_v59 = vld [vmem:[%s13887_s29 + $0x3c] sm:$0xe]  ;;  %v10707_v45 = vcombine.low %v13924_v30, %v13927_v35  ;;  %v1363_v30 = vrot.slane %v13998_v48, 5  ;;  %v13549_v48 = vld [vmem:[%s17579_s1 + $0x88] sm:$0xff]  }
  0x57   : > { %12182 = vmatprep.mubr.bf16.mxu0 %v10693_v0  ;;  %v661_v19 = vrot.slane %v660_v55, 4  ;;  %v670_v17 = vor.u32 %v669_v52, %v665_v1  ;;  %v675_v61 = vrot.slane %v673_v44, 5  ;;  %v1275_v52 = vld [vmem:[%s13887_s29 + $0x24] sm:$0xe]  ;;  %v1409_v6 = vrot.slane %v14138_v10, 5 }
  0x58   : > { %v652_v3 = vsel %vm13919_vm2, %v647_v57, %v651_v41  ;;  %v10732_v57 = vrot.slane %v1275_v52, 9  ;;  %v1279_v52 = vld [vmem:[%s13887_s29 + $0x54] sm:$0xe]  ;;  %v1423_v25 = vrot.slane %v14176_v39, 5 }
  0x59   : > { %v10695_v0 = vcombine.low %v642_v58, %v652_v3  ;;  %v671_v21 = vrot.slane %v670_v17, 4  ;;  %v666_v44 = vsel %vm13919_vm2, %v661_v19, %v665_v1  ;;  %v1346_v17 = vrot.slane %v13945_v51, 5  ;;  %v1276_v3 = vld [vmem:[%s13887_s29 + $0x30] sm:$0xe] }
  0x5a   : > { %v10705_v1 = vcombine.low %v13893_v4, %v13896_v5  ;;  %v1356_v5 = vrot.slane %v13970_v16, 5  ;;  %v1367_v16 = vrot.slane %v14006_v56, 5 }
  0x5b   : > { %v676_v58 = vsel %vm13919_vm2, %v671_v21, %v675_v61  ;;  %v14261_v19 = vsel %vm14252_vm5, %v10732_v57, %v1346_v17  ;;  %v1349_v21 = vrot.slane %v13956_v63, 5  ;;  %v10733_v61 = vrot.slane %v1276_v3, 9 }
  0x5c   : > { %v10696_v37 = vcombine.low %v666_v44, %v676_v58  ;;  %v10706_v44 = vcombine.low %v13904_v12, %v13907_v15  ;;  %v1353_v58 = vrot.slane %v13966_v9, 5  ;;  %v10734_v57 = vrot.slane %v1277_v59, 9 }
  0x5d   : > { %v1370_v59 = vrot.slane %v14018_v11, 5  ;;  %v1369_v11 = vrot.slane %v1367_v16, 4 }
  0x5e   : > { %12183 = vmatmul.mubr.bf16.gmra.mrb[24].mxu0 %v10694_v43  ;;  %v1348_v43 = vrot.slane %v1346_v17, 4  ;;  %v14279_v12 = vsel %vm14252_vm5, %v10733_v61, %v1353_v58  ;;  %v1355_v15 = vrot.slane %v1353_v58, 4  ;;  %v1360_v17 = vrot.slane %v13988_v38, 5 }
  0x5f   : > { %12186 = vmatprep.mubr.bf16.mxu0 %v10695_v0  ;;  %v1278_v0 = vld [vmem:[%s13887_s29 + $0x48] sm:$0xe]  ;;  %v10736_v61 = vrot.slane %v1279_v52, 9  ;;  %v1374_v58 = vrot.slane %v14033_v27, 5 }
  0x60   : > { %v14272_v4 = vsel %vm14252_vm5, %v1348_v43, %v1349_v21  ;;  %v10735_v35 = vrot.slane %v1278_v0, 9  ;;  %v14288_v3 = vsel %vm14252_vm5, %v1355_v15, %v1356_v5  ;;  %v14292_v43 = vsel %vm14252_vm5, %v10734_v57, %v1360_v17  ;;  %v1282_v5 = vld [vmem:[%s13887_s29 + $0x78] sm:$0xe] }
  0x61   : > { %v1362_v21 = vrot.slane %v1360_v17, 4  ;;  %v1377_v57 = vrot.slane %v14038_v34, 5  ;;  %v1381_v17 = vrot.slane %v14052_v53, 5  ;;  %v1376_v34 = vrot.slane %v1374_v58, 4 }
  0x62   : > { %v14299_v0 = vsel %vm14252_vm5, %v10735_v35, %v1367_v16  ;;  %v14316_v16 = vsel %vm14252_vm5, %v1369_v11, %v1370_v59  ;;  %v17701_v35 = vld [vmem:[#allocation4_spill] sm:$0xff]  ;;  %v1388_v11 = vrot.slane %v14070_v24, 5 }
  0x63   : > { %v14305_v15 = vsel %vm14252_vm5, %v1362_v21, %v1363_v30  ;;  %v14320_v30 = vsel %vm14252_vm5, %v10736_v61, %v1374_v58  ;;  %v1383_v62 = vrot.slane %v1381_v17, 4  ;;  %v1384_v41 = vrot.slane %v17701_v35, 5  ;;  %v17702_v58 = vld [vmem:[#allocation5_spill] sm:$0xff]  ;;  %v17704_v21 = vld [vmem:[#allocation6_spill] sm:$0xff] }
  0x64   : > { %v14332_v59 = vsel %vm14252_vm5, %v1376_v34, %v1377_v57  ;;  %v1391_v13 = vrot.slane %v17702_v58, 5  ;;  %v1395_v35 = vrot.slane %v14094_v60, 5  ;;  %v1284_v57 = vld [vmem:[%s13887_s29 + $0x90] sm:$0xe]  ;;  %v17703_v34 = vld [vmem:[#allocation9_spill] sm:$0xff]  ;;  %v1390_v58 = vrot.slane %v1388_v11, 4 }
  0x65   : > { %v1398_v18 = vrot.slane %v17704_v21, 5  ;;  %v17705_v21 = vld [vmem:[#allocation7_spill] sm:$0xff]  ;;  %v10741_v32 = vrot.slane %v1284_v57, 9 }
  0x66   : > { %12187 = vmatmul.mubr.bf16.gmra.mrb[28].mxu0 %v10696_v37  ;;  %v1280_v37 = vld [vmem:[%s13887_s29 + $0x60] sm:$0xe]  ;;  %v1405_v26 = vrot.slane %v17705_v21, 5 }
  0x67   : > { %12206 = vmatprep.mubr.bf16.mxu0 %v10705_v1  ;;  %v1281_v1 = vld [vmem:[%s13887_s29 + $0x6c] sm:$0xe]  ;;  %v10737_v52 = vrot.slane %v1280_v37, 9  ;;  %v1283_v37 = vld [vmem:[%s13887_s29 + $0x84] sm:$0xe]  ;;  %v14383_v57 = vsel %vm14252_vm5, %v10741_v32, %v1409_v6 }
  0x68   : > { %v10738_v61 = vrot.slane %v1281_v1, 9  ;;  %v1402_v1 = vrot.slane %v14115_v36, 5  ;;  %v17707_v21 = vld [vmem:[#allocation8_spill] sm:$0xff] }
  0x69   : > { %v14327_v63 = vsel %vm14252_vm5, %v10737_v52, %v1381_v17  ;;  %v14340_v52 = vsel %vm14252_vm5, %v1383_v62, %v1384_v41  ;;  %v10739_v17 = vrot.slane %v1282_v5, 9  ;;  %v1285_v41 = vld [vmem:[%s13887_s29 + $0x9c] sm:$0xe]  ;;  %v13552_v62 = vld [vmem:[%s17579_s1 + $0x90] sm:$0xff]   ;;  %v1397_v5 = vrot.slane %v1395_v35, 4 }
  0x6a   : > { %v1412_v40 = vrot.slane %v17707_v21, 5 }
  0x6e   : > { %12207 = vmatmul.mubr.bf16.vlgmr.msra.gmra.mrb[0].mxu0 %v10706_v44  ;;  %v14349_v44 = vsel %vm14252_vm5, %v10738_v61, %v1388_v11  ;;  %v1286_v61 = vld [vmem:[%s13887_s29 + $0xa8] sm:$0xe]  ;;  %v14364_v11 = vsel %vm14252_vm5, %v1390_v58, %v1391_v13  ;;  %v1411_v58 = vrot.slane %v1409_v6, 4 }
  0x6f   : > { %12239 = vmatpush3.bf16.msra.mxu0 %v17703_v34  ;;  %12210 = vmatprep.mubr.bf16.mxu0 %v10707_v45  ;;  %v14358_v45 = vsel %vm14252_vm5, %v10739_v17, %v1395_v35  ;;  %v10740_v34 = vrot.slane %v1283_v37, 9  ;;  %v14372_v17 = vsel %vm14252_vm5, %v1397_v5, %v1398_v18  ;;  %v1404_v35 = vrot.slane %v1402_v1, 4  ;;  %v13555_v18 = vld [vmem:[%s17579_s1 + $0x98] sm:$0xff]  }
  0x70   : > { %12240 = vmatprep.subr.bf16.mxu0 %v13549_v48  ;;  %17706 = vst [vmem:[#allocation4_spill] sm:$0xff] %v14372_v17  ;;  %v1416_v5 = vrot.slane %v14154_v47, 5  ;;  %v14399_v6 = vsel %vm14252_vm5, %v1411_v58, %v1412_v40  ;;  %v10743_v21 = vrot.slane %v1286_v61, 9  ;;  %v17709_v17 = vcombine.low %v13939_v46, %v13945_v51  ;;  %v13558_v58 = vld [vmem:[%s17579_s1 + $0xa0] sm:$0xff]  }
  0x71   : > { %v14376_v37 = vsel %vm14252_vm5, %v10740_v34, %v1402_v1  ;;  %v14391_v1 = vsel %vm14252_vm5, %v1404_v35, %v1405_v26  ;;  %v17708_v34 = vld [vmem:[#allocation10_spill] sm:$0xff]  ;;  %v10773_v26 = vcombine.low %v14383_v57, %v14399_v6  ;;  %v17711_v40 = vcombine.low %v13961_v2, %v13966_v9 }
  0x72   : > { %v1419_v13 = vrot.slane %v17708_v34, 5  ;;  %v1418_v35 = vrot.slane %v1416_v5, 4  ;;  %v17710_v34 = vld [vmem:[#allocation11_spill] sm:$0xff]  ;;  %v14417_v61 = vsel %vm14252_vm5, %v10743_v21, %v1423_v25  ;;  %v1425_v46 = vrot.slane %v1423_v25, 4  ;;  %v13576_v57 = vld [vmem:[%s13887_s29 + $0xc] sm:$0xff]  }
  0x73   : > { %12241 = vmatpush3.bf16.msra.mxu0 %v13549_v48  ;;  %v10742_v48 = vrot.slane %v1285_v41, 9  ;;  %v1426_v32 = vrot.slane %v17710_v34, 5  ;;  %v10744_v51 = vrot.slane %v1287_v54, 9  ;;  %v1433_v2 = vrot.slane %v14207_v8, 5  ;;  %v13567_v34 = vld [vmem:[%s17579_s1 + $0xb8] sm:$0xff]  }
  0x74   : > { %12242 = vmatprep.subr.bf16.mxu0 %v13552_v62  ;;  %v17712_v21 = vcombine.low %v13980_v22, %v13988_v38  ;;  %v17714_v22 = vcombine.low %v14027_v20, %v14033_v27  ;;  %v17715_v38 = vcombine.low %v14041_v33, %v14052_v53  ;;  %v17717_v20 = vcombine.low %v14091_v49, %v14094_v60  ;;  %v13768_v27 = vld [vmem:[%s13887_s29 + $0x4] sm:$0xf]  ;;  %v1272_v53 = vld [vmem:[%s13887_s29] sm:$0xe]  ;;  %v1273_v60 = vld [vmem:[%s13887_s29 + $0xc] sm:$0xe] }
  0x75   : > { %v14409_v41 = vsel %vm14252_vm5, %v10742_v48, %v1416_v5  ;;  %v14425_v48 = vsel %vm14252_vm5, %v1418_v35, %v1419_v13  ;;  %v14432_v25 = vsel %vm14252_vm5, %v1425_v46, %v1426_v32  ;;  %v13561_v5 = vld [vmem:[%s17579_s1 + $0xa8] sm:$0xff]   ;;  %v17713_v35 = vcombine.low %v14002_v50, %v14006_v56  ;;  %v13568_v50 = vld [vmem:[%s17579_s1 + $0xc0] sm:$0xff]  }
  0x76   : > { %12211 = vmatmul.mubr.bf16.gmra.mrb[4].mxu0 %v17709_v17  ;;  %v1430_v17 = vrot.slane %v14198_v42, 5  ;;  %v10774_v9 = vcombine.low %v14409_v41, %v14425_v48  ;;  %v10775_v13 = vcombine.low %v14417_v61, %v14432_v25  ;;  %v17716_v56 = vcombine.low %v14067_v14, %v14070_v24  ;;  %v10862_v61 = vld [vmem:[%s13887_s29 + $0x20] sm:$0x1] }
  0x77   : > { %12214 = vmatprep.mubr.bf16.mxu0 %v17711_v40  ;;  %12243 = vmatpush3.bf16.msra.mxu0 %v13552_v62  ;;  %v1325_v33 = vrot.slane %v13768_v27, 5  ;;  %v13769_v40 = vld [vmem:[%s13887_s29 + $0x8] sm:$0x1]  ;;  %v17719_v14 = vcombine.low %v14135_v7, %v14138_v10  ;;  %v10729_v24 = vrot.slane %v1272_v53, 9  ;;  %v17720_v49 = vcombine.low %v14145_v31, %v14154_v47 }
  0x78   : > { %12244 = vmatprep.subr.bf16.mxu0 %v13555_v18  ;;  %v14436_v54 = vsel %vm14252_vm5, %v10744_v51, %v1430_v17  ;;  %v1432_v62 = vrot.slane %v1430_v17, 4  ;;  %v1328_v46 = vrot.slane %v13769_v40, 5  ;;  %v17718_v51 = vcombine.low %v14109_v29, %v14115_v36  ;;  %v13771_v29 = vld [vmem:[%s13887_s29 + $0x1c] sm:$0xf] }
  0x79   : > { %v1327_v17 = vrot.slane %v1325_v33, 4  ;;  %v1339_v36 = vrot.slane %v13771_v29, 5  ;;  %v1326_v7 = vsel %vm14252_vm5, %v10729_v24, %v1325_v33  ;;  %v13573_v24 = vld [vmem:[%s17579_s1 + $0xe8] sm:$0xff]  }
  0x7a   : > { %v14445_v8 = vsel %vm14252_vm5, %v1432_v62, %v1433_v2  ;;  %v13770_v2 = vld [vmem:[%s13887_s29 + $0x10] sm:$0xf] }
  0x7b   : > { %12245 = vmatpush3.bf16.msra.mxu0 %v13555_v18  ;;  %v10776_v32 = vcombine.low %v14436_v54, %v14445_v8  ;;  %v13564_v18 = vld [vmem:[%s17579_s1 + $0xb0] sm:$0xff]   ;;  %v1332_v62 = vrot.slane %v13770_v2, 5  ;;  %v1329_v10 = vsel %vm14252_vm5, %v1327_v17, %v1328_v46  ;;  %v13571_v46 = vld [vmem:[%s17579_s1 + $0xd8] sm:$0xff]   ;;  %v2236_v54 = vshll.u32 %v10862_v61, 16  ;;  %v13581_v8 = vld [vmem:[%s17579_s1 + $0x108] sm:$0xff]  }
  0x7c   : > { %12246 = vmatprep.subr.bf16.mxu0 %v13558_v58  ;;  %v10761_v47 = vcombine.low %v1326_v7, %v1329_v10  ;;  %v10859_v2 = vld [vmem:[%s13887_s29 + $0x14] sm:$0x1]  ;;  %v13577_v7 = vld [vmem:[%s13887_s29 + $0x18] sm:$0xff]   ;;  %v14666_v61 = vld [vmem:[%s13887_s29 + $0x68] sm:$0x1] }
  0x7d   : > { %v2212_v10 = vshll.u32 %v10859_v2, 16  ;;  %v13596_v2 = vld [vmem:[%s17579_s1 + $0x130] sm:$0xff]  }
  0x7e   : > { %12215 = vmatmul.mubr.bf16.gmra.mrb[8].mxu0 %v17712_v21  ;;  %v13772_v21 = vld [vmem:[%s13887_s29 + $0x14] sm:$0x1] }
  0x7f   : > { %12218 = vmatprep.mubr.bf16.mxu0 %v17713_v35  ;;  %12247 = vmatpush3.bf16.msra.mxu0 %v13558_v58  ;;  %v17721_v58 = vcombine.low %v14170_v28, %v14176_v39  ;;  %v1335_v31 = vrot.slane %v13772_v21, 5  ;;  %v10730_v35 = vrot.slane %v1273_v60, 9  ;;  %v1341_v28 = vrot.slane %v1339_v36, 4  ;;  %v13773_v39 = vld [vmem:[%s13887_s29 + $0x20] sm:$0x1] }
  0x80   : > { %12248 = vmatprep.subr.bf16.mxu0 %v13561_v5 }
  0x83   : > { %12249 = vmatpush3.bf16.msra.mxu0 %v13561_v5  ;;  %v1274_v5 = vld [vmem:[%s13887_s29 + $0x18] sm:$0xe] }
  0x84   : > { %12250 = vmatprep.subr.bf16.mxu0 %v13564_v18 }
  0x86   : > { %12219 = vmatmul.mubr.bf16.gmra.mrb[12].mxu0 %v17714_v22  ;;  %v1342_v22 = vrot.slane %v13773_v39, 5 }
  0x87   : > { %12222 = vmatprep.mubr.bf16.mxu0 %v17715_v38  ;;  %12251 = vmatpush3.bf16.msra.mxu0 %v13564_v18  ;;  %v1334_v18 = vrot.slane %v1332_v62, 4  ;;  %v17722_v38 = vcombine.low %v14188_v23, %v14198_v42  ;;  %v13569_v23 = vld [vmem:[%s17579_s1 + $0xc8] sm:$0xff]   ;;  %v13570_v42 = vld [vmem:[%s17579_s1 + $0xd0] sm:$0xff]  }
  0x88   : > { %12252 = vmatprep.subr.bf16.mxu0 %v13567_v34  ;;  %v1343_v33 = vsel %vm14252_vm5, %v1341_v28, %v1342_v22  ;;  %v10864_v28 = vld [vmem:[%s13887_s29 + $0x28] sm:$0xf]  ;;  %v10866_v22 = vld [vmem:[%s13887_s29 + $0x30] sm:$0xf] }
  0x8b   : > { %12253 = vmatpush3.bf16.msra.mxu0 %v13567_v34  ;;  %v10731_v34 = vrot.slane %v1274_v5, 9 }
  0x8c   : > { %12286 = vmatprep.subr.bf16.mxu0 %v13568_v50 }
  0x8d   : > { %v1340_v27 = vsel %vm14252_vm5, %v10731_v34, %v1339_v36  ;;  %v10863_v36 = vld [vmem:[%s13887_s29 + $0x24] sm:$0xf] }
  0x8e   : > { %12223 = vmatmul.mubr.bf16.gmra.mrb[16].mxu0 %v17716_v56  ;;  %v1333_v56 = vsel %vm14252_vm5, %v10730_v35, %v1332_v62  ;;  %v10763_v40 = vcombine.low %v1340_v27, %v1343_v33  ;;  %v2244_v35 = vshll.u32 %v10863_v36, 16  ;;  %v14607_v33 = vrot.slane %v2236_v54, 5  ;;  %v13588_v54 = vld [vmem:[%s13887_s29 + $0x6c] sm:$0xff]  }
  0x8f   : > { %12226 = vmatprep.mubr.bf16.mxu0 %v17717_v20  ;;  %v1336_v20 = vsel %vm14252_vm5, %v1334_v18, %v1335_v31  ;;  %v13579_v31 = vld [vmem:[%s13887_s29 + $0x24] sm:$0xff]  }
  0x90   : > { %v10762_v53 = vcombine.low %v1333_v56, %v1336_v20  ;;  %v14603_v20 = vrot.slane %v2212_v10, 5  ;;  %v13586_v10 = vld [vmem:[%s13887_s29 + $0x60] sm:$0xff]  }
  0x96   : > { %12227 = vmatmul.mubr.bf16.gmra.mrb[20].mxu0 %v17718_v51  ;;  %v17723_v51 = vcombine.low %v14261_v19, %v14272_v4  ;;  %v17725_v19 = vcombine.low %v14292_v43, %v14305_v15  ;;  %v17726_v4 = vcombine.low %v14299_v0, %v14316_v16  ;;  %v17727_v43 = vcombine.low %v14320_v30, %v14332_v59  ;;  %v13578_v15 = vld [vmem:[%s17579_s1 + $0x100] sm:$0xff]  }
  0x97   : > { %12230 = vmatprep.mubr.bf16.mxu0 %v17719_v14  ;;  %v17724_v14 = vcombine.low %v14279_v12, %v14288_v3  ;;  %v13574_v12 = vld [vmem:[%s17579_s1 + $0xf0] sm:$0xff]   ;;  %v13575_v3 = vld [vmem:[%s17579_s1 + $0xf8] sm:$0xff]   ;;  %v17728_v0 = vcombine.low %v14327_v63, %v14340_v52  ;;  %v17729_v16 = vcombine.low %v14349_v44, %v14364_v11  ;;  %v17730_v30 = vld [vmem:[#allocation4_spill] sm:$0xff]  ;;  %v17732_v59 = vcombine.low %v14376_v37, %v14391_v1 }
  0x98   : > { %v17731_v63 = vcombine.low %v14358_v45, %v17730_v30  ;;  %v10857_v52 = vld [vmem:[%s13887_s29 + $0xc] sm:$0xf]  ;;  %v10858_v44 = vld [vmem:[%s13887_s29 + $0x10] sm:$0xf]  ;;  %v10860_v45 = vld [vmem:[%s13887_s29 + $0x18] sm:$0xf] }
  0x99   : > { %v2193_v17 = vshrl.u32 %v10857_v52, 16  ;;  %v10861_v11 = vld [vmem:[%s13887_s29 + $0x1c] sm:$0xf]  ;;  %v2202_v6 = vshll.u32 %v10858_v44, 16  ;;  %v2217_v60 = vshrl.u32 %v10860_v45, 16 }
  0x9a   : > { %v2226_v41 = vshll.u32 %v10861_v11, 16  ;;  %v2230_v48 = vshrl.u32 %v10861_v11, 16 }
  0x9b   : > { %v2195_v37 = vrot.slane %v2193_v17, 4  ;;  %v14582_v25 = vrot.slane %v2202_v6, 5  ;;  %v2219_v62 = vrot.slane %v2217_v60, 4  ;;  %v13583_v17 = vld [vmem:[%s13887_s29 + $0x48] sm:$0xff]   ;;  %v14651_v60 = vld [vmem:[%s13887_s29 + $0x38] sm:$0x1] }
  0x9c   : > { %v14586_v5 = vrot.slane %v2226_v41, 5  ;;  %v2232_v21 = vrot.slane %v2230_v48, 4 }
  0x9e   : > { %12231 = vmatmul.mubr.bf16.gmra.mrb[24].mxu0 %v17720_v49  ;;  %v2196_v49 = vshll.u32 %v10857_v52, 16  ;;  %v2233_v39 = vor.u32 %v2232_v21, %v14586_v5 }
  0x9f   : > { %12234 = vmatprep.mubr.bf16.mxu0 %v17721_v58  ;;  %v2220_v58 = vshll.u32 %v10860_v45, 16  ;;  %v13585_v45 = vld [vmem:[%s13887_s29 + $0x54] sm:$0xff]  }
  0xa0   : > { %v2198_v1 = vrot.slane %v2196_v49, 5 }
  0xa1   : > { %v2222_v29 = vrot.slane %v2220_v58, 5 }
  0xa3   : > { %v2223_v34 = vor.u32 %v2222_v29, %v2219_v62  ;;  %v10952_v29 = vld [vmem:[%s13887_s29 + $0x60] sm:$0xe] }
  0xa5   : > { %v14605_v27 = vrot.slane %v2223_v34, 4 }
  0xa6   : > { %12235 = vmatmul.mubr.bf16.gmra.mrb[28].mxu0 %v17722_v38  ;;  %v13584_v38 = vld [vmem:[%s17579_s1 + $0x110] sm:$0xff]  }
  0xa7   : > { %12254 = vmatprep.mubr.bf16.mxu0 %v10761_v47 }
  0xae   : > { %12255 = vmatmul.mubr.bf16.vlgmr.msra.gmra.mrb[0].mxu0 %v10762_v53  ;;  %v13580_v53 = vld [vmem:[%s13887_s29 + $0x30] sm:$0xff]  }
  0xaf   : > { %12287 = vmatpush3.bf16.msra.mxu0 %v13568_v50  ;;  %12258 = vmatprep.mubr.bf16.mxu0 %v10763_v40  ;;  %v13572_v50 = vld [vmem:[%s17579_s1 + $0xe0] sm:$0xff]   ;;  %v14610_v40 = vrot.slane %v2233_v39, 4 }
  0xb0   : > { %12288 = vmatprep.subr.bf16.mxu0 %v13569_v23 }
  0xb3   : > { %12289 = vmatpush3.bf16.msra.mxu0 %v13569_v23 }
  0xb4   : > { %12290 = vmatprep.subr.bf16.mxu0 %v13570_v42 }
  0xb6   : > { %12259 = vmatmul.mubr.bf16.gmra.mrb[4].mxu0 %v17723_v51  ;;  %v13582_v51 = vld [vmem:[%s13887_s29 + $0x3c] sm:$0xff]  }
  0xb7   : > { %12262 = vmatprep.mubr.bf16.mxu0 %v17724_v14  ;;  %12291 = vmatpush3.bf16.msra.mxu0 %v13570_v42  ;;  %v2246_v42 = vrot.slane %v2244_v35, 5  ;;  %v2254_v14 = vshrl.u32 %v10864_v28, 16  ;;  %v13599_v35 = vld [vmem:[%s17579_s1 + $0x138] sm:$0xff]  }
  0xb8   : > { %12292 = vmatprep.subr.bf16.mxu0 %v13571_v46 }
  0xbb   : > { %12293 = vmatpush3.bf16.msra.mxu0 %v13571_v46  ;;  %v2250_v46 = vshll.u32 %v10864_v28, 16 }
  0xbc   : > { %12294 = vmatprep.subr.bf16.mxu0 %v13572_v50 }
  0xbe   : > { %12263 = vmatmul.mubr.bf16.gmra.mrb[8].mxu0 %v17725_v19  ;;  %v14617_v19 = vld [vmem:[%s13887_s29 + $0x34] sm:$0xf] }
  0xbf   : > { %12266 = vmatprep.mubr.bf16.mxu0 %v17726_v4  ;;  %12295 = vmatpush3.bf16.msra.mxu0 %v13572_v50  ;;  %v2265_v50 = vshrl.u32 %v10866_v22, 16  ;;  %v10865_v4 = vld [vmem:[%s13887_s29 + $0x2c] sm:$0x1]  ;;  %v2274_v30 = vshll.u32 %v14617_v19, 16  ;;  %v2278_v62 = vshrl.u32 %v14617_v19, 16 }
  0xc0   : > { %12296 = vmatprep.subr.bf16.mxu0 %v13573_v24  ;;  %v2260_v49 = vshll.u32 %v10865_v4, 16 }
  0xc1   : > { %v14637_v11 = vrot.slane %v2265_v50, 4  ;;  %v14660_v48 = vrot.slane %v2274_v30, 5 }
  0xc2   : > { %v14675_v21 = vrot.slane %v2260_v49, 5  ;;  %v14738_v49 = vld [vmem:[%s13887_s29 + $0x94] sm:$0xf] }
  0xc3   : > { %12297 = vmatpush3.bf16.msra.mxu0 %v13573_v24  ;;  %v13587_v24 = vld [vmem:[%s17579_s1 + $0x118] sm:$0xff]  }
  0xc4   : > { %12298 = vmatprep.subr.bf16.mxu0 %v13574_v12 }
  0xc6   : > { %12267 = vmatmul.mubr.bf16.gmra.mrb[12].mxu0 %v17727_v43  ;;  %v2268_v43 = vshll.u32 %v10866_v22, 16  ;;  %v14696_v22 = vld [vmem:[%s17579_s1 + $0x140] sm:$0xff]  }
  0xc7   : > { %12270 = vmatprep.mubr.bf16.mxu0 %v17728_v0  ;;  %12299 = vmatpush3.bf16.msra.mxu0 %v13574_v12  ;;  %v13590_v12 = vld [vmem:[%s17579_s1 + $0x120] sm:$0xff]   ;;  %v14626_v0 = vld [vmem:[%s13887_s29 + $0x4c] sm:$0xf] }
  0xc8   : > { %12300 = vmatprep.subr.bf16.mxu0 %v13575_v3  ;;  %v14658_v41 = vrot.slane %v2268_v43, 5 }
  0xcb   : > { %12301 = vmatpush3.bf16.msra.mxu0 %v13575_v3  ;;  %v14623_v3 = vrot.slane %v2250_v46, 5  ;;  %v14709_v46 = vrot.slane %v2278_v62, 4 }
  0xcc   : > { %12334 = vmatprep.subr.bf16.mxu0 %v13578_v15 }
  0xce   : > { %12271 = vmatmul.mubr.bf16.gmra.mrb[16].mxu0 %v17729_v16  ;;  %v2256_v16 = vrot.slane %v2254_v14, 4 }
  0xcf   : > { %12274 = vmatprep.mubr.bf16.mxu0 %v17731_v63  ;;  %v10950_v63 = vld [vmem:[%s13887_s29 + $0x48] sm:$0xe] }
  0xd0   : > { %v2257_v34 = vor.u32 %v2256_v16, %v14623_v3 }
  0xd6   : > { %12275 = vmatmul.mubr.bf16.gmra.mrb[20].mxu0 %v17732_v59  ;;  %v2999_v59 = vrot.slane %v14626_v0, 5 }
  0xd7   : > { %12278 = vmatprep.mubr.bf16.mxu0 %v10773_v26  ;;  %v2206_v26 = vshrl.u32 %v10858_v44, 16  ;;  %v10966_v44 = vrot.slane %v10950_v63, 9  ;;  %v14724_v63 = vld [vmem:[%s13887_s29 + $0x88] sm:$0xf] }
  0xde   : > { %12279 = vmatmul.mubr.bf16.gmra.mrb[24].mxu0 %v10774_v9  ;;  %v2199_v9 = vor.u32 %v2198_v1, %v2195_v37  ;;  %v3001_v37 = vrot.slane %v2999_v59, 4  ;;  %v13593_v1 = vld [vmem:[%s17579_s1 + $0x128] sm:$0xff]  }
  0xdf   : > { %12282 = vmatprep.mubr.bf16.mxu0 %v10775_v13  ;;  %v2208_v13 = vrot.slane %v2206_v26, 4 }
  0xe0   : > { %v14589_v47 = vrot.slane %v2199_v9, 4  ;;  %v14663_v9 = vld [vmem:[%s13887_s29 + $0x64] sm:$0xf] }
  0xe1   : > { %v2209_v18 = vor.u32 %v2208_v13, %v14582_v25 }
  0xe2   : > { %v2205_v58 = vsel %vm13919_vm2, %v14589_v47, %v14582_v25  ;;  %v10875_v25 = vld [vmem:[%s13887_s29 + $0x54] sm:$0xf] }
  0xe3   : > { %v14601_v56 = vrot.slane %v2209_v18, 4 }
  0xe6   : > { %12283 = vmatmul.mubr.bf16.gmra.mrb[28].mxu0 %v10776_v32  ;;  %v2241_v32 = vshrl.u32 %v10863_v36, 16  ;;  %v3013_v36 = vrot.slane %v14663_v9, 5 }
  0xe7   : > { %12302 = vmatprep.mubr.bf16.mxu0 %v13576_v57  ;;  %v14644_v57 = vsel %vm14252_vm5, %v10966_v44, %v2999_v59  ;;  %v14727_v59 = vld [vmem:[%s13887_s29 + $0x8c] sm:$0x1] }
  0xe8   : > { %v2243_v23 = vrot.slane %v2241_v32, 4  ;;  %v3015_v32 = vrot.slane %v3013_v36, 4 }
  0xea   : > { %v2247_v6 = vor.u32 %v2246_v42, %v2243_v23  ;;  %v14705_v23 = vld [vmem:[%s13887_s29 + $0x80] sm:$0x1]  ;;  %v14707_v42 = vrot.slane %v2257_v34, 4 }
  0xeb   : > { %v3030_v50 = vrot.slane %v14705_v23, 5 }
  0xec   : > { %v14668_v13 = vrot.slane %v2247_v6, 4  ;;  %v3037_v6 = vrot.slane %v14727_v59, 5 }
  0xee   : > { %12303 = vmatmul.mubr.bf16.vlgmr.msra.gmra.mrb[0].mxu0 %v13577_v7  ;;  %v3016_v7 = vrot.slane %v14666_v61, 5 }
  0xef   : > { %12335 = vmatpush3.bf16.msra.mxu0 %v13578_v15  ;;  %12306 = vmatprep.mubr.bf16.mxu0 %v13579_v31  ;;  %v14629_v15 = vld [vmem:[%s13887_s29 + $0x50] sm:$0x1]  ;;  %v10968_v31 = vrot.slane %v10952_v29, 9  ;;  %v10956_v29 = vld [vmem:[%s13887_s29 + $0x90] sm:$0xe] }
  0xf0   : > { %12336 = vmatprep.subr.bf16.mxu0 %v13581_v8  ;;  %v3002_v52 = vrot.slane %v14629_v15, 5  ;;  %v14689_v28 = vsel %vm14252_vm5, %v3015_v32, %v3016_v7 }
  0xf1   : > { %v14684_v18 = vsel %vm14252_vm5, %v10968_v31, %v3013_v36  ;;  %v3041_v36 = vrot.slane %v14738_v49, 5 }
  0xf2   : > { %v14648_v26 = vsel %vm14252_vm5, %v3001_v37, %v3002_v52  ;;  %v10955_v37 = vld [vmem:[%s13887_s29 + $0x84] sm:$0xe] }
  0xf3   : > { %12337 = vmatpush3.bf16.msra.mxu0 %v13581_v8  ;;  %v2284_v8 = vshll.u32 %v14651_v60, 16  ;;  %v10971_v62 = vrot.slane %v10955_v37, 9  ;;  %v3043_v34 = vrot.slane %v3041_v36, 4  ;;  %v14785_v37 = vld [vmem:[%s13887_s29 + $0xb0] sm:$0x1] }
  0xf4   : > { %12338 = vmatprep.subr.bf16.mxu0 %v13584_v38 }
  0xf5   : > { %v14715_v19 = vrot.slane %v2284_v8, 5  ;;  %v13594_v8 = vld [vmem:[%s13887_s29 + $0x9c] sm:$0xff]  }
  0xf6   : > { %12307 = vmatmul.mubr.bf16.gmra.mrb[4].mxu0 %v13580_v53  ;;  %v14702_v53 = vld [vmem:[%s13887_s29 + $0x7c] sm:$0xf] }
  0xf7   : > { %12310 = vmatprep.mubr.bf16.mxu0 %v13582_v51  ;;  %12339 = vmatpush3.bf16.msra.mxu0 %v13584_v38  ;;  %v14699_v38 = vld [vmem:[%s13887_s29 + $0x3c] sm:$0xf]  ;;  %v10954_v51 = vld [vmem:[%s13887_s29 + $0x78] sm:$0xe]  ;;  %v3027_v14 = vrot.slane %v14702_v53, 5 }
  0xf8   : > { %12340 = vmatprep.subr.bf16.mxu0 %v13587_v24  ;;  %v10970_v4 = vrot.slane %v10954_v51, 9  ;;  %v2289_v43 = vshrl.u32 %v14699_v38, 16 }
  0xf9   : > { %v3029_v16 = vrot.slane %v3027_v14, 4 }
  0xfa   : > { %v14721_v30 = vsel %vm14252_vm5, %v10970_v4, %v3027_v14  ;;  %v14768_v14 = vld [vmem:[%s13887_s29 + $0xa0] sm:$0xf]  ;;  %v14796_v44 = vrot.slane %v2289_v43, 4 }
  0xfb   : > { %12341 = vmatpush3.bf16.msra.mxu0 %v13587_v24  ;;  %v13589_v24 = vld [vmem:[%s13887_s29 + $0x78] sm:$0xff]   ;;  %17733 = vst [vmem:[#allocation5_spill] sm:$0xff] %v14721_v30  ;;  %v14731_v52 = vsel %vm14252_vm5, %v3029_v16, %v3030_v50  ;;  %v14771_v50 = vld [vmem:[%s13887_s29 + $0xa4] sm:$0x1] }
  0xfc   : > { %12342 = vmatprep.subr.bf16.mxu0 %v13590_v12  ;;  %17734 = vst [vmem:[#allocation9_spill] sm:$0xff] %v14731_v52 }
  0xfe   : > { %12311 = vmatmul.mubr.bf16.gmra.mrb[8].mxu0 %v13583_v17  ;;  %v14735_v17 = vld [vmem:[%s13887_s29 + $0x40] sm:$0xf] }
  0xff   : > { %12314 = vmatprep.mubr.bf16.mxu0 %v13585_v45  ;;  %12343 = vmatpush3.bf16.msra.mxu0 %v13590_v12  ;;  %v13591_v12 = vld [vmem:[%s13887_s29 + $0x84] sm:$0xff]   ;;  %v14743_v45 = vld [vmem:[%s13887_s29 + $0x98] sm:$0x1]  ;;  %v2298_v32 = vshll.u32 %v14735_v17, 16 }
 0x100   : > { %12344 = vmatprep.subr.bf16.mxu0 %v13593_v1  ;;  %v3044_v7 = vrot.slane %v14743_v45, 5 }
 0x102   : > { %v14777_v4 = vsel %vm14252_vm5, %v3043_v34, %v3044_v7  ;;  %v10958_v7 = vld [vmem:[%s13887_s29 + $0xa8] sm:$0xe] }
 0x103   : > { %12345 = vmatpush3.bf16.msra.mxu0 %v13593_v1  ;;  %v3034_v1 = vrot.slane %v14724_v63, 5  ;;  %17738 = vst [vmem:[#allocation10_spill] sm:$0xff] %v14777_v4  ;;  %v13595_v34 = vld [vmem:[%s13887_s29 + $0xa8] sm:$0xff]   ;;  %v10974_v16 = vrot.slane %v10958_v7, 9  ;;  %v2215_v4 = vsel %vm13919_vm2, %v14601_v56, %v14603_v20  ;;  %v14828_v20 = vrot.slane %v2298_v32, 5 }
 0x104   : > { %12346 = vmatprep.subr.bf16.mxu0 %v13596_v2  ;;  %v10872_v7 = vld [vmem:[%s13887_s29 + $0x48] sm:$0xf]  ;;  %v14843_v32 = vld [vmem:[%s13887_s29 + $0xb8] sm:$0xf] }
 0x105   : > { %v3036_v31 = vrot.slane %v3034_v1, 4 }
 0x106   : > { %12315 = vmatmul.mubr.bf16.gmra.mrb[12].mxu0 %v13586_v10  ;;  %v13592_v10 = vld [vmem:[%s13887_s29 + $0x90] sm:$0xff]  }
 0x107   : > { %12318 = vmatprep.mubr.bf16.mxu0 %v13588_v54  ;;  %12347 = vmatpush3.bf16.msra.mxu0 %v13596_v2  ;;  %v2292_v2 = vshll.u32 %v14699_v38, 16  ;;  %v10972_v54 = vrot.slane %v10956_v29, 9  ;;  %v14761_v38 = vsel %vm14252_vm5, %v3036_v31, %v3037_v6  ;;  %v3048_v6 = vrot.slane %v14768_v14, 5 }
 0x108   : > { %12348 = vmatprep.subr.bf16.mxu0 %v13599_v35  ;;  %17736 = vst [vmem:[#allocation7_spill] sm:$0xff] %v14761_v38  ;;  %v2302_v29 = vshrl.u32 %v14735_v17, 16  ;;  %v13598_v38 = vld [vmem:[%s13887_s29 + $0xc0] sm:$0xff]  }
 0x109   : > { %v14765_v51 = vsel %vm14252_vm5, %v10972_v54, %v3041_v36  ;;  %v3058_v54 = vrot.slane %v14785_v37, 5  ;;  %v2294_v56 = vrot.slane %v2292_v2, 5  ;;  %v2271_v2 = vor.u32 %v14658_v41, %v14637_v11 }
 0x10a   : > { %17737 = vst [vmem:[#allocation8_spill] sm:$0xff] %v14765_v51  ;;  %v3062_v11 = vrot.slane %v14843_v32, 5  ;;  %v2313_v41 = vshrl.u32 %v10872_v7, 16  ;;  %v14871_v51 = vld [vmem:[%s13887_s29 + $0x58] sm:$0xf] }
 0x10b   : > { %12349 = vmatpush3.bf16.msra.mxu0 %v13599_v35  ;;  %v14757_v35 = vsel %vm14252_vm5, %v10971_v62, %v3034_v1  ;;  %v10957_v1 = vld [vmem:[%s13887_s29 + $0x9c] sm:$0xe]  ;;  %v3051_v62 = vrot.slane %v14771_v50, 5 }
 0x10c   : > { %12382 = vmatprep.subr.bf16.mxu0 %v14696_v22  ;;  %17735 = vst [vmem:[#allocation6_spill] sm:$0xff] %v14757_v35  ;;  %v10973_v36 = vrot.slane %v10957_v1, 9  ;;  %v2322_v35 = vshll.u32 %v14626_v0, 16 }
 0x10e   : > { %12319 = vmatmul.mubr.bf16.gmra.mrb[16].mxu0 %v13589_v24  ;;  %v13597_v24 = vld [vmem:[%s13887_s29 + $0xb4] sm:$0xff]   ;;  %v14800_v39 = vsel %vm14252_vm5, %v10973_v36, %v3048_v6  ;;  %v14820_v36 = vld [vmem:[%s13887_s29 + $0x44] sm:$0x1] }
 0x10f   : > { %12322 = vmatprep.mubr.bf16.mxu0 %v13591_v12  ;;  %v14780_v12 = vld [vmem:[%s13887_s29 + $0xac] sm:$0xf]  ;;  %17739 = vst [vmem:[#allocation11_spill] sm:$0xff] %v14800_v39  ;;  %v2316_v39 = vshll.u32 %v10872_v7, 16 }
 0x110   : > { %v3055_v31 = vrot.slane %v14780_v12, 5 }
 0x116   : > { %12323 = vmatmul.mubr.bf16.gmra.mrb[20].mxu0 %v13592_v10  ;;  %v3050_v10 = vrot.slane %v3048_v6, 4  ;;  %v14817_v6 = vsel %vm14252_vm5, %v10974_v16, %v3055_v31  ;;  %v10921_v16 = vcombine.low %v2205_v58, %v2215_v4 }
 0x117   : > { %12326 = vmatprep.mubr.bf16.mxu0 %v13594_v8  ;;  %v3057_v8 = vrot.slane %v3055_v31, 4  ;;  %17742 = vst [vmem:[#allocation3_spill] sm:$0xff] %v14817_v6  ;;  %v2229_v31 = vsel %vm13919_vm2, %v14605_v27, %v14586_v5  ;;  %v2253_v5 = vsel %vm13919_vm2, %v14668_v13, %v14623_v3  ;;  %v2281_v27 = vor.u32 %v14709_v46, %v14660_v48 }
 0x118   : > { %v14813_v43 = vsel %vm14252_vm5, %v3050_v10, %v3051_v62  ;;  %v2304_v62 = vrot.slane %v2302_v29, 4  ;;  %v14846_v29 = vld [vmem:[%s13887_s29 + $0xbc] sm:$0x1]  ;;  %v2295_v13 = vor.u32 %v2294_v56, %v14796_v44  ;;  %v2308_v46 = vshll.u32 %v14820_v36, 16 }
 0x119   : > { %17741 = vst [vmem:[#allocation4_spill] sm:$0xff] %v14813_v43  ;;  %v14826_v47 = vsel %vm14252_vm5, %v3057_v8, %v3058_v54  ;;  %v2239_v54 = vsel %vm13919_vm2, %v14610_v40, %v14607_v33  ;;  %v14849_v8 = vld [vmem:[%s13887_s29 + $0xc4] sm:$0xf]  ;;  %v14858_v33 = vld [vmem:[%s13887_s29 + $0xc8] sm:$0x1]  ;;  %v3065_v58 = vrot.slane %v14846_v29, 5 }
 0x11a   : > { %17743 = vst [vmem:[#allocation12_spill] sm:$0xff] %v14826_v47  ;;  %v10959_v40 = vld [vmem:[%s13887_s29 + $0xb4] sm:$0xe]  ;;  %v3069_v10 = vrot.slane %v14849_v8, 5  ;;  %v3072_v3 = vrot.slane %v14858_v33, 5  ;;  %v3064_v47 = vrot.slane %v3062_v11, 4  ;;  %v2305_v43 = vor.u32 %v2304_v62, %v14828_v20 }
 0x11b   : > { %v10975_v4 = vrot.slane %v10959_v40, 9  ;;  %v2326_v44 = vshrl.u32 %v14626_v0, 16  ;;  %v2337_v62 = vshrl.u32 %v10875_v25, 16  ;;  %v2263_v0 = vsel %vm13919_vm2, %v14707_v42, %v14675_v21 }
 0x11c   : > { %v3071_v40 = vrot.slane %v3069_v10, 4  ;;  %v14882_v56 = vsel %vm14252_vm5, %v3064_v47, %v3065_v58  ;;  %v14898_v47 = vrot.slane %v2271_v2, 4  ;;  %v2346_v58 = vshll.u32 %v14871_v51, 16 }
 0x11d   : > { %17745 = vst [vmem:[#allocation14_spill] sm:$0xff] %v14882_v56  ;;  %v2296_v56 = vrot.slane %v2295_v13, 4  ;;  %v2318_v21 = vrot.slane %v2316_v39, 5  ;;  %v14909_v42 = vrot.slane %v2322_v35, 5  ;;  %v2328_v2 = vrot.slane %v2326_v44, 4 }
 0x11e   : > { %12327 = vmatmul.mubr.bf16.gmra.mrb[24].mxu0 %v13595_v34  ;;  %v10960_v34 = vld [vmem:[%s13887_s29 + $0xc0] sm:$0xe]  ;;  %v14915_v52 = vrot.slane %v2346_v58, 5  ;;  %v2370_v35 = vshll.u32 %v14663_v9, 16 }
 0x11f   : > { %12330 = vmatprep.mubr.bf16.mxu0 %v13597_v24  ;;  %v10976_v6 = vrot.slane %v10960_v34, 9  ;;  %v14875_v24 = vsel %vm14252_vm5, %v10975_v4, %v3062_v11  ;;  %v2340_v34 = vshll.u32 %v10875_v25, 16  ;;  %v14892_v4 = vsel %vm14252_vm5, %v3071_v40, %v3072_v3  ;;  %v10878_v40 = vld [vmem:[%s13887_s29 + $0x60] sm:$0xf] }
 0x120   : > { %17744 = vst [vmem:[#allocation13_spill] sm:$0xff] %v14875_v24  ;;  %17747 = vst [vmem:[#allocation16_spill] sm:$0xff] %v14892_v4  ;;  %v14903_v25 = vrot.slane %v2281_v27, 4  ;;  %v2315_v11 = vrot.slane %v2313_v41, 4  ;;  %v2350_v3 = vshrl.u32 %v14871_v51, 16  ;;  %v2306_v24 = vrot.slane %v2305_v43, 4 }
 0x121   : > { %v14886_v7 = vsel %vm14252_vm5, %v10976_v6, %v3069_v10  ;;  %v14905_v10 = vrot.slane %v2308_v46, 5  ;;  %v2332_v6 = vshll.u32 %v14629_v15, 16  ;;  %v2339_v27 = vrot.slane %v2337_v62, 4  ;;  %v14913_v41 = vld [vmem:[%s13887_s29 + $0x5c] sm:$0x1] }
 0x122   : > { %17746 = vst [vmem:[#allocation15_spill] sm:$0xff] %v14886_v7  ;;  %v2342_v4 = vrot.slane %v2340_v34, 5  ;;  %v10922_v46 = vcombine.low %v2229_v31, %v2239_v54  ;;  %v10923_v7 = vcombine.low %v2253_v5, %v2263_v0  ;;  %v2361_v30 = vshrl.u32 %v10878_v40, 16  ;;  %v14931_v62 = vld [vmem:[%s13887_s29 + $0x70] sm:$0xf] }
 0x123   : > { %v2352_v13 = vrot.slane %v2350_v3, 4  ;;  %v2364_v39 = vshll.u32 %v10878_v40, 16  ;;  %v2277_v15 = vsel %vm13919_vm2, %v14898_v47, %v14660_v48  ;;  %v2287_v43 = vsel %vm13919_vm2, %v14903_v25, %v14715_v19  ;;  %v13601_v48 = vld [vmem:[%s17579_s1 + $0x148] sm:$0xff]   ;;  %v10884_v40 = vld [vmem:[%s13887_s29 + $0x78] sm:$0xf] }
 0x124   : > { %v2319_v31 = vor.u32 %v2318_v21, %v2315_v11  ;;  %v2329_v54 = vor.u32 %v2328_v2, %v14909_v42  ;;  %v2343_v5 = vor.u32 %v2342_v4, %v2339_v27  ;;  %v2356_v44 = vshll.u32 %v14913_v41, 16 }
 0x125   : > { %v2301_v0 = vsel %vm13919_vm2, %v2296_v56, %v14828_v20  ;;  %v2311_v19 = vsel %vm13919_vm2, %v2306_v24, %v14905_v10  ;;  %v14942_v11 = vrot.slane %v2332_v6, 5  ;;  %v2363_v4 = vrot.slane %v2361_v30, 4  ;;  %v13602_v10 = vld [vmem:[%s17579_s1 + $0x150] sm:$0xff]  }
 0x126   : > { %12331 = vmatmul.mubr.bf16.gmra.mrb[28].mxu0 %v13598_v38  ;;  %v10881_v38 = vld [vmem:[%s13887_s29 + $0x6c] sm:$0xf]  ;;  %v2353_v47 = vor.u32 %v2352_v13, %v14915_v52  ;;  %v2366_v58 = vrot.slane %v2364_v39, 5  ;;  %v14945_v25 = vrot.slane %v2370_v35, 5  ;;  %v2320_v21 = vrot.slane %v2319_v31, 4 }
 0x127   : > { %12350 = vmatprep.mubr.bf16.mxu0 %v10921_v16  ;;  %v2374_v16 = vshrl.u32 %v14663_v9, 16  ;;  %v2385_v9 = vshrl.u32 %v10881_v38, 16  ;;  %v2388_v34 = vshll.u32 %v10881_v38, 16  ;;  %v2330_v2 = vrot.slane %v2329_v54, 4 }
 0x128   : > { %v2394_v27 = vshll.u32 %v14931_v62, 16  ;;  %v2398_v20 = vshrl.u32 %v14931_v62, 16  ;;  %v2344_v24 = vrot.slane %v2343_v5, 4  ;;  %v2358_v56 = vrot.slane %v2356_v44, 5 }
 0x129   : > { %v2376_v3 = vrot.slane %v2374_v16, 4  ;;  %v2387_v30 = vrot.slane %v2385_v9, 4  ;;  %v2390_v6 = vrot.slane %v2388_v34, 5  ;;  %v2409_v38 = vshrl.u32 %v10884_v40, 16 }
 0x12a   : > { %v2418_v13 = vshll.u32 %v14702_v53, 16  ;;  %v2422_v39 = vshrl.u32 %v14702_v53, 16  ;;  %v2354_v35 = vrot.slane %v2353_v47, 4  ;;  %v2380_v16 = vshll.u32 %v14666_v61, 16 }
 0x12b   : > { %v10924_v31 = vcombine.low %v2277_v15, %v2287_v43  ;;  %v10925_v54 = vcombine.low %v2301_v0, %v2311_v19  ;;  %v14958_v5 = vrot.slane %v2394_v27, 5  ;;  %v2400_v44 = vrot.slane %v2398_v20, 4  ;;  %v10887_v15 = vld [vmem:[%s13887_s29 + $0x84] sm:$0xf]  ;;  %v13603_v43 = vld [vmem:[%s17579_s1 + $0x158] sm:$0xff]  }
 0x12c   : > { %v2325_v9 = vsel %vm13919_vm2, %v2320_v21, %v14909_v42  ;;  %v2335_v53 = vsel %vm13919_vm2, %v2330_v2, %v14942_v11  ;;  %v2349_v34 = vsel %vm13919_vm2, %v2344_v24, %v14915_v52  ;;  %v2391_v61 = vor.u32 %v2390_v6, %v2387_v30 }
 0x12d   : > { %v14976_v42 = vrot.slane %v2418_v13, 5  ;;  %v2424_v19 = vrot.slane %v2422_v39, 4  ;;  %v2359_v11 = vsel %vm13919_vm2, %v2354_v35, %v2358_v56  ;;  %v2382_v52 = vrot.slane %v2380_v16, 5 }
 0x12e   : > { %12351 = vmatmul.mubr.bf16.vlgmr.msra.gmra.mrb[0].mxu0 %v10922_v46  ;;  %v2412_v46 = vshll.u32 %v10884_v40, 16  ;;  %v2433_v21 = vshrl.u32 %v10887_v15, 16  ;;  %v2436_v2 = vshll.u32 %v10887_v15, 16  ;;  %v2442_v27 = vshll.u32 %v14724_v63, 16  ;;  %v13605_v15 = vld [vmem:[%s17579_s1 + $0x168] sm:$0xff]  }
 0x12f   : > { %12383 = vmatpush3.bf16.msra.mxu0 %v14696_v22  ;;  %12354 = vmatprep.mubr.bf16.mxu0 %v10923_v7  ;;  %v2367_v22 = vor.u32 %v2366_v58, %v2363_v4  ;;  %v2377_v7 = vor.u32 %v2376_v3, %v14945_v25  ;;  %v14970_v4 = vld [vmem:[%s13887_s29 + $0x74] sm:$0x1]  ;;  %v2401_v3 = vor.u32 %v2400_v44, %v14958_v5  ;;  %v2446_v20 = vshrl.u32 %v14724_v63, 16 }
 0x130   : > { %12384 = vmatprep.subr.bf16.mxu0 %v13601_v48  ;;  %v2414_v0 = vrot.slane %v2412_v46, 5  ;;  %v2404_v40 = vshll.u32 %v14970_v4, 16  ;;  %v2392_v24 = vrot.slane %v2391_v61, 4  ;;  %v2425_v30 = vor.u32 %v2424_v19, %v14976_v42  ;;  %v10890_v46 = vld [vmem:[%s13887_s29 + $0x90] sm:$0xf] }
 0x131   : > { %v2368_v47 = vrot.slane %v2367_v22, 4  ;;  %v2378_v58 = vrot.slane %v2377_v7, 4  ;;  %v2428_v6 = vshll.u32 %v14705_v23, 16  ;;  %v10926_v13 = vcombine.low %v2325_v9, %v2335_v53 }
 0x132   : > { %v10927_v39 = vcombine.low %v2349_v34, %v2359_v11  ;;  %v2402_v35 = vrot.slane %v2401_v3, 4  ;;  %v2406_v22 = vrot.slane %v2404_v40, 5  ;;  %v2435_v7 = vrot.slane %v2433_v21, 4 }
 0x133   : > { %12385 = vmatpush3.bf16.msra.mxu0 %v13601_v48  ;;  %v2411_v48 = vrot.slane %v2409_v38, 4  ;;  %v13604_v38 = vld [vmem:[%s17579_s1 + $0x160] sm:$0xff]   ;;  %v2383_v63 = vsel %vm13919_vm2, %v2378_v58, %v2382_v52  ;;  %v2438_v16 = vrot.slane %v2436_v2, 5  ;;  %v14996_v23 = vrot.slane %v2442_v27, 5 }
 0x134   : > { %12386 = vmatprep.subr.bf16.mxu0 %v13602_v10  ;;  %v2457_v44 = vshrl.u32 %v10890_v46, 16  ;;  %v2460_v61 = vshll.u32 %v10890_v46, 16  ;;  %v2397_v9 = vsel %vm13919_vm2, %v2392_v24, %v14958_v5  ;;  %v2430_v34 = vrot.slane %v2428_v6, 5 }
 0x135   : > { %v2415_v56 = vor.u32 %v2414_v0, %v2411_v48  ;;  %v2466_v48 = vshll.u32 %v14738_v49, 16  ;;  %v2407_v11 = vsel %vm13919_vm2, %v2402_v35, %v2406_v22  ;;  %v2452_v5 = vshll.u32 %v14727_v59, 16  ;;  %v13607_v22 = vld [vmem:[%s17579_s1 + $0x178] sm:$0xff]  }
 0x136   : > { %12355 = vmatmul.mubr.bf16.gmra.mrb[4].mxu0 %v10924_v31  ;;  %v10893_v31 = vld [vmem:[%s13887_s29 + $0x9c] sm:$0xf]  ;;  %v2494_v58 = vshrl.u32 %v14768_v14, 16  ;;  %v2439_v52 = vor.u32 %v2438_v16, %v2435_v7  ;;  %v2459_v40 = vrot.slane %v2457_v44, 4  ;;  %v10899_v44 = vld [vmem:[%s13887_s29 + $0xb4] sm:$0xf] }
 0x137   : > { %12358 = vmatprep.mubr.bf16.mxu0 %v10925_v54  ;;  %12387 = vmatpush3.bf16.msra.mxu0 %v13602_v10  ;;  %v2373_v10 = vsel %vm13919_vm2, %v2368_v47, %v14945_v25  ;;  %v2448_v54 = vrot.slane %v2446_v20, 4  ;;  %v2416_v53 = vrot.slane %v2415_v56, 4  ;;  %v2426_v25 = vrot.slane %v2425_v30, 4 }
 0x138   : > { %12388 = vmatprep.subr.bf16.mxu0 %v13603_v43  ;;  %v2481_v0 = vshrl.u32 %v10893_v31, 16  ;;  %v2484_v19 = vshll.u32 %v10893_v31, 16  ;;  %v2490_v47 = vshll.u32 %v14768_v14, 16  ;;  %v10928_v21 = vcombine.low %v2373_v10, %v2383_v63  ;;  %v13606_v14 = vld [vmem:[%s17579_s1 + $0x170] sm:$0xff]  }
 0x139   : > { %v2449_v3 = vor.u32 %v2448_v54, %v14996_v23  ;;  %v2421_v2 = vsel %vm13919_vm2, %v2416_v53, %v14976_v42  ;;  %v2431_v59 = vsel %vm13919_vm2, %v2426_v25, %v2430_v34  ;;  %v15020_v27 = vrot.slane %v2466_v48, 5  ;;  %v10896_v42 = vld [vmem:[%s13887_s29 + $0xa8] sm:$0xf] }
 0x13a   : > { %v2483_v24 = vrot.slane %v2481_v0, 4  ;;  %v2486_v56 = vrot.slane %v2484_v19, 5  ;;  %v10929_v30 = vcombine.low %v2397_v9, %v2407_v11  ;;  %v2454_v6 = vrot.slane %v2452_v5, 5 }
 0x13b   : > { %12389 = vmatpush3.bf16.msra.mxu0 %v13603_v43  ;;  %v2470_v43 = vshrl.u32 %v14738_v49, 16  ;;  %v2462_v49 = vrot.slane %v2460_v61, 5  ;;  %v2496_v46 = vrot.slane %v2494_v58, 4  ;;  %v2476_v63 = vshll.u32 %v14743_v45, 16 }
 0x13c   : > { %12390 = vmatprep.subr.bf16.mxu0 %v13604_v38  ;;  %v10930_v35 = vcombine.low %v2421_v2, %v2431_v59  ;;  %v2487_v16 = vor.u32 %v2486_v56, %v2483_v24  ;;  %v2500_v31 = vshll.u32 %v14771_v50, 16  ;;  %v2505_v54 = vshrl.u32 %v10896_v42, 16 }
 0x13d   : > { %v2472_v20 = vrot.slane %v2470_v43, 4  ;;  %v2463_v10 = vor.u32 %v2462_v49, %v2459_v40  ;;  %v2508_v9 = vshll.u32 %v10896_v42, 16  ;;  %v2514_v45 = vshll.u32 %v14780_v12, 16 }
 0x13e   : > { %12359 = vmatmul.mubr.bf16.gmra.mrb[8].mxu0 %v10926_v13  ;;  %v2440_v13 = vrot.slane %v2439_v52, 4  ;;  %v2518_v53 = vshrl.u32 %v14780_v12, 16  ;;  %v2478_v50 = vrot.slane %v2476_v63, 5  ;;  %v2529_v48 = vshrl.u32 %v10899_v44, 16  ;;  %v15045_v12 = vld [vmem:[%s17579_s1 + $0x180] sm:$0xff]  }
 0x13f   : > { %12362 = vmatprep.mubr.bf16.mxu0 %v10927_v39  ;;  %12391 = vmatpush3.bf16.msra.mxu0 %v13604_v38  ;;  %v15022_v38 = vrot.slane %v2490_v47, 5  ;;  %v2450_v39 = vrot.slane %v2449_v3, 4  ;;  %v2473_v7 = vor.u32 %v2472_v20, %v15020_v27  ;;  %v2532_v43 = vshll.u32 %v10899_v44, 16 }
 0x140   : > { %12392 = vmatprep.subr.bf16.mxu0 %v13605_v15  ;;  %v2445_v25 = vsel %vm13919_vm2, %v2440_v13, %v14996_v23  ;;  %v2538_v0 = vshll.u32 %v14843_v32, 16  ;;  %v2542_v19 = vshrl.u32 %v14843_v32, 16  ;;  %v2488_v11 = vrot.slane %v2487_v16, 4 }
 0x141   : > { %v2497_v61 = vor.u32 %v2496_v46, %v15022_v38  ;;  %v2455_v34 = vsel %vm13919_vm2, %v2450_v39, %v2454_v6  ;;  %v2474_v23 = vrot.slane %v2473_v7, 4  ;;  %v2502_v5 = vrot.slane %v2500_v31, 5 }
 0x142   : > { %v2507_v47 = vrot.slane %v2505_v54, 4  ;;  %v2510_v52 = vrot.slane %v2508_v9, 5  ;;  %v2516_v3 = vrot.slane %v2514_v45, 5  ;;  %v2520_v40 = vrot.slane %v2518_v53, 4 }
 0x143   : > { %12393 = vmatpush3.bf16.msra.mxu0 %v13605_v15  ;;  %v2464_v15 = vrot.slane %v2463_v10, 4  ;;  %v2498_v58 = vrot.slane %v2497_v61, 4  ;;  %v10931_v49 = vcombine.low %v2445_v25, %v2455_v34  ;;  %v2534_v2 = vrot.slane %v2532_v43, 5 }
 0x144   : > { %12394 = vmatprep.subr.bf16.mxu0 %v13606_v14  ;;  %v2540_v32 = vrot.slane %v2538_v0, 5  ;;  %v2544_v59 = vrot.slane %v2542_v19, 4  ;;  %v2479_v24 = vsel %vm13919_vm2, %v2474_v23, %v2478_v50  ;;  %v2524_v56 = vshll.u32 %v14785_v37, 16  ;;  %v13774_v0 = vld [vmem:[%s13887_s29 + $0x10] sm:$0xf] }
 0x145   : > { %v2469_v20 = vsel %vm13919_vm2, %v2464_v15, %v15020_v27  ;;  %v2503_v6 = vsel %vm13919_vm2, %v2498_v58, %v2502_v5  ;;  %v2511_v46 = vor.u32 %v2510_v52, %v2507_v47  ;;  %v2521_v42 = vor.u32 %v2520_v40, %v2516_v3  ;;  %v10945_v23 = vld [vmem:[%s13887_s29 + $0xc] sm:$0xe]  ;;  %v13775_v40 = vld [vmem:[%s13887_s29 + $0x14] sm:$0x1] }
 0x146   : > { %12363 = vmatmul.mubr.bf16.gmra.mrb[12].mxu0 %v10928_v21  ;;  %v2531_v21 = vrot.slane %v2529_v48, 4  ;;  %v2562_v27 = vshll.u32 %v14849_v8, 16  ;;  %v2566_v10 = vshrl.u32 %v14849_v8, 16  ;;  %v2548_v37 = vshll.u32 %v14846_v29, 16 }
 0x147   : > { %12366 = vmatprep.mubr.bf16.mxu0 %v10929_v30  ;;  %12395 = vmatpush3.bf16.msra.mxu0 %v13606_v14  ;;  %v10902_v14 = vld [vmem:[%s13887_s29 + $0xc0] sm:$0xf]  ;;  %v2493_v30 = vsel %vm13919_vm2, %v2488_v11, %v15022_v38  ;;  %v2512_v16 = vrot.slane %v2511_v46, 4  ;;  %v2522_v38 = vrot.slane %v2521_v42, 4  ;;  %v2526_v31 = vrot.slane %v2524_v56, 5 }
 0x148   : > { %12396 = vmatprep.subr.bf16.mxu0 %v13607_v22  ;;  %v2553_v13 = vshrl.u32 %v10902_v14, 16  ;;  %v2556_v39 = vshll.u32 %v10902_v14, 16  ;;  %v2535_v63 = vor.u32 %v2534_v2, %v2531_v21  ;;  %v10933_v7 = vcombine.low %v2493_v30, %v2503_v6  ;;  %v13777_v56 = vld [vmem:[%s13887_s29 + $0x28] sm:$0xf]  ;;  %v10947_v6 = vld [vmem:[%s13887_s29 + $0x24] sm:$0xe] }
 0x149   : > { %v2564_v61 = vrot.slane %v2562_v27, 5  ;;  %v2568_v9 = vrot.slane %v2566_v10, 4  ;;  %v2550_v25 = vrot.slane %v2548_v37, 5  ;;  %v2517_v8 = vsel %vm13919_vm2, %v2512_v16, %v2516_v3  ;;  %v13778_v27 = vld [vmem:[%s13887_s29 + $0x20] sm:$0x1] }
 0x14a   : > { %v2555_v54 = vrot.slane %v2553_v13, 4  ;;  %v2558_v44 = vrot.slane %v2556_v39, 5  ;;  %v2536_v45 = vrot.slane %v2535_v63, 4  ;;  %v2527_v29 = vsel %vm13919_vm2, %v2522_v38, %v2526_v31  ;;  %v13779_v37 = vld [vmem:[%s13887_s29 + $0x2c] sm:$0x1] }
 0x14b   : > { %12397 = vmatpush3.bf16.msra.mxu0 %v13607_v22  ;;  %v2545_v22 = vor.u32 %v2544_v59, %v2540_v32  ;;  %v2569_v15 = vor.u32 %v2568_v9, %v2564_v61  ;;  %v2572_v50 = vshll.u32 %v14858_v33, 16  ;;  %v2964_v19 = vrot.slane %v13774_v0, 5  ;;  %v13780_v38 = vld [vmem:[%s13887_s29 + $0x34] sm:$0xf] }
 0x14c   : > { %12430 = vmatprep.subr.bf16.mxu0 %v15045_v12  ;;  %v2559_v34 = vor.u32 %v2558_v44, %v2555_v54  ;;  %v2541_v48 = vsel %vm13919_vm2, %v2536_v45, %v2540_v32  ;;  %v10934_v11 = vcombine.low %v2517_v8, %v2527_v29  ;;  %v10961_v3 = vrot.slane %v10945_v23, 9  ;;  %v13776_v32 = vld [vmem:[%s13887_s29 + $0x1c] sm:$0xf]  ;;  %v10951_v23 = vld [vmem:[%s13887_s29 + $0x54] sm:$0xe] }
 0x14d   : > { %v2546_v53 = vrot.slane %v2545_v22, 4  ;;  %v2570_v58 = vrot.slane %v2569_v15, 4  ;;  %v2574_v52 = vrot.slane %v2572_v50, 5  ;;  %v2966_v33 = vrot.slane %v2964_v19, 4  ;;  %v10949_v45 = vld [vmem:[%s13887_s29 + $0x3c] sm:$0xe] }
 0x14e   : > { %12367 = vmatmul.mubr.bf16.gmra.mrb[16].mxu0 %v10930_v35  ;;  %v10932_v35 = vcombine.low %v2469_v20, %v2479_v24  ;;  %v2560_v47 = vrot.slane %v2559_v34, 4  ;;  %v2971_v59 = vrot.slane %v13776_v32, 5  ;;  %v2965_v14 = vsel %vm14252_vm5, %v10961_v3, %v2964_v19  ;;  %v10946_v24 = vld [vmem:[%s13887_s29 + $0x18] sm:$0xe]  ;;  %v13609_v15 = vld [vmem:[%s17579_s1 + $0x188] sm:$0xff]  }
 0x14f   : > { %12370 = vmatprep.mubr.bf16.mxu0 %v10931_v49  ;;  %v2551_v43 = vsel %vm13919_vm2, %v2546_v53, %v2550_v25  ;;  %v2967_v49 = vrot.slane %v13775_v40, 5  ;;  %v2575_v2 = vsel %vm13919_vm2, %v2570_v58, %v2574_v52  ;;  %v2978_v30 = vrot.slane %v13777_v56, 5  ;;  %v13611_v3 = vld [vmem:[%s17579_s1 + $0x198] sm:$0xff]  }
 0x150   : > { %v10935_v5 = vcombine.low %v2541_v48, %v2551_v43  ;;  %v2565_v21 = vsel %vm13919_vm2, %v2560_v47, %v2564_v61  ;;  %v10962_v13 = vrot.slane %v10946_v24, 9  ;;  %v2973_v39 = vrot.slane %v2971_v59, 4  ;;  %v10948_v61 = vld [vmem:[%s13887_s29 + $0x30] sm:$0xe] }
 0x151   : > { %v2968_v20 = vsel %vm14252_vm5, %v2966_v33, %v2967_v49  ;;  %v10936_v46 = vcombine.low %v2565_v21, %v2575_v2  ;;  %v2974_v10 = vrot.slane %v13778_v27, 5  ;;  %v10963_v63 = vrot.slane %v10947_v6, 9  ;;  %v10953_v49 = vld [vmem:[%s13887_s29 + $0x6c] sm:$0xe] }
 0x152   : > { %v10993_v42 = vcombine.low %v2965_v14, %v2968_v20  ;;  %v2980_v22 = vrot.slane %v2978_v30, 4  ;;  %v2985_v31 = vrot.slane %v13780_v38, 5  ;;  %v2992_v9 = vrot.slane %v14735_v17, 5  ;;  %v13613_v14 = vld [vmem:[%s17579_s1 + $0x1a8] sm:$0xff]  }
 0x153   : > { %v2975_v16 = vsel %vm14252_vm5, %v2973_v39, %v2974_v10  ;;  %v2979_v54 = vsel %vm14252_vm5, %v10963_v63, %v2978_v30  ;;  %v10964_v8 = vrot.slane %v10948_v61, 9  ;;  %v2988_v34 = vrot.slane %v14651_v60, 5  ;;  %v13618_v30 = vld [vmem:[%s17579_s1 + $0x1c0] sm:$0xff]   ;;  %v17750_v6 = vld [vmem:[#allocation5_spill] sm:$0xff]  ;;  %v17754_v39 = vld [vmem:[#allocation7_spill] sm:$0xff] }
 0x154   : > { %v2987_v29 = vrot.slane %v2985_v31, 4  ;;  %v10965_v50 = vrot.slane %v10949_v45, 9  ;;  %v2994_v48 = vrot.slane %v2992_v9, 4  ;;  %v2995_v43 = vrot.slane %v14820_v36, 5  ;;  %v13610_v36 = vld [vmem:[%s17579_s1 + $0x190] sm:$0xff]   ;;  %v17759_v63 = vld [vmem:[#allocation11_spill] sm:$0xff] }
 0x155   : > { %v2986_v17 = vsel %vm14252_vm5, %v10964_v8, %v2985_v31  ;;  %v10967_v47 = vrot.slane %v10951_v23, 9  ;;  %v3009_v52 = vrot.slane %v14913_v41, 5  ;;  %v3020_v40 = vrot.slane %v14931_v62, 5  ;;  %v13612_v41 = vld [vmem:[%s17579_s1 + $0x1a0] sm:$0xff]   ;;  %v17765_v38 = vld [vmem:[#allocation13_spill] sm:$0xff]  ;;  %v17766_v31 = vld [vmem:[#allocation14_spill] sm:$0xff] }
 0x156   : > { %12371 = vmatmul.mubr.bf16.gmra.mrb[20].mxu0 %v10932_v35  ;;  %v2981_v35 = vrot.slane %v13779_v37, 5  ;;  %v2989_v0 = vsel %vm14252_vm5, %v2987_v29, %v2988_v34  ;;  %v2993_v60 = vsel %vm14252_vm5, %v10965_v50, %v2992_v9  ;;  %v2996_v19 = vsel %vm14252_vm5, %v2994_v48, %v2995_v43  ;;  %v17768_v61 = vld [vmem:[#allocation15_spill] sm:$0xff]  ;;  %v17769_v9 = vld [vmem:[#allocation16_spill] sm:$0xff]  ;;  %v13621_v8 = vld [vmem:[%s17579_s1 + $0x1c8] sm:$0xff]  }
 0x157   : > { %12374 = vmatprep.mubr.bf16.mxu0 %v10933_v7  ;;  %v2972_v7 = vsel %vm14252_vm5, %v10962_v13, %v2971_v59  ;;  %v10969_v2 = vrot.slane %v10953_v49, 9  ;;  %v3022_v32 = vrot.slane %v3020_v40, 4  ;;  %v3023_v59 = vrot.slane %v14970_v4, 5  ;;  %v13614_v4 = vld [vmem:[%s17579_s1 + $0x1b0] sm:$0xff]   ;;  %v13620_v34 = vld [vmem:[%s13887_s29 + $0x3c] sm:$0xff]  }
 0x158   : > { %v2982_v44 = vsel %vm14252_vm5, %v2980_v22, %v2981_v35  ;;  %v10994_v53 = vcombine.low %v2972_v7, %v2975_v16  ;;  %v17748_v20 = vcombine.low %v14644_v57, %v14648_v26  ;;  %v13615_v57 = vld [vmem:[%s17579_s1 + $0x1b8] sm:$0xff]   ;;  %v17749_v26 = vcombine.low %v14684_v18, %v14689_v28  ;;  %v17753_v13 = vld [vmem:[#allocation6_spill] sm:$0xff]  ;;  %v17756_v18 = vld [vmem:[#allocation8_spill] sm:$0xff] }
 0x159   : > { %v10995_v25 = vcombine.low %v2979_v54, %v2982_v44  ;;  %v3021_v62 = vsel %vm14252_vm5, %v10969_v2, %v3020_v40  ;;  %v3024_v24 = vsel %vm14252_vm5, %v3022_v32, %v3023_v59  ;;  %v17755_v27 = vcombine.low %v17753_v13, %v17754_v39  ;;  %v17757_v28 = vld [vmem:[#allocation10_spill] sm:$0xff]  ;;  %v17760_v22 = vld [vmem:[#allocation4_spill] sm:$0xff]  ;;  %v17762_v35 = vld [vmem:[#allocation3_spill] sm:$0xff] }
 0x15a   : > { %v11001_v56 = vcombine.low %v3021_v62, %v3024_v24  ;;  %v17758_v10 = vcombine.low %v17756_v18, %v17757_v28  ;;  %v17761_v37 = vcombine.low %v17759_v63, %v17760_v22  ;;  %v17763_v7 = vld [vmem:[#allocation12_spill] sm:$0xff]  ;;  %v17767_v54 = vcombine.low %v17765_v38, %v17766_v31  ;;  %v13616_v44 = vld [vmem:[%s13887_s29 + $0x18] sm:$0xff]   ;;  %v13624_v29 = vld [vmem:[%s17579_s1 + $0x1d0] sm:$0xff]  }
 0x15b   : > { %v17764_v16 = vcombine.low %v17762_v35, %v17763_v7  ;;  %v17770_v45 = vcombine.low %v17768_v61, %v17769_v9  ;;  %v13627_v50 = vld [vmem:[%s17579_s1 + $0x1d8] sm:$0xff]   ;;  %v15222_v40 = vld [vmem:[%s13887_s29 + $0x28] sm:$0xf]  ;;  %v15246_v18 = vld [vmem:[%s13887_s29 + $0x20] sm:$0x1] }
 0x15c   : > { %v15192_v48 = vld [vmem:[%s13887_s29 + $0x58] sm:$0xf]  ;;  %v15195_v43 = vld [vmem:[%s13887_s29 + $0x5c] sm:$0x1]  ;;  %v3865_v62 = vshll.u32 %v15222_v40, 16  ;;  %v3869_v24 = vshrl.u32 %v15222_v40, 16 }
 0x15d   : > { %v13628_v22 = vld [vmem:[%s13887_s29 + $0x78] sm:$0xff]   ;;  %v11095_v31 = vld [vmem:[%s13887_s29 + $0x30] sm:$0xf]  ;;  %v3851_v9 = vshll.u32 %v15246_v18, 16 }
 0x15e   : > { %12375 = vmatmul.mubr.bf16.gmra.mrb[24].mxu0 %v10934_v11  ;;  %v10996_v11 = vcombine.low %v2986_v17, %v2989_v0  ;;  %v11182_v17 = vld [vmem:[%s13887_s29 + $0x54] sm:$0xe]  ;;  %v4638_v0 = vrot.slane %v15192_v48, 5  ;;  %v15256_v35 = vrot.slane %v3865_v62, 5  ;;  %v3871_v7 = vrot.slane %v3869_v24, 4  ;;  %v13639_v38 = vld [vmem:[%s17579_s1 + $0x1f8] sm:$0xff]  }
 0x15f   : > { %12378 = vmatprep.mubr.bf16.mxu0 %v10935_v5  ;;  %v10997_v5 = vcombine.low %v2993_v60, %v2996_v19  ;;  %v4641_v60 = vrot.slane %v15195_v43, 5  ;;  %v13630_v19 = vld [vmem:[%s17579_s1 + $0x1e0] sm:$0xff]  }
 0x160   : > { %v4640_v23 = vrot.slane %v4638_v0, 4 }
 0x166   : > { %12379 = vmatmul.mubr.bf16.gmra.mrb[28].mxu0 %v10936_v46  ;;  %v17751_v46 = vld [vmem:[#allocation9_spill] sm:$0xff] }
 0x167   : > { %12398 = vmatprep.mubr.bf16.mxu0 %v10993_v42  ;;  %v17752_v42 = vcombine.low %v17750_v6, %v17751_v46 }
 0x16e   : > { %12399 = vmatmul.mubr.bf16.vlgmr.msra.gmra.mrb[0].mxu0 %v10994_v53  ;;  %v13617_v53 = vld [vmem:[%s13887_s29 + $0x24] sm:$0xff]  }
 0x16f   : > { %12431 = vmatpush3.bf16.msra.mxu0 %v15045_v12  ;;  %12402 = vmatprep.mubr.bf16.mxu0 %v10995_v25  ;;  %v3006_v12 = vrot.slane %v14871_v51, 5  ;;  %v13619_v25 = vld [vmem:[%s13887_s29 + $0x30] sm:$0xff]  }
 0x170   : > { %12432 = vmatprep.subr.bf16.mxu0 %v13609_v15 }
 0x171   : > { %v3008_v58 = vrot.slane %v3006_v12, 4  ;;  %v3007_v51 = vsel %vm14252_vm5, %v10967_v47, %v3006_v12  ;;  %v11089_v12 = vld [vmem:[%s13887_s29 + $0x18] sm:$0xf] }
 0x172   : > { %v3835_v49 = vshll.u32 %v11089_v12, 16 }
 0x173   : > { %12433 = vmatpush3.bf16.msra.mxu0 %v13609_v15  ;;  %v3010_v33 = vsel %vm14252_vm5, %v3008_v58, %v3009_v52  ;;  %v13622_v15 = vld [vmem:[%s13887_s29 + $0x48] sm:$0xff]   ;;  %v13625_v58 = vld [vmem:[%s13887_s29 + $0x60] sm:$0xff]  }
 0x174   : > { %12434 = vmatprep.subr.bf16.mxu0 %v13610_v36  ;;  %v10999_v21 = vcombine.low %v3007_v51, %v3010_v33  ;;  %v11092_v52 = vld [vmem:[%s13887_s29 + $0x24] sm:$0xf]  ;;  %v13633_v51 = vld [vmem:[%s17579_s1 + $0x1e8] sm:$0xff]   ;;  %v3832_v33 = vshrl.u32 %v11089_v12, 16  ;;  %v3837_v46 = vrot.slane %v3835_v49, 5  ;;  %v3883_v49 = vshll.u32 %v11095_v31, 16 }
 0x175   : > { %v3856_v32 = vshrl.u32 %v11092_v52, 16  ;;  %v3859_v59 = vshll.u32 %v11092_v52, 16  ;;  %v13629_v52 = vld [vmem:[%s13887_s29 + $0x84] sm:$0xff]  }
 0x176   : > { %12403 = vmatmul.mubr.bf16.gmra.mrb[4].mxu0 %v10996_v11  ;;  %v13623_v11 = vld [vmem:[%s13887_s29 + $0x54] sm:$0xff]  }
 0x177   : > { %12406 = vmatprep.mubr.bf16.mxu0 %v10997_v5  ;;  %12435 = vmatpush3.bf16.msra.mxu0 %v13610_v36  ;;  %v11198_v36 = vrot.slane %v11182_v17, 9  ;;  %v15206_v5 = vld [vmem:[%s13887_s29 + $0x1c] sm:$0xf]  ;;  %v3858_v28 = vrot.slane %v3856_v32, 4 }
 0x178   : > { %12436 = vmatprep.subr.bf16.mxu0 %v13611_v3  ;;  %v3845_v2 = vshrl.u32 %v15206_v5, 16 }
 0x179   : > { %v15210_v47 = vsel %vm14252_vm5, %v11198_v36, %v4638_v0  ;;  %v15284_v0 = vld [vmem:[%s17579_s1 + $0x200] sm:$0xff]  }
 0x17a   : > { %17771 = vst [vmem:[#allocation5_spill] sm:$0xff] %v15210_v47  ;;  %v3847_v13 = vrot.slane %v3845_v2, 4  ;;  %v13631_v2 = vld [vmem:[%s13887_s29 + $0x90] sm:$0xff]  }
 0x17b   : > { %12437 = vmatpush3.bf16.msra.mxu0 %v13611_v3  ;;  %v15216_v3 = vsel %vm14252_vm5, %v4640_v23, %v4641_v60  ;;  %v15287_v60 = vld [vmem:[%s13887_s29 + $0x34] sm:$0xf]  ;;  %v15293_v23 = vrot.slane %v3851_v9, 5  ;;  %v3885_v9 = vrot.slane %v3883_v49, 5  ;;  %v13638_v47 = vld [vmem:[%s13887_s29 + $0xcc] sm:$0xff]  }
 0x17c   : > { %12438 = vmatprep.subr.bf16.mxu0 %v13612_v41  ;;  %17772 = vst [vmem:[#allocation9_spill] sm:$0xff] %v15216_v3  ;;  %v3889_v62 = vshll.u32 %v15287_v60, 16  ;;  %v15487_v3 = vld [vmem:[%s13887_s29 + $0x64] sm:$0xf] }
 0x17d   : > { %17787 = vst [vmem:[#allocation19_spill] sm:$0xff] %v15487_v3 }
 0x17e   : > { %12407 = vmatmul.mubr.bf16.gmra.mrb[8].mxu0 %v17748_v20  ;;  %v15232_v20 = vld [vmem:[%s13887_s29 + $0x74] sm:$0x1] }
 0x17f   : > { %12410 = vmatprep.mubr.bf16.mxu0 %v10999_v21  ;;  %12439 = vmatpush3.bf16.msra.mxu0 %v13612_v41  ;;  %v3841_v21 = vshll.u32 %v15206_v5, 16  ;;  %v11190_v41 = vld [vmem:[%s13887_s29 + $0xb4] sm:$0xe] }
 0x180   : > { %12440 = vmatprep.subr.bf16.mxu0 %v13613_v14 }
 0x183   : > { %12441 = vmatpush3.bf16.msra.mxu0 %v13613_v14  ;;  %v15229_v14 = vld [vmem:[%s13887_s29 + $0x70] sm:$0xf] }
 0x184   : > { %12442 = vmatprep.subr.bf16.mxu0 %v13614_v4 }
 0x186   : > { %12411 = vmatmul.mubr.bf16.gmra.mrb[12].mxu0 %v17749_v26  ;;  %v13636_v26 = vld [vmem:[%s17579_s1 + $0x1f0] sm:$0xff]  }
 0x187   : > { %12414 = vmatprep.mubr.bf16.mxu0 %v11001_v56  ;;  %12443 = vmatpush3.bf16.msra.mxu0 %v13614_v4  ;;  %v11184_v4 = vld [vmem:[%s13887_s29 + $0x6c] sm:$0xe]  ;;  %v4652_v56 = vrot.slane %v15229_v14, 5 }
 0x188   : > { %12444 = vmatprep.subr.bf16.mxu0 %v13615_v57  ;;  %v11200_v6 = vrot.slane %v11184_v4, 9  ;;  %v3893_v4 = vshrl.u32 %v15287_v60, 16 }
 0x189   : > { %v4654_v39 = vrot.slane %v4652_v56, 4 }
 0x18a   : > { %v15250_v63 = vsel %vm14252_vm5, %v11200_v6, %v4652_v56  ;;  %v15318_v56 = vld [vmem:[%s13887_s29 + $0x40] sm:$0xf]  ;;  %v15323_v6 = vld [vmem:[%s13887_s29 + $0x38] sm:$0x1] }
 0x18b   : > { %12445 = vmatpush3.bf16.msra.mxu0 %v13615_v57  ;;  %v4655_v57 = vrot.slane %v15232_v20, 5  ;;  %17773 = vst [vmem:[#allocation6_spill] sm:$0xff] %v15250_v63 }
 0x18c   : > { %12478 = vmatprep.subr.bf16.mxu0 %v13618_v30 }
 0x18e   : > { %12415 = vmatmul.mubr.bf16.gmra.mrb[16].mxu0 %v17752_v42  ;;  %v15242_v42 = vrot.slane %v3841_v21, 5 }
 0x18f   : > { %12418 = vmatprep.mubr.bf16.mxu0 %v17755_v27  ;;  %v13626_v27 = vld [vmem:[%s13887_s29 + $0x6c] sm:$0xff]  }
 0x190   : > { %v3848_v61 = vor.u32 %v3847_v13, %v15242_v42  ;;  %v15329_v13 = vld [vmem:[%s13887_s29 + $0x98] sm:$0x1] }
 0x192   : > { %v15291_v12 = vrot.slane %v3848_v61, 4 }
 0x196   : > { %12419 = vmatmul.mubr.bf16.gmra.mrb[20].mxu0 %v17758_v10  ;;  %v3861_v10 = vrot.slane %v3859_v59, 5 }
 0x197   : > { %12422 = vmatprep.mubr.bf16.mxu0 %v17761_v37  ;;  %v15254_v37 = vld [vmem:[%s13887_s29 + $0x2c] sm:$0x1] }
 0x19e   : > { %12423 = vmatmul.mubr.bf16.gmra.mrb[24].mxu0 %v17764_v16  ;;  %v15260_v16 = vsel %vm14252_vm5, %v4654_v39, %v4655_v57  ;;  %v15332_v39 = vld [vmem:[%s13887_s29 + $0xa0] sm:$0xf] }
 0x19f   : > { %12426 = vmatprep.mubr.bf16.mxu0 %v17767_v54  ;;  %17774 = vst [vmem:[#allocation7_spill] sm:$0xff] %v15260_v16  ;;  %v11189_v54 = vld [vmem:[%s13887_s29 + $0xa8] sm:$0xe] }
 0x1a6   : > { %12427 = vmatmul.mubr.bf16.gmra.mrb[28].mxu0 %v17770_v45  ;;  %v3862_v45 = vor.u32 %v3861_v10, %v3858_v28  ;;  %v11187_v28 = vld [vmem:[%s13887_s29 + $0x90] sm:$0xe] }
 0x1a7   : > { %12446 = vmatprep.mubr.bf16.mxu0 %v13616_v44 }
 0x1ae   : > { %12447 = vmatmul.mubr.bf16.vlgmr.msra.gmra.mrb[0].mxu0 %v13617_v53  ;;  %v3875_v53 = vshll.u32 %v15254_v37, 16 }
 0x1af   : > { %12479 = vmatpush3.bf16.msra.mxu0 %v13618_v30  ;;  %12450 = vmatprep.mubr.bf16.mxu0 %v13619_v25  ;;  %v3834_v30 = vrot.slane %v3832_v33, 4  ;;  %v15272_v25 = vld [vmem:[%s13887_s29 + $0x88] sm:$0xf] }
 0x1b0   : > { %12480 = vmatprep.subr.bf16.mxu0 %v13621_v8  ;;  %v15299_v33 = vrot.slane %v3875_v53, 5 }
 0x1b1   : > { %v3838_v44 = vor.u32 %v3837_v46, %v3834_v30  ;;  %v15326_v46 = vld [vmem:[%s13887_s29 + $0x94] sm:$0xf]  ;;  %v15404_v30 = vld [vmem:[%s13887_s29 + $0xbc] sm:$0x1] }
 0x1b2   : > { %v4673_v10 = vrot.slane %v15326_v46, 5 }
 0x1b3   : > { %12481 = vmatpush3.bf16.msra.mxu0 %v13621_v8  ;;  %v15275_v8 = vld [vmem:[%s13887_s29 + $0x8c] sm:$0x1]  ;;  %v15289_v36 = vrot.slane %v3838_v44, 4  ;;  %v4680_v44 = vrot.slane %v15332_v39, 5 }
 0x1b4   : > { %12482 = vmatprep.subr.bf16.mxu0 %v13624_v29  ;;  %v4669_v17 = vrot.slane %v15275_v8, 5  ;;  %v4675_v53 = vrot.slane %v4673_v10, 4 }
 0x1b6   : > { %12451 = vmatmul.mubr.bf16.gmra.mrb[4].mxu0 %v13620_v34  ;;  %v3880_v34 = vshrl.u32 %v11095_v31, 16  ;;  %v11188_v31 = vld [vmem:[%s13887_s29 + $0x9c] sm:$0xe] }
 0x1b7   : > { %12454 = vmatprep.mubr.bf16.mxu0 %v13622_v15  ;;  %12483 = vmatpush3.bf16.msra.mxu0 %v13624_v29  ;;  %v3872_v29 = vor.u32 %v3871_v7, %v15256_v35  ;;  %v11186_v15 = vld [vmem:[%s13887_s29 + $0x84] sm:$0xe]  ;;  %v3913_v7 = vshll.u32 %v15318_v56, 16 }
 0x1b8   : > { %12484 = vmatprep.subr.bf16.mxu0 %v13627_v50  ;;  %v15308_v59 = vrot.slane %v3880_v34, 4  ;;  %v3895_v34 = vrot.slane %v3893_v4, 4 }
 0x1b9   : > { %v15306_v32 = vrot.slane %v3872_v29, 4  ;;  %v11204_v29 = vrot.slane %v11188_v31, 9  ;;  %v15380_v31 = vld [vmem:[%s13887_s29 + $0x4c] sm:$0xf] }
 0x1bb   : > { %12485 = vmatpush3.bf16.msra.mxu0 %v13627_v50  ;;  %v4666_v50 = vrot.slane %v15272_v25, 5 }
 0x1bc   : > { %12486 = vmatprep.subr.bf16.mxu0 %v13630_v19 }
 0x1be   : > { %12455 = vmatmul.mubr.bf16.gmra.mrb[8].mxu0 %v13623_v11  ;;  %v11098_v11 = vld [vmem:[%s13887_s29 + $0x3c] sm:$0xf] }
 0x1bf   : > { %12458 = vmatprep.mubr.bf16.mxu0 %v13625_v58  ;;  %12487 = vmatpush3.bf16.msra.mxu0 %v13630_v19  ;;  %v11202_v19 = vrot.slane %v11186_v15, 9  ;;  %v4668_v58 = vrot.slane %v4666_v50, 4  ;;  %v3904_v57 = vshrl.u32 %v11098_v11, 16  ;;  %v15347_v15 = vld [vmem:[%s13887_s29 + $0x44] sm:$0x1] }
 0x1c0   : > { %12488 = vmatprep.subr.bf16.mxu0 %v13633_v51  ;;  %17777 = vst [vmem:[#allocation11_spill] sm:$0xff] %v15347_v15 }
 0x1c1   : > { %v15303_v21 = vsel %vm14252_vm5, %v11202_v19, %v4666_v50  ;;  %v15313_v24 = vsel %vm14252_vm5, %v4668_v58, %v4669_v17  ;;  %v11101_v50 = vld [vmem:[%s13887_s29 + $0x48] sm:$0xf]  ;;  %v4682_v19 = vrot.slane %v4680_v44, 4  ;;  %v3899_v58 = vshll.u32 %v15323_v6, 16 }
 0x1c2   : > { %17775 = vst [vmem:[#allocation8_spill] sm:$0xff] %v15303_v21  ;;  %17776 = vst [vmem:[#allocation10_spill] sm:$0xff] %v15313_v24 }
 0x1c3   : > { %12489 = vmatpush3.bf16.msra.mxu0 %v13633_v51  ;;  %v15297_v51 = vrot.slane %v3862_v45, 4  ;;  %v15344_v45 = vrot.slane %v3889_v62, 5  ;;  %v13634_v62 = vld [vmem:[%s13887_s29 + $0xa8] sm:$0xff]  }
 0x1c4   : > { %12490 = vmatprep.subr.bf16.mxu0 %v13636_v26 }
 0x1c6   : > { %12459 = vmatmul.mubr.bf16.gmra.mrb[12].mxu0 %v13626_v27  ;;  %v15335_v27 = vld [vmem:[%s13887_s29 + $0xa4] sm:$0x1] }
 0x1c7   : > { %12462 = vmatprep.mubr.bf16.mxu0 %v13628_v22  ;;  %12491 = vmatpush3.bf16.msra.mxu0 %v13636_v26  ;;  %v3907_v26 = vshll.u32 %v11098_v11, 16  ;;  %v4676_v22 = vrot.slane %v15329_v13, 5  ;;  %v4683_v61 = vrot.slane %v15335_v27, 5  ;;  %v13632_v11 = vld [vmem:[%s13887_s29 + $0x9c] sm:$0xff]  }
 0x1c8   : > { %12492 = vmatprep.subr.bf16.mxu0 %v13639_v38 }
 0x1c9   : > { %v15360_v49 = vsel %vm14252_vm5, %v4675_v53, %v4676_v22  ;;  %v15367_v4 = vrot.slane %v3907_v26, 5  ;;  %v3917_v22 = vshrl.u32 %v15318_v56, 16  ;;  %v3886_v53 = vor.u32 %v3885_v9, %v15308_v59 }
 0x1ca   : > { %17779 = vst [vmem:[#allocation3_spill] sm:$0xff] %v15360_v49  ;;  %v3854_v26 = vsel %vm13919_vm2, %v15291_v12, %v15293_v23  ;;  %v3931_v59 = vshll.u32 %v11101_v50, 16  ;;  %v11205_v9 = vrot.slane %v11189_v54, 9  ;;  %v3937_v12 = vshll.u32 %v15380_v31, 16 }
 0x1cb   : > { %12493 = vmatpush3.bf16.msra.mxu0 %v13639_v38  ;;  %v11203_v38 = vrot.slane %v11187_v28, 9  ;;  %v15369_v28 = vrot.slane %v3913_v7, 5  ;;  %v3844_v7 = vsel %vm13919_vm2, %v15289_v36, %v15242_v42  ;;  %v3941_v23 = vshrl.u32 %v15380_v31, 16 }
 0x1cc   : > { %12526 = vmatprep.subr.bf16.mxu0 %v15284_v0  ;;  %v15414_v49 = vrot.slane %v3886_v53, 4  ;;  %v3919_v21 = vrot.slane %v3917_v22, 4 }
 0x1cd   : > { %v15352_v17 = vsel %vm14252_vm5, %v11203_v38, %v4673_v10  ;;  %v15375_v10 = vsel %vm14252_vm5, %v4682_v19, %v4683_v61  ;;  %v3923_v38 = vshll.u32 %v15347_v15, 16  ;;  %v15390_v61 = vld [vmem:[%s13887_s29 + $0xac] sm:$0xf]  ;;  %v15396_v19 = vld [vmem:[%s13887_s29 + $0xb8] sm:$0xf]  ;;  %v3961_v15 = vshll.u32 %v15192_v48, 16 }
 0x1ce   : > { %12463 = vmatmul.mubr.bf16.gmra.mrb[16].mxu0 %v13629_v52  ;;  %17778 = vst [vmem:[#allocation4_spill] sm:$0xff] %v15352_v17  ;;  %v15356_v52 = vrot.slane %v3904_v57, 4  ;;  %17781 = vst [vmem:[#allocation13_spill] sm:$0xff] %v15375_v10  ;;  %v3896_v57 = vor.u32 %v3895_v34, %v15344_v45  ;;  %v4687_v42 = vrot.slane %v15390_v61, 5  ;;  %v4697_v10 = vrot.slane %v15404_v30, 5 }
 0x1cf   : > { %12466 = vmatprep.mubr.bf16.mxu0 %v13631_v2  ;;  %v15364_v2 = vsel %vm14252_vm5, %v11204_v29, %v4680_v44  ;;  %v3928_v44 = vshrl.u32 %v11101_v50, 16  ;;  %v15393_v29 = vld [vmem:[%s13887_s29 + $0xb0] sm:$0x1]  ;;  %v15416_v17 = vrot.slane %v3899_v58, 5  ;;  %v13637_v58 = vld [vmem:[%s13887_s29 + $0xc0] sm:$0xff]   ;;  %v15434_v53 = vrot.slane %v3923_v38, 5 }
 0x1d0   : > { %17780 = vst [vmem:[#allocation12_spill] sm:$0xff] %v15364_v2  ;;  %v4690_v36 = vrot.slane %v15393_v29, 5  ;;  %v4689_v34 = vrot.slane %v4687_v42, 4  ;;  %v11206_v2 = vrot.slane %v11190_v41, 9  ;;  %v15420_v54 = vsel %vm14252_vm5, %v11205_v9, %v4687_v42  ;;  %v11104_v9 = vld [vmem:[%s13887_s29 + $0x54] sm:$0xf] }
 0x1d1   : > { %17782 = vst [vmem:[#allocation14_spill] sm:$0xff] %v15420_v54  ;;  %v15423_v24 = vrot.slane %v3896_v57, 4  ;;  %v3930_v42 = vrot.slane %v3928_v44, 4  ;;  %v11153_v44 = vcombine.low %v3844_v7, %v3854_v26  ;;  %v3868_v57 = vsel %vm13919_vm2, %v15297_v51, %v15256_v35  ;;  %v15475_v26 = vld [vmem:[%s13887_s29 + $0xd4] sm:$0x1] }
 0x1d2   : > { %v15427_v16 = vsel %vm14252_vm5, %v4689_v34, %v4690_v36  ;;  %v15444_v36 = vld [vmem:[%s13887_s29 + $0x50] sm:$0x1]  ;;  %v3943_v34 = vrot.slane %v3941_v23, 4  ;;  %v15464_v23 = vld [vmem:[%s13887_s29 + $0xc8] sm:$0x1]  ;;  %v3892_v35 = vsel %vm13919_vm2, %v15414_v49, %v15344_v45  ;;  %v3920_v51 = vor.u32 %v3919_v21, %v15369_v28 }
 0x1d3   : > { %17783 = vst [vmem:[#allocation15_spill] sm:$0xff] %v15427_v16  ;;  %17786 = vst [vmem:[#allocation18_spill] sm:$0xff] %v15444_v36  ;;  %v3947_v21 = vshll.u32 %v15444_v36, 16  ;;  %v11107_v49 = vld [vmem:[%s13887_s29 + $0x60] sm:$0xf]  ;;  %v3955_v63 = vshll.u32 %v11104_v9, 16 }
 0x1d6   : > { %12467 = vmatmul.mubr.bf16.gmra.mrb[20].mxu0 %v13632_v11  ;;  %v4694_v11 = vrot.slane %v15396_v19, 5 }
 0x1d7   : > { %12470 = vmatprep.mubr.bf16.mxu0 %v13634_v62  ;;  %v13635_v62 = vld [vmem:[%s13887_s29 + $0xb4] sm:$0xff]  }
 0x1d8   : > { %v4696_v50 = vrot.slane %v4694_v11, 4  ;;  %v15431_v41 = vsel %vm14252_vm5, %v11206_v2, %v4694_v11  ;;  %v3933_v2 = vrot.slane %v3931_v59, 5  ;;  %v15446_v11 = vrot.slane %v3937_v12, 5  ;;  %v15461_v12 = vld [vmem:[%s13887_s29 + $0xc4] sm:$0xf] }
 0x1d9   : > { %17784 = vst [vmem:[#allocation16_spill] sm:$0xff] %v15431_v41  ;;  %v3910_v59 = vor.u32 %v15367_v4, %v15356_v52  ;;  %v4704_v52 = vrot.slane %v15464_v23, 5  ;;  %v3952_v4 = vshrl.u32 %v11104_v9, 16 }
 0x1da   : > { %v15441_v22 = vsel %vm14252_vm5, %v4696_v50, %v4697_v10  ;;  %v3878_v10 = vsel %vm13919_vm2, %v15306_v32, %v15299_v33  ;;  %v15467_v50 = vld [vmem:[%s13887_s29 + $0xd0] sm:$0xf]  ;;  %v11191_v33 = vld [vmem:[%s13887_s29 + $0xc0] sm:$0xe]  ;;  %v4701_v32 = vrot.slane %v15461_v12, 5  ;;  %v3934_v45 = vor.u32 %v3933_v2, %v3930_v42 }
 0x1db   : > { %17785 = vst [vmem:[#allocation17_spill] sm:$0xff] %v15441_v22  ;;  %v11207_v7 = vrot.slane %v11191_v33, 9  ;;  %v4708_v38 = vrot.slane %v15467_v50, 5  ;;  %v4711_v22 = vrot.slane %v15475_v26, 5  ;;  %v3944_v54 = vor.u32 %v3943_v34, %v15446_v11 }
 0x1dc   : > { %v4703_v41 = vrot.slane %v4701_v32, 4  ;;  %v3965_v42 = vshrl.u32 %v15192_v48, 16  ;;  %v3976_v34 = vshrl.u32 %v11107_v49, 16  ;;  %v3902_v48 = vsel %vm13919_vm2, %v15423_v24, %v15416_v17 }
 0x1dd   : > { %v4710_v33 = vrot.slane %v4708_v38, 4  ;;  %v3957_v24 = vrot.slane %v3955_v63, 5  ;;  %v15525_v17 = vrot.slane %v3961_v15, 5  ;;  %v4009_v15 = vshll.u32 %v15229_v14, 16 }
 0x1de   : > { %12471 = vmatmul.mubr.bf16.gmra.mrb[24].mxu0 %v13635_v62  ;;  %v11192_v62 = vld [vmem:[%s13887_s29 + $0xcc] sm:$0xe]  ;;  %v15498_v2 = vsel %vm14252_vm5, %v4703_v41, %v4704_v52  ;;  %v15514_v41 = vrot.slane %v3910_v59, 4  ;;  %v3985_v52 = vshll.u32 %v15487_v3, 16  ;;  %v3967_v59 = vrot.slane %v3965_v42, 4 }
 0x1df   : > { %12474 = vmatprep.mubr.bf16.mxu0 %v13637_v58  ;;  %v11208_v16 = vrot.slane %v11192_v62, 9  ;;  %v15491_v58 = vsel %vm14252_vm5, %v11207_v7, %v4701_v32  ;;  %17789 = vst [vmem:[#allocation21_spill] sm:$0xff] %v15498_v2  ;;  %v3979_v62 = vshll.u32 %v11107_v49, 16  ;;  %v15508_v7 = vsel %vm14252_vm5, %v4710_v33, %v4711_v22  ;;  %v11110_v33 = vld [vmem:[%s13887_s29 + $0x6c] sm:$0xf] }
 0x1e0   : > { %17788 = vst [vmem:[#allocation20_spill] sm:$0xff] %v15491_v58  ;;  %17791 = vst [vmem:[#allocation23_spill] sm:$0xff] %v15508_v7  ;;  %v15521_v49 = vrot.slane %v3947_v21, 5  ;;  %v3954_v32 = vrot.slane %v3952_v4, 4  ;;  %v3989_v22 = vshrl.u32 %v15487_v3, 16  ;;  %v3935_v2 = vrot.slane %v3934_v45, 4 }
 0x1e1   : > { %v15502_v9 = vsel %vm14252_vm5, %v11208_v16, %v4708_v38  ;;  %v15519_v38 = vrot.slane %v3920_v51, 4  ;;  %v3945_v58 = vrot.slane %v3944_v54, 4  ;;  %v3971_v16 = vshll.u32 %v15195_v43, 16  ;;  %v15529_v4 = vld [vmem:[%s13887_s29 + $0x68] sm:$0x1] }
 0x1e2   : > { %17790 = vst [vmem:[#allocation22_spill] sm:$0xff] %v15502_v9  ;;  %v3978_v51 = vrot.slane %v3976_v34, 4  ;;  %v3981_v7 = vrot.slane %v3979_v62, 5  ;;  %v11154_v21 = vcombine.low %v3868_v57, %v3878_v10  ;;  %v11155_v9 = vcombine.low %v3892_v35, %v3902_v48  ;;  %v15547_v34 = vld [vmem:[%s13887_s29 + $0x7c] sm:$0xf] }
 0x1e3   : > { %v15531_v3 = vrot.slane %v3985_v52, 5  ;;  %v4000_v36 = vshrl.u32 %v11110_v33, 16  ;;  %v3991_v45 = vrot.slane %v3989_v22, 4  ;;  %v4003_v63 = vshll.u32 %v11110_v33, 16  ;;  %v11116_v33 = vld [vmem:[%s13887_s29 + $0x84] sm:$0xf] }
 0x1e4   : > { %v3916_v43 = vsel %vm13919_vm2, %v15514_v41, %v15369_v28  ;;  %v3926_v54 = vsel %vm13919_vm2, %v15519_v38, %v15434_v53  ;;  %v3958_v57 = vor.u32 %v3957_v24, %v3954_v32  ;;  %v3968_v10 = vor.u32 %v3967_v59, %v15525_v17  ;;  %v13641_v28 = vld [vmem:[%s17579_s1 + $0x208] sm:$0xff]  }
 0x1e5   : > { %v3982_v35 = vor.u32 %v3981_v7, %v3978_v51  ;;  %v3995_v42 = vshll.u32 %v15529_v4, 16  ;;  %v3940_v48 = vsel %vm13919_vm2, %v3935_v2, %v15446_v11  ;;  %v3950_v53 = vsel %vm13919_vm2, %v3945_v58, %v15521_v49  ;;  %v13642_v49 = vld [vmem:[%s17579_s1 + $0x210] sm:$0xff]  }
 0x1e6   : > { %12475 = vmatmul.mubr.bf16.gmra.mrb[28].mxu0 %v13638_v47  ;;  %v11113_v47 = vld [vmem:[%s13887_s29 + $0x78] sm:$0xf]  ;;  %v15558_v32 = vrot.slane %v3971_v16, 5  ;;  %v4002_v7 = vrot.slane %v4000_v36, 4  ;;  %v3992_v41 = vor.u32 %v3991_v45, %v15531_v3  ;;  %v4005_v52 = vrot.slane %v4003_v63, 5 }
 0x1e7   : > { %12494 = vmatprep.mubr.bf16.mxu0 %v11153_v44  ;;  %v4013_v44 = vshrl.u32 %v15229_v14, 16  ;;  %v4024_v14 = vshrl.u32 %v11113_v47, 16  ;;  %v4027_v62 = vshll.u32 %v11113_v47, 16  ;;  %v15561_v38 = vrot.slane %v4009_v15, 5 }
 0x1e8   : > { %v3959_v24 = vrot.slane %v3958_v57, 4  ;;  %v3969_v59 = vrot.slane %v3968_v10, 4  ;;  %v4033_v51 = vshll.u32 %v15547_v34, 16  ;;  %v4037_v11 = vshrl.u32 %v15547_v34, 16 }
 0x1e9   : > { %v4015_v22 = vrot.slane %v4013_v44, 4  ;;  %v3983_v58 = vrot.slane %v3982_v35, 4  ;;  %v3997_v2 = vrot.slane %v3995_v42, 5  ;;  %v4026_v36 = vrot.slane %v4024_v14, 4 }
 0x1ea   : > { %v4029_v16 = vrot.slane %v4027_v62, 5  ;;  %v4048_v47 = vshrl.u32 %v11116_v33, 16  ;;  %v4057_v45 = vshll.u32 %v15272_v25, 16  ;;  %v4061_v63 = vshrl.u32 %v15272_v25, 16 }
 0x1eb   : > { %v3993_v15 = vrot.slane %v3992_v41, 4  ;;  %v4019_v44 = vshll.u32 %v15232_v20, 16  ;;  %v11156_v57 = vcombine.low %v3916_v43, %v3926_v54  ;;  %v11157_v10 = vcombine.low %v3940_v48, %v3950_v53  ;;  %v11119_v43 = vld [vmem:[%s13887_s29 + $0x90] sm:$0xf]  ;;  %v13643_v54 = vld [vmem:[%s17579_s1 + $0x218] sm:$0xff]  }
 0x1ec   : > { %v15574_v35 = vrot.slane %v4033_v51, 5  ;;  %v4039_v42 = vrot.slane %v4037_v11, 4  ;;  %v3964_v14 = vsel %vm13919_vm2, %v3959_v24, %v15525_v17  ;;  %v3974_v25 = vsel %vm13919_vm2, %v3969_v59, %v15558_v32 }
 0x1ed   : > { %v3988_v62 = vsel %vm13919_vm2, %v3983_v58, %v15531_v3  ;;  %v4030_v20 = vor.u32 %v4029_v16, %v4026_v36  ;;  %v15592_v17 = vrot.slane %v4057_v45, 5  ;;  %v4063_v53 = vrot.slane %v4061_v63, 4 }
 0x1ee   : > { %12495 = vmatmul.mubr.bf16.vlgmr.msra.gmra.mrb[0].mxu0 %v11154_v21  ;;  %v4051_v21 = vshll.u32 %v11116_v33, 16  ;;  %v3998_v32 = vsel %vm13919_vm2, %v3993_v15, %v3997_v2  ;;  %v4021_v3 = vrot.slane %v4019_v44, 5  ;;  %v4072_v24 = vshrl.u32 %v11119_v43, 16 }
 0x1ef   : > { %12527 = vmatpush3.bf16.msra.mxu0 %v15284_v0  ;;  %12498 = vmatprep.mubr.bf16.mxu0 %v11155_v9  ;;  %v4006_v0 = vor.u32 %v4005_v52, %v4002_v7  ;;  %v4016_v9 = vor.u32 %v4015_v22, %v15561_v38  ;;  %v15586_v7 = vld [vmem:[%s13887_s29 + $0x80] sm:$0x1]  ;;  %v4040_v22 = vor.u32 %v4039_v42, %v15574_v35  ;;  %v4075_v59 = vshll.u32 %v11119_v43, 16  ;;  %v13645_v43 = vld [vmem:[%s17579_s1 + $0x228] sm:$0xff]  }
 0x1f0   : > { %12528 = vmatprep.subr.bf16.mxu0 %v13641_v28  ;;  %v4053_v48 = vrot.slane %v4051_v21, 5  ;;  %v4043_v33 = vshll.u32 %v15586_v7, 16  ;;  %v4081_v51 = vshll.u32 %v15326_v46, 16  ;;  %v4085_v11 = vshrl.u32 %v15326_v46, 16  ;;  %v11122_v21 = vld [vmem:[%s13887_s29 + $0x9c] sm:$0xf] }
 0x1f1   : > { %v4007_v41 = vrot.slane %v4006_v0, 4  ;;  %v4017_v52 = vrot.slane %v4016_v9, 4  ;;  %v4031_v58 = vrot.slane %v4030_v20, 4  ;;  %v4064_v36 = vor.u32 %v4063_v53, %v15592_v17 }
 0x1f2   : > { %v4067_v16 = vshll.u32 %v15275_v8, 16  ;;  %v11158_v45 = vcombine.low %v3964_v14, %v3974_v25  ;;  %v11159_v63 = vcombine.low %v3988_v62, %v3998_v32  ;;  %v4041_v15 = vrot.slane %v4040_v22, 4 }
 0x1f3   : > { %12529 = vmatpush3.bf16.msra.mxu0 %v13641_v28  ;;  %v4050_v28 = vrot.slane %v4048_v47, 4  ;;  %v13644_v47 = vld [vmem:[%s17579_s1 + $0x220] sm:$0xff]   ;;  %v4022_v46 = vsel %vm13919_vm2, %v4017_v52, %v4021_v3  ;;  %v4045_v0 = vrot.slane %v4043_v33, 5  ;;  %v4074_v9 = vrot.slane %v4072_v24, 4 }
 0x1f4   : > { %12530 = vmatprep.subr.bf16.mxu0 %v13642_v49  ;;  %v4077_v44 = vrot.slane %v4075_v59, 5  ;;  %v15612_v8 = vrot.slane %v4081_v51, 5  ;;  %v4096_v42 = vshrl.u32 %v11122_v21, 16  ;;  %v4099_v20 = vshll.u32 %v11122_v21, 16 }
 0x1f5   : > { %v4054_v2 = vor.u32 %v4053_v48, %v4050_v28  ;;  %v4036_v14 = vsel %vm13919_vm2, %v4031_v58, %v15574_v35  ;;  %v4069_v62 = vrot.slane %v4067_v16, 5  ;;  %v4105_v28 = vshll.u32 %v15332_v39, 16 }
 0x1f6   : > { %12499 = vmatmul.mubr.bf16.gmra.mrb[4].mxu0 %v11156_v57  ;;  %v11125_v57 = vld [vmem:[%s13887_s29 + $0xa8] sm:$0xf]  ;;  %v4046_v32 = vsel %vm13919_vm2, %v4041_v15, %v4045_v0  ;;  %v4091_v35 = vshll.u32 %v15329_v13, 16  ;;  %v4133_v52 = vshrl.u32 %v15390_v61, 16  ;;  %v4078_v3 = vor.u32 %v4077_v44, %v4074_v9  ;;  %v13647_v0 = vld [vmem:[%s17579_s1 + $0x238] sm:$0xff]  }
 0x1f7   : > { %12502 = vmatprep.mubr.bf16.mxu0 %v11157_v10  ;;  %12531 = vmatpush3.bf16.msra.mxu0 %v13642_v49  ;;  %v4012_v49 = vsel %vm13919_vm2, %v4007_v41, %v15561_v38  ;;  %v4087_v10 = vrot.slane %v4085_v11, 4  ;;  %v4055_v25 = vrot.slane %v4054_v2, 4  ;;  %v4065_v38 = vrot.slane %v4064_v36, 4 }
 0x1f8   : > { %12532 = vmatprep.subr.bf16.mxu0 %v13643_v54  ;;  %v4120_v48 = vshrl.u32 %v11125_v57, 16  ;;  %v4123_v53 = vshll.u32 %v11125_v57, 16  ;;  %v4129_v41 = vshll.u32 %v15390_v61, 16  ;;  %v4098_v33 = vrot.slane %v4096_v42, 4  ;;  %v13646_v61 = vld [vmem:[%s17579_s1 + $0x230] sm:$0xff]  }
 0x1f9   : > { %v4088_v22 = vor.u32 %v4087_v10, %v15612_v8  ;;  %v11160_v24 = vcombine.low %v4012_v49, %v4022_v46  ;;  %v4060_v59 = vsel %vm13919_vm2, %v4055_v25, %v15592_v17  ;;  %v4070_v13 = vsel %vm13919_vm2, %v4065_v38, %v4069_v62  ;;  %v11128_v17 = vld [vmem:[%s13887_s29 + $0xb4] sm:$0xf]  ;;  %v11131_v42 = vld [vmem:[%s13887_s29 + $0xc0] sm:$0xf] }
 0x1fa   : > { %v15636_v51 = vrot.slane %v4105_v28, 5  ;;  %v4122_v58 = vrot.slane %v4120_v48, 4  ;;  %v4125_v2 = vrot.slane %v4123_v53, 5  ;;  %v11161_v36 = vcombine.low %v4036_v14, %v4046_v32 }
 0x1fb   : > { %12533 = vmatpush3.bf16.msra.mxu0 %v13643_v54  ;;  %v4109_v54 = vshrl.u32 %v15332_v39, 16  ;;  %v4101_v39 = vrot.slane %v4099_v20, 5  ;;  %v4093_v16 = vrot.slane %v4091_v35, 5  ;;  %v4135_v21 = vrot.slane %v4133_v52, 4 }
 0x1fc   : > { %12534 = vmatprep.subr.bf16.mxu0 %v13644_v47  ;;  %v4115_v46 = vshll.u32 %v15335_v27, 16  ;;  %v11162_v15 = vcombine.low %v4060_v59, %v4070_v13  ;;  %v4126_v44 = vor.u32 %v4125_v2, %v4122_v58  ;;  %v4139_v57 = vshll.u32 %v15393_v29, 16 }
 0x1fd   : > { %v4111_v11 = vrot.slane %v4109_v54, 4  ;;  %v4102_v49 = vor.u32 %v4101_v39, %v4098_v33  ;;  %v4144_v10 = vshrl.u32 %v11128_v17, 16  ;;  %v4147_v14 = vshll.u32 %v11128_v17, 16 }
 0x1fe   : > { %12503 = vmatmul.mubr.bf16.gmra.mrb[8].mxu0 %v11158_v45  ;;  %v4079_v45 = vrot.slane %v4078_v3, 4  ;;  %v4153_v27 = vshll.u32 %v15396_v19, 16  ;;  %v4157_v25 = vshrl.u32 %v15396_v19, 16  ;;  %v4117_v29 = vrot.slane %v4115_v46, 5 }
 0x1ff   : > { %12506 = vmatprep.mubr.bf16.mxu0 %v11159_v63  ;;  %12535 = vmatpush3.bf16.msra.mxu0 %v13644_v47  ;;  %v15638_v47 = vrot.slane %v4129_v41, 5  ;;  %v4089_v63 = vrot.slane %v4088_v22, 4  ;;  %v4112_v9 = vor.u32 %v4111_v11, %v15636_v51  ;;  %v4168_v28 = vshrl.u32 %v11131_v42, 16 }
 0x200   : > { %12536 = vmatprep.subr.bf16.mxu0 %v13645_v43  ;;  %v4084_v38 = vsel %vm13919_vm2, %v4079_v45, %v15612_v8  ;;  %v4171_v54 = vshll.u32 %v11131_v42, 16  ;;  %v4177_v48 = vshll.u32 %v15461_v12, 16  ;;  %v4181_v53 = vshrl.u32 %v15461_v12, 16 }
 0x201   : > { %v4136_v20 = vor.u32 %v4135_v21, %v15638_v47  ;;  %v4094_v62 = vsel %vm13919_vm2, %v4089_v63, %v4093_v16  ;;  %v4113_v19 = vrot.slane %v4112_v9, 4  ;;  %v4127_v32 = vrot.slane %v4126_v44, 4 }
 0x202   : > { %v4141_v35 = vrot.slane %v4139_v57, 5  ;;  %v4146_v41 = vrot.slane %v4144_v10, 4  ;;  %v4149_v8 = vrot.slane %v4147_v14, 5  ;;  %v4155_v3 = vrot.slane %v4153_v27, 5 }
 0x203   : > { %12537 = vmatpush3.bf16.msra.mxu0 %v13645_v43  ;;  %v4103_v43 = vrot.slane %v4102_v49, 4  ;;  %v4137_v52 = vrot.slane %v4136_v20, 4  ;;  %v4159_v22 = vrot.slane %v4157_v25, 4  ;;  %v11163_v33 = vcombine.low %v4084_v38, %v4094_v62 }
 0x204   : > { %12538 = vmatprep.subr.bf16.mxu0 %v13646_v61  ;;  %v4170_v39 = vrot.slane %v4168_v28, 4  ;;  %v4179_v59 = vrot.slane %v4177_v48, 5  ;;  %v4183_v13 = vrot.slane %v4181_v53, 4  ;;  %v4118_v11 = vsel %vm13919_vm2, %v4113_v19, %v4117_v29  ;;  %v11177_v48 = vld [vmem:[%s13887_s29 + $0x18] sm:$0xe] }
 0x205   : > { %v4108_v12 = vsel %vm13919_vm2, %v4103_v43, %v15636_v51  ;;  %v4163_v58 = vshll.u32 %v15404_v30, 16  ;;  %v4132_v2 = vsel %vm13919_vm2, %v4127_v32, %v15638_v47  ;;  %v4150_v16 = vor.u32 %v4149_v8, %v4146_v41 }
 0x206   : > { %12507 = vmatmul.mubr.bf16.gmra.mrb[12].mxu0 %v11160_v24  ;;  %v4173_v24 = vrot.slane %v4171_v54, 5  ;;  %v4160_v21 = vor.u32 %v4159_v22, %v4155_v3  ;;  %v4201_v51 = vshll.u32 %v15467_v50, 16  ;;  %v4205_v63 = vshrl.u32 %v15467_v50, 16 }
 0x207   : > { %12510 = vmatprep.mubr.bf16.mxu0 %v11161_v36  ;;  %12539 = vmatpush3.bf16.msra.mxu0 %v13646_v61  ;;  %v11134_v61 = vld [vmem:[%s13887_s29 + $0xcc] sm:$0xf]  ;;  %v4142_v36 = vsel %vm13919_vm2, %v4137_v52, %v4141_v35  ;;  %v4184_v46 = vor.u32 %v4183_v13, %v4179_v59  ;;  %v4187_v30 = vshll.u32 %v15464_v23, 16  ;;  %v4151_v9 = vrot.slane %v4150_v16, 4 }
 0x208   : > { %12540 = vmatprep.subr.bf16.mxu0 %v13647_v0  ;;  %v4192_v17 = vshrl.u32 %v11134_v61, 16  ;;  %v4195_v45 = vshll.u32 %v11134_v61, 16  ;;  %v4174_v49 = vor.u32 %v4173_v24, %v4170_v39  ;;  %v4161_v47 = vrot.slane %v4160_v21, 4  ;;  %v11178_v24 = vld [vmem:[%s13887_s29 + $0x24] sm:$0xe] }
 0x209   : > { %v4165_v44 = vrot.slane %v4163_v58, 5  ;;  %v4203_v42 = vrot.slane %v4201_v51, 5  ;;  %v4207_v20 = vrot.slane %v4205_v63, 4  ;;  %v4185_v27 = vrot.slane %v4184_v46, 4 }
 0x20a   : > { %v4194_v57 = vrot.slane %v4192_v17, 4  ;;  %v4197_v10 = vrot.slane %v4195_v45, 5  ;;  %v4175_v14 = vrot.slane %v4174_v49, 4  ;;  %v4189_v25 = vrot.slane %v4187_v30, 5  ;;  %v11180_v45 = vld [vmem:[%s13887_s29 + $0x3c] sm:$0xe] }
 0x20b   : > { %12541 = vmatpush3.bf16.msra.mxu0 %v13647_v0  ;;  %v11165_v0 = vcombine.low %v4132_v2, %v4142_v36  ;;  %v4156_v50 = vsel %vm13919_vm2, %v4151_v9, %v4155_v3  ;;  %v4166_v23 = vsel %vm13919_vm2, %v4161_v47, %v4165_v44  ;;  %v4208_v62 = vor.u32 %v4207_v20, %v4203_v42  ;;  %v17794_v20 = vld [vmem:[#allocation19_spill] sm:$0xff] }
 0x20c   : > { %v4198_v38 = vor.u32 %v4197_v10, %v4194_v57  ;;  %v4211_v43 = vshll.u32 %v15475_v26, 16  ;;  %v4180_v29 = vsel %vm13919_vm2, %v4175_v14, %v4179_v59  ;;  %v4190_v28 = vsel %vm13919_vm2, %v4185_v27, %v4189_v25  ;;  %v11183_v27 = vld [vmem:[%s13887_s29 + $0x60] sm:$0xe] }
 0x20d   : > { %v4603_v54 = vrot.slane %v15206_v5, 5  ;;  %v11166_v53 = vcombine.low %v4156_v50, %v4166_v23  ;;  %v11167_v19 = vcombine.low %v4180_v29, %v4190_v28  ;;  %v4209_v35 = vrot.slane %v4208_v62, 4 }
 0x20e   : > { %12511 = vmatmul.mubr.bf16.gmra.mrb[16].mxu0 %v11162_v15  ;;  %v11164_v15 = vcombine.low %v4108_v12, %v4118_v11  ;;  %v4199_v32 = vrot.slane %v4198_v38, 4  ;;  %v4213_v41 = vrot.slane %v4211_v43, 5  ;;  %v11193_v52 = vrot.slane %v11177_v48, 9 }
 0x20f   : > { %12514 = vmatprep.mubr.bf16.mxu0 %v11163_v33  ;;  %v4605_v8 = vrot.slane %v4603_v54, 4  ;;  %v4606_v26 = vrot.slane %v15246_v18, 5  ;;  %v4610_v22 = vrot.slane %v15222_v40, 5  ;;  %v4617_v59 = vrot.slane %v15287_v60, 5  ;;  %v11179_v18 = vld [vmem:[%s13887_s29 + $0x30] sm:$0xe] }
 0x210   : > { %v4204_v3 = vsel %vm13919_vm2, %v4199_v32, %v4203_v42  ;;  %v4214_v5 = vsel %vm13919_vm2, %v4209_v35, %v4213_v41  ;;  %v4604_v33 = vsel %vm14252_vm5, %v11193_v52, %v4603_v54  ;;  %v11194_v12 = vrot.slane %v11178_v24, 9  ;;  %v11185_v54 = vld [vmem:[%s13887_s29 + $0x78] sm:$0xe]  ;;  %v17795_v35 = vld [vmem:[#allocation5_spill] sm:$0xff] }
 0x211   : > { %v4607_v39 = vsel %vm14252_vm5, %v4605_v8, %v4606_v26  ;;  %v11168_v13 = vcombine.low %v4204_v3, %v4214_v5  ;;  %v4612_v11 = vrot.slane %v4610_v22, 4  ;;  %v4613_v58 = vrot.slane %v15254_v37, 5  ;;  %v17796_v41 = vld [vmem:[#allocation9_spill] sm:$0xff]  ;;  %v17798_v3 = vld [vmem:[#allocation6_spill] sm:$0xff]  ;;  %v17805_v24 = vld [vmem:[#allocation3_spill] sm:$0xff] }
 0x212   : > { %v11225_v61 = vcombine.low %v4604_v33, %v4607_v39  ;;  %v11195_v2 = vrot.slane %v11179_v18, 9  ;;  %v4619_v40 = vrot.slane %v4617_v59, 4  ;;  %v4620_v36 = vrot.slane %v15323_v6, 5  ;;  %v11181_v6 = vld [vmem:[%s13887_s29 + $0x48] sm:$0xe]  ;;  %v17802_v33 = vld [vmem:[#allocation10_spill] sm:$0xff] }
 0x213   : > { %v4611_v16 = vsel %vm14252_vm5, %v11194_v12, %v4610_v22  ;;  %v4614_v60 = vsel %vm14252_vm5, %v4612_v11, %v4613_v58  ;;  %v4624_v21 = vrot.slane %v15318_v56, 5  ;;  %v4631_v51 = vrot.slane %v15380_v31, 5  ;;  %v17793_v56 = vld [vmem:[#allocation18_spill] sm:$0xff]  ;;  %v17801_v22 = vld [vmem:[#allocation8_spill] sm:$0xff]  ;;  %v17811_v11 = vld [vmem:[#allocation15_spill] sm:$0xff] }
 0x214   : > { %v4618_v17 = vsel %vm14252_vm5, %v11195_v2, %v4617_v59  ;;  %v4621_v37 = vsel %vm14252_vm5, %v4619_v40, %v4620_v36  ;;  %v11226_v63 = vcombine.low %v4611_v16, %v4614_v60  ;;  %v11196_v46 = vrot.slane %v11180_v45, 9  ;;  %v17804_v39 = vld [vmem:[#allocation4_spill] sm:$0xff]  ;;  %v17810_v12 = vld [vmem:[#allocation14_spill] sm:$0xff]  ;;  %v17814_v40 = vld [vmem:[#allocation17_spill] sm:$0xff] }
 0x215   : > { %v11227_v49 = vcombine.low %v4618_v17, %v4621_v37  ;;  %v4626_v30 = vrot.slane %v4624_v21, 4  ;;  %v11197_v9 = vrot.slane %v11181_v6, 9  ;;  %v4633_v47 = vrot.slane %v4631_v51, 4  ;;  %v17807_v18 = vld [vmem:[#allocation12_spill] sm:$0xff]  ;;  %v17817_v60 = vld [vmem:[#allocation21_spill] sm:$0xff]  ;;  %v17819_v17 = vld [vmem:[#allocation22_spill] sm:$0xff] }
 0x216   : > { %12515 = vmatmul.mubr.bf16.gmra.mrb[20].mxu0 %v11164_v15  ;;  %v17792_v15 = vld [vmem:[#allocation11_spill] sm:$0xff]  ;;  %v4634_v44 = vrot.slane %v17793_v56, 5  ;;  %v4625_v57 = vsel %vm14252_vm5, %v11196_v46, %v4624_v21  ;;  %v4645_v14 = vrot.slane %v17794_v20, 5  ;;  %v11199_v23 = vrot.slane %v11183_v27, 9  ;;  %v17813_v2 = vld [vmem:[#allocation16_spill] sm:$0xff] }
 0x217   : > { %12518 = vmatprep.mubr.bf16.mxu0 %v11165_v0  ;;  %v4627_v0 = vrot.slane %v17792_v15, 5  ;;  %v4632_v10 = vsel %vm14252_vm5, %v11197_v9, %v4631_v51  ;;  %v4648_v62 = vrot.slane %v15529_v4, 5  ;;  %v4659_v28 = vrot.slane %v15547_v34, 5  ;;  %v17799_v34 = vld [vmem:[#allocation7_spill] sm:$0xff]  ;;  %v17816_v16 = vld [vmem:[#allocation20_spill] sm:$0xff]  ;;  %v13653_v15 = vld [vmem:[%s17581_s3 + $0x68] sm:$0xff]  }
 0x218   : > { %v4635_v42 = vsel %vm14252_vm5, %v4633_v47, %v4634_v44  ;;  %v4647_v38 = vrot.slane %v4645_v14, 4  ;;  %v4646_v43 = vsel %vm14252_vm5, %v11199_v23, %v4645_v14  ;;  %v4662_v32 = vrot.slane %v15586_v7, 5  ;;  %v17820_v37 = vld [vmem:[#allocation23_spill] sm:$0xff]  ;;  %v13648_v51 = vld [vmem:[%s17581_s3 + $0x40] sm:$0xff]  }
 0x219   : > { %v4628_v31 = vsel %vm14252_vm5, %v4626_v30, %v4627_v0  ;;  %v11229_v50 = vcombine.low %v4632_v10, %v4635_v42  ;;  %v17797_v52 = vcombine.low %v17795_v35, %v17796_v41  ;;  %v17800_v5 = vcombine.low %v17798_v3, %v17799_v34  ;;  %12574 = vmatprep.subr.bf16.mxu1 %v13648_v51  ;;  %v13651_v46 = vld [vmem:[%s17581_s3 + $0x58] sm:$0xff]   ;;  %v13652_v30 = vld [vmem:[%s17581_s3 + $0x60] sm:$0xff]   ;;  %v13654_v0 = vld [vmem:[%s17581_s3 + $0x70] sm:$0xff]  }
 0x21a   : > { %v11228_v25 = vcombine.low %v4625_v57, %v4628_v31  ;;  %v4649_v29 = vsel %vm14252_vm5, %v4647_v38, %v4648_v62  ;;  %v17803_v7 = vcombine.low %v17801_v22, %v17802_v33  ;;  %v17806_v59 = vcombine.low %v17804_v39, %v17805_v24  ;;  %12575 = vmatpush3.bf16.msra.mxu1 %v13648_v51  ;;  %v13655_v10 = vld [vmem:[%s17581_s3 + $0x78] sm:$0xff]  }
 0x21b   : > { %v11231_v48 = vcombine.low %v4646_v43, %v4649_v29  ;;  %v17812_v58 = vcombine.low %v17810_v12, %v17811_v11  ;;  %v17815_v36 = vcombine.low %v17813_v2, %v17814_v40  ;;  %v17818_v21 = vcombine.low %v17816_v16, %v17817_v60 }
 0x21c   : > { %v17821_v45 = vcombine.low %v17819_v17, %v17820_v37  ;;  %v13833_v6 = vmov 0  }
 0x21d   : > { %5128 = vst [vmem:[#allocation2 + $0x18] sm:$0xf] %v13833_v6  ;;  %5122 = vst [vmem:[#allocation2] sm:$0xf] %v13833_v6 }
 0x21e   : > { %12519 = vmatmul.mubr.bf16.gmra.mrb[24].mxu0 %v11166_v53  ;;  %v11201_v53 = vrot.slane %v11185_v54, 9  ;;  %5123 = vst [vmem:[#allocation2 + $0x4] sm:$0xf] %v13833_v6  ;;  %5124 = vst [vmem:[#allocation2 + $0x8] sm:$0x1] %v13833_v6 }
 0x21f   : > { %12522 = vmatprep.mubr.bf16.mxu0 %v11167_v19  ;;  %v4661_v19 = vrot.slane %v4659_v28, 4  ;;  %5125 = vst [vmem:[#allocation2 + $0xc] sm:$0xf] %v13833_v6  ;;  %5126 = vst [vmem:[#allocation2 + $0x10] sm:$0xf] %v13833_v6 }
 0x220   : > { %v4660_v4 = vsel %vm14252_vm5, %v11201_v53, %v4659_v28  ;;  %5127 = vst [vmem:[#allocation2 + $0x14] sm:$0x1] %v13833_v6  ;;  %5129 = vst [vmem:[#allocation2 + $0x1c] sm:$0xf] %v13833_v6  ;;  %v15793_v53 = vld [vmem:[%s17581_s3] sm:$0xff]  }
 0x221   : > { %v4663_v8 = vsel %vm14252_vm5, %v4661_v19, %v4662_v32  ;;  %5130 = vst [vmem:[#allocation2 + $0x20] sm:$0x1] %v13833_v6  ;;  %5131 = vst [vmem:[#allocation2 + $0x24] sm:$0xf] %v13833_v6  ;;  %v15799_v19 = vld [vmem:[%s17580_s2] ss:$0 sm:$0xff] }
 0x222   : > { %v11233_v26 = vcombine.low %v4660_v4, %v4663_v8  ;;  %5132 = vst [vmem:[#allocation2 + $0x28] sm:$0xf] %v13833_v6  ;;  %5133 = vst [vmem:[#allocation2 + $0x2c] sm:$0x1] %v13833_v6 }
 0x223   : > { %5134 = vst [vmem:[#allocation2 + $0x30] sm:$0xf] %v13833_v6  ;;  %5135 = vst [vmem:[#allocation2 + $0x34] sm:$0xf] %v13833_v6 }
 0x224   : > { %5136 = vst [vmem:[#allocation2 + $0x38] sm:$0x1] %v13833_v6  ;;  %5137 = vst [vmem:[#allocation2 + $0x3c] sm:$0xf] %v13833_v6  ;;  %v5697_v9 = vld [vmem:[#allocation2] sm:$0xf] }
 0x225   : > { %5138 = vst [vmem:[#allocation2 + $0x40] sm:$0xf] %v13833_v6  ;;  %5139 = vst [vmem:[#allocation2 + $0x44] sm:$0x1] %v13833_v6  ;;  %v5698_v47 = vld [vmem:[#allocation2 + $0x4] sm:$0xf] }
 0x226   : > { %12523 = vmatmul.mubr.bf16.gmra.mrb[28].mxu0 %v11168_v13  ;;  %v17808_v13 = vld [vmem:[#allocation13_spill] sm:$0xff]  ;;  %5140 = vst [vmem:[#allocation2 + $0x48] sm:$0xf] %v13833_v6  ;;  %5141 = vst [vmem:[#allocation2 + $0x4c] sm:$0xf] %v13833_v6  ;;  %v5762_v56 = vshrl.u32 %v5697_v9, 16 }
 0x227   : > { %12542 = vmatprep.mubr.bf16.mxu0 %v11225_v61  ;;  %v17809_v61 = vcombine.low %v17807_v18, %v17808_v13  ;;  %5142 = vst [vmem:[#allocation2 + $0x50] sm:$0x1] %v13833_v6  ;;  %5143 = vst [vmem:[#allocation2 + $0x54] sm:$0xf] %v13833_v6  ;;  %v5765_v44 = vshll.u32 %v5697_v9, 16  ;;  %v5771_v57 = vshll.u32 %v5698_v47, 16 }
 0x228   : > { %5144 = vst [vmem:[#allocation2 + $0x58] sm:$0xf] %v13833_v6  ;;  %5145 = vst [vmem:[#allocation2 + $0x5c] sm:$0x1] %v13833_v6  ;;  %v5775_v31 = vshrl.u32 %v5698_v47, 16  ;;  %v5764_v42 = vrot.slane %v5762_v56, 4 }
 0x229   : > { %5146 = vst [vmem:[#allocation2 + $0x60] sm:$0xf] %v13833_v6  ;;  %5147 = vst [vmem:[#allocation2 + $0x64] sm:$0xf] %v13833_v6  ;;  %v5767_v20 = vrot.slane %v5765_v44, 5  ;;  %v5773_v14 = vrot.slane %v5771_v57, 5 }
 0x22a   : > { %5148 = vst [vmem:[#allocation2 + $0x68] sm:$0x1] %v13833_v6  ;;  %5149 = vst [vmem:[#allocation2 + $0x6c] sm:$0xf] %v13833_v6  ;;  %v5745_v27 = vld [vmem:[#allocation2 + $0x8] sm:$0x1] }
 0x22b   : > { %5150 = vst [vmem:[#allocation2 + $0x70] sm:$0xf] %v13833_v6  ;;  %5151 = vst [vmem:[#allocation2 + $0x74] sm:$0x1] %v13833_v6  ;;  %v5781_v23 = vshll.u32 %v5745_v27, 16 }
 0x22c   : > { %5152 = vst [vmem:[#allocation2 + $0x78] sm:$0xf] %v13833_v6  ;;  %5153 = vst [vmem:[#allocation2 + $0x7c] sm:$0xf] %v13833_v6  ;;  %v5596_v57 = vld [vmem:[#allocation2 + $0x20] sm:$0x1] }
 0x22d   : > { %5154 = vst [vmem:[#allocation2 + $0x80] sm:$0x1] %v13833_v6  ;;  %5155 = vst [vmem:[#allocation2 + $0x84] sm:$0xf] %v13833_v6  ;;  %v5783_v43 = vrot.slane %v5781_v23, 5 }
 0x22e   : > { %12543 = vmatmul.mubr.bf16.vlgmr.msra.gmra.mrb[0].mxu0 %v11226_v63  ;;  %5156 = vst [vmem:[#allocation2 + $0x88] sm:$0xf] %v13833_v6  ;;  %5157 = vst [vmem:[#allocation2 + $0x8c] sm:$0x1] %v13833_v6  ;;  %v13649_v63 = vld [vmem:[%s17581_s3 + $0x48] sm:$0xff]  }
 0x22f   : > { %12546 = vmatprep.mubr.bf16.mxu0 %v11227_v49  ;;  %5158 = vst [vmem:[#allocation2 + $0x90] sm:$0xf] %v13833_v6  ;;  %5159 = vst [vmem:[#allocation2 + $0x94] sm:$0xf] %v13833_v6  ;;  %12576 = vmatprep.subr.bf16.mxu1 %v13649_v63  ;;  %v13650_v49 = vld [vmem:[%s17581_s3 + $0x50] sm:$0xff]  }
 0x230   : > { %5160 = vst [vmem:[#allocation2 + $0x98] sm:$0x1] %v13833_v6  ;;  %5161 = vst [vmem:[#allocation2 + $0x9c] sm:$0xf] %v13833_v6  ;;  %12577 = vmatpush3.bf16.msra.mxu1 %v13649_v63  ;;  %v5589_v27 = vld [vmem:[#allocation2 + $0x14] sm:$0x1] }
 0x231   : > { %5162 = vst [vmem:[#allocation2 + $0xa0] sm:$0xf] %v13833_v6  ;;  %5163 = vst [vmem:[#allocation2 + $0xa4] sm:$0x1] %v13833_v6  ;;  %12578 = vmatprep.subr.bf16.mxu1 %v13650_v49 }
 0x232   : > { %5164 = vst [vmem:[#allocation2 + $0xa8] sm:$0xf] %v13833_v6  ;;  %5165 = vst [vmem:[#allocation2 + $0xac] sm:$0xf] %v13833_v6 }
 0x233   : > { %5166 = vst [vmem:[#allocation2 + $0xb0] sm:$0x1] %v13833_v6  ;;  %5167 = vst [vmem:[#allocation2 + $0xb4] sm:$0xf] %v13833_v6 }
 0x234   : > { %5168 = vst [vmem:[#allocation2 + $0xb8] sm:$0xf] %v13833_v6  ;;  %5169 = vst [vmem:[#allocation2 + $0xbc] sm:$0x1] %v13833_v6  ;;  %12579 = vmatpush3.bf16.msra.mxu1 %v13650_v49 }
 0x235   : > { %5170 = vst [vmem:[#allocation2 + $0xc0] sm:$0xf] %v13833_v6  ;;  %5171 = vst [vmem:[#allocation2 + $0xc4] sm:$0xf] %v13833_v6  ;;  %12580 = vmatprep.subr.bf16.mxu1 %v13651_v46 }
 0x236   : > { %12547 = vmatmul.mubr.bf16.gmra.mrb[4].mxu0 %v11228_v25  ;;  %5172 = vst [vmem:[#allocation2 + $0xc8] sm:$0x1] %v13833_v6  ;;  %5173 = vst [vmem:[#allocation2 + $0xcc] sm:$0xf] %v13833_v6  ;;  %v5777_v25 = vrot.slane %v5775_v31, 4 }
 0x237   : > { %12550 = vmatprep.mubr.bf16.mxu0 %v11229_v50  ;;  %5174 = vst [vmem:[#allocation2 + $0xd0] sm:$0xf] %v13833_v6  ;;  %5175 = vst [vmem:[#allocation2 + $0xd4] sm:$0x1] %v13833_v6  ;;  %v5768_v50 = vor.u32 %v5767_v20, %v5764_v42 }
 0x238   : > { %12581 = vmatpush3.bf16.msra.mxu1 %v13651_v46  ;;  %v5778_v38 = vor.u32 %v5777_v25, %v5773_v14  ;;  %v5583_v46 = vld [vmem:[#allocation2 + $0xc] sm:$0xf] }
 0x239   : > { %12582 = vmatprep.subr.bf16.mxu1 %v13652_v30  ;;  %v5769_v62 = vrot.slane %v5768_v50, 4 }
 0x23a   : > { %v5779_v29 = vrot.slane %v5778_v38, 4 }
 0x23b   : > { %v5774_v28 = vsel %vm13919_vm2, %v5769_v62, %v5773_v14 }
 0x23c   : > { %12583 = vmatpush3.bf16.msra.mxu1 %v13652_v30  ;;  %v5784_v54 = vsel %vm13919_vm2, %v5779_v29, %v5783_v43 }
 0x23d   : > { %12584 = vmatprep.subr.bf16.mxu1 %v13653_v15 }
 0x23e   : > { %12551 = vmatmul.mubr.bf16.gmra.mrb[8].mxu0 %v17797_v52 }
 0x23f   : > { %12554 = vmatprep.mubr.bf16.mxu0 %v11231_v48  ;;  %v11298_v48 = vcombine.low %v5774_v28, %v5784_v54 }
 0x240   : > { %12585 = vmatpush3.bf16.msra.mxu1 %v13653_v15 }
 0x241   : > { %12586 = vmatprep.subr.bf16.mxu1 %v13654_v0  ;;  %12590 = vmatprep.mubr.bf16.mxu1 %v11298_v48 }
 0x244   : > { %12587 = vmatpush3.bf16.msra.mxu1 %v13654_v0 }
 0x245   : > { %12588 = vmatprep.subr.bf16.mxu1 %v13655_v10 }
 0x246   : > { %12555 = vmatmul.mubr.bf16.gmra.mrb[12].mxu0 %v17800_v5 }
 0x247   : > { %12558 = vmatprep.mubr.bf16.mxu0 %v11233_v26 }
 0x248   : > { %12589 = vmatpush3.bf16.msra.mxu1 %v13655_v10 }
 0x249   : > { %12622 = vmatprep.subr.bf16.mxu1 %v15793_v53 }
 0x24e   : > { %12559 = vmatmul.mubr.bf16.gmra.mrb[16].mxu0 %v17803_v7 }
 0x24f   : > { %12562 = vmatprep.mubr.bf16.mxu0 %v17806_v59 }
 0x256   : > { %12563 = vmatmul.mubr.bf16.gmra.mrb[20].mxu0 %v17809_v61 }
 0x257   : > { %12566 = vmatprep.mubr.bf16.mxu0 %v17812_v58 }
 0x25e   : > { %12567 = vmatmul.mubr.bf16.gmra.mrb[24].mxu0 %v17815_v36 }
 0x25f   : > { %12570 = vmatprep.mubr.bf16.mxu0 %v17818_v21  ;;  %v5592_v21 = vld [vmem:[#allocation2 + $0x18] sm:$0xf] }
 0x266   : > { %12571 = vmatmul.mubr.bf16.gmra.mrb[28].mxu0 %v17821_v45 }
 0x301   : > { %v12544_v32 = vpop.f32.mrb[0].mxu0 }
 0x302   : > { %v5044_v35 = vadd.f32 %v12544_v32, %v15799_v19  ;;  %v4876_v41 = vpop.f32.mrb[1].mxu0 }
 0x303   : > { %v5042_v52 = vadd.f32 %v15799_v19, %v4876_v41  ;;  %v12545_v4 = vpop.f32.mrb[2].mxu0 }
 0x304   : > { %v5076_v8 = vmax.f32 %v5044_v35, 0.0  ;;  %v5045_v26 = vadd.f32 %v12545_v4, %v15799_v19  ;;  %v4879_v3 = vpop.f32.mrb[3].mxu0 }
 0x305   : > { %v5074_v34 = vmax.f32 %v5042_v52, 0.0  ;;  %v5043_v5 = vadd.f32 %v15799_v19, %v4879_v3 }
 0x306   : > { %v11680_v22 = vpack.c.bf16 %v5076_v8, %v5076_v8  ;;  %v5077_v33 = vmax.f32 %v5045_v26, 0.0 }
 0x307   : > { %v11678_v7 = vpack.c.bf16 %v5074_v34, %v5074_v34  ;;  %v5075_v39 = vmax.f32 %v5043_v5, 0.0  ;;  %v5606_v34 = vld [vmem:[#allocation2 + $0x30] sm:$0xf] }
 0x308   : > { %v5277_v24 = vshrl.u32 %v11680_v22, 16  ;;  %v11681_v59 = vpack.c.bf16 %v5077_v33, %v5077_v33  ;;  %v5280_v18 = vshll.u32 %v11680_v22, 16 }
 0x309   : > { %v5260_v13 = vshrl.u32 %v11678_v7, 16  ;;  %v5263_v61 = vshll.u32 %v11678_v7, 16  ;;  %v11679_v12 = vpack.c.bf16 %v5075_v39, %v5075_v39  ;;  %v12548_v11 = vpop.f32.mrb[4].mxu0 }
 0x30a   : > { %v5279_v58 = vrot.slane %v5277_v24, 7  ;;  %v5285_v2 = vshrl.u32 %v11681_v59, 16  ;;  %v5288_v40 = vshll.u32 %v11681_v59, 16  ;;  %v5048_v36 = vadd.f32 %v12548_v11, %v15799_v19  ;;  %v4892_v16 = vpop.f32.mrb[5].mxu0  ;;  %v5599_v59 = vld [vmem:[#allocation2 + $0x24] sm:$0xf] }
 0x30b   : > { %v5262_v17 = vrot.slane %v5260_v13, 7  ;;  %v5268_v37 = vshrl.u32 %v11679_v12, 16  ;;  %v5271_v45 = vshll.u32 %v11679_v12, 16  ;;  %v5046_v51 = vadd.f32 %v15799_v19, %v4892_v16  ;;  %v12549_v6 = vpop.f32.mrb[6].mxu0 }
 0x30c   : > { %v5282_v63 = vor.u32 %v5280_v18, %v5279_v58  ;;  %v5283_v49 = vrot.slane %v5279_v58, 4  ;;  %v5287_v15 = vrot.slane %v5285_v2, 7  ;;  %v5080_v0 = vmax.f32 %v5048_v36, 0.0  ;;  %v4895_v9 = vpop.f32.mrb[7].mxu0 }
 0x30d   : > { %v5265_v47 = vor.u32 %v5263_v61, %v5262_v17  ;;  %v5266_v56 = vrot.slane %v5262_v17, 4  ;;  %v5270_v31 = vrot.slane %v5268_v37, 7  ;;  %v5078_v10 = vmax.f32 %v5046_v51, 0.0 }
 0x30e   : > { %v5593_v42 = vsel %vm15808_vm11, %v5282_v63, %v5592_v21  ;;  %v5290_v20 = vor.u32 %v5288_v40, %v5287_v15  ;;  %v5292_v14 = vrot.slane %v5287_v15, 4  ;;  %v11684_v25 = vpack.c.bf16 %v5080_v0, %v5080_v0  ;;  %v5610_v15 = vld [vmem:[#allocation2 + $0x38] sm:$0x1]  ;;  %v5603_v0 = vld [vmem:[#allocation2 + $0x2c] sm:$0x1] }
 0x30f   : > { %5594 = vst [vmem:[#allocation2 + $0x18] sm:$0xf] %v5593_v42  ;;  %v5584_v50 = vsel %vm15808_vm11, %v5265_v47, %v5583_v46  ;;  %v5273_v23 = vor.u32 %v5271_v45, %v5270_v31  ;;  %v5275_v38 = vrot.slane %v5270_v31, 4  ;;  %v11682_v62 = vpack.c.bf16 %v5078_v10, %v5078_v10 }
 0x310   : > { %5585 = vst [vmem:[#allocation2 + $0xc] sm:$0xf] %v5584_v50  ;;  %v5291_v43 = vsel %vm15815_vm12, %v5283_v49, %v5290_v20  ;;  %v5597_v29 = vsel %vm15821_vm13, %v5292_v14, %v5596_v57  ;;  %v5311_v28 = vshrl.u32 %v11684_v25, 16  ;;  %v5314_v32 = vshll.u32 %v11684_v25, 16  ;;  %v5620_v50 = vld [vmem:[#allocation2 + $0x48] sm:$0xf] }
 0x311   : > { %5595 = vst [vmem:[#allocation2 + $0x1c] sm:$0xf] %v5291_v43  ;;  %5598 = vst [vmem:[#allocation2 + $0x20] sm:$0x1] %v5597_v29  ;;  %v5274_v54 = vsel %vm15815_vm12, %v5266_v56, %v5273_v23  ;;  %v5590_v48 = vsel %vm15821_vm13, %v5275_v38, %v5589_v27  ;;  %v5294_v35 = vshrl.u32 %v11682_v62, 16  ;;  %v12552_v41 = vpop.f32.mrb[8].mxu0  ;;  %v5049_v4 = vadd.f32 %v12549_v6, %v15799_v19 }
 0x312   : > { %5586 = vst [vmem:[#allocation2 + $0x10] sm:$0xf] %v5274_v54  ;;  %5591 = vst [vmem:[#allocation2 + $0x14] sm:$0x1] %v5590_v48  ;;  %v15837_v52 = vrot.slane %v5311_v28, 7  ;;  %v5047_v8 = vadd.f32 %v15799_v19, %v4895_v9  ;;  %v5052_v26 = vadd.f32 %v12552_v41, %v15799_v19  ;;  %v4908_v3 = vpop.f32.mrb[9].mxu0 }
 0x313   : > { %v5296_v5 = vrot.slane %v5294_v35, 7  ;;  %v5297_v22 = vshll.u32 %v11682_v62, 16  ;;  %v5050_v33 = vadd.f32 %v15799_v19, %v4908_v3  ;;  %v12553_v7 = vpop.f32.mrb[10].mxu0  ;;  %v5081_v18 = vmax.f32 %v5049_v4, 0.0 }
 0x314   : > { %v5316_v39 = vor.u32 %v5314_v32, %v15837_v52  ;;  %v5317_v24 = vrot.slane %v15837_v52, 4  ;;  %v5079_v13 = vmax.f32 %v5047_v8, 0.0  ;;  %v4911_v61 = vpop.f32.mrb[11].mxu0  ;;  %v5084_v58 = vmax.f32 %v5052_v26, 0.0  ;;  %v5613_v32 = vld [vmem:[#allocation2 + $0x3c] sm:$0xf] }
 0x315   : > { %v5299_v12 = vor.u32 %v5297_v22, %v5296_v5  ;;  %v5300_v11 = vrot.slane %v5296_v5, 4  ;;  %v5082_v2 = vmax.f32 %v5050_v33, 0.0  ;;  %v11685_v36 = vpack.c.bf16 %v5081_v18, %v5081_v18 }
 0x316   : > { %v5607_v40 = vsel %vm15808_vm11, %v5316_v39, %v5606_v34  ;;  %v11683_v16 = vpack.c.bf16 %v5079_v13, %v5079_v13  ;;  %v5053_v21 = vadd.f32 %v12553_v7, %v15799_v19  ;;  %v11688_v37 = vpack.c.bf16 %v5084_v58, %v5084_v58 }
 0x317   : > { %5608 = vst [vmem:[#allocation2 + $0x30] sm:$0xf] %v5607_v40  ;;  %v5600_v17 = vsel %vm15808_vm11, %v5299_v12, %v5599_v59  ;;  %v11686_v45 = vpack.c.bf16 %v5082_v2, %v5082_v2  ;;  %v5051_v51 = vadd.f32 %v15799_v19, %v4911_v61  ;;  %v5319_v6 = vshrl.u32 %v11685_v36, 16  ;;  %v5624_v40 = vld [vmem:[#allocation2 + $0x50] sm:$0x1] }
 0x318   : > { %5601 = vst [vmem:[#allocation2 + $0x24] sm:$0xf] %v5600_v17  ;;  %v5322_v63 = vshll.u32 %v11685_v36, 16  ;;  %v5302_v49 = vshrl.u32 %v11683_v16, 16  ;;  %v5305_v46 = vshll.u32 %v11683_v16, 16  ;;  %v5345_v9 = vshrl.u32 %v11688_v37, 16 }
 0x319   : > { %v5348_v47 = vshll.u32 %v11688_v37, 16  ;;  %v5328_v56 = vshrl.u32 %v11686_v45, 16  ;;  %v5331_v57 = vshll.u32 %v11686_v45, 16  ;;  %v12556_v31 = vpop.f32.mrb[12].mxu0  ;;  %v5321_v10 = vrot.slane %v5319_v6, 7 }
 0x31a   : > { %v5304_v42 = vrot.slane %v5302_v49, 7  ;;  %v5085_v20 = vmax.f32 %v5053_v21, 0.0  ;;  %v5083_v14 = vmax.f32 %v5051_v51, 0.0  ;;  %v4924_v27 = vpop.f32.mrb[13].mxu0  ;;  %v15851_v25 = vrot.slane %v5345_v9, 7 }
 0x31b   : > { %v15853_v23 = vrot.slane %v5328_v56, 7  ;;  %v5056_v38 = vadd.f32 %v12556_v31, %v15799_v19  ;;  %v5054_v62 = vadd.f32 %v15799_v19, %v4924_v27  ;;  %v12557_v43 = vpop.f32.mrb[14].mxu0  ;;  %v5324_v29 = vor.u32 %v5322_v63, %v5321_v10  ;;  %v5617_v6 = vld [vmem:[#allocation2 + $0x44] sm:$0x1] }
 0x31c   : > { %v5326_v28 = vrot.slane %v5321_v10, 4  ;;  %v5307_v54 = vor.u32 %v5305_v46, %v5304_v42  ;;  %v5309_v48 = vrot.slane %v5304_v42, 4  ;;  %v4927_v35 = vpop.f32.mrb[15].mxu0  ;;  %v5350_v41 = vor.u32 %v5348_v47, %v15851_v25 }
 0x31d   : > { %v5351_v52 = vrot.slane %v15851_v25, 4  ;;  %v5333_v4 = vor.u32 %v5331_v57, %v15853_v23  ;;  %v5334_v8 = vrot.slane %v15853_v23, 4  ;;  %v5325_v26 = vsel %vm15815_vm12, %v5317_v24, %v5324_v29  ;;  %v5627_v29 = vld [vmem:[#allocation2 + $0x54] sm:$0xf] }
 0x31e   : > { %v5611_v3 = vsel %vm15821_vm13, %v5326_v28, %v5610_v15  ;;  %v5308_v34 = vsel %vm15815_vm12, %v5300_v11, %v5307_v54  ;;  %v5604_v5 = vsel %vm15821_vm13, %v5309_v48, %v5603_v0  ;;  %5609 = vst [vmem:[#allocation2 + $0x34] sm:$0xf] %v5325_v26  ;;  %v5621_v22 = vsel %vm15808_vm11, %v5350_v41, %v5620_v50 }
 0x31f   : > { %5612 = vst [vmem:[#allocation2 + $0x38] sm:$0x1] %v5611_v3  ;;  %5602 = vst [vmem:[#allocation2 + $0x28] sm:$0xf] %v5308_v34  ;;  %v5614_v33 = vsel %vm15808_vm11, %v5333_v4, %v5613_v32  ;;  %v11689_v7 = vpack.c.bf16 %v5085_v20, %v5085_v20  ;;  %v11687_v39 = vpack.c.bf16 %v5083_v14, %v5083_v14  ;;  %v5088_v24 = vmax.f32 %v5056_v38, 0.0 }
 0x320   : > { %5605 = vst [vmem:[#allocation2 + $0x2c] sm:$0x1] %v5604_v5  ;;  %5622 = vst [vmem:[#allocation2 + $0x48] sm:$0xf] %v5621_v22  ;;  %v5086_v59 = vmax.f32 %v5054_v62, 0.0  ;;  %v5057_v18 = vadd.f32 %v12557_v43, %v15799_v19  ;;  %v5055_v13 = vadd.f32 %v15799_v19, %v4927_v35 }
 0x321   : > { %5615 = vst [vmem:[#allocation2 + $0x3c] sm:$0xf] %v5614_v33  ;;  %v5353_v61 = vshrl.u32 %v11689_v7, 16  ;;  %v5356_v12 = vshll.u32 %v11689_v7, 16  ;;  %v5336_v11 = vshrl.u32 %v11687_v39, 16  ;;  %v5339_v58 = vshll.u32 %v11687_v39, 16 }
 0x322   : > { %v12560_v2 = vpop.f32.mrb[16].mxu0  ;;  %v11692_v36 = vpack.c.bf16 %v5088_v24, %v5088_v24  ;;  %v11690_v16 = vpack.c.bf16 %v5086_v59, %v5086_v59  ;;  %v5089_v21 = vmax.f32 %v5057_v18, 0.0  ;;  %v5087_v17 = vmax.f32 %v5055_v13, 0.0  ;;  %v5634_v43 = vld [vmem:[#allocation2 + $0x60] sm:$0xf] }
 0x323   : > { %v4940_v37 = vpop.f32.mrb[17].mxu0  ;;  %v5355_v45 = vrot.slane %v5353_v61, 7  ;;  %v5338_v51 = vrot.slane %v5336_v11, 7  ;;  %v5060_v63 = vadd.f32 %v12560_v2, %v15799_v19  ;;  %v5699_v35 = vld [vmem:[#allocation2 + $0xc] sm:$0xf] }
 0x324   : > { %v5058_v49 = vadd.f32 %v15799_v19, %v4940_v37  ;;  %v12561_v46 = vpop.f32.mrb[18].mxu0  ;;  %v5379_v15 = vshrl.u32 %v11692_v36, 16  ;;  %v5382_v0 = vshll.u32 %v11692_v36, 16  ;;  %v5362_v9 = vshrl.u32 %v11690_v16, 16  ;;  %v5638_v5 = vld [vmem:[#allocation2 + $0x68] sm:$0x1] }
 0x325   : > { %v5365_v47 = vshll.u32 %v11690_v16, 16  ;;  %v4943_v56 = vpop.f32.mrb[19].mxu0  ;;  %v5358_v57 = vor.u32 %v5356_v12, %v5355_v45  ;;  %v5360_v31 = vrot.slane %v5355_v45, 4  ;;  %v5341_v10 = vor.u32 %v5339_v58, %v5338_v51  ;;  %v5631_v59 = vld [vmem:[#allocation2 + $0x5c] sm:$0x1] }
 0x326   : > { %v5343_v42 = vrot.slane %v5338_v51, 4  ;;  %v5381_v20 = vrot.slane %v5379_v15, 7  ;;  %v5364_v14 = vrot.slane %v5362_v9, 7  ;;  %v11693_v27 = vpack.c.bf16 %v5089_v21, %v5089_v21  ;;  %v5700_v58 = vld [vmem:[#allocation2 + $0x10] sm:$0xf] }
 0x327   : > { %v11691_v25 = vpack.c.bf16 %v5087_v17, %v5087_v17  ;;  %v5359_v50 = vsel %vm15815_vm12, %v5351_v52, %v5358_v57  ;;  %v5625_v23 = vsel %vm15821_vm13, %v5360_v31, %v5624_v40  ;;  %v5342_v38 = vsel %vm15815_vm12, %v5334_v8, %v5341_v10  ;;  %v5648_v9 = vld [vmem:[#allocation2 + $0x78] sm:$0xf] }
 0x328   : > { %v5618_v62 = vsel %vm15821_vm13, %v5343_v42, %v5617_v6  ;;  %5623 = vst [vmem:[#allocation2 + $0x4c] sm:$0xf] %v5359_v50  ;;  %5626 = vst [vmem:[#allocation2 + $0x50] sm:$0x1] %v5625_v23  ;;  %v5384_v28 = vor.u32 %v5382_v0, %v5381_v20  ;;  %v5385_v54 = vrot.slane %v5381_v20, 4  ;;  %v5367_v48 = vor.u32 %v5365_v47, %v5364_v14 }
 0x329   : > { %5616 = vst [vmem:[#allocation2 + $0x40] sm:$0xf] %v5342_v38  ;;  %5619 = vst [vmem:[#allocation2 + $0x44] sm:$0x1] %v5618_v62  ;;  %v5368_v32 = vrot.slane %v5364_v14, 4  ;;  %v5387_v41 = vshrl.u32 %v11693_v27, 16  ;;  %v5061_v18 = vadd.f32 %v12561_v46, %v15799_v19  ;;  %v5059_v13 = vadd.f32 %v15799_v19, %v4943_v56 }
 0x32a   : > { %v5390_v52 = vshll.u32 %v11693_v27, 16  ;;  %v5370_v4 = vshrl.u32 %v11691_v25, 16  ;;  %v5373_v26 = vshll.u32 %v11691_v25, 16  ;;  %v15885_v3 = vpop.f32.mrb[20].mxu0  ;;  %v5635_v8 = vsel %vm15808_vm11, %v5384_v28, %v5634_v43  ;;  %v5641_v47 = vld [vmem:[#allocation2 + $0x6c] sm:$0xf] }
 0x32b   : > { %v5628_v34 = vsel %vm15808_vm11, %v5367_v48, %v5627_v29  ;;  %v5092_v22 = vmax.f32 %v5060_v63, 0.0  ;;  %v5090_v33 = vmax.f32 %v5058_v49, 0.0  ;;  %v15891_v7 = vpop.f32.mrb[21].mxu0  ;;  %5636 = vst [vmem:[#allocation2 + $0x60] sm:$0xf] %v5635_v8  ;;  %v5389_v39 = vrot.slane %v5387_v41, 7 }
 0x32c   : > { %5629 = vst [vmem:[#allocation2 + $0x54] sm:$0xf] %v5628_v34  ;;  %v5372_v24 = vrot.slane %v5370_v4, 7  ;;  %v15895_v61 = vpop.f32.mrb[22].mxu0  ;;  %v5786_v2 = vshrl.u32 %v5699_v35, 16  ;;  %v5789_v40 = vshll.u32 %v5699_v35, 16 }
 0x32d   : > { %v11696_v12 = vpack.c.bf16 %v5092_v22, %v5092_v22  ;;  %v11694_v11 = vpack.c.bf16 %v5090_v33, %v5090_v33  ;;  %v15897_v36 = vpop.f32.mrb[23].mxu0  ;;  %v5392_v16 = vor.u32 %v5390_v52, %v5389_v39  ;;  %v5394_v21 = vrot.slane %v5389_v39, 4  ;;  %v5746_v42 = vld [vmem:[#allocation2 + $0x14] sm:$0x1]  ;;  %v5702_v8 = vld [vmem:[#allocation2 + $0x1c] sm:$0xf] }
 0x32e   : > { %v5375_v17 = vor.u32 %v5373_v26, %v5372_v24  ;;  %v5377_v37 = vrot.slane %v5372_v24, 4  ;;  %v5093_v31 = vmax.f32 %v5061_v18, 0.0  ;;  %v5091_v10 = vmax.f32 %v5059_v13, 0.0 }
 0x32f   : > { %v5413_v45 = vshrl.u32 %v11696_v12, 16  ;;  %v5416_v51 = vshll.u32 %v11696_v12, 16  ;;  %v5396_v6 = vshrl.u32 %v11694_v11, 16  ;;  %v5399_v63 = vshll.u32 %v11694_v11, 16  ;;  %v5652_v11 = vld [vmem:[#allocation2 + $0x80] sm:$0x1] }
 0x330   : > { %v5393_v49 = vsel %vm15815_vm12, %v5385_v54, %v5392_v16  ;;  %v5639_v46 = vsel %vm15821_vm13, %v5394_v21, %v5638_v5  ;;  %v5376_v15 = vsel %vm15815_vm12, %v5368_v32, %v5375_v17  ;;  %v5632_v0 = vsel %vm15821_vm13, %v5377_v37, %v5631_v59  ;;  %v5701_v32 = vld [vmem:[#allocation2 + $0x18] sm:$0xf]  ;;  %v5645_v16 = vld [vmem:[#allocation2 + $0x74] sm:$0x1] }
 0x331   : > { %5637 = vst [vmem:[#allocation2 + $0x64] sm:$0xf] %v5393_v49  ;;  %5640 = vst [vmem:[#allocation2 + $0x68] sm:$0x1] %v5639_v46  ;;  %v5415_v56 = vrot.slane %v5413_v45, 7  ;;  %v5398_v57 = vrot.slane %v5396_v6, 7  ;;  %v11697_v29 = vpack.c.bf16 %v5093_v31, %v5093_v31  ;;  %v11695_v28 = vpack.c.bf16 %v5091_v10, %v5091_v10 }
 0x332   : > { %5630 = vst [vmem:[#allocation2 + $0x58] sm:$0xf] %v5376_v15  ;;  %5633 = vst [vmem:[#allocation2 + $0x5c] sm:$0x1] %v5632_v0  ;;  %v5788_v20 = vrot.slane %v5786_v2, 4  ;;  %v5791_v14 = vrot.slane %v5789_v40, 5 }
 0x333   : > { %v5795_v27 = vshll.u32 %v5700_v58, 16  ;;  %v5799_v25 = vshrl.u32 %v5700_v58, 16  ;;  %v15907_v50 = vpop.f32.mrb[24].mxu0  ;;  %v5418_v23 = vor.u32 %v5416_v51, %v5415_v56  ;;  %v5419_v38 = vrot.slane %v5415_v56, 4  ;;  %v5747_v46 = vld [vmem:[#allocation2 + $0x20] sm:$0x1] }
 0x334   : > { %v5401_v62 = vor.u32 %v5399_v63, %v5398_v57  ;;  %v15909_v43 = vpop.f32.mrb[25].mxu0  ;;  %v5792_v54 = vor.u32 %v5791_v14, %v5788_v20  ;;  %v5805_v26 = vshll.u32 %v5746_v42, 16  ;;  %v5402_v5 = vrot.slane %v5398_v57, 4  ;;  %v5703_v57 = vld [vmem:[#allocation2 + $0x24] sm:$0xf] }
 0x335   : > { %v5797_v48 = vrot.slane %v5795_v27, 5  ;;  %v15911_v35 = vpop.f32.mrb[26].mxu0  ;;  %v5649_v41 = vsel %vm15808_vm11, %v5418_v23, %v5648_v9  ;;  %v5801_v4 = vrot.slane %v5799_v25, 4  ;;  %v5421_v22 = vshrl.u32 %v11697_v29, 16 }
 0x336   : > { %v5642_v52 = vsel %vm15808_vm11, %v5401_v62, %v5641_v47  ;;  %v15917_v34 = vpop.f32.mrb[27].mxu0  ;;  %5650 = vst [vmem:[#allocation2 + $0x78] sm:$0xf] %v5649_v41  ;;  %v5424_v33 = vshll.u32 %v11697_v29, 16  ;;  %v5404_v39 = vshrl.u32 %v11695_v28, 16  ;;  %v5407_v24 = vshll.u32 %v11695_v28, 16 }
 0x337   : > { %5643 = vst [vmem:[#allocation2 + $0x6c] sm:$0xf] %v5642_v52  ;;  %v5793_v59 = vrot.slane %v5792_v54, 4  ;;  %v5802_v18 = vor.u32 %v5801_v4, %v5797_v48  ;;  %v5807_v13 = vrot.slane %v5805_v26, 5  ;;  %v5423_v12 = vrot.slane %v5421_v22, 7 }
 0x338   : > { %v5406_v58 = vrot.slane %v5404_v39, 7  ;;  %v5810_v2 = vshrl.u32 %v5701_v32, 16  ;;  %v5813_v40 = vshll.u32 %v5701_v32, 16  ;;  %v5819_v37 = vshll.u32 %v5702_v8, 16  ;;  %v5704_v52 = vld [vmem:[#allocation2 + $0x28] sm:$0xf] }
 0x339   : > { %v5798_v21 = vsel %vm13919_vm2, %v5793_v59, %v5797_v48  ;;  %v5803_v17 = vrot.slane %v5802_v18, 4  ;;  %v5823_v45 = vshrl.u32 %v5702_v8, 16  ;;  %v5426_v51 = vor.u32 %v5424_v33, %v5423_v12  ;;  %v15921_v15 = vpop.f32.mrb[28].mxu0 }
 0x33a   : > { %v5428_v6 = vrot.slane %v5423_v12, 4  ;;  %v5409_v63 = vor.u32 %v5407_v24, %v5406_v58  ;;  %v5411_v49 = vrot.slane %v5406_v58, 4  ;;  %v5812_v9 = vrot.slane %v5810_v2, 4  ;;  %v15925_v31 = vpop.f32.mrb[29].mxu0 }
 0x33b   : > { %v5808_v0 = vsel %vm13919_vm2, %v5803_v17, %v5807_v13  ;;  %v5815_v47 = vrot.slane %v5813_v40, 5  ;;  %v5821_v56 = vrot.slane %v5819_v37, 5  ;;  %v5427_v10 = vsel %vm15815_vm12, %v5419_v38, %v5426_v51  ;;  %v15935_v27 = vpop.f32.mrb[30].mxu0  ;;  %v13657_v38 = vld [vmem:[%s17581_s3 + $0x8] sm:$0xff]  }
 0x33c   : > { %v5653_v42 = vsel %vm15821_vm13, %v5428_v6, %v5652_v11  ;;  %v5410_v20 = vsel %vm15815_vm12, %v5402_v5, %v5409_v63  ;;  %v5646_v14 = vsel %vm15821_vm13, %v5411_v49, %v5645_v16  ;;  %5651 = vst [vmem:[#allocation2 + $0x7c] sm:$0xf] %v5427_v10  ;;  %v11299_v25 = vcombine.low %v5798_v21, %v5808_v0  ;;  %v15940_v28 = vpop.f32.mrb[31].mxu0  ;;  %v5655_v6 = vld [vmem:[#allocation2 + $0x84] sm:$0xf]  ;;  %v13659_v0 = vld [vmem:[%s17581_s3 + $0x18] sm:$0xff]  }
 0x33d   : > { %5654 = vst [vmem:[#allocation2 + $0x80] sm:$0x1] %v5653_v42  ;;  %5644 = vst [vmem:[#allocation2 + $0x70] sm:$0xf] %v5410_v20  ;;  %v5816_v23 = vor.u32 %v5815_v47, %v5812_v9  ;;  %v5825_v62 = vrot.slane %v5823_v45, 4  ;;  %v5829_v29 = vshll.u32 %v5747_v46, 16  ;;  %v5064_v54 = vadd.f32 %v15885_v3, %v15799_v19 }
 0x33e   : > { %5647 = vst [vmem:[#allocation2 + $0x74] sm:$0x1] %v5646_v14  ;;  %v5062_v48 = vadd.f32 %v15799_v19, %v15891_v7  ;;  %v5065_v32 = vadd.f32 %v15895_v61, %v15799_v19  ;;  %v5063_v41 = vadd.f32 %v15799_v19, %v15897_v36  ;;  %12591 = vmatmul.mubr.bf16.vlgmr.msra.gmra.mrb[0].mxu1 %v11299_v25  ;;  %v5834_v5 = vshrl.u32 %v5703_v57, 16  ;;  %v13658_v36 = vld [vmem:[%s17581_s3 + $0x10] sm:$0xff]   ;;  %v5659_v10 = vld [vmem:[#allocation2 + $0x8c] sm:$0x1] }
 0x33f   : > { %v5817_v4 = vrot.slane %v5816_v23, 4  ;;  %v5826_v26 = vor.u32 %v5825_v62, %v5821_v56  ;;  %v5831_v8 = vrot.slane %v5829_v29, 5  ;;  %12623 = vmatpush3.bf16.msra.mxu1 %v15793_v53  ;;  %v5096_v22 = vmax.f32 %v5064_v54, 0.0  ;;  %v5662_v45 = vld [vmem:[#allocation2 + $0x90] sm:$0xf]  ;;  %v13660_v62 = vld [vmem:[%s17581_s3 + $0x20] sm:$0xff]  }
 0x340   : > { %v5094_v33 = vmax.f32 %v5062_v48, 0.0  ;;  %v5097_v3 = vmax.f32 %v5065_v32, 0.0  ;;  %v5095_v39 = vmax.f32 %v5063_v41, 0.0  ;;  %v5836_v61 = vrot.slane %v5834_v5, 4  ;;  %12624 = vmatprep.subr.bf16.mxu1 %v13657_v38 }
 0x341   : > { %v5822_v7 = vsel %vm13919_vm2, %v5817_v4, %v5821_v56  ;;  %v5827_v24 = vrot.slane %v5826_v26, 4  ;;  %v5837_v59 = vshll.u32 %v5703_v57, 16  ;;  %v11700_v18 = vpack.c.bf16 %v5096_v22, %v5096_v22  ;;  %v5666_v56 = vld [vmem:[#allocation2 + $0x98] sm:$0x1]  ;;  %v5748_v26 = vld [vmem:[#allocation2 + $0x2c] sm:$0x1] }
 0x342   : > { %v11698_v13 = vpack.c.bf16 %v5094_v33, %v5094_v33  ;;  %v11701_v12 = vpack.c.bf16 %v5097_v3, %v5097_v3  ;;  %v11699_v11 = vpack.c.bf16 %v5095_v39, %v5095_v39  ;;  %v5843_v2 = vshll.u32 %v5704_v52, 16  ;;  %v15970_v39 = vld [vmem:[#allocation2 + $0x34] sm:$0xf] }
 0x343   : > { %v5832_v53 = vsel %vm13919_vm2, %v5827_v24, %v5831_v8  ;;  %v5839_v58 = vrot.slane %v5837_v59, 5  ;;  %v5847_v40 = vshrl.u32 %v5704_v52, 16  ;;  %v5447_v21 = vshrl.u32 %v11700_v18, 16  ;;  %12625 = vmatpush3.bf16.msra.mxu1 %v13657_v38  ;;  %v15964_v8 = vld [vmem:[#allocation2 + $0x30] sm:$0xf] }
 0x344   : > { %v11300_v16 = vcombine.low %v5822_v7, %v5832_v53  ;;  %v5450_v17 = vshll.u32 %v11700_v18, 16  ;;  %v5430_v37 = vshrl.u32 %v11698_v13, 16  ;;  %v5433_v51 = vshll.u32 %v11698_v13, 16  ;;  %12626 = vmatprep.subr.bf16.mxu1 %v13658_v36  ;;  %v5749_v7 = vld [vmem:[#allocation2 + $0x38] sm:$0x1] }
 0x345   : > { %v5455_v63 = vshrl.u32 %v11701_v12, 16  ;;  %v5458_v49 = vshll.u32 %v11701_v12, 16  ;;  %v5438_v46 = vshrl.u32 %v11699_v11, 16  ;;  %v5449_v9 = vrot.slane %v5447_v21, 7 }
 0x346   : > { %12594 = vmatprep.mubr.bf16.mxu1 %v11300_v16  ;;  %v5432_v47 = vrot.slane %v5430_v37, 7  ;;  %v5441_v57 = vshll.u32 %v11699_v11, 16  ;;  %v5840_v42 = vor.u32 %v5839_v58, %v5836_v61  ;;  %v5845_v25 = vrot.slane %v5843_v2, 5  ;;  %v13661_v16 = vld [vmem:[%s17581_s3 + $0x28] sm:$0xff]  }
 0x347   : > { %v5457_v20 = vrot.slane %v5455_v63, 7  ;;  %v5440_v14 = vrot.slane %v5438_v46, 7  ;;  %v5849_v23 = vrot.slane %v5847_v40, 4  ;;  %v5452_v29 = vor.u32 %v5450_v17, %v5449_v9  ;;  %12627 = vmatpush3.bf16.msra.mxu1 %v13658_v36  ;;  %v15993_v46 = vld [vmem:[#allocation2 + $0x3c] sm:$0xf] }
 0x348   : > { %v5453_v38 = vrot.slane %v5449_v9, 4  ;;  %v5435_v54 = vor.u32 %v5433_v51, %v5432_v47  ;;  %v5436_v48 = vrot.slane %v5432_v47, 4  ;;  %12628 = vmatprep.subr.bf16.mxu1 %v13659_v0  ;;  %v5841_v33 = vrot.slane %v5840_v42, 4  ;;  %v13662_v42 = vld [vmem:[%s17581_s3 + $0x30] sm:$0xff]  }
 0x349   : > { %v5460_v32 = vor.u32 %v5458_v49, %v5457_v20  ;;  %v5462_v41 = vrot.slane %v5457_v20, 4  ;;  %v5443_v52 = vor.u32 %v5441_v57, %v5440_v14  ;;  %v5445_v4 = vrot.slane %v5440_v14, 4 }
 0x34a   : > { %v5663_v5 = vsel %vm15808_vm11, %v5452_v29, %v5662_v45  ;;  %v5656_v22 = vsel %vm15808_vm11, %v5435_v54, %v5655_v6  ;;  %v5850_v3 = vor.u32 %v5849_v23, %v5845_v25  ;;  %v5846_v18 = vsel %vm13919_vm2, %v5841_v33, %v5845_v25  ;;  %v13663_v33 = vld [vmem:[%s17581_s3 + $0x38] sm:$0xff]  }
 0x34b   : > { %5664 = vst [vmem:[#allocation2 + $0x90] sm:$0xf] %v5663_v5  ;;  %5657 = vst [vmem:[#allocation2 + $0x84] sm:$0xf] %v5656_v22  ;;  %v5461_v24 = vsel %vm15815_vm12, %v5453_v38, %v5460_v32  ;;  %v5667_v61 = vsel %vm15821_vm13, %v5462_v41, %v5666_v56  ;;  %v5444_v59 = vsel %vm15815_vm12, %v5436_v48, %v5443_v52  ;;  %v5853_v12 = vshll.u32 %v5748_v26, 16 }
 0x34c   : > { %v5660_v36 = vsel %vm15821_vm13, %v5445_v4, %v5659_v10  ;;  %5665 = vst [vmem:[#allocation2 + $0x94] sm:$0xf] %v5461_v24  ;;  %5668 = vst [vmem:[#allocation2 + $0x98] sm:$0x1] %v5667_v61  ;;  %v5851_v13 = vrot.slane %v5850_v3, 4  ;;  %v5858_v11 = vshrl.u32 %v15964_v8, 16  ;;  %12629 = vmatpush3.bf16.msra.mxu1 %v13659_v0  ;;  %v5068_v37 = vadd.f32 %v15907_v50, %v15799_v19 }
 0x34d   : > { %5658 = vst [vmem:[#allocation2 + $0x88] sm:$0xf] %v5444_v59  ;;  %5661 = vst [vmem:[#allocation2 + $0x8c] sm:$0x1] %v5660_v36  ;;  %v5861_v53 = vshll.u32 %v15964_v8, 16  ;;  %v5867_v58 = vshll.u32 %v15970_v39, 16  ;;  %12630 = vmatprep.subr.bf16.mxu1 %v13660_v62  ;;  %v5066_v45 = vadd.f32 %v15799_v19, %v15909_v43  ;;  %v5069_v56 = vadd.f32 %v15911_v35, %v15799_v19 }
 0x34e   : > { %v5871_v2 = vshrl.u32 %v15970_v39, 16  ;;  %v5877_v40 = vshll.u32 %v5749_v7, 16  ;;  %v5855_v21 = vrot.slane %v5853_v12, 5  ;;  %v5860_v17 = vrot.slane %v5858_v11, 4  ;;  %v5676_v52 = vld [vmem:[#allocation2 + $0xa8] sm:$0xf] }
 0x34f   : > { %v5863_v51 = vrot.slane %v5861_v53, 5  ;;  %v5869_v6 = vrot.slane %v5867_v58, 5  ;;  %v5100_v9 = vmax.f32 %v5068_v37, 0.0  ;;  %v5098_v47 = vmax.f32 %v5066_v45, 0.0  ;;  %v5669_v4 = vld [vmem:[#allocation2 + $0x9c] sm:$0xf] }
 0x350   : > { %v5873_v63 = vrot.slane %v5871_v2, 4  ;;  %v5879_v49 = vrot.slane %v5877_v40, 5  ;;  %v5856_v0 = vsel %vm13919_vm2, %v5851_v13, %v5855_v21  ;;  %12631 = vmatpush3.bf16.msra.mxu1 %v13660_v62  ;;  %v5067_v43 = vadd.f32 %v15799_v19, %v15917_v34  ;;  %v16010_v22 = vld [vmem:[#allocation2 + $0x40] sm:$0xf]  ;;  %v5750_v61 = vld [vmem:[#allocation2 + $0x44] sm:$0x1] }
 0x351   : > { %v11301_v57 = vcombine.low %v5846_v18, %v5856_v0  ;;  %v5864_v50 = vor.u32 %v5863_v51, %v5860_v17  ;;  %12632 = vmatprep.subr.bf16.mxu1 %v13661_v16  ;;  %v11704_v20 = vpack.c.bf16 %v5100_v9, %v5100_v9  ;;  %v11702_v14 = vpack.c.bf16 %v5098_v47, %v5098_v47  ;;  %v5680_v40 = vld [vmem:[#allocation2 + $0xb0] sm:$0x1]  ;;  %v16019_v45 = vld [vmem:[%s17581_s3 + $0x80] sm:$0xff]  }
 0x352   : > { %v5874_v10 = vor.u32 %v5873_v63, %v5869_v6  ;;  %v5101_v25 = vmax.f32 %v5069_v56, 0.0  ;;  %v5882_v23 = vshrl.u32 %v15993_v46, 16  ;;  %v5099_v62 = vmax.f32 %v5067_v43, 0.0  ;;  %v5673_v63 = vld [vmem:[#allocation2 + $0xa4] sm:$0x1] }
 0x353   : > { %12595 = vmatmul.mubr.bf16.gmra.mrb[4].mxu1 %v11301_v57  ;;  %v5865_v29 = vrot.slane %v5864_v50, 4  ;;  %v5885_v38 = vshll.u32 %v15993_v46, 16  ;;  %v5481_v54 = vshrl.u32 %v11704_v20, 16  ;;  %v5484_v48 = vshll.u32 %v11704_v20, 16  ;;  %v16026_v50 = vld [vmem:[#allocation2 + $0x48] sm:$0xf] }
 0x354   : > { %v5875_v35 = vrot.slane %v5874_v10, 4  ;;  %v5464_v32 = vshrl.u32 %v11702_v14, 16  ;;  %v5467_v19 = vshll.u32 %v11702_v14, 16  ;;  %12633 = vmatpush3.bf16.msra.mxu1 %v13661_v16  ;;  %v11705_v26 = vpack.c.bf16 %v5101_v25, %v5101_v25  ;;  %v16028_v10 = vld [vmem:[#allocation2 + $0x4c] sm:$0xf] }
 0x355   : > { %v5870_v34 = vsel %vm13919_vm2, %v5865_v29, %v5869_v6  ;;  %v11703_v5 = vpack.c.bf16 %v5099_v62, %v5099_v62  ;;  %12634 = vmatprep.subr.bf16.mxu1 %v13662_v42  ;;  %v5483_v7 = vrot.slane %v5481_v54, 7  ;;  %v5884_v59 = vrot.slane %v5882_v23, 4  ;;  %v16030_v25 = vld [vmem:[#allocation2 + $0x50] sm:$0x1] }
 0x356   : > { %v5880_v41 = vsel %vm13919_vm2, %v5875_v35, %v5879_v49  ;;  %v5466_v24 = vrot.slane %v5464_v32, 7  ;;  %v5489_v36 = vshrl.u32 %v11705_v26, 16  ;;  %v5492_v18 = vshll.u32 %v11705_v26, 16 }
 0x357   : > { %v11302_v3 = vcombine.low %v5870_v34, %v5880_v41  ;;  %v5472_v13 = vshrl.u32 %v11703_v5, 16  ;;  %v5475_v12 = vshll.u32 %v11703_v5, 16  ;;  %v5486_v11 = vor.u32 %v5484_v48, %v5483_v7 }
 0x358   : > { %v5487_v53 = vrot.slane %v5483_v7, 4  ;;  %v5469_v58 = vor.u32 %v5467_v19, %v5466_v24  ;;  %v5470_v2 = vrot.slane %v5466_v24, 4  ;;  %12635 = vmatpush3.bf16.msra.mxu1 %v13662_v42  ;;  %v5491_v16 = vrot.slane %v5489_v36, 7  ;;  %v16052_v36 = vld [vmem:[#allocation2 + $0x54] sm:$0xf] }
 0x359   : > { %12598 = vmatprep.mubr.bf16.mxu1 %v11302_v3  ;;  %v5474_v21 = vrot.slane %v5472_v13, 7  ;;  %v5887_v17 = vrot.slane %v5885_v38, 5  ;;  %v5891_v37 = vshll.u32 %v16010_v22, 16  ;;  %12636 = vmatprep.subr.bf16.mxu1 %v13663_v33  ;;  %v5677_v51 = vsel %vm15808_vm11, %v5486_v11, %v5676_v52  ;;  %v13781_v52 = vld [vmem:[%s17580_s2] ss:$0 sm:$0xff] }
 0x35a   : > { %v5670_v6 = vsel %vm15808_vm11, %v5469_v58, %v5669_v4  ;;  %v5895_v49 = vshrl.u32 %v16010_v22, 16  ;;  %v5901_v0 = vshll.u32 %v5750_v61, 16  ;;  %5678 = vst [vmem:[#allocation2 + $0xa8] sm:$0xf] %v5677_v51  ;;  %v5494_v9 = vor.u32 %v5492_v18, %v5491_v16 }
 0x35b   : > { %5671 = vst [vmem:[#allocation2 + $0x9c] sm:$0xf] %v5670_v6  ;;  %v5496_v47 = vrot.slane %v5491_v16, 4  ;;  %v5477_v56 = vor.u32 %v5475_v12, %v5474_v21  ;;  %v5479_v57 = vrot.slane %v5474_v21, 4  ;;  %v5888_v43 = vor.u32 %v5887_v17, %v5884_v59 }
 0x35c   : > { %v5893_v42 = vrot.slane %v5891_v37, 5  ;;  %v5897_v20 = vrot.slane %v5895_v49, 4  ;;  %v5903_v14 = vrot.slane %v5901_v0, 5  ;;  %12637 = vmatpush3.bf16.msra.mxu1 %v13663_v33  ;;  %v5495_v23 = vsel %vm15815_vm12, %v5487_v53, %v5494_v9  ;;  %v5690_v49 = vld [vmem:[#allocation2 + $0xc0] sm:$0xf] }
 0x35d   : > { %v5681_v29 = vsel %vm15821_vm13, %v5496_v47, %v5680_v40  ;;  %v5478_v35 = vsel %vm15815_vm12, %v5470_v2, %v5477_v56  ;;  %v5674_v62 = vsel %vm15821_vm13, %v5479_v57, %v5673_v63  ;;  %12670 = vmatprep.subr.bf16.mxu1 %v16019_v45  ;;  %5679 = vst [vmem:[#allocation2 + $0xac] sm:$0xf] %v5495_v23  ;;  %v5889_v38 = vrot.slane %v5888_v43, 4  ;;  %v16064_v57 = vld [vmem:[#allocation2 + $0x58] sm:$0xf] }
 0x35e   : > { %5682 = vst [vmem:[#allocation2 + $0xb0] sm:$0x1] %v5681_v29  ;;  %5672 = vst [vmem:[#allocation2 + $0xa0] sm:$0xf] %v5478_v35  ;;  %v5898_v54 = vor.u32 %v5897_v20, %v5893_v42  ;;  %v5906_v48 = vshrl.u32 %v16026_v50, 16  ;;  %v5909_v32 = vshll.u32 %v16026_v50, 16  ;;  %v5072_v4 = vadd.f32 %v13781_v52, %v15921_v15 }
 0x35f   : > { %5675 = vst [vmem:[#allocation2 + $0xa4] sm:$0x1] %v5674_v62  ;;  %v5915_v19 = vshll.u32 %v16028_v10, 16  ;;  %v5919_v34 = vshrl.u32 %v16028_v10, 16  ;;  %v5925_v41 = vshll.u32 %v16030_v25, 16  ;;  %v5894_v26 = vsel %vm13919_vm2, %v5889_v38, %v5893_v42 }
 0x360   : > { %v5899_v5 = vrot.slane %v5898_v54, 4  ;;  %v5908_v33 = vrot.slane %v5906_v48, 4  ;;  %v5911_v3 = vrot.slane %v5909_v32, 5  ;;  %v5104_v59 = vmax.f32 %v5072_v4, 0.0  ;;  %v5683_v48 = vld [vmem:[#allocation2 + $0xb4] sm:$0xf] }
 0x361   : > { %v5917_v7 = vrot.slane %v5915_v19, 5  ;;  %v5921_v24 = vrot.slane %v5919_v34, 4  ;;  %v5927_v61 = vrot.slane %v5925_v41, 5  ;;  %v5070_v12 = vadd.f32 %v13781_v52, %v15925_v31 }
 0x362   : > { %v5904_v18 = vsel %vm13919_vm2, %v5899_v5, %v5903_v14  ;;  %v5912_v13 = vor.u32 %v5911_v3, %v5908_v33  ;;  %v5073_v15 = vadd.f32 %v13781_v52, %v15935_v27  ;;  %v11708_v58 = vpack.c.bf16 %v5104_v59, %v5104_v59  ;;  %v16071_v59 = vld [vmem:[#allocation2 + $0x5c] sm:$0x1] }
 0x363   : > { %v11303_v11 = vcombine.low %v5894_v26, %v5904_v18  ;;  %v5922_v53 = vor.u32 %v5921_v24, %v5917_v7  ;;  %v5071_v2 = vadd.f32 %v13781_v52, %v15940_v28  ;;  %v5102_v16 = vmax.f32 %v5070_v12, 0.0  ;;  %v5694_v52 = vld [vmem:[#allocation2 + $0xc8] sm:$0x1] }
 0x364   : > { %v5913_v40 = vrot.slane %v5912_v13, 4  ;;  %v5105_v21 = vmax.f32 %v5073_v15, 0.0  ;;  %v5930_v17 = vshrl.u32 %v16052_v36, 16  ;;  %v5515_v51 = vshrl.u32 %v11708_v58, 16 }
 0x365   : > { %12599 = vmatmul.mubr.bf16.gmra.mrb[8].mxu1 %v11303_v11  ;;  %v5923_v37 = vrot.slane %v5922_v53, 4  ;;  %v5518_v6 = vshll.u32 %v11708_v58, 16  ;;  %v5103_v63 = vmax.f32 %v5071_v2, 0.0  ;;  %v11706_v27 = vpack.c.bf16 %v5102_v16, %v5102_v16  ;;  %v16073_v11 = vld [vmem:[#allocation2 + $0x60] sm:$0xf] }
 0x366   : > { %v5918_v31 = vsel %vm13919_vm2, %v5913_v40, %v5917_v7  ;;  %v11709_v0 = vpack.c.bf16 %v5105_v21, %v5105_v21  ;;  %v5932_v9 = vrot.slane %v5930_v17, 4  ;;  %v5517_v47 = vrot.slane %v5515_v51, 7  ;;  %v16075_v53 = vld [vmem:[#allocation2 + $0x64] sm:$0xf]  ;;  %v16083_v21 = vld [vmem:[#allocation2 + $0x68] sm:$0x1] }
 0x367   : > { %v5928_v28 = vsel %vm13919_vm2, %v5923_v37, %v5927_v61  ;;  %v11707_v56 = vpack.c.bf16 %v5103_v63, %v5103_v63  ;;  %v5933_v43 = vshll.u32 %v16052_v36, 16  ;;  %v5498_v20 = vshrl.u32 %v11706_v27, 16  ;;  %v5687_v61 = vld [vmem:[#allocation2 + $0xbc] sm:$0x1] }
 0x368   : > { %v11304_v42 = vcombine.low %v5918_v31, %v5928_v28  ;;  %v5501_v14 = vshll.u32 %v11706_v27, 16  ;;  %v5523_v23 = vshrl.u32 %v11709_v0, 16  ;;  %v5520_v29 = vor.u32 %v5518_v6, %v5517_v47  ;;  %v16090_v6 = vld [vmem:[#allocation2 + $0x6c] sm:$0xf] }
 0x369   : > { %v5521_v35 = vrot.slane %v5517_v47, 4  ;;  %v5526_v62 = vshll.u32 %v11709_v0, 16  ;;  %v5506_v38 = vshrl.u32 %v11707_v56, 16  ;;  %v5500_v54 = vrot.slane %v5498_v20, 7  ;;  %v16095_v0 = vld [vmem:[#allocation2 + $0x70] sm:$0xf] }
 0x36a   : > { %12602 = vmatprep.mubr.bf16.mxu1 %v11304_v42  ;;  %v5525_v32 = vrot.slane %v5523_v23, 7  ;;  %v5509_v19 = vshll.u32 %v11707_v56, 16  ;;  %v5935_v34 = vrot.slane %v5933_v43, 5  ;;  %v5691_v41 = vsel %vm15808_vm11, %v5520_v29, %v5690_v49  ;;  %v16101_v20 = vld [vmem:[#allocation2 + $0x74] sm:$0x1] }
 0x36b   : > { %v5508_v4 = vrot.slane %v5506_v38, 7  ;;  %v5939_v26 = vshll.u32 %v16064_v57, 16  ;;  %v5943_v5 = vshrl.u32 %v16064_v57, 16  ;;  %5692 = vst [vmem:[#allocation2 + $0xc0] sm:$0xf] %v5691_v41  ;;  %v5503_v33 = vor.u32 %v5501_v14, %v5500_v54 }
 0x36c   : > { %v5504_v3 = vrot.slane %v5500_v54, 4  ;;  %v5528_v7 = vor.u32 %v5526_v62, %v5525_v32  ;;  %v5530_v24 = vrot.slane %v5525_v32, 4  ;;  %v5936_v12 = vor.u32 %v5935_v34, %v5932_v9  ;;  %v16103_v14 = vld [vmem:[#allocation2 + $0x78] sm:$0xf] }
 0x36d   : > { %v5511_v18 = vor.u32 %v5509_v19, %v5508_v4  ;;  %v5513_v13 = vrot.slane %v5508_v4, 4  ;;  %v5941_v15 = vrot.slane %v5939_v26, 5  ;;  %v5684_v58 = vsel %vm15808_vm11, %v5503_v33, %v5683_v48  ;;  %v16111_v19 = vld [vmem:[#allocation2 + $0x7c] sm:$0xf] }
 0x36e   : > { %v5529_v2 = vsel %vm15815_vm12, %v5521_v35, %v5528_v7  ;;  %v5695_v40 = vsel %vm15821_vm13, %v5530_v24, %v5694_v52  ;;  %v5945_v16 = vrot.slane %v5943_v5, 4  ;;  %5685 = vst [vmem:[#allocation2 + $0xb4] sm:$0xf] %v5684_v58  ;;  %v5937_v60 = vrot.slane %v5936_v12, 4 }
 0x36f   : > { %5693 = vst [vmem:[#allocation2 + $0xc4] sm:$0xf] %v5529_v2  ;;  %5696 = vst [vmem:[#allocation2 + $0xc8] sm:$0x1] %v5695_v40  ;;  %v5512_v17 = vsel %vm15815_vm12, %v5504_v3, %v5511_v18  ;;  %v5688_v37 = vsel %vm15821_vm13, %v5513_v13, %v5687_v61  ;;  %v5949_v51 = vshll.u32 %v16071_v59, 16  ;;  %v5954_v31 = vshrl.u32 %v16073_v11, 16 }
 0x370   : > { %5686 = vst [vmem:[#allocation2 + $0xb8] sm:$0xf] %v5512_v17  ;;  %5689 = vst [vmem:[#allocation2 + $0xbc] sm:$0x1] %v5688_v37  ;;  %v5946_v63 = vor.u32 %v5945_v16, %v5941_v15  ;;  %v5957_v49 = vshll.u32 %v16073_v11, 16  ;;  %v5963_v27 = vshll.u32 %v16075_v53, 16  ;;  %v5942_v30 = vsel %vm13919_vm2, %v5937_v60, %v5941_v15 }
 0x371   : > { %v5951_v44 = vrot.slane %v5949_v51, 5  ;;  %v5967_v9 = vshrl.u32 %v16075_v53, 16  ;;  %v5973_v28 = vshll.u32 %v16083_v21, 16  ;;  %v5956_v56 = vrot.slane %v5954_v31, 4  ;;  %v16114_v61 = vld [vmem:[#allocation2 + $0x80] sm:$0x1] }
 0x372   : > { %v5947_v47 = vrot.slane %v5946_v63, 4  ;;  %v5959_v43 = vrot.slane %v5957_v49, 5  ;;  %v5965_v42 = vrot.slane %v5963_v27, 5  ;;  %v5978_v35 = vshrl.u32 %v16090_v6, 16  ;;  %v16121_v40 = vld [vmem:[#allocation2 + $0x84] sm:$0xf] }
 0x373   : > { %v5969_v23 = vrot.slane %v5967_v9, 4  ;;  %v5975_v29 = vrot.slane %v5973_v28, 5  ;;  %v5981_v62 = vshll.u32 %v16090_v6, 16  ;;  %v5987_v48 = vshll.u32 %v16095_v0, 16  ;;  %v16123_v16 = vld [vmem:[#allocation2 + $0x88] sm:$0xf] }
 0x374   : > { %v5952_v38 = vsel %vm13919_vm2, %v5947_v47, %v5951_v44  ;;  %v5960_v54 = vor.u32 %v5959_v43, %v5956_v56  ;;  %v5991_v32 = vshrl.u32 %v16095_v0, 16  ;;  %v5980_v52 = vrot.slane %v5978_v35, 4  ;;  %v16132_v47 = vld [vmem:[#allocation2 + $0x90] sm:$0xf] }
 0x375   : > { %v11305_v34 = vcombine.low %v5942_v30, %v5952_v38  ;;  %v5970_v41 = vor.u32 %v5969_v23, %v5965_v42  ;;  %v5983_v4 = vrot.slane %v5981_v62, 5  ;;  %v5989_v5 = vrot.slane %v5987_v48, 5  ;;  %v16140_v48 = vld [vmem:[#allocation2 + $0x94] sm:$0xf] }
 0x376   : > { %v5961_v26 = vrot.slane %v5960_v54, 4  ;;  %v5993_v33 = vrot.slane %v5991_v32, 4  ;;  %v5997_v3 = vshll.u32 %v16101_v20, 16  ;;  %v6002_v18 = vshrl.u32 %v16103_v14, 16 }
 0x377   : > { %12603 = vmatmul.mubr.bf16.gmra.mrb[12].mxu1 %v11305_v34  ;;  %v5971_v7 = vrot.slane %v5970_v41, 4  ;;  %v5984_v24 = vor.u32 %v5983_v4, %v5980_v52  ;;  %v6005_v13 = vshll.u32 %v16103_v14, 16  ;;  %v6011_v2 = vshll.u32 %v16111_v19, 16 }
 0x378   : > { %v5966_v12 = vsel %vm13919_vm2, %v5961_v26, %v5965_v42  ;;  %v5994_v15 = vor.u32 %v5993_v33, %v5989_v5  ;;  %v5999_v58 = vrot.slane %v5997_v3, 5  ;;  %v6004_v60 = vrot.slane %v6002_v18, 4  ;;  %v16136_v42 = vld [vmem:[#allocation2 + $0x8c] sm:$0x1]  ;;  %v16148_v18 = vld [vmem:[#allocation2 + $0x98] sm:$0x1] }
 0x379   : > { %v5976_v17 = vsel %vm13919_vm2, %v5971_v7, %v5975_v29  ;;  %v5985_v37 = vrot.slane %v5984_v24, 4  ;;  %v6007_v51 = vrot.slane %v6005_v13, 5  ;;  %v6013_v49 = vrot.slane %v6011_v2, 5 }
 0x37a   : > { %v11306_v63 = vcombine.low %v5966_v12, %v5976_v17  ;;  %v5995_v31 = vrot.slane %v5994_v15, 4  ;;  %v6015_v27 = vshrl.u32 %v16111_v19, 16  ;;  %v6021_v9 = vshll.u32 %v16114_v61, 16  ;;  %v16152_v17 = vld [vmem:[#allocation2 + $0x9c] sm:$0xf] }
 0x37b   : > { %v5990_v30 = vsel %vm13919_vm2, %v5985_v37, %v5989_v5  ;;  %v6008_v44 = vor.u32 %v6007_v51, %v6004_v60  ;;  %v6026_v28 = vshrl.u32 %v16121_v40, 16  ;;  %v6029_v23 = vshll.u32 %v16121_v40, 16 }
 0x37c   : > { %12606 = vmatprep.mubr.bf16.mxu1 %v11306_v63  ;;  %v6000_v56 = vsel %vm13919_vm2, %v5995_v31, %v5999_v58  ;;  %v6017_v43 = vrot.slane %v6015_v27, 4  ;;  %v6035_v29 = vshll.u32 %v16123_v16, 16  ;;  %v6023_v38 = vrot.slane %v6021_v9, 5  ;;  %v16156_v31 = vld [vmem:[#allocation2 + $0xa0] sm:$0xf] }
 0x37d   : > { %v11307_v35 = vcombine.low %v5990_v30, %v6000_v56  ;;  %v6009_v62 = vrot.slane %v6008_v44, 4  ;;  %v6028_v54 = vrot.slane %v6026_v28, 4  ;;  %v6031_v34 = vrot.slane %v6029_v23, 5  ;;  %v16159_v9 = vld [vmem:[#allocation2 + $0xa8] sm:$0xf] }
 0x37e   : > { %v6018_v32 = vor.u32 %v6017_v43, %v6013_v49  ;;  %v6037_v41 = vrot.slane %v6035_v29, 5  ;;  %v6039_v52 = vshrl.u32 %v16123_v16, 16  ;;  %v6045_v26 = vshll.u32 %v16136_v42, 16 }
 0x37f   : > { %12607 = vmatmul.mubr.bf16.gmra.mrb[16].mxu1 %v11307_v35  ;;  %v6014_v4 = vsel %vm13919_vm2, %v6009_v62, %v6013_v49  ;;  %v6050_v5 = vshrl.u32 %v16132_v47, 16  ;;  %v6053_v33 = vshll.u32 %v16132_v47, 16  ;;  %v6032_v7 = vor.u32 %v6031_v34, %v6028_v54 }
 0x380   : > { %v6019_v3 = vrot.slane %v6018_v32, 4  ;;  %v6041_v24 = vrot.slane %v6039_v52, 4  ;;  %v6059_v13 = vshll.u32 %v16140_v48, 16  ;;  %v6047_v12 = vrot.slane %v6045_v26, 5 }
 0x381   : > { %v6052_v15 = vrot.slane %v6050_v5, 4  ;;  %v6055_v58 = vrot.slane %v6053_v33, 5  ;;  %v6063_v2 = vshrl.u32 %v16140_v48, 16  ;;  %v6033_v60 = vrot.slane %v6032_v7, 4  ;;  %v16175_v7 = vld [vmem:[#allocation2 + $0xb0] sm:$0x1] }
 0x382   : > { %v6024_v37 = vsel %vm13919_vm2, %v6019_v3, %v6023_v38  ;;  %v6042_v51 = vor.u32 %v6041_v24, %v6037_v41  ;;  %v6061_v63 = vrot.slane %v6059_v13, 5  ;;  %v6069_v44 = vshll.u32 %v16148_v18, 16  ;;  %v16165_v38 = vld [vmem:[#allocation2 + $0xa4] sm:$0x1]  ;;  %v16177_v24 = vld [vmem:[#allocation2 + $0xb4] sm:$0xf] }
 0x383   : > { %v11308_v49 = vcombine.low %v6014_v4, %v6024_v37  ;;  %v6056_v27 = vor.u32 %v6055_v58, %v6052_v15  ;;  %v6065_v30 = vrot.slane %v6063_v2, 4  ;;  %v6038_v28 = vsel %vm13919_vm2, %v6033_v60, %v6037_v41  ;;  %v16171_v4 = vld [vmem:[#allocation2 + $0xac] sm:$0xf]  ;;  %v16181_v2 = vld [vmem:[#allocation2 + $0xb8] sm:$0xf] }
 0x384   : > { %v6043_v56 = vrot.slane %v6042_v51, 4  ;;  %v6074_v43 = vshrl.u32 %v16152_v17, 16  ;;  %v6077_v23 = vshll.u32 %v16152_v17, 16  ;;  %v6071_v62 = vrot.slane %v6069_v44, 5 }
 0x385   : > { %12610 = vmatprep.mubr.bf16.mxu1 %v11308_v49  ;;  %v6057_v29 = vrot.slane %v6056_v27, 4  ;;  %v6066_v35 = vor.u32 %v6065_v30, %v6061_v63  ;;  %v6083_v54 = vshll.u32 %v16156_v31, 16  ;;  %v6087_v41 = vshrl.u32 %v16156_v31, 16 }
 0x386   : > { %v6048_v32 = vsel %vm13919_vm2, %v6043_v56, %v6047_v12  ;;  %v6076_v34 = vrot.slane %v6074_v43, 4  ;;  %v6079_v52 = vrot.slane %v6077_v23, 5  ;;  %v6093_v12 = vshll.u32 %v16165_v38, 16 }
 0x387   : > { %v11309_v26 = vcombine.low %v6038_v28, %v6048_v32  ;;  %v6062_v5 = vsel %vm13919_vm2, %v6057_v29, %v6061_v63  ;;  %v6067_v33 = vrot.slane %v6066_v35, 4  ;;  %v6085_v3 = vrot.slane %v6083_v54, 5 }
 0x388   : > { %v6080_v13 = vor.u32 %v6079_v52, %v6076_v34  ;;  %v6089_v15 = vrot.slane %v6087_v41, 4  ;;  %v6098_v58 = vshrl.u32 %v16159_v9, 16  ;;  %v6101_v60 = vshll.u32 %v16159_v9, 16  ;;  %v16192_v52 = vld [vmem:[#allocation2 + $0xbc] sm:$0x1] }
 0x389   : > { %12611 = vmatmul.mubr.bf16.gmra.mrb[20].mxu1 %v11309_v26  ;;  %v6072_v37 = vsel %vm13919_vm2, %v6067_v33, %v6071_v62  ;;  %v6107_v51 = vshll.u32 %v16171_v4, 16  ;;  %v6111_v63 = vshrl.u32 %v16171_v4, 16  ;;  %v6095_v44 = vrot.slane %v6093_v12, 5 }
 0x38a   : > { %v11310_v49 = vcombine.low %v6062_v5, %v6072_v37  ;;  %v6081_v27 = vrot.slane %v6080_v13, 4  ;;  %v6090_v30 = vor.u32 %v6089_v15, %v6085_v3  ;;  %v6100_v28 = vrot.slane %v6098_v58, 4 }
 0x38b   : > { %v6103_v56 = vrot.slane %v6101_v60, 5  ;;  %v6109_v43 = vrot.slane %v6107_v51, 5  ;;  %v6113_v23 = vrot.slane %v6111_v63, 4  ;;  %v6117_v62 = vshll.u32 %v16175_v7, 16 }
 0x38c   : > { %12614 = vmatprep.mubr.bf16.mxu1 %v11310_v49  ;;  %v6086_v29 = vsel %vm13919_vm2, %v6081_v27, %v6085_v3  ;;  %v6091_v35 = vrot.slane %v6090_v30, 4  ;;  %v6122_v54 = vshrl.u32 %v16177_v24, 16  ;;  %v6125_v41 = vshll.u32 %v16177_v24, 16 }
 0x38d   : > { %v6104_v32 = vor.u32 %v6103_v56, %v6100_v28  ;;  %v6114_v34 = vor.u32 %v6113_v23, %v6109_v43  ;;  %v6131_v26 = vshll.u32 %v16181_v2, 16  ;;  %v6119_v33 = vrot.slane %v6117_v62, 5  ;;  %v13782_v23 = vld [vmem:[#allocation2] sm:$0xf] }
 0x38e   : > { %v6096_v5 = vsel %vm13919_vm2, %v6091_v35, %v6095_v44  ;;  %v6124_v13 = vrot.slane %v6122_v54, 4  ;;  %v6135_v3 = vshrl.u32 %v16181_v2, 16  ;;  %v6127_v37 = vrot.slane %v6125_v41, 5 }
 0x38f   : > { %v11311_v15 = vcombine.low %v6086_v29, %v6096_v5  ;;  %v6105_v12 = vrot.slane %v6104_v32, 4  ;;  %v6115_v58 = vrot.slane %v6114_v34, 4  ;;  %v6133_v60 = vrot.slane %v6131_v26, 5  ;;  %v16204_v29 = vld [vmem:[#allocation2 + $0x4] sm:$0xf] }
 0x390   : > { %v6137_v51 = vrot.slane %v6135_v3, 4  ;;  %v6141_v63 = vshll.u32 %v16192_v52, 16  ;;  %v6128_v30 = vor.u32 %v6127_v37, %v6124_v13  ;;  %v11322_v35 = vcombine.low %v13782_v23, %v16204_v29  ;;  %v13784_v37 = vld [vmem:[#allocation2 + $0xc] sm:$0xf]  ;;  %v13672_v23 = vld [vmem:[%s17581_s3 + $0x90] sm:$0xff]  }
 0x391   : > { %12615 = vmatmul.mubr.bf16.gmra.mrb[24].mxu1 %v11311_v15  ;;  %v6110_v49 = vsel %vm13919_vm2, %v6105_v12, %v6109_v43  ;;  %v6120_v27 = vsel %vm13919_vm2, %v6115_v58, %v6119_v33  ;;  %v11329_v32 = vcombine.low %v16052_v36, %v16064_v57  ;;  %v11330_v43 = vcombine.low %v16073_v11, %v16075_v53  ;;  %v6750_v15 = vld [vmem:[#allocation2 + $0x78] sm:$0xe]  ;;  %v6740_v11 = vld [vmem:[#allocation2] sm:$0xe] }
 0x392   : > { %v11312_v44 = vcombine.low %v6110_v49, %v6120_v27  ;;  %v6138_v28 = vor.u32 %v6137_v51, %v6133_v60  ;;  %v6129_v56 = vrot.slane %v6128_v30, 4  ;;  %v6143_v54 = vrot.slane %v6141_v63, 5  ;;  %v13669_v63 = vld [vmem:[%s17581_s3 + $0x88] sm:$0xff]   ;;  %v13786_v49 = vld [vmem:[#allocation2 + $0x18] sm:$0xf] }
 0x393   : > { %v11331_v41 = vcombine.low %v16090_v6, %v16095_v0  ;;  %v11332_v26 = vcombine.low %v16103_v14, %v16111_v19  ;;  %v11333_v5 = vcombine.low %v16121_v40, %v16123_v16  ;;  %v16235_v27 = vld [vmem:[#allocation2 + $0x1c] sm:$0xf]  ;;  %v6849_v58 = vrot.slane %v16083_v21, 5 }
 0x394   : > { %12618 = vmatprep.mubr.bf16.mxu1 %v11312_v44  ;;  %v6139_v62 = vrot.slane %v6138_v28, 4  ;;  %v6134_v34 = vsel %vm13919_vm2, %v6129_v56, %v6133_v60  ;;  %v16229_v60 = vld [vmem:[#allocation2 + $0x10] sm:$0xf]  ;;  %v11324_v30 = vcombine.low %v13786_v49, %v16235_v27  ;;  %v6747_v44 = vld [vmem:[#allocation2 + $0x54] sm:$0xe]  ;;  %v6839_v56 = vrot.slane %v16064_v57, 5 }
 0x395   : > { %v11323_v51 = vcombine.low %v13784_v37, %v16229_v60  ;;  %v6748_v28 = vld [vmem:[#allocation2 + $0x60] sm:$0xe]  ;;  %v11326_v49 = vcombine.low %v15964_v8, %v15970_v39  ;;  %v6853_v8 = vrot.slane %v16095_v0, 5  ;;  %v6751_v39 = vld [vmem:[#allocation2 + $0x84] sm:$0xe]  ;;  %v17828_v36 = vcombine.low %v16132_v47, %v16140_v48 }
 0x396   : > { %v6144_v33 = vsel %vm13919_vm2, %v6139_v62, %v6143_v54  ;;  %v6846_v62 = vrot.slane %v16075_v53, 5  ;;  %v6749_v54 = vld [vmem:[#allocation2 + $0x6c] sm:$0xe]  ;;  %v6841_v37 = vrot.slane %v6839_v56, 4  ;;  %v6790_v57 = vrot.slane %v16204_v29, 5 }
 0x397   : > { %v11313_v12 = vcombine.low %v6134_v34, %v6144_v33  ;;  %v13788_v34 = vld [vmem:[#allocation2 + $0x24] sm:$0xf]  ;;  %v16244_v33 = vld [vmem:[#allocation2 + $0x28] sm:$0xf]  ;;  %v17829_v0 = vcombine.low %v16152_v17, %v16156_v31  ;;  %v17830_v14 = vcombine.low %v16159_v9, %v16171_v4  ;;  %v6804_v47 = vrot.slane %v16235_v27, 5 }
 0x398   : > { %v13790_v53 = vld [vmem:[#allocation2 + $0x8] sm:$0x1]  ;;  %v6792_v6 = vrot.slane %v6790_v57, 4  ;;  %v17831_v17 = vcombine.low %v16177_v24, %v16181_v2  ;;  %v13791_v9 = vld [vmem:[#allocation2 + $0x14] sm:$0x1]  ;;  %v6811_v27 = vrot.slane %v16244_v33, 5 }
 0x399   : > { %12619 = vmatmul.mubr.bf16.gmra.mrb[28].mxu1 %v11313_v12  ;;  %v11325_v12 = vcombine.low %v13788_v34, %v16244_v33  ;;  %v6855_v34 = vrot.slane %v6853_v8, 4  ;;  %v13793_v24 = vld [vmem:[#allocation2 + $0x34] sm:$0xf]  ;;  %v6743_v33 = vld [vmem:[#allocation2 + $0x24] sm:$0xe] }
 0x39a   : > { %12638 = vmatprep.mubr.bf16.mxu1 %v11322_v35  ;;  %v11353_v35 = vrot.slane %v6747_v44, 9  ;;  %v6848_v44 = vrot.slane %v6846_v62, 4 }
 0x3a1   : > { %12639 = vmatmul.mubr.bf16.vlgmr.msra.gmra.mrb[0].mxu1 %v11323_v51  ;;  %v6842_v51 = vrot.slane %v16071_v59, 5 }
 0x3a2   : > { %12642 = vmatprep.mubr.bf16.mxu1 %v11324_v30  ;;  %12671 = vmatpush3.bf16.msra.mxu1 %v16019_v45  ;;  %v11354_v45 = vrot.slane %v6748_v28, 9  ;;  %v16252_v30 = vsel %vm14252_vm5, %v11353_v35, %v6839_v56  ;;  %v11355_v28 = vrot.slane %v6749_v54, 9  ;;  %v13675_v56 = vld [vmem:[%s17581_s3 + $0x98] sm:$0xff]   ;;  %v6856_v35 = vrot.slane %v16101_v20, 5  ;;  %v6754_v54 = vld [vmem:[#allocation2 + $0xa8] sm:$0xe] }
 0x3a3   : > { %12672 = vmatprep.subr.bf16.mxu1 %v13669_v63  ;;  %v16257_v3 = vsel %vm14252_vm5, %v6841_v37, %v6842_v51  ;;  %v11356_v37 = vrot.slane %v6750_v15, 9  ;;  %v6863_v51 = vrot.slane %v16114_v61, 5  ;;  %v6870_v61 = vrot.slane %v16136_v42, 5 }
 0x3a4   : > { %v16261_v59 = vsel %vm14252_vm5, %v11354_v45, %v6846_v62  ;;  %v6860_v62 = vrot.slane %v16111_v19, 5  ;;  %v6752_v45 = vld [vmem:[#allocation2 + $0x90] sm:$0xe]  ;;  %v16280_v21 = vsel %vm14252_vm5, %v11355_v28, %v6853_v8  ;;  %v16285_v20 = vsel %vm14252_vm5, %v6855_v34, %v6856_v35  ;;  %v13678_v28 = vld [vmem:[%s17581_s3 + $0xa0] sm:$0xff]   ;;  %v6753_v35 = vld [vmem:[#allocation2 + $0x9c] sm:$0xe] }
 0x3a5   : > { %v11327_v42 = vcombine.low %v15993_v46, %v16010_v22  ;;  %v6881_v46 = vrot.slane %v16156_v31, 5  ;;  %v6895_v22 = vrot.slane %v16181_v2, 5  ;;  %v6741_v31 = vld [vmem:[#allocation2 + $0xc] sm:$0xe]  ;;  %v6818_v2 = vrot.slane %v13793_v24, 5 }
 0x3a6   : > { %12673 = vmatpush3.bf16.msra.mxu1 %v13669_v63  ;;  %v16271_v63 = vsel %vm14252_vm5, %v6848_v44, %v6849_v58  ;;  %v6862_v13 = vrot.slane %v6860_v62, 4  ;;  %v11357_v58 = vrot.slane %v6751_v39, 9  ;;  %v6867_v44 = vrot.slane %v16123_v16, 5 }
 0x3a7   : > { %12674 = vmatprep.subr.bf16.mxu1 %v13672_v23  ;;  %v16289_v15 = vsel %vm14252_vm5, %v11356_v37, %v6860_v62  ;;  %v11358_v39 = vrot.slane %v6752_v45, 9  ;;  %v6877_v37 = vrot.slane %v16148_v18, 5  ;;  %v11359_v45 = vrot.slane %v6753_v35, 9 }
 0x3a8   : > { %v6869_v8 = vrot.slane %v6867_v44, 4  ;;  %v6891_v35 = vrot.slane %v16175_v7, 5  ;;  %v6797_v16 = vrot.slane %v16229_v60, 5 }
 0x3a9   : > { %12643 = vmatmul.mubr.bf16.gmra.mrb[4].mxu1 %v11325_v12  ;;  %v6874_v12 = vrot.slane %v16140_v48, 5  ;;  %v16339_v62 = vsel %vm14252_vm5, %v11359_v45, %v6881_v46  ;;  %v13684_v45 = vld [vmem:[%s17581_s3 + $0xb0] sm:$0xff]  }
 0x3aa   : > { %12646 = vmatprep.mubr.bf16.mxu1 %v11326_v49  ;;  %12675 = vmatpush3.bf16.msra.mxu1 %v13672_v23  ;;  %v16300_v49 = vsel %vm14252_vm5, %v6862_v13, %v6863_v51  ;;  %v16309_v23 = vsel %vm14252_vm5, %v11357_v58, %v6867_v44  ;;  %v16313_v13 = vsel %vm14252_vm5, %v6869_v8, %v6870_v61  ;;  %v6888_v58 = vrot.slane %v16171_v4, 5  ;;  %v6755_v44 = vld [vmem:[#allocation2 + $0xb4] sm:$0xe]  ;;  %v13681_v61 = vld [vmem:[%s17581_s3 + $0xa8] sm:$0xff]  }
 0x3ab   : > { %12676 = vmatprep.subr.bf16.mxu1 %v13675_v56  ;;  %v6876_v34 = vrot.slane %v6874_v12, 4  ;;  %v16317_v51 = vsel %vm14252_vm5, %v11358_v39, %v6874_v12  ;;  %v6884_v8 = vrot.slane %v16165_v38, 5  ;;  %v11360_v39 = vrot.slane %v6754_v54, 9 }
 0x3ac   : > { %v11361_v54 = vrot.slane %v6755_v44, 9  ;;  %v6799_v29 = vrot.slane %v6797_v16, 4  ;;  %v6800_v4 = vrot.slane %v13791_v9, 5  ;;  %v6745_v9 = vld [vmem:[#allocation2 + $0x3c] sm:$0xe] }
 0x3ad   : > { %v16324_v18 = vsel %vm14252_vm5, %v6876_v34, %v6877_v37  ;;  %v11328_v34 = vcombine.low %v16026_v50, %v16028_v10  ;;  %v6890_v37 = vrot.slane %v6888_v58, 4  ;;  %v16347_v38 = vsel %vm14252_vm5, %v11360_v39, %v6888_v58 }
 0x3ae   : > { %12677 = vmatpush3.bf16.msra.mxu1 %v13675_v56  ;;  %v6883_v56 = vrot.slane %v6881_v46, 4  ;;  %v6898_v46 = vrot.slane %v16192_v52, 5  ;;  %v13687_v52 = vld [vmem:[%s17581_s3 + $0xb8] sm:$0xff]   ;;  %v6801_v60 = vsel %vm14252_vm5, %v6799_v29, %v6800_v4  ;;  %v17845_v58 = vcombine.low %v16309_v23, %v16313_v13  ;;  %v8376_v23 = vld [vmem:[#allocation2 + $0xb4] sm:$0xe] }
 0x3af   : > { %12678 = vmatprep.subr.bf16.mxu1 %v13678_v28  ;;  %v16353_v7 = vsel %vm14252_vm5, %v6890_v37, %v6891_v35 }
 0x3b0   : > { %v16343_v12 = vsel %vm14252_vm5, %v6883_v56, %v6884_v8  ;;  %v11347_v8 = vrot.slane %v6741_v31, 9 }
 0x3b1   : > { %12647 = vmatmul.mubr.bf16.gmra.mrb[8].mxu1 %v11327_v42  ;;  %v6897_v42 = vrot.slane %v6895_v22, 4 }
 0x3b2   : > { %12650 = vmatprep.mubr.bf16.mxu1 %v11328_v34  ;;  %12679 = vmatpush3.bf16.msra.mxu1 %v13678_v28  ;;  %v16363_v28 = vsel %vm14252_vm5, %v11361_v54, %v6895_v22  ;;  %v13688_v22 = vld [vmem:[%s17581_s3 + $0xc0] sm:$0xff]   ;;  %v6798_v37 = vsel %vm14252_vm5, %v11347_v8, %v6797_v16  ;;  %v6832_v16 = vrot.slane %v16028_v10, 5 }
 0x3b3   : > { %12680 = vmatprep.subr.bf16.mxu1 %v13681_v61  ;;  %v16367_v44 = vsel %vm14252_vm5, %v6897_v42, %v6898_v46  ;;  %v11379_v35 = vcombine.low %v6798_v37, %v6801_v60  ;;  %v13689_v42 = vld [vmem:[%s17581_s3 + $0xc8] sm:$0xff]   ;;  %v13797_v10 = vld [vmem:[#allocation2 + $0x44] sm:$0x1]  ;;  %v11351_v60 = vrot.slane %v6745_v9, 9 }
 0x3b4   : > { %v6834_v4 = vrot.slane %v6832_v16, 4  ;;  %v13692_v8 = vld [vmem:[%s17581_s3 + $0xe0] sm:$0xff]   ;;  %v13693_v37 = vld [vmem:[%s17581_s3 + $0xe8] sm:$0xff]  }
 0x3b6   : > { %12681 = vmatpush3.bf16.msra.mxu1 %v13681_v61 }
 0x3b7   : > { %12682 = vmatprep.subr.bf16.mxu1 %v13684_v45 }
 0x3b9   : > { %12651 = vmatmul.mubr.bf16.gmra.mrb[12].mxu1 %v11329_v32  ;;  %v6793_v32 = vrot.slane %v13790_v53, 5  ;;  %v13795_v53 = vld [vmem:[#allocation2 + $0x38] sm:$0x1] }
 0x3ba   : > { %12654 = vmatprep.mubr.bf16.mxu1 %v11330_v43  ;;  %12683 = vmatpush3.bf16.msra.mxu1 %v13684_v45  ;;  %v11346_v43 = vrot.slane %v6740_v11, 9  ;;  %v6813_v45 = vrot.slane %v6811_v27, 4  ;;  %v6744_v11 = vld [vmem:[#allocation2 + $0x30] sm:$0xe] }
 0x3bb   : > { %12684 = vmatprep.subr.bf16.mxu1 %v13687_v52  ;;  %v6794_v40 = vsel %vm14252_vm5, %v6792_v6, %v6793_v32  ;;  %v6821_v32 = vrot.slane %v13795_v53, 5  ;;  %v11349_v6 = vrot.slane %v6743_v33, 9  ;;  %v16463_v33 = vld [vmem:[#allocation2 + $0x34] sm:$0xf]  ;;  %v17832_v53 = vcombine.low %v16252_v30, %v16257_v3  ;;  %v16484_v3 = vld [vmem:[%s17581_s3 + $0x100] sm:$0xff]  }
 0x3bc   : > { %v6791_v19 = vsel %vm14252_vm5, %v11346_v43, %v6790_v57  ;;  %v13690_v43 = vld [vmem:[%s17581_s3 + $0xd0] sm:$0xff]  }
 0x3bd   : > { %v11378_v48 = vcombine.low %v6791_v19, %v6794_v40  ;;  %v11350_v40 = vrot.slane %v6744_v11, 9  ;;  %v16486_v30 = vld [vmem:[#allocation2 + $0x50] sm:$0x1] }
 0x3be   : > { %12685 = vmatpush3.bf16.msra.mxu1 %v13687_v52  ;;  %v6820_v52 = vrot.slane %v6818_v2, 4 }
 0x3bf   : > { %12718 = vmatprep.subr.bf16.mxu1 %v13688_v22  ;;  %v6819_v29 = vsel %vm14252_vm5, %v11350_v40, %v6818_v2 }
 0x3c1   : > { %12655 = vmatmul.mubr.bf16.gmra.mrb[16].mxu1 %v11331_v41  ;;  %v6806_v41 = vrot.slane %v6804_v47, 4 }
 0x3c2   : > { %12658 = vmatprep.mubr.bf16.mxu1 %v11332_v26  ;;  %v6742_v26 = vld [vmem:[#allocation2 + $0x18] sm:$0xe] }
 0x3c3   : > { %v11348_v39 = vrot.slane %v6742_v26, 9  ;;  %v6828_v26 = vrot.slane %v13797_v10, 5 }
 0x3c5   : > { %v6805_v54 = vsel %vm14252_vm5, %v11348_v39, %v6804_v47  ;;  %v6812_v47 = vsel %vm14252_vm5, %v11349_v6, %v6811_v27  ;;  %v8365_v6 = vld [vmem:[#allocation2 + $0x30] sm:$0xe] }
 0x3c9   : > { %12659 = vmatmul.mubr.bf16.gmra.mrb[20].mxu1 %v11333_v5  ;;  %v13792_v5 = vld [vmem:[#allocation2 + $0x20] sm:$0x1] }
 0x3ca   : > { %12662 = vmatprep.mubr.bf16.mxu1 %v17828_v36  ;;  %v6807_v61 = vrot.slane %v13792_v5, 5  ;;  %v13794_v36 = vld [vmem:[#allocation2 + $0x2c] sm:$0x1]  ;;  %v6746_v5 = vld [vmem:[#allocation2 + $0x48] sm:$0xe] }
 0x3cb   : > { %v6814_v57 = vrot.slane %v13794_v36, 5  ;;  %v11352_v39 = vrot.slane %v6746_v5, 9  ;;  %v16465_v36 = vld [vmem:[#allocation2 + $0x38] sm:$0x1]  ;;  %v16505_v5 = vld [vmem:[#allocation2 + $0x64] sm:$0xf] }
 0x3cc   : > { %v6808_v34 = vsel %vm14252_vm5, %v6806_v41, %v6807_v61  ;;  %v6835_v61 = vrot.slane %v16030_v25, 5 }
 0x3cd   : > { %v11380_v46 = vcombine.low %v6805_v54, %v6808_v34  ;;  %v6833_v25 = vsel %vm14252_vm5, %v11352_v39, %v6832_v16  ;;  %v13694_v54 = vld [vmem:[%s17581_s3 + $0xf0] sm:$0xff]   ;;  %v8449_v16 = vrot.slane %v16463_v33, 5 }
 0x3ce   : > { %v6836_v34 = vsel %vm14252_vm5, %v6834_v4, %v6835_v61 }
 0x3cf   : > { %v8451_v9 = vrot.slane %v8449_v16, 4 }
 0x3d1   : > { %12663 = vmatmul.mubr.bf16.gmra.mrb[24].mxu1 %v17829_v0  ;;  %v6815_v0 = vsel %vm14252_vm5, %v6813_v45, %v6814_v57  ;;  %v13695_v45 = vld [vmem:[%s17581_s3 + $0xf8] sm:$0xff]   ;;  %v16467_v57 = vld [vmem:[#allocation2 + $0x40] sm:$0xf] }
 0x3d2   : > { %12666 = vmatprep.mubr.bf16.mxu1 %v17830_v14  ;;  %v13796_v14 = vld [vmem:[#allocation2 + $0x40] sm:$0xf]  ;;  %v8456_v10 = vrot.slane %v16467_v57, 5 }
 0x3d3   : > { %v6825_v19 = vrot.slane %v13796_v14, 5 }
 0x3d5   : > { %v6827_v41 = vrot.slane %v6825_v19, 4  ;;  %v6826_v24 = vsel %vm14252_vm5, %v11351_v60, %v6825_v19 }
 0x3d7   : > { %v6829_v27 = vsel %vm14252_vm5, %v6827_v41, %v6828_v26  ;;  %v8368_v26 = vld [vmem:[#allocation2 + $0x54] sm:$0xe] }
 0x3d8   : > { %v11383_v2 = vcombine.low %v6826_v24, %v6829_v27  ;;  %v8458_v24 = vrot.slane %v8456_v10, 4 }
 0x3d9   : > { %12667 = vmatmul.mubr.bf16.gmra.mrb[28].mxu1 %v17831_v17  ;;  %v13691_v17 = vld [vmem:[%s17581_s3 + $0xd8] sm:$0xff]  }
 0x3da   : > { %12686 = vmatprep.mubr.bf16.mxu1 %v11378_v48  ;;  %v11381_v48 = vcombine.low %v6812_v47, %v6815_v0  ;;  %v17833_v0 = vcombine.low %v16261_v59, %v16271_v63  ;;  %v8367_v47 = vld [vmem:[#allocation2 + $0x48] sm:$0xe]  ;;  %v16491_v59 = vld [vmem:[#allocation2 + $0x5c] sm:$0x1] }
 0x3db   : > { %v11487_v60 = vrot.slane %v8367_v47, 9 }
 0x3e1   : > { %12687 = vmatmul.mubr.bf16.vlgmr.msra.gmra.mrb[0].mxu1 %v11379_v35  ;;  %v11384_v35 = vcombine.low %v6833_v25, %v6836_v34  ;;  %v8369_v25 = vld [vmem:[#allocation2 + $0x60] sm:$0xe] }
 0x3e2   : > { %12690 = vmatprep.mubr.bf16.mxu1 %v11380_v46  ;;  %12719 = vmatpush3.bf16.msra.mxu1 %v13688_v22  ;;  %v6822_v22 = vsel %vm14252_vm5, %v6820_v52, %v6821_v32  ;;  %v16458_v46 = vld [vmem:[#allocation2 + $0x2c] sm:$0x1]  ;;  %v8364_v52 = vld [vmem:[#allocation2 + $0x24] sm:$0xe]  ;;  %v16473_v32 = vld [vmem:[#allocation2 + $0x44] sm:$0x1] }
 0x3e3   : > { %12720 = vmatprep.subr.bf16.mxu1 %v13689_v42  ;;  %v11382_v31 = vcombine.low %v6819_v29, %v6822_v22  ;;  %v11484_v14 = vrot.slane %v8364_v52, 9  ;;  %v8445_v40 = vrot.slane %v16458_v46, 5  ;;  %v8366_v22 = vld [vmem:[#allocation2 + $0x3c] sm:$0xe] }
 0x3e4   : > { %v11486_v4 = vrot.slane %v8366_v22, 9  ;;  %v17836_v22 = vcombine.low %v16289_v15, %v16300_v49 }
 0x3e6   : > { %12721 = vmatpush3.bf16.msra.mxu1 %v13689_v42  ;;  %v16456_v42 = vld [vmem:[#allocation2 + $0x28] sm:$0xf]  ;;  %v16520_v34 = vsel %vm14252_vm5, %v11486_v4, %v8456_v10  ;;  %v16556_v4 = vld [vmem:[#allocation2 + $0x80] sm:$0x1] }
 0x3e7   : > { %12722 = vmatprep.subr.bf16.mxu1 %v13690_v43  ;;  %v8442_v11 = vrot.slane %v16456_v42, 5 }
 0x3e9   : > { %12691 = vmatmul.mubr.bf16.gmra.mrb[4].mxu1 %v11381_v48  ;;  %v8444_v19 = vrot.slane %v8442_v11, 4  ;;  %v16489_v48 = vld [vmem:[#allocation2 + $0x58] sm:$0xf]  ;;  %v16495_v63 = vsel %vm14252_vm5, %v11484_v14, %v8442_v11  ;;  %v17834_v11 = vcombine.low %v16280_v21, %v16285_v20  ;;  %v8473_v14 = vrot.slane %v16491_v59, 5  ;;  %v16546_v21 = vld [vmem:[#allocation2 + $0x7c] sm:$0xf] }
 0x3ea   : > { %12694 = vmatprep.mubr.bf16.mxu1 %v11382_v31  ;;  %12723 = vmatpush3.bf16.msra.mxu1 %v13690_v43  ;;  %v16475_v43 = vld [vmem:[#allocation2 + $0x4c] sm:$0xf]  ;;  %v8452_v31 = vrot.slane %v16465_v36, 5  ;;  %v8470_v52 = vrot.slane %v16489_v48, 5  ;;  %v16592_v20 = vld [vmem:[#allocation2 + $0xa0] sm:$0xf] }
 0x3eb   : > { %12724 = vmatprep.subr.bf16.mxu1 %v13691_v17  ;;  %v16499_v29 = vsel %vm14252_vm5, %v8444_v19, %v8445_v40  ;;  %v8463_v27 = vrot.slane %v16475_v43, 5  ;;  %v8477_v19 = vrot.slane %v16505_v5, 5  ;;  %v8370_v40 = vld [vmem:[#allocation2 + $0x6c] sm:$0xe] }
 0x3ec   : > { %v16516_v39 = vsel %vm14252_vm5, %v8451_v9, %v8452_v31  ;;  %v8472_v47 = vrot.slane %v8470_v52, 4  ;;  %v8371_v31 = vld [vmem:[#allocation2 + $0x78] sm:$0xe]  ;;  %v16554_v9 = vld [vmem:[#allocation2 + $0x74] sm:$0x1] }
 0x3ed   : > { %v8479_v10 = vrot.slane %v8477_v19, 4  ;;  %v8487_v15 = vrot.slane %v16554_v9, 5 }
 0x3ee   : > { %12725 = vmatpush3.bf16.msra.mxu1 %v13691_v17  ;;  %v11485_v17 = vrot.slane %v8365_v6, 9 }
 0x3ef   : > { %12726 = vmatprep.subr.bf16.mxu1 %v13692_v8 }
 0x3f0   : > { %v16509_v61 = vsel %vm14252_vm5, %v11485_v17, %v8449_v16  ;;  %v11489_v17 = vrot.slane %v8369_v25, 9 }
 0x3f1   : > { %12695 = vmatmul.mubr.bf16.gmra.mrb[8].mxu1 %v11383_v2  ;;  %v8466_v2 = vrot.slane %v16486_v30, 5 }
 0x3f2   : > { %12698 = vmatprep.mubr.bf16.mxu1 %v11384_v35  ;;  %12727 = vmatpush3.bf16.msra.mxu1 %v13692_v8  ;;  %v8459_v8 = vrot.slane %v16473_v32, 5 }
 0x3f3   : > { %12728 = vmatprep.subr.bf16.mxu1 %v13693_v37 }
 0x3f4   : > { %v16535_v6 = vsel %vm14252_vm5, %v8458_v24, %v8459_v8  ;;  %v16565_v8 = vld [vmem:[#allocation2 + $0x88] sm:$0xf]  ;;  %v16573_v24 = vsel %vm14252_vm5, %v11489_v17, %v8477_v19  ;;  %v7646_v19 = vld [vmem:[#allocation2 + $0xa4] sm:$0x1] }
 0x3f5   : > { %17840 = vst [vmem:[#allocation9_spill] sm:$0xff] %v16573_v24  ;;  %v8498_v35 = vrot.slane %v16565_v8, 5 }
 0x3f6   : > { %12729 = vmatpush3.bf16.msra.mxu1 %v13693_v37  ;;  %v16523_v37 = vld [vmem:[#allocation2 + $0x68] sm:$0x1] }
 0x3f7   : > { %12730 = vmatprep.subr.bf16.mxu1 %v13694_v54 }
 0x3f9   : > { %12699 = vmatmul.mubr.bf16.gmra.mrb[12].mxu1 %v17832_v53  ;;  %v16531_v53 = vld [vmem:[#allocation2 + $0x70] sm:$0xf] }
 0x3fa   : > { %12702 = vmatprep.mubr.bf16.mxu1 %v17833_v0  ;;  %12731 = vmatpush3.bf16.msra.mxu1 %v13694_v54  ;;  %v8465_v54 = vrot.slane %v8463_v27, 4  ;;  %v16539_v0 = vsel %vm14252_vm5, %v11487_v60, %v8463_v27  ;;  %v7640_v60 = vld [vmem:[#allocation2 + $0x8c] sm:$0x1]  ;;  %v16569_v27 = vsel %vm14252_vm5, %v8472_v47, %v8473_v14  ;;  %v8484_v25 = vrot.slane %v16531_v53, 5  ;;  %v7643_v47 = vld [vmem:[#allocation2 + $0x98] sm:$0x1] }
 0x3fb   : > { %12732 = vmatprep.subr.bf16.mxu1 %v13695_v45  ;;  %17835 = vst [vmem:[#allocation11_spill] sm:$0xff] %v16539_v0  ;;  %17839 = vst [vmem:[#allocation5_spill] sm:$0xff] %v16569_v27  ;;  %v8491_v14 = vrot.slane %v16546_v21, 5  ;;  %v8501_v41 = vrot.slane %v7640_v60, 5  ;;  %v17847_v60 = vcombine.low %v16317_v51, %v16324_v18  ;;  %v16619_v27 = vld [vmem:[#allocation2 + $0xb8] sm:$0xf] }
 0x3fc   : > { %v16552_v16 = vsel %vm14252_vm5, %v8465_v54, %v8466_v2  ;;  %v11490_v2 = vrot.slane %v8370_v40, 9  ;;  %v16576_v54 = vld [vmem:[#allocation2 + $0x94] sm:$0xf]  ;;  %v8486_v17 = vrot.slane %v8484_v25, 4  ;;  %v8512_v18 = vrot.slane %v16592_v20, 5 }
 0x3fd   : > { %17837 = vst [vmem:[#allocation18_spill] sm:$0xff] %v16552_v16  ;;  %v8505_v56 = vrot.slane %v16576_v54, 5 }
 0x3fe   : > { %12733 = vmatpush3.bf16.msra.mxu1 %v13695_v45  ;;  %v11488_v45 = vrot.slane %v8368_v26, 9  ;;  %v8480_v26 = vrot.slane %v16523_v37, 5  ;;  %v16589_v40 = vsel %vm14252_vm5, %v11490_v2, %v8484_v25  ;;  %v16602_v2 = vsel %vm14252_vm5, %v8486_v17, %v8487_v15  ;;  %v8374_v15 = vld [vmem:[#allocation2 + $0x9c] sm:$0xe]  ;;  %v8375_v17 = vld [vmem:[#allocation2 + $0xa8] sm:$0xe] }
 0x3ff   : > { %12766 = vmatprep.subr.bf16.mxu1 %v16484_v3  ;;  %17842 = vst [vmem:[#allocation7_spill] sm:$0xff] %v16589_v40  ;;  %17844 = vst [vmem:[#allocation10_spill] sm:$0xff] %v16602_v2  ;;  %v8507_v13 = vrot.slane %v8505_v56, 4 }
 0x400   : > { %v16562_v49 = vsel %vm14252_vm5, %v11488_v45, %v8470_v52  ;;  %v16582_v52 = vsel %vm14252_vm5, %v8479_v10, %v8480_v26  ;;  %v8373_v45 = vld [vmem:[#allocation2 + $0x90] sm:$0xe]  ;;  %v8493_v10 = vrot.slane %v8491_v14, 4  ;;  %v8494_v26 = vrot.slane %v16556_v4, 5 }
 0x401   : > { %12703 = vmatmul.mubr.bf16.gmra.mrb[16].mxu1 %v17834_v11  ;;  %17838 = vst [vmem:[#allocation19_spill] sm:$0xff] %v16562_v49  ;;  %17841 = vst [vmem:[#allocation6_spill] sm:$0xff] %v16582_v52  ;;  %v11491_v11 = vrot.slane %v8371_v31, 9  ;;  %v8500_v52 = vrot.slane %v8498_v35, 4  ;;  %v11493_v24 = vrot.slane %v8373_v45, 9 }
 0x402   : > { %12706 = vmatprep.mubr.bf16.mxu1 %v17836_v22  ;;  %v8372_v22 = vld [vmem:[#allocation2 + $0x84] sm:$0xe]  ;;  %v16612_v50 = vsel %vm14252_vm5, %v8493_v10, %v8494_v26  ;;  %v7632_v49 = vld [vmem:[#allocation2 + $0x6c] sm:$0xf] }
 0x403   : > { %v16596_v31 = vsel %vm14252_vm5, %v11491_v11, %v8491_v14  ;;  %v11492_v25 = vrot.slane %v8372_v22, 9  ;;  %v7648_v11 = vld [vmem:[#allocation2 + $0xac] sm:$0xf]  ;;  %17846 = vst [vmem:[#allocation4_spill] sm:$0xff] %v16612_v50  ;;  %v7649_v22 = vld [vmem:[#allocation2 + $0xb0] sm:$0x1]  ;;  %v16627_v45 = vsel %vm14252_vm5, %v8500_v52, %v8501_v41  ;;  %v16631_v51 = vsel %vm14252_vm5, %v11493_v24, %v8505_v56 }
 0x404   : > { %17843 = vst [vmem:[#allocation8_spill] sm:$0xff] %v16596_v31  ;;  %v7652_v14 = vld [vmem:[#allocation2 + $0xbc] sm:$0x1]  ;;  %17849 = vst [vmem:[#allocation12_spill] sm:$0xff] %v16627_v45  ;;  %v7654_v26 = vld [vmem:[#allocation2 + $0xc4] sm:$0xf]  ;;  %v17856_v41 = vcombine.low %v16339_v62, %v16343_v12 }
 0x405   : > { %v16623_v10 = vsel %vm14252_vm5, %v11492_v25, %v8498_v35  ;;  %17850 = vst [vmem:[#allocation13_spill] sm:$0xff] %v16631_v51  ;;  %v11494_v35 = vrot.slane %v8374_v15, 9  ;;  %v8519_v25 = vrot.slane %v7648_v11, 5  ;;  %v7655_v50 = vld [vmem:[#allocation2 + $0xc8] sm:$0x1]  ;;  %v8514_v52 = vrot.slane %v8512_v18, 4 }
 0x406   : > { %17848 = vst [vmem:[#allocation3_spill] sm:$0xff] %v16623_v10  ;;  %v8515_v56 = vrot.slane %v7646_v19, 5  ;;  %v11495_v24 = vrot.slane %v8375_v17, 9  ;;  %v8526_v45 = vrot.slane %v16619_v27, 5  ;;  %v8533_v19 = vrot.slane %v7654_v26, 5  ;;  %v13709_v10 = vld [vmem:[#allocation2 + $0x78] sm:$0xff]  }
 0x407   : > { %v16644_v31 = vsel %vm14252_vm5, %v11494_v35, %v8512_v18  ;;  %v8521_v2 = vrot.slane %v8519_v25, 4  ;;  %v8529_v35 = vrot.slane %v7652_v14, 5  ;;  %v17857_v26 = vcombine.low %v16347_v38, %v16353_v7  ;;  %v13696_v7 = vld [vmem:[#allocation2 + $0xc] sm:$0xff]  }
 0x408   : > { %17852 = vst [vmem:[#allocation15_spill] sm:$0xff] %v16644_v31  ;;  %v16649_v11 = vsel %vm14252_vm5, %v8514_v52, %v8515_v56  ;;  %v16653_v15 = vsel %vm14252_vm5, %v11495_v24, %v8519_v25  ;;  %v8535_v56 = vrot.slane %v8533_v19, 4  ;;  %v13699_v24 = vld [vmem:[#allocation2 + $0x24] sm:$0xff]   ;;  %v16705_v52 = vld [vmem:[#allocation2 + $0x14] sm:$0x1] }
 0x409   : > { %12707 = vmatmul.mubr.bf16.gmra.mrb[20].mxu1 %v17845_v58  ;;  %v8508_v58 = vrot.slane %v7643_v47, 5  ;;  %v8522_v47 = vrot.slane %v7649_v22, 5  ;;  %17853 = vst [vmem:[#allocation16_spill] sm:$0xff] %v16649_v11  ;;  %17854 = vst [vmem:[#allocation17_spill] sm:$0xff] %v16653_v15  ;;  %v8528_v22 = vrot.slane %v8526_v45, 4  ;;  %v7738_v11 = vshll.u32 %v16463_v33, 16 }
 0x40a   : > { %12710 = vmatprep.mubr.bf16.mxu1 %v17847_v60 }
 0x40b   : > { %v16638_v60 = vsel %vm14252_vm5, %v8507_v13, %v8508_v58  ;;  %v8377_v13 = vld [vmem:[#allocation2 + $0xc0] sm:$0xe]  ;;  %v11496_v58 = vrot.slane %v8376_v23, 9  ;;  %v16659_v18 = vsel %vm14252_vm5, %v8521_v2, %v8522_v47  ;;  %v8536_v23 = vrot.slane %v7655_v50, 5  ;;  %v13697_v47 = vld [vmem:[#allocation2 + $0x18] sm:$0xff]  }
 0x40c   : > { %17851 = vst [vmem:[#allocation14_spill] sm:$0xff] %v16638_v60  ;;  %17855 = vst [vmem:[#allocation20_spill] sm:$0xff] %v16659_v18  ;;  %v11497_v25 = vrot.slane %v8377_v13, 9  ;;  %v16675_v14 = vsel %vm14252_vm5, %v8528_v22, %v8529_v35  ;;  %v13704_v13 = vld [vmem:[%s17581_s3 + $0x110] sm:$0xff]  }
 0x40d   : > { %v16671_v2 = vsel %vm14252_vm5, %v11496_v58, %v8526_v45  ;;  %17859 = vst [vmem:[#allocation22_spill] sm:$0xff] %v16675_v14  ;;  %v16685_v50 = vsel %vm14252_vm5, %v8535_v56, %v8536_v23  ;;  %v17862_v45 = vcombine.low %v16363_v28, %v16367_v44  ;;  %v7608_v58 = vld [vmem:[#allocation2 + $0xc] sm:$0xf]  ;;  %v13700_v56 = vld [vmem:[#allocation2 + $0x30] sm:$0xff]   ;;  %v13707_v23 = vld [vmem:[%s17581_s3 + $0x118] sm:$0xff]   ;;  %v7714_v14 = vshll.u32 %v16456_v42, 16 }
 0x40e   : > { %17858 = vst [vmem:[#allocation21_spill] sm:$0xff] %v16671_v2  ;;  %v16681_v12 = vsel %vm14252_vm5, %v11497_v25, %v8533_v19  ;;  %17861 = vst [vmem:[#allocation24_spill] sm:$0xff] %v16685_v50  ;;  %v7609_v19 = vld [vmem:[#allocation2 + $0x10] sm:$0xf]  ;;  %v7657_v28 = vshrl.u32 %v7608_v58, 16  ;;  %v7660_v44 = vshll.u32 %v7608_v58, 16 }
 0x40f   : > { %17860 = vst [vmem:[#allocation23_spill] sm:$0xff] %v16681_v12  ;;  %v7666_v22 = vshll.u32 %v7609_v19, 16  ;;  %v7670_v35 = vshrl.u32 %v7609_v19, 16  ;;  %v7611_v25 = vld [vmem:[#allocation2 + $0x18] sm:$0xf]  ;;  %v13710_v19 = vld [vmem:[%s17581_s3 + $0x120] sm:$0xff]  }
 0x410   : > { %v16713_v12 = vld [vmem:[#allocation2 + $0x20] sm:$0x1] }
 0x411   : > { %12711 = vmatmul.mubr.bf16.gmra.mrb[24].mxu1 %v17856_v41  ;;  %v13701_v41 = vld [vmem:[%s17581_s3 + $0x108] sm:$0xff]   ;;  %v7672_v58 = vrot.slane %v7670_v35, 4  ;;  %v13705_v35 = vld [vmem:[#allocation2 + $0x54] sm:$0xff]  }
 0x412   : > { %12714 = vmatprep.mubr.bf16.mxu1 %v17857_v26  ;;  %v7612_v26 = vld [vmem:[#allocation2 + $0x1c] sm:$0xf] }
 0x413   : > { %v7690_v38 = vshll.u32 %v7612_v26, 16  ;;  %v7694_v62 = vshrl.u32 %v7612_v26, 16  ;;  %v7676_v26 = vshll.u32 %v16705_v52, 16 }
 0x415   : > { %v7678_v2 = vrot.slane %v7676_v26, 5 }
 0x419   : > { %12715 = vmatmul.mubr.bf16.gmra.mrb[28].mxu1 %v17862_v45  ;;  %v7684_v45 = vshll.u32 %v7611_v25, 16 }
 0x41a   : > { %12734 = vmatprep.mubr.bf16.mxu1 %v13696_v7  ;;  %v7681_v7 = vshrl.u32 %v7611_v25, 16 }
 0x41b   : > { %v7686_v50 = vrot.slane %v7684_v45, 5 }
 0x41c   : > { %v7683_v17 = vrot.slane %v7681_v7, 4 }
 0x421   : > { %12735 = vmatmul.mubr.bf16.vlgmr.msra.gmra.mrb[0].mxu1 %v13697_v47  ;;  %v7659_v47 = vrot.slane %v7657_v28, 4  ;;  %v13713_v28 = vld [vmem:[%s17581_s3 + $0x128] sm:$0xff]  }
 0x422   : > { %12738 = vmatprep.mubr.bf16.mxu1 %v13699_v24  ;;  %12767 = vmatpush3.bf16.msra.mxu1 %v16484_v3  ;;  %v13702_v3 = vld [vmem:[#allocation2 + $0x3c] sm:$0xff]   ;;  %v7668_v24 = vrot.slane %v7666_v22, 5  ;;  %v7696_v22 = vrot.slane %v7694_v62, 4 }
 0x423   : > { %12768 = vmatprep.subr.bf16.mxu1 %v13701_v41 }
 0x426   : > { %12769 = vmatpush3.bf16.msra.mxu1 %v13701_v41  ;;  %v7662_v41 = vrot.slane %v7660_v44, 5  ;;  %v16710_v44 = vrot.slane %v7690_v38, 5  ;;  %v13716_v38 = vld [vmem:[%s17581_s3 + $0x130] sm:$0xff]  }
 0x427   : > { %12770 = vmatprep.subr.bf16.mxu1 %v13704_v13 }
 0x428   : > { %v7663_v25 = vor.u32 %v7662_v41, %v7659_v47  ;;  %v7697_v62 = vor.u32 %v7696_v22, %v16710_v44  ;;  %v13706_v22 = vld [vmem:[#allocation2 + $0x60] sm:$0xff]  }
 0x429   : > { %12739 = vmatmul.mubr.bf16.gmra.mrb[4].mxu1 %v13700_v56  ;;  %v7614_v56 = vld [vmem:[#allocation2 + $0x24] sm:$0xf] }
 0x42a   : > { %12742 = vmatprep.mubr.bf16.mxu1 %v13702_v3  ;;  %12771 = vmatpush3.bf16.msra.mxu1 %v13704_v13  ;;  %v7673_v3 = vor.u32 %v7672_v58, %v7668_v24  ;;  %v13703_v13 = vld [vmem:[#allocation2 + $0x48] sm:$0xff]   ;;  %v7705_v7 = vshrl.u32 %v7614_v56, 16  ;;  %v7708_v45 = vshll.u32 %v7614_v56, 16  ;;  %v7664_v47 = vrot.slane %v7663_v25, 4 }
 0x42b   : > { %12772 = vmatprep.subr.bf16.mxu1 %v13707_v23  ;;  %v7700_v58 = vshll.u32 %v16713_v12, 16  ;;  %v7698_v26 = vrot.slane %v7697_v62, 4  ;;  %v7742_v62 = vshrl.u32 %v16463_v33, 16  ;;  %v7786_v33 = vshll.u32 %v16475_v43, 16 }
 0x42c   : > { %v7674_v41 = vrot.slane %v7673_v3, 4  ;;  %v7707_v18 = vrot.slane %v7705_v7, 4  ;;  %v7710_v56 = vrot.slane %v7708_v45, 5  ;;  %v7669_v25 = vsel %vm13919_vm2, %v7664_v47, %v7668_v24 }
 0x42d   : > { %v7702_v7 = vrot.slane %v7700_v58, 5  ;;  %v16729_v45 = vrot.slane %v7714_v14, 5  ;;  %v7766_v58 = vshrl.u32 %v16467_v57, 16 }
 0x42e   : > { %12773 = vmatpush3.bf16.msra.mxu1 %v13707_v23  ;;  %v7687_v23 = vor.u32 %v7686_v50, %v7683_v17  ;;  %v7718_v17 = vshrl.u32 %v16456_v42, 16  ;;  %v7679_v3 = vsel %vm13919_vm2, %v7674_v41, %v7678_v2  ;;  %v7724_v42 = vshll.u32 %v16458_v46, 16 }
 0x42f   : > { %12774 = vmatprep.subr.bf16.mxu1 %v13710_v19  ;;  %v16732_v2 = vcombine.low %v7669_v25, %v7679_v3  ;;  %v7768_v51 = vrot.slane %v7766_v58, 4 }
 0x430   : > { %v7688_v50 = vrot.slane %v7687_v23, 4  ;;  %v7711_v23 = vor.u32 %v7710_v56, %v7707_v18  ;;  %v7720_v15 = vrot.slane %v7718_v17, 4  ;;  %v7762_v18 = vshll.u32 %v16467_v57, 16  ;;  %v7623_v56 = vld [vmem:[#allocation2 + $0x48] sm:$0xf] }
 0x431   : > { %12743 = vmatmul.mubr.bf16.gmra.mrb[8].mxu1 %v13703_v13  ;;  %v7620_v13 = vld [vmem:[#allocation2 + $0x3c] sm:$0xf]  ;;  %v7703_v17 = vsel %vm13919_vm2, %v7698_v26, %v7702_v7  ;;  %v7744_v26 = vrot.slane %v7742_v62, 4  ;;  %v7777_v7 = vshrl.u32 %v7623_v56, 16  ;;  %v7810_v62 = vshll.u32 %v16489_v48, 16 }
 0x432   : > { %12746 = vmatprep.mubr.bf16.mxu1 %v13705_v35  ;;  %12775 = vmatpush3.bf16.msra.mxu1 %v13710_v19  ;;  %v7617_v19 = vld [vmem:[#allocation2 + $0x30] sm:$0xf]  ;;  %v13719_v35 = vld [vmem:[%s17581_s3 + $0x138] sm:$0xff]   ;;  %v7693_v41 = vsel %vm13919_vm2, %v7688_v50, %v16710_v44  ;;  %v7753_v14 = vshrl.u32 %v7620_v13, 16  ;;  %v7756_v46 = vshll.u32 %v7620_v13, 16  ;;  %v16746_v44 = vld [vmem:[%s17581_s3 + $0x140] sm:$0xff]   ;;  %v7721_v57 = vor.u32 %v7720_v15, %v16729_v45 }
 0x433   : > { %12776 = vmatprep.subr.bf16.mxu1 %v13713_v28  ;;  %v7729_v24 = vshrl.u32 %v7617_v19, 16  ;;  %v7732_v47 = vshll.u32 %v7617_v19, 16  ;;  %v16748_v50 = vrot.slane %v7724_v42, 5  ;;  %v16752_v19 = vrot.slane %v7711_v23, 4  ;;  %v7626_v13 = vld [vmem:[#allocation2 + $0x54] sm:$0xf] }
 0x434   : > { %v7755_v31 = vrot.slane %v7753_v14, 4  ;;  %v7758_v42 = vrot.slane %v7756_v46, 5  ;;  %v16757_v60 = vrot.slane %v7762_v18, 5  ;;  %v7801_v23 = vshrl.u32 %v7626_v13, 16 }
 0x435   : > { %v7731_v25 = vrot.slane %v7729_v24, 4  ;;  %v7734_v3 = vrot.slane %v7732_v47, 5  ;;  %v7804_v24 = vshll.u32 %v7626_v13, 16  ;;  %v13711_v47 = vld [vmem:[#allocation2 + $0x84] sm:$0xff]   ;;  %v7814_v14 = vshrl.u32 %v16489_v48, 16 }
 0x436   : > { %12777 = vmatpush3.bf16.msra.mxu1 %v13713_v28  ;;  %v13708_v28 = vld [vmem:[#allocation2 + $0x6c] sm:$0xff]   ;;  %v7722_v46 = vrot.slane %v7721_v57, 4  ;;  %v7748_v18 = vshll.u32 %v16465_v36, 16  ;;  %v7779_v58 = vrot.slane %v7777_v7, 4  ;;  %v7772_v13 = vshll.u32 %v16473_v32, 16 }
 0x437   : > { %12778 = vmatprep.subr.bf16.mxu1 %v13716_v38  ;;  %v7803_v40 = vrot.slane %v7801_v23, 4  ;;  %v7806_v48 = vrot.slane %v7804_v24, 5  ;;  %v7816_v57 = vrot.slane %v7814_v14, 4  ;;  %v13714_v14 = vld [vmem:[#allocation2 + $0x9c] sm:$0xff]  }
 0x438   : > { %v7727_v32 = vsel %vm13919_vm2, %v7722_v46, %v16748_v50  ;;  %v7774_v23 = vrot.slane %v7772_v13, 5  ;;  %v7849_v13 = vshrl.u32 %v7632_v49, 16 }
 0x439   : > { %12747 = vmatmul.mubr.bf16.gmra.mrb[12].mxu1 %v13706_v22  ;;  %v16755_v22 = vrot.slane %v7738_v11, 5  ;;  %v16762_v11 = vcombine.low %v7693_v41, %v7703_v17  ;;  %v7769_v17 = vor.u32 %v7768_v51, %v16757_v60  ;;  %v7750_v51 = vrot.slane %v7748_v18, 5 }
 0x43a   : > { %12750 = vmatprep.mubr.bf16.mxu1 %v13708_v28  ;;  %12779 = vmatpush3.bf16.msra.mxu1 %v13716_v38  ;;  %v7790_v38 = vshrl.u32 %v16475_v43, 16  ;;  %v7780_v28 = vshll.u32 %v7623_v56, 16  ;;  %v16760_v43 = vrot.slane %v7786_v33, 5  ;;  %v7629_v33 = vld [vmem:[#allocation2 + $0x60] sm:$0xf] }
 0x43b   : > { %12780 = vmatprep.subr.bf16.mxu1 %v13719_v35  ;;  %v7745_v41 = vor.u32 %v7744_v26, %v16755_v22  ;;  %v7825_v36 = vshrl.u32 %v7629_v33, 16  ;;  %v7828_v7 = vshll.u32 %v7629_v33, 16  ;;  %v7770_v26 = vrot.slane %v7769_v17, 4 }
 0x43c   : > { %v7792_v15 = vrot.slane %v7790_v38, 4  ;;  %v7782_v56 = vrot.slane %v7780_v28, 5  ;;  %v7735_v38 = vor.u32 %v7734_v3, %v7731_v25  ;;  %v7834_v25 = vshll.u32 %v16505_v5, 16 }
 0x43d   : > { %v7838_v3 = vshrl.u32 %v16505_v5, 16  ;;  %v7830_v33 = vrot.slane %v7828_v7, 5  ;;  %v16812_v7 = vld [vmem:[#allocation2 + $0x78] sm:$0xf] }
 0x43e   : > { %12781 = vmatpush3.bf16.msra.mxu1 %v13719_v35  ;;  %v7717_v35 = vsel %vm13919_vm2, %v16752_v19, %v16729_v45  ;;  %v7759_v45 = vor.u32 %v7758_v42, %v7755_v31  ;;  %v7793_v19 = vor.u32 %v7792_v15, %v16760_v43  ;;  %v7783_v28 = vor.u32 %v7782_v56, %v7779_v58  ;;  %v13712_v42 = vld [vmem:[#allocation2 + $0x90] sm:$0xff]  }
 0x43f   : > { %12814 = vmatprep.subr.bf16.mxu1 %v16746_v44  ;;  %v7746_v31 = vrot.slane %v7745_v41, 4  ;;  %v7736_v15 = vrot.slane %v7735_v38, 4  ;;  %v7827_v56 = vrot.slane %v7825_v36, 4  ;;  %v16784_v0 = vrot.slane %v7834_v25, 5 }
 0x440   : > { %v7794_v24 = vrot.slane %v7793_v19, 4  ;;  %v7760_v58 = vrot.slane %v7759_v45, 4  ;;  %v7784_v5 = vrot.slane %v7783_v28, 4  ;;  %v7840_v50 = vrot.slane %v7838_v3, 4 }
 0x441   : > { %12751 = vmatmul.mubr.bf16.gmra.mrb[16].mxu1 %v13709_v10  ;;  %v16775_v10 = vrot.slane %v7810_v62, 5  ;;  %v7807_v62 = vor.u32 %v7806_v48, %v7803_v40  ;;  %v16786_v46 = vcombine.low %v7717_v35, %v7727_v32  ;;  %v7751_v18 = vsel %vm13919_vm2, %v7746_v31, %v7750_v51  ;;  %v16823_v32 = vld [vmem:[#allocation2 + $0x20] sm:$0x1]  ;;  %v13715_v31 = vld [vmem:[#allocation2 + $0xa8] sm:$0xff]  }
 0x442   : > { %12754 = vmatprep.mubr.bf16.mxu1 %v13711_v47  ;;  %v7796_v47 = vshll.u32 %v16486_v30, 16  ;;  %v7775_v40 = vsel %vm13919_vm2, %v7770_v26, %v7774_v23  ;;  %v7820_v38 = vshll.u32 %v16491_v59, 16  ;;  %v7852_v45 = vshll.u32 %v7632_v49, 16  ;;  %17863 = vst [vmem:[#allocation25_spill] sm:$0xff] %v16823_v32  ;;  %v13717_v23 = vld [vmem:[#allocation2 + $0xb4] sm:$0xff]  }
 0x443   : > { %v7817_v30 = vor.u32 %v7816_v57, %v16775_v10  ;;  %v16795_v17 = vrot.slane %v7807_v62, 4  ;;  %v7741_v35 = vsel %vm13919_vm2, %v7736_v15, %v16755_v22  ;;  %v7831_v48 = vor.u32 %v7830_v33, %v7827_v56  ;;  %v16814_v22 = vld [vmem:[#allocation2 + $0x1c] sm:$0xf]  ;;  %v10001_v15 = vld [vmem:[#allocation2 + $0x18] sm:$0xe] }
 0x444   : > { %v7798_v16 = vrot.slane %v7796_v47, 5  ;;  %v7858_v57 = vshll.u32 %v16531_v53, 16  ;;  %v16803_v36 = vcombine.low %v7741_v35, %v7751_v18  ;;  %v7765_v59 = vsel %vm13919_vm2, %v7760_v58, %v16757_v60  ;;  %v16825_v60 = vld [vmem:[#allocation2 + $0x28] sm:$0xf]  ;;  %v16844_v58 = vld [vmem:[#allocation2 + $0x34] sm:$0xf] }
 0x445   : > { %v16800_v19 = vrot.slane %v7817_v30, 4  ;;  %v7841_v49 = vor.u32 %v7840_v50, %v16784_v0  ;;  %v16816_v28 = vcombine.low %v7765_v59, %v7775_v40  ;;  %v16820_v25 = vrot.slane %v7820_v38, 5  ;;  %17864 = vst [vmem:[#allocation26_spill] sm:$0xff] %v16825_v60  ;;  %17865 = vst [vmem:[#allocation27_spill] sm:$0xff] %v16844_v58  ;;  %v10002_v56 = vld [vmem:[#allocation2 + $0x24] sm:$0xe] }
 0x446   : > { %v7799_v41 = vsel %vm13919_vm2, %v7794_v24, %v7798_v16  ;;  %v7789_v16 = vsel %vm13919_vm2, %v7784_v5, %v16760_v43  ;;  %v16831_v51 = vrot.slane %v7849_v13, 4  ;;  %v16833_v26 = vrot.slane %v7852_v45, 5  ;;  %v16852_v18 = vld [vmem:[#allocation2 + $0x2c] sm:$0x1]  ;;  %v16854_v40 = vld [vmem:[#allocation2 + $0x38] sm:$0x1] }
 0x447   : > { %v16818_v47 = vcombine.low %v7789_v16, %v7799_v41  ;;  %v16840_v62 = vrot.slane %v7831_v48, 4  ;;  %v10067_v30 = vrot.slane %v16814_v22, 5  ;;  %v16847_v33 = vrot.slane %v7841_v49, 4  ;;  %17866 = vst [vmem:[#allocation28_spill] sm:$0xff] %v16852_v18  ;;  %17867 = vst [vmem:[#allocation29_spill] sm:$0xff] %v16854_v40  ;;  %v13718_v59 = vld [vmem:[#allocation2 + $0xc0] sm:$0xff]  }
 0x448   : > { %v7873_v5 = vshrl.u32 %v16812_v7, 16  ;;  %v16856_v38 = vld [vmem:[#allocation2 + $0x40] sm:$0xf]  ;;  %v11618_v41 = vrot.slane %v10001_v15, 9  ;;  %v10070_v45 = vrot.slane %v16823_v32, 5  ;;  %v10074_v35 = vrot.slane %v16825_v60, 5 }
 0x449   : > { %12755 = vmatmul.mubr.bf16.gmra.mrb[20].mxu1 %v13712_v42  ;;  %v7862_v42 = vshrl.u32 %v16531_v53, 16  ;;  %17868 = vst [vmem:[#allocation30_spill] sm:$0xff] %v16856_v38  ;;  %v10069_v13 = vrot.slane %v10067_v30, 4  ;;  %v11619_v16 = vrot.slane %v10002_v56, 9  ;;  %v10003_v49 = vld [vmem:[#allocation2 + $0x30] sm:$0xe] }
 0x44a   : > { %12758 = vmatprep.mubr.bf16.mxu1 %v13714_v14  ;;  %v16842_v14 = vrot.slane %v7858_v57, 5  ;;  %v10076_v53 = vrot.slane %v10074_v35, 4  ;;  %v10077_v3 = vrot.slane %v16852_v18, 5  ;;  %v10004_v43 = vld [vmem:[#allocation2 + $0x3c] sm:$0xe]  ;;  %v10088_v50 = vrot.slane %v16856_v38, 5 }
 0x44b   : > { %v16862_v57 = vrot.slane %v7862_v42, 4  ;;  %v16873_v15 = vsel %vm14252_vm5, %v10069_v13, %v10070_v45  ;;  %v16876_v42 = vrot.slane %v7873_v5, 4  ;;  %v16879_v56 = vld [vmem:[#allocation2 + $0x44] sm:$0x1]  ;;  %v16886_v13 = vsel %vm14252_vm5, %v11619_v16, %v10074_v35  ;;  %v10005_v24 = vld [vmem:[#allocation2 + $0x48] sm:$0xe] }
 0x44c   : > { %17871 = vst [vmem:[#allocation33_spill] sm:$0xff] %v16873_v15  ;;  %17872 = vst [vmem:[#allocation34_spill] sm:$0xff] %v16879_v56  ;;  %v16890_v45 = vsel %vm14252_vm5, %v10076_v53, %v10077_v3  ;;  %v11620_v5 = vrot.slane %v10003_v49, 9  ;;  %v16893_v18 = vld [vmem:[#allocation2 + $0x58] sm:$0xf]  ;;  %v10090_v53 = vrot.slane %v10088_v50, 4 }
 0x44d   : > { %17873 = vst [vmem:[#allocation35_spill] sm:$0xff] %v16886_v13  ;;  %17874 = vst [vmem:[#allocation36_spill] sm:$0xff] %v16890_v45  ;;  %v16900_v16 = vld [vmem:[#allocation2 + $0x5c] sm:$0x1]  ;;  %v10091_v49 = vrot.slane %v16879_v56, 5  ;;  %v11622_v35 = vrot.slane %v10005_v24, 9 }
 0x44e   : > { %17875 = vst [vmem:[#allocation37_spill] sm:$0xff] %v16893_v18  ;;  %17876 = vst [vmem:[#allocation38_spill] sm:$0xff] %v16900_v16  ;;  %v10006_v38 = vld [vmem:[#allocation2 + $0x54] sm:$0xe]  ;;  %v16907_v32 = vld [vmem:[#allocation2 + $0x64] sm:$0xf] }
 0x44f   : > { %17878 = vst [vmem:[#allocation40_spill] sm:$0xff] %v16907_v32  ;;  %v16919_v13 = vld [vmem:[#allocation2 + $0x70] sm:$0xf]  ;;  %v9270_v60 = vld [vmem:[#allocation2 + $0x74] sm:$0x1] }
 0x450   : > { %17881 = vst [vmem:[#allocation43_spill] sm:$0xff] %v16919_v13 }
 0x451   : > { %12759 = vmatmul.mubr.bf16.gmra.mrb[24].mxu1 %v13715_v31  ;;  %v16865_v31 = vld [vmem:[#allocation2 + $0x4c] sm:$0xf] }
 0x452   : > { %12762 = vmatprep.mubr.bf16.mxu1 %v13717_v23  ;;  %17869 = vst [vmem:[#allocation31_spill] sm:$0xff] %v16865_v31  ;;  %v16869_v23 = vsel %vm14252_vm5, %v11618_v41, %v10067_v30  ;;  %v10081_v30 = vrot.slane %v16844_v58, 5  ;;  %v9261_v41 = vld [vmem:[#allocation2 + $0x50] sm:$0x1]  ;;  %v11621_v58 = vrot.slane %v10004_v43, 9  ;;  %v10095_v45 = vrot.slane %v16865_v31, 5 }
 0x453   : > { %17870 = vst [vmem:[#allocation32_spill] sm:$0xff] %v16869_v23  ;;  %v10084_v23 = vrot.slane %v16854_v40, 5  ;;  %v11623_v31 = vrot.slane %v10006_v38, 9  ;;  %v10008_v40 = vld [vmem:[#allocation2 + $0x6c] sm:$0xe] }
 0x454   : > { %v10083_v15 = vrot.slane %v10081_v30, 4  ;;  %v16904_v3 = vsel %vm14252_vm5, %v11620_v5, %v10081_v30  ;;  %v16915_v43 = vsel %vm14252_vm5, %v11621_v58, %v10088_v50  ;;  %v10007_v30 = vld [vmem:[#allocation2 + $0x60] sm:$0xe]  ;;  %v9267_v5 = vld [vmem:[#allocation2 + $0x68] sm:$0x1]  ;;  %v10102_v58 = vrot.slane %v16893_v18, 5 }
 0x455   : > { %17877 = vst [vmem:[#allocation39_spill] sm:$0xff] %v16904_v3  ;;  %17880 = vst [vmem:[#allocation42_spill] sm:$0xff] %v16915_v43  ;;  %v9272_v50 = vld [vmem:[#allocation2 + $0x7c] sm:$0xf]  ;;  %v10097_v56 = vrot.slane %v10095_v45, 4  ;;  %v10112_v24 = vrot.slane %v9267_v5, 5 }
 0x456   : > { %v16911_v48 = vsel %vm14252_vm5, %v10083_v15, %v10084_v23  ;;  %v16925_v23 = vsel %vm14252_vm5, %v10090_v53, %v10091_v49  ;;  %v10098_v15 = vrot.slane %v9261_v41, 5  ;;  %v11624_v53 = vrot.slane %v10007_v30, 9  ;;  %v9273_v49 = vld [vmem:[#allocation2 + $0x80] sm:$0x1]  ;;  %v10009_v43 = vld [vmem:[#allocation2 + $0x78] sm:$0xe] }
 0x457   : > { %17879 = vst [vmem:[#allocation41_spill] sm:$0xff] %v16911_v48  ;;  %17882 = vst [vmem:[#allocation44_spill] sm:$0xff] %v16925_v23  ;;  %v10104_v48 = vrot.slane %v10102_v58, 4  ;;  %v10109_v41 = vrot.slane %v16907_v32, 5  ;;  %v16942_v38 = vsel %vm14252_vm5, %v11623_v31, %v10102_v58  ;;  %v10116_v23 = vrot.slane %v16919_v13, 5  ;;  %v13721_v31 = vld [vmem:[%s17581_s3 + $0x148] sm:$0xff]  }
 0x458   : > { %v16938_v3 = vsel %vm14252_vm5, %v10097_v56, %v10098_v15  ;;  %v11625_v56 = vrot.slane %v10008_v40, 9  ;;  %v10119_v13 = vrot.slane %v9270_v60, 5  ;;  %v10011_v18 = vld [vmem:[#allocation2 + $0x90] sm:$0xe]  ;;  %v9279_v5 = vld [vmem:[#allocation2 + $0x98] sm:$0x1] }
 0x459   : > { %12763 = vmatmul.mubr.bf16.gmra.mrb[28].mxu1 %v13718_v59  ;;  %v16933_v59 = vsel %vm14252_vm5, %v11622_v35, %v10095_v45  ;;  %17884 = vst [vmem:[#allocation46_spill] sm:$0xff] %v16938_v3  ;;  %v9276_v45 = vld [vmem:[#allocation2 + $0x8c] sm:$0x1]  ;;  %v10111_v32 = vrot.slane %v10109_v41, 4  ;;  %v16958_v15 = vsel %vm14252_vm5, %v11624_v53, %v10109_v41  ;;  %v10118_v58 = vrot.slane %v10116_v23, 4  ;;  %v13722_v60 = vld [vmem:[%s17581_s3 + $0x150] sm:$0xff]  }
 0x45a   : > { %12782 = vmatprep.mubr.bf16.mxu1 %v16732_v2  ;;  %v10105_v2 = vrot.slane %v16900_v16, 5  ;;  %17883 = vst [vmem:[#allocation45_spill] sm:$0xff] %v16933_v59  ;;  %v9275_v16 = vld [vmem:[#allocation2 + $0x88] sm:$0xf]  ;;  %17885 = vst [vmem:[#allocation47_spill] sm:$0xff] %v16958_v15  ;;  %v16966_v40 = vsel %vm14252_vm5, %v11625_v56, %v10116_v23  ;;  %v10123_v59 = vrot.slane %v9272_v50, 5 }
 0x45b   : > { %v10010_v35 = vld [vmem:[#allocation2 + $0x84] sm:$0xe]  ;;  %v9278_v3 = vld [vmem:[#allocation2 + $0x94] sm:$0xf]  ;;  %17887 = vst [vmem:[#allocation49_spill] sm:$0xff] %v16966_v40  ;;  %v16973_v41 = vsel %vm14252_vm5, %v10118_v58, %v10119_v13  ;;  %v10133_v50 = vrot.slane %v9276_v45, 5 }
 0x45c   : > { %v16949_v30 = vsel %vm14252_vm5, %v10104_v48, %v10105_v2  ;;  %v16962_v48 = vsel %vm14252_vm5, %v10111_v32, %v10112_v24  ;;  %v11626_v2 = vrot.slane %v10009_v43, 9  ;;  %v9281_v53 = vld [vmem:[#allocation2 + $0xa0] sm:$0xf]  ;;  %17888 = vst [vmem:[#allocation50_spill] sm:$0xff] %v16973_v41  ;;  %v10126_v32 = vrot.slane %v9273_v49, 5 }
 0x45d   : > { %17886 = vst [vmem:[#allocation48_spill] sm:$0xff] %v16962_v48  ;;  %v10130_v24 = vrot.slane %v9275_v16, 5  ;;  %v10125_v23 = vrot.slane %v10123_v59, 4  ;;  %v10012_v56 = vld [vmem:[#allocation2 + $0x9c] sm:$0xe]  ;;  %v11628_v49 = vrot.slane %v10011_v18, 9 }
 0x45e   : > { %v9282_v13 = vld [vmem:[#allocation2 + $0xa4] sm:$0x1]  ;;  %v16984_v16 = vsel %vm14252_vm5, %v11626_v2, %v10123_v59  ;;  %v9284_v58 = vld [vmem:[#allocation2 + $0xac] sm:$0xf]  ;;  %v9285_v48 = vld [vmem:[#allocation2 + $0xb0] sm:$0x1] }
 0x45f   : > { %v10140_v43 = vrot.slane %v9279_v5, 5  ;;  %v10144_v41 = vrot.slane %v9281_v53, 5  ;;  %v9287_v40 = vld [vmem:[#allocation2 + $0xb8] sm:$0xf]  ;;  %v11629_v2 = vrot.slane %v10012_v56, 9 }
 0x460   : > { %v10013_v15 = vld [vmem:[#allocation2 + $0xa8] sm:$0xe]  ;;  %v9290_v59 = vld [vmem:[#allocation2 + $0xc4] sm:$0xf] }
 0x461   : > { %12783 = vmatmul.mubr.bf16.vlgmr.msra.gmra.mrb[0].mxu1 %v16762_v11  ;;  %v11627_v11 = vrot.slane %v10010_v35, 9  ;;  %v16988_v35 = vsel %vm14252_vm5, %v10125_v23, %v10126_v32  ;;  %v17892_v32 = vshll.u32 %v16546_v21, 16  ;;  %v10146_v53 = vrot.slane %v10144_v41, 4  ;;  %v17961_v1 = vld [vmem:[#allocation45_spill] sm:$0xff] }
 0x462   : > { %12786 = vmatprep.mubr.bf16.mxu1 %v16786_v46  ;;  %12815 = vmatpush3.bf16.msra.mxu1 %v16746_v44  ;;  %v10132_v46 = vrot.slane %v10130_v24, 4  ;;  %v10137_v44 = vrot.slane %v9278_v3, 5  ;;  %17889 = vst [vmem:[#allocation51_spill] sm:$0xff] %v16988_v35  ;;  %v10158_v35 = vrot.slane %v9287_v40, 5  ;;  %v7638_v40 = vld [vmem:[#allocation2 + $0x84] sm:$0xf] }
 0x463   : > { %12816 = vmatprep.subr.bf16.mxu1 %v13721_v31  ;;  %v16992_v45 = vsel %vm14252_vm5, %v11627_v11, %v10130_v24  ;;  %v17002_v23 = vrot.slane %v17892_v32, 5  ;;  %v10147_v24 = vrot.slane %v9282_v13, 5  ;;  %v10014_v11 = vld [vmem:[#allocation2 + $0xb4] sm:$0xe]  ;;  %v17019_v32 = vsel %vm14252_vm5, %v11629_v2, %v10144_v41 }
 0x464   : > { %17890 = vst [vmem:[#allocation52_spill] sm:$0xff] %v16992_v45  ;;  %v16998_v18 = vsel %vm14252_vm5, %v10132_v46, %v10133_v50  ;;  %v10139_v3 = vrot.slane %v10137_v44, 4  ;;  %v13723_v50 = vld [vmem:[%s17581_s3 + $0x158] sm:$0xff]   ;;  %v10151_v13 = vrot.slane %v9284_v58, 5  ;;  %v11630_v45 = vrot.slane %v10013_v15, 9 }
 0x465   : > { %17891 = vst [vmem:[#allocation53_spill] sm:$0xff] %v16998_v18  ;;  %v9288_v46 = vld [vmem:[#allocation2 + $0xbc] sm:$0x1]  ;;  %v17025_v18 = vsel %vm14252_vm5, %v10146_v53, %v10147_v24  ;;  %v10154_v41 = vrot.slane %v9285_v48, 5  ;;  %v11631_v2 = vrot.slane %v10014_v11, 9  ;;  %v17893_v58 = vshrl.u32 %v16546_v21, 16 }
 0x466   : > { %12817 = vmatpush3.bf16.msra.mxu1 %v13721_v31  ;;  %v17011_v31 = vsel %vm14252_vm5, %v11628_v49, %v10137_v44  ;;  %v17015_v56 = vsel %vm14252_vm5, %v10139_v3, %v10140_v43  ;;  %v10015_v49 = vld [vmem:[#allocation2 + $0xc0] sm:$0xe]  ;;  %v9291_v44 = vld [vmem:[#allocation2 + $0xc8] sm:$0x1]  ;;  %v10153_v3 = vrot.slane %v10151_v13, 4  ;;  %v10160_v53 = vrot.slane %v10158_v35, 4 }
 0x467   : > { %12818 = vmatprep.subr.bf16.mxu1 %v13722_v60  ;;  %v7888_v5 = vrot.slane %v17893_v58, 4  ;;  %v10161_v24 = vrot.slane %v9288_v46, 5  ;;  %v10165_v15 = vrot.slane %v9290_v59, 5  ;;  %v17038_v43 = vsel %vm14252_vm5, %v11630_v45, %v10151_v13 }
 0x468   : > { %v17046_v21 = vsel %vm14252_vm5, %v11631_v2, %v10158_v35  ;;  %v11632_v48 = vrot.slane %v10015_v49, 9  ;;  %v10168_v46 = vrot.slane %v9291_v44, 5  ;;  %v17894_v45 = vshll.u32 %v16812_v7, 16 }
 0x469   : > { %12787 = vmatmul.mubr.bf16.gmra.mrb[4].mxu1 %v16803_v36  ;;  %v13724_v36 = vld [vmem:[%s17581_s3 + $0x160] sm:$0xff]   ;;  %v17052_v59 = vsel %vm14252_vm5, %v10160_v53, %v10161_v24  ;;  %v10167_v11 = vrot.slane %v10165_v15, 4  ;;  %v7897_v49 = vshrl.u32 %v7638_v40, 16  ;;  %v7900_v2 = vshll.u32 %v7638_v40, 16 }
 0x46a   : > { %12790 = vmatprep.mubr.bf16.mxu1 %v16816_v28  ;;  %12819 = vmatpush3.bf16.msra.mxu1 %v13722_v60  ;;  %v17042_v28 = vsel %vm14252_vm5, %v10153_v3, %v10154_v41  ;;  %v7878_v13 = vrot.slane %v17894_v45, 5  ;;  %v7906_v3 = vshll.u32 %v16565_v8, 16  ;;  %v7910_v41 = vshrl.u32 %v16565_v8, 16 }
 0x46b   : > { %12820 = vmatprep.subr.bf16.mxu1 %v13723_v50  ;;  %v11662_v60 = vcombine.low %v17038_v43, %v17042_v28  ;;  %v11663_v35 = vcombine.low %v17046_v21, %v17052_v59  ;;  %v17062_v58 = vsel %vm14252_vm5, %v11632_v48, %v10165_v15  ;;  %v17066_v44 = vsel %vm14252_vm5, %v10167_v11, %v10168_v46  ;;  %v13725_v15 = vld [vmem:[%s17581_s3 + $0x168] sm:$0xff]  }
 0x46c   : > { %v17895_v7 = vor.u32 %v16833_v26, %v16831_v51  ;;  %v17896_v8 = vor.u32 %v16862_v57, %v16842_v14  ;;  %v11664_v40 = vcombine.low %v17062_v58, %v17066_v44  ;;  %v17897_v51 = vsel %vm13919_vm2, %v16800_v19, %v16820_v25  ;;  %v7641_v19 = vld [vmem:[#allocation2 + $0x90] sm:$0xf] }
 0x46d   : > { %v17898_v26 = vsel %vm13919_vm2, %v16795_v17, %v16775_v10  ;;  %v17900_v11 = vshll.u32 %v16554_v9, 16  ;;  %v7892_v45 = vshll.u32 %v16556_v4, 16  ;;  %v7837_v10 = vsel %vm13919_vm2, %v16840_v62, %v16784_v0  ;;  %v13726_v0 = vld [vmem:[%s17581_s3 + $0x170] sm:$0xff]  }
 0x46e   : > { %12821 = vmatpush3.bf16.msra.mxu1 %v13723_v50  ;;  %v7856_v53 = vrot.slane %v17895_v7, 4  ;;  %v7866_v24 = vrot.slane %v17896_v8, 4  ;;  %v7889_v50 = vor.u32 %v7888_v5, %v17002_v23  ;;  %v11464_v57 = vcombine.low %v17898_v26, %v17897_v51 }
 0x46f   : > { %12822 = vmatprep.subr.bf16.mxu1 %v13724_v36  ;;  %v17899_v5 = vshll.u32 %v16523_v37, 16  ;;  %v7870_v46 = vrot.slane %v17900_v11, 5  ;;  %v17096_v7 = vrot.slane %v7906_v3, 5  ;;  %v7912_v8 = vrot.slane %v7910_v41, 4  ;;  %v13727_v11 = vld [vmem:[%s17581_s3 + $0x178] sm:$0xff]  }
 0x470   : > { %v7879_v37 = vor.u32 %v7878_v13, %v16876_v42  ;;  %v7899_v17 = vrot.slane %v7897_v49, 4  ;;  %v7902_v25 = vrot.slane %v7900_v2, 5  ;;  %v7861_v4 = vsel %vm13919_vm2, %v7856_v53, %v16842_v14 }
 0x471   : > { %v7846_v48 = vrot.slane %v17899_v5, 5  ;;  %12791 = vmatmul.mubr.bf16.gmra.mrb[8].mxu1 %v16818_v47  ;;  %v7871_v47 = vsel %vm13919_vm2, %v7866_v24, %v7870_v46  ;;  %v7890_v3 = vrot.slane %v7889_v50, 4  ;;  %v7921_v62 = vshrl.u32 %v7641_v19, 16 }
 0x472   : > { %12794 = vmatprep.mubr.bf16.mxu1 %v11464_v57  ;;  %12823 = vmatpush3.bf16.msra.mxu1 %v13724_v36  ;;  %v7924_v42 = vshll.u32 %v7641_v19, 16  ;;  %v7930_v36 = vshll.u32 %v16576_v54, 16  ;;  %v7934_v13 = vshrl.u32 %v16576_v54, 16  ;;  %v7894_v41 = vrot.slane %v7892_v45, 5  ;;  %v13798_v57 = vld [vmem:[#allocation2 + $0x8c] sm:$0x1] }
 0x473   : > { %v7847_v9 = vsel %vm13919_vm2, %v16847_v33, %v7846_v48  ;;  %12824 = vmatprep.subr.bf16.mxu1 %v13725_v15  ;;  %v7644_v33 = vld [vmem:[#allocation2 + $0x9c] sm:$0xf]  ;;  %v7913_v49 = vor.u32 %v7912_v8, %v17096_v7  ;;  %v7954_v14 = vshll.u32 %v16592_v20, 16  ;;  %v7958_v2 = vshrl.u32 %v16592_v20, 16 }
 0x474   : > { %v11465_v53 = vcombine.low %v7837_v10, %v7847_v9  ;;  %v11466_v24 = vcombine.low %v7861_v4, %v7871_v47  ;;  %v7880_v50 = vrot.slane %v7879_v37, 4  ;;  %v7903_v51 = vor.u32 %v7902_v25, %v7899_v17 }
 0x475   : > { %v7895_v26 = vsel %vm13919_vm2, %v7890_v3, %v7894_v41  ;;  %v7916_v5 = vshll.u32 %v13798_v57, 16  ;;  %v7945_v48 = vshrl.u32 %v7644_v33, 16  ;;  %v7948_v54 = vshll.u32 %v7644_v33, 16  ;;  %v7647_v3 = vld [vmem:[#allocation2 + $0xa8] sm:$0xf] }
 0x476   : > { %12825 = vmatpush3.bf16.msra.mxu1 %v13725_v15  ;;  %v7923_v46 = vrot.slane %v7921_v62, 4  ;;  %v7926_v45 = vrot.slane %v7924_v42, 5  ;;  %v17124_v20 = vrot.slane %v7930_v36, 5  ;;  %v7936_v8 = vrot.slane %v7934_v13, 4  ;;  %v17134_v62 = vld [vmem:[%s17581_s3 + $0x180] sm:$0xff]  }
 0x477   : > { %12826 = vmatprep.subr.bf16.mxu1 %v13726_v0  ;;  %v7914_v19 = vrot.slane %v7913_v49, 4  ;;  %v17126_v15 = vrot.slane %v7954_v14, 5  ;;  %v7960_v10 = vrot.slane %v7958_v2, 4  ;;  %v7885_v37 = vsel %vm13919_vm2, %v7880_v50, %v17002_v23  ;;  %v13799_v13 = vld [vmem:[#allocation2 + $0xac] sm:$0xf] }
 0x478   : > { %v7904_v17 = vrot.slane %v7903_v51, 4  ;;  %v11467_v25 = vcombine.low %v7885_v37, %v7895_v26  ;;  %v7918_v9 = vrot.slane %v7916_v5, 5  ;;  %v7947_v4 = vrot.slane %v7945_v48, 4  ;;  %v7650_v23 = vld [vmem:[#allocation2 + $0xb4] sm:$0xf] }
 0x479   : > { %12795 = vmatmul.mubr.bf16.gmra.mrb[12].mxu1 %v11465_v53  ;;  %v7950_v47 = vrot.slane %v7948_v54, 5  ;;  %v7927_v42 = vor.u32 %v7926_v45, %v7923_v46  ;;  %v7937_v36 = vor.u32 %v7936_v8, %v17124_v20  ;;  %v7978_v33 = vshll.u32 %v13799_v13, 16  ;;  %v13801_v5 = vld [vmem:[#allocation2 + $0xa4] sm:$0x1] }
 0x47a   : > { %12798 = vmatprep.mubr.bf16.mxu1 %v11466_v24  ;;  %12827 = vmatpush3.bf16.msra.mxu1 %v13726_v0  ;;  %v7982_v41 = vshrl.u32 %v13799_v13, 16  ;;  %v7919_v0 = vsel %vm13919_vm2, %v7914_v19, %v7918_v9  ;;  %v7961_v49 = vor.u32 %v7960_v10, %v17126_v15  ;;  %v8002_v14 = vshll.u32 %v16619_v27, 16  ;;  %v13800_v24 = vld [vmem:[#allocation2 + $0x98] sm:$0x1] }
 0x47b   : > { %12828 = vmatprep.subr.bf16.mxu1 %v13727_v11  ;;  %v8006_v2 = vshrl.u32 %v16619_v27, 16  ;;  %v7909_v53 = vsel %vm13919_vm2, %v7904_v17, %v17096_v7  ;;  %v7940_v50 = vshll.u32 %v13800_v24, 16  ;;  %v7969_v51 = vshrl.u32 %v7647_v3, 16 }
 0x47c   : > { %v7972_v26 = vshll.u32 %v7647_v3, 16  ;;  %v7951_v57 = vor.u32 %v7950_v47, %v7947_v4  ;;  %v7964_v48 = vshll.u32 %v13801_v5, 16  ;;  %v7993_v54 = vshrl.u32 %v7650_v23, 16 }
 0x47d   : > { %v7996_v46 = vshll.u32 %v7650_v23, 16  ;;  %v11468_v45 = vcombine.low %v7909_v53, %v7919_v0  ;;  %v7938_v8 = vrot.slane %v7937_v36, 4  ;;  %v7980_v19 = vrot.slane %v7978_v33, 5  ;;  %v7653_v23 = vld [vmem:[#allocation2 + $0xc0] sm:$0xf] }
 0x47e   : > { %12829 = vmatpush3.bf16.msra.mxu1 %v13727_v11  ;;  %v7984_v27 = vrot.slane %v7982_v41, 4  ;;  %v7928_v10 = vrot.slane %v7927_v42, 4  ;;  %v7962_v37 = vrot.slane %v7961_v49, 4  ;;  %v8004_v7 = vrot.slane %v8002_v14, 5  ;;  %v13802_v33 = vld [vmem:[#allocation2 + $0xc4] sm:$0xf] }
 0x47f   : > { %12862 = vmatprep.subr.bf16.mxu1 %v17134_v62  ;;  %v8008_v17 = vrot.slane %v8006_v2, 4  ;;  %v7942_v9 = vrot.slane %v7940_v50, 5  ;;  %v7971_v3 = vrot.slane %v7969_v51, 4  ;;  %v7974_v11 = vrot.slane %v7972_v26, 5  ;;  %v13803_v53 = vld [vmem:[#allocation2 + $0xb0] sm:$0x1] }
 0x480   : > { %v7952_v4 = vrot.slane %v7951_v57, 4  ;;  %v7966_v47 = vrot.slane %v7964_v48, 5  ;;  %v7995_v13 = vrot.slane %v7993_v54, 4  ;;  %v7998_v24 = vrot.slane %v7996_v46, 5  ;;  %v13804_v54 = vld [vmem:[#allocation2 + $0xbc] sm:$0x1] }
 0x481   : > { %12799 = vmatmul.mubr.bf16.gmra.mrb[16].mxu1 %v11467_v25  ;;  %v7943_v0 = vsel %vm13919_vm2, %v7938_v8, %v7942_v9  ;;  %v7985_v36 = vor.u32 %v7984_v27, %v7980_v19  ;;  %v8026_v41 = vshll.u32 %v13802_v33, 16  ;;  %v8030_v25 = vshrl.u32 %v13802_v33, 16  ;;  %v13806_v33 = vld [vmem:[#allocation2 + $0xc8] sm:$0x1] }
 0x482   : > { %12802 = vmatprep.mubr.bf16.mxu1 %v11468_v45  ;;  %v7933_v42 = vsel %vm13919_vm2, %v7928_v10, %v17124_v20  ;;  %v7967_v49 = vsel %vm13919_vm2, %v7962_v37, %v7966_v47  ;;  %v8009_v14 = vor.u32 %v8008_v17, %v8004_v7  ;;  %v7975_v2 = vor.u32 %v7974_v11, %v7971_v3 }
 0x483   : > { %v7988_v50 = vshll.u32 %v13803_v53, 16  ;;  %v8017_v51 = vshrl.u32 %v7653_v23, 16  ;;  %v8020_v26 = vshll.u32 %v7653_v23, 16  ;;  %v11469_v57 = vcombine.low %v7933_v42, %v7943_v0 }
 0x484   : > { %v7957_v5 = vsel %vm13919_vm2, %v7952_v4, %v17126_v15  ;;  %v7999_v48 = vor.u32 %v7998_v24, %v7995_v13  ;;  %v8012_v46 = vshll.u32 %v13804_v54, 16  ;;  %v7986_v8 = vrot.slane %v7985_v36, 4  ;;  %v13805_v13 = vld [vmem:[#allocation2 + $0x10] sm:$0xf] }
 0x485   : > { %v11470_v45 = vcombine.low %v7957_v5, %v7967_v49  ;;  %v8028_v20 = vrot.slane %v8026_v41, 5  ;;  %v8032_v27 = vrot.slane %v8030_v25, 4  ;;  %v8010_v10 = vrot.slane %v8009_v14, 4 }
 0x486   : > { %v7976_v37 = vrot.slane %v7975_v2, 4  ;;  %v7990_v17 = vrot.slane %v7988_v50, 5  ;;  %v8019_v9 = vrot.slane %v8017_v51, 4  ;;  %v8022_v3 = vrot.slane %v8020_v26, 5  ;;  %v8362_v51 = vld [vmem:[#allocation2 + $0xc] sm:$0xe] }
 0x487   : > { %v8000_v11 = vrot.slane %v7999_v48, 4  ;;  %v8014_v47 = vrot.slane %v8012_v46, 5  ;;  %v8033_v15 = vor.u32 %v8032_v27, %v8028_v20  ;;  %v8428_v24 = vrot.slane %v13805_v13, 5  ;;  %v17908_v13 = vld [vmem:[#allocation5_spill] sm:$0xff] }
 0x488   : > { %v7991_v23 = vsel %vm13919_vm2, %v7986_v8, %v7990_v17  ;;  %v7981_v0 = vsel %vm13919_vm2, %v7976_v37, %v7980_v19  ;;  %v8023_v36 = vor.u32 %v8022_v3, %v8019_v9  ;;  %v8036_v41 = vshll.u32 %v13806_v33, 16 }
 0x489   : > { %12803 = vmatmul.mubr.bf16.gmra.mrb[20].mxu1 %v11469_v57  ;;  %v8015_v4 = vsel %vm13919_vm2, %v8010_v10, %v8014_v47  ;;  %v11471_v25 = vcombine.low %v7981_v0, %v7991_v23  ;;  %v8005_v42 = vsel %vm13919_vm2, %v8000_v11, %v8004_v7  ;;  %v8034_v14 = vrot.slane %v8033_v15, 4  ;;  %v13807_v57 = vld [vmem:[#allocation2 + $0x1c] sm:$0xf]  ;;  %v17910_v0 = vld [vmem:[#allocation9_spill] sm:$0xff] }
 0x48a   : > { %12806 = vmatprep.mubr.bf16.mxu1 %v11470_v45  ;;  %v11472_v49 = vcombine.low %v8005_v42, %v8015_v4  ;;  %v8430_v2 = vrot.slane %v8428_v24, 4  ;;  %v8024_v53 = vrot.slane %v8023_v36, 4  ;;  %v8038_v50 = vrot.slane %v8036_v41, 5  ;;  %v13731_v47 = vld [vmem:[%s17581_s3 + $0x198] sm:$0xff]   ;;  %v17905_v4 = vld [vmem:[#allocation18_spill] sm:$0xff] }
 0x48b   : > { %v8431_v26 = vrot.slane %v16705_v52, 5  ;;  %v8435_v5 = vrot.slane %v13807_v57, 5  ;;  %v11482_v48 = vrot.slane %v8362_v51, 9  ;;  %v8363_v52 = vld [vmem:[#allocation2 + $0x18] sm:$0xe]  ;;  %v8438_v10 = vrot.slane %v16713_v12, 5 }
 0x48c   : > { %v8039_v19 = vsel %vm13919_vm2, %v8034_v14, %v8038_v50  ;;  %v8029_v7 = vsel %vm13919_vm2, %v8024_v53, %v8028_v20  ;;  %v11483_v37 = vrot.slane %v8363_v52, 9  ;;  %v13729_v20 = vld [vmem:[%s17581_s3 + $0x188] sm:$0xff]   ;;  %v17901_v11 = vcombine.low %v16495_v63, %v16499_v29  ;;  %v13730_v12 = vld [vmem:[%s17581_s3 + $0x190] sm:$0xff]   ;;  %v13732_v29 = vld [vmem:[%s17581_s3 + $0x1a0] sm:$0xff]  }
 0x48d   : > { %v8432_v54 = vsel %vm14252_vm5, %v8430_v2, %v8431_v26  ;;  %v11473_v46 = vcombine.low %v8029_v7, %v8039_v19  ;;  %v8429_v45 = vsel %vm14252_vm5, %v11482_v48, %v8428_v24  ;;  %v8437_v27 = vrot.slane %v8435_v5, 4  ;;  %v17904_v15 = vld [vmem:[#allocation11_spill] sm:$0xff]  ;;  %v17911_v36 = vld [vmem:[#allocation6_spill] sm:$0xff]  ;;  %v17916_v14 = vld [vmem:[#allocation8_spill] sm:$0xff] }
 0x48e   : > { %v11514_v8 = vcombine.low %v8429_v45, %v8432_v54  ;;  %v8436_v9 = vsel %vm14252_vm5, %v11483_v37, %v8435_v5  ;;  %v17902_v23 = vcombine.low %v16509_v61, %v16516_v39  ;;  %v17903_v63 = vcombine.low %v16520_v34, %v16535_v6  ;;  %v17907_v39 = vld [vmem:[#allocation19_spill] sm:$0xff]  ;;  %v13734_v6 = vld [vmem:[%s17581_s3 + $0x1b0] sm:$0xff]   ;;  %v17917_v2 = vld [vmem:[#allocation4_spill] sm:$0xff] }
 0x48f   : > { %v8439_v17 = vsel %vm14252_vm5, %v8437_v27, %v8438_v10  ;;  %v17906_v61 = vcombine.low %v17904_v15, %v17905_v4  ;;  %v17909_v34 = vcombine.low %v17907_v39, %v17908_v13  ;;  %v13735_v24 = vld [vmem:[%s17581_s3 + $0x1b8] sm:$0xff]   ;;  %v17912_v33 = vcombine.low %v17910_v0, %v17911_v36  ;;  %v17920_v51 = vld [vmem:[#allocation12_spill] sm:$0xff]  ;;  %v17922_v19 = vld [vmem:[#allocation13_spill] sm:$0xff] }
 0x490   : > { %v11515_v3 = vcombine.low %v8436_v9, %v8439_v17  ;;  %v17913_v41 = vld [vmem:[#allocation7_spill] sm:$0xff]  ;;  %v17918_v53 = vcombine.low %v17916_v14, %v17917_v2  ;;  %v17923_v57 = vld [vmem:[#allocation14_spill] sm:$0xff]  ;;  %v17926_v54 = vld [vmem:[#allocation16_spill] sm:$0xff]  ;;  %v9305_v36 = vshll.u32 %v16814_v22, 16 }
 0x491   : > { %12807 = vmatmul.mubr.bf16.gmra.mrb[24].mxu1 %v11471_v25  ;;  %v17914_v25 = vld [vmem:[#allocation10_spill] sm:$0xff]  ;;  %v17919_v50 = vld [vmem:[#allocation3_spill] sm:$0xff]  ;;  %v17924_v5 = vcombine.low %v17922_v19, %v17923_v57  ;;  %v17929_v45 = vld [vmem:[#allocation20_spill] sm:$0xff] }
 0x492   : > { %12810 = vmatprep.mubr.bf16.mxu1 %v11472_v49  ;;  %v17915_v42 = vcombine.low %v17913_v41, %v17914_v25  ;;  %v13738_v49 = vld [vmem:[%s17581_s3 + $0x1c0] sm:$0xff]   ;;  %v17921_v26 = vcombine.low %v17919_v50, %v17920_v51  ;;  %v17925_v48 = vld [vmem:[#allocation15_spill] sm:$0xff]  ;;  %v17931_v27 = vld [vmem:[#allocation21_spill] sm:$0xff]  ;;  %v9307_v2 = vrot.slane %v9305_v36, 5 }
 0x493   : > { %v17927_v7 = vcombine.low %v17925_v48, %v17926_v54  ;;  %v17932_v52 = vld [vmem:[#allocation22_spill] sm:$0xff]  ;;  %v13736_v37 = vld [vmem:[#allocation2 + $0x18] sm:$0xff]   ;;  %v17935_v9 = vld [vmem:[#allocation24_spill] sm:$0xff] }
 0x494   : > { %v17933_v10 = vcombine.low %v17931_v27, %v17932_v52  ;;  %v17934_v17 = vld [vmem:[#allocation23_spill] sm:$0xff]  ;;  %v13753_v4 = vld [vmem:[%s17581_s3 + $0x1e8] sm:$0xff]   ;;  %v13756_v39 = vld [vmem:[%s17581_s3 + $0x1f0] sm:$0xff]  }
 0x495   : > { %v13743_v15 = vld [vmem:[#allocation2 + $0x54] sm:$0xff]   ;;  %v13746_v13 = vld [vmem:[#allocation2 + $0x6c] sm:$0xff]   ;;  %v9250_v41 = vld [vmem:[#allocation2 + $0x24] sm:$0xf] }
 0x496   : > { %v9247_v0 = vld [vmem:[#allocation2 + $0x18] sm:$0xf]  ;;  %v13749_v25 = vld [vmem:[#allocation2 + $0x84] sm:$0xff]   ;;  %v13751_v14 = vld [vmem:[#allocation2 + $0x90] sm:$0xff]   ;;  %v9320_v50 = vshrl.u32 %v9250_v41, 16  ;;  %v9323_v51 = vshll.u32 %v9250_v41, 16 }
 0x497   : > { %v17937_v57 = vld [vmem:[#allocation26_spill] sm:$0xff]  ;;  %v17938_v27 = vld [vmem:[#allocation25_spill] sm:$0xff] }
 0x498   : > { %v9325_v54 = vrot.slane %v9323_v51, 5  ;;  %v9315_v52 = vshll.u32 %v17938_v27, 16 }
 0x499   : > { %12811 = vmatmul.mubr.bf16.gmra.mrb[28].mxu1 %v11473_v46  ;;  %v17928_v46 = vld [vmem:[#allocation17_spill] sm:$0xff] }
 0x49a   : > { %12830 = vmatprep.mubr.bf16.mxu1 %v11514_v8  ;;  %v17930_v8 = vcombine.low %v17928_v46, %v17929_v45  ;;  %v9253_v46 = vld [vmem:[#allocation2 + $0x30] sm:$0xf]  ;;  %v13752_v45 = vld [vmem:[#allocation2 + $0x9c] sm:$0xff]  }
 0x4a1   : > { %12831 = vmatmul.mubr.bf16.vlgmr.msra.gmra.mrb[0].mxu1 %v11515_v3  ;;  %v17936_v3 = vcombine.low %v17934_v17, %v17935_v9  ;;  %v9344_v17 = vshrl.u32 %v9253_v46, 16 }
 0x4a2   : > { %12834 = vmatprep.mubr.bf16.mxu1 %v17901_v11  ;;  %12863 = vmatpush3.bf16.msra.mxu1 %v17134_v62  ;;  %v13733_v62 = vld [vmem:[%s17581_s3 + $0x1a8] sm:$0xff]  }
 0x4a3   : > { %12864 = vmatprep.subr.bf16.mxu1 %v13729_v20  ;;  %v13741_v11 = vld [vmem:[%s17581_s3 + $0x1c8] sm:$0xff]  }
 0x4a6   : > { %12865 = vmatpush3.bf16.msra.mxu1 %v13729_v20  ;;  %v13737_v20 = vld [vmem:[#allocation2 + $0x24] sm:$0xff]  }
 0x4a7   : > { %12866 = vmatprep.subr.bf16.mxu1 %v13730_v12 }
 0x4a9   : > { %12835 = vmatmul.mubr.bf16.gmra.mrb[4].mxu1 %v17902_v23  ;;  %v13740_v23 = vld [vmem:[#allocation2 + $0x3c] sm:$0xff]  }
 0x4aa   : > { %12838 = vmatprep.mubr.bf16.mxu1 %v17903_v63  ;;  %12867 = vmatpush3.bf16.msra.mxu1 %v13730_v12  ;;  %v13739_v12 = vld [vmem:[#allocation2 + $0x30] sm:$0xff]   ;;  %v13747_v63 = vld [vmem:[%s17581_s3 + $0x1d8] sm:$0xff]  }
 0x4ab   : > { %12868 = vmatprep.subr.bf16.mxu1 %v13731_v47 }
 0x4ae   : > { %12869 = vmatpush3.bf16.msra.mxu1 %v13731_v47  ;;  %v13744_v47 = vld [vmem:[%s17581_s3 + $0x1d0] sm:$0xff]  }
 0x4af   : > { %12870 = vmatprep.subr.bf16.mxu1 %v13732_v29 }
 0x4b1   : > { %12839 = vmatmul.mubr.bf16.gmra.mrb[8].mxu1 %v17906_v61  ;;  %v13745_v61 = vld [vmem:[#allocation2 + $0x60] sm:$0xff]  }
 0x4b2   : > { %12842 = vmatprep.mubr.bf16.mxu1 %v17909_v34  ;;  %12871 = vmatpush3.bf16.msra.mxu1 %v13732_v29  ;;  %v13742_v29 = vld [vmem:[#allocation2 + $0x48] sm:$0xff]   ;;  %v13759_v34 = vld [vmem:[%s17581_s3 + $0x1f8] sm:$0xff]  }
 0x4b3   : > { %12872 = vmatprep.subr.bf16.mxu1 %v13733_v62 }
 0x4b6   : > { %12873 = vmatpush3.bf16.msra.mxu1 %v13733_v62  ;;  %v13750_v62 = vld [vmem:[%s17581_s3 + $0x1e0] sm:$0xff]  }
 0x4b7   : > { %12874 = vmatprep.subr.bf16.mxu1 %v13734_v6 }
 0x4b9   : > { %12843 = vmatmul.mubr.bf16.gmra.mrb[12].mxu1 %v17912_v33  ;;  %v9309_v33 = vshrl.u32 %v16814_v22, 16  ;;  %v9322_v22 = vrot.slane %v9320_v50, 4 }
 0x4ba   : > { %12846 = vmatprep.mubr.bf16.mxu1 %v17915_v42  ;;  %12875 = vmatpush3.bf16.msra.mxu1 %v13734_v6  ;;  %v13748_v6 = vld [vmem:[#allocation2 + $0x78] sm:$0xff]   ;;  %v9296_v42 = vshrl.u32 %v9247_v0, 16 }
 0x4bb   : > { %12876 = vmatprep.subr.bf16.mxu1 %v13735_v24 }
 0x4be   : > { %12877 = vmatpush3.bf16.msra.mxu1 %v13735_v24  ;;  %v17269_v24 = vld [vmem:[%s17581_s3 + $0x200] sm:$0xff]  }
 0x4bf   : > { %12910 = vmatprep.subr.bf16.mxu1 %v13738_v49 }
 0x4c1   : > { %12847 = vmatmul.mubr.bf16.gmra.mrb[16].mxu1 %v17918_v53  ;;  %v9311_v53 = vrot.slane %v9309_v33, 4  ;;  %v13755_v33 = vld [vmem:[#allocation2 + $0xb4] sm:$0xff]  }
 0x4c2   : > { %12850 = vmatprep.mubr.bf16.mxu1 %v17921_v26  ;;  %v9298_v26 = vrot.slane %v9296_v42, 4  ;;  %v17941_v42 = vld [vmem:[#allocation29_spill] sm:$0xff] }
 0x4c3   : > { %v9312_v48 = vor.u32 %v9311_v53, %v9307_v2  ;;  %v13757_v53 = vld [vmem:[#allocation2 + $0xc0] sm:$0xff]  }
 0x4c5   : > { %v9313_v9 = vrot.slane %v9312_v48, 4 }
 0x4c9   : > { %12851 = vmatmul.mubr.bf16.gmra.mrb[20].mxu1 %v17924_v5  ;;  %v9329_v5 = vshll.u32 %v17937_v57, 16 }
 0x4ca   : > { %12854 = vmatprep.mubr.bf16.mxu1 %v17927_v7  ;;  %v9333_v7 = vshrl.u32 %v17937_v57, 16 }
 0x4d1   : > { %12855 = vmatmul.mubr.bf16.gmra.mrb[24].mxu1 %v17930_v8 }
 0x4d2   : > { %12858 = vmatprep.mubr.bf16.mxu1 %v17933_v10  ;;  %v13754_v10 = vld [vmem:[#allocation2 + $0xa8] sm:$0xff]  }
 0x4d9   : > { %12859 = vmatmul.mubr.bf16.gmra.mrb[28].mxu1 %v17936_v3  ;;  %v9326_v3 = vor.u32 %v9325_v54, %v9322_v22  ;;  %v17943_v54 = vld [vmem:[#allocation31_spill] sm:$0xff] }
 0x4da   : > { %12878 = vmatprep.mubr.bf16.mxu1 %v13736_v37  ;;  %v17277_v37 = vrot.slane %v9329_v5, 5  ;;  %v9259_v5 = vld [vmem:[#allocation2 + $0x48] sm:$0xf]  ;;  %v9405_v27 = vshrl.u32 %v17943_v54, 16 }
 0x4e1   : > { %12879 = vmatmul.mubr.bf16.vlgmr.msra.gmra.mrb[0].mxu1 %v13737_v20  ;;  %v9335_v20 = vrot.slane %v9333_v7, 4  ;;  %v9401_v7 = vshll.u32 %v17943_v54, 16 }
 0x4e2   : > { %12882 = vmatprep.mubr.bf16.mxu1 %v13739_v12  ;;  %12911 = vmatpush3.bf16.msra.mxu1 %v13738_v49  ;;  %v9299_v49 = vshll.u32 %v9247_v0, 16  ;;  %v17939_v12 = vld [vmem:[#allocation27_spill] sm:$0xff] }
 0x4e3   : > { %12912 = vmatprep.subr.bf16.mxu1 %v13741_v11 }
 0x4e4   : > { %v9301_v19 = vrot.slane %v9299_v49, 5  ;;  %v9363_v49 = vshll.u32 %v17941_v42, 16 }
 0x4e6   : > { %12913 = vmatpush3.bf16.msra.mxu1 %v13741_v11  ;;  %v9302_v8 = vor.u32 %v9301_v19, %v9298_v26  ;;  %v9347_v11 = vshll.u32 %v9253_v46, 16  ;;  %v17942_v26 = vld [vmem:[#allocation30_spill] sm:$0xff] }
 0x4e7   : > { %12914 = vmatprep.subr.bf16.mxu1 %v13744_v47  ;;  %v9377_v19 = vshll.u32 %v17942_v26, 16  ;;  %v9381_v57 = vshrl.u32 %v17942_v26, 16  ;;  %v17301_v46 = vld [vmem:[#allocation2 + $0xd0] sm:$0xf] }
 0x4e9   : > { %12883 = vmatmul.mubr.bf16.gmra.mrb[4].mxu1 %v13740_v23  ;;  %v9357_v23 = vshrl.u32 %v17939_v12, 16 }
 0x4ea   : > { %12886 = vmatprep.mubr.bf16.mxu1 %v13742_v29  ;;  %12915 = vmatpush3.bf16.msra.mxu1 %v13744_v47  ;;  %v9353_v47 = vshll.u32 %v17939_v12, 16  ;;  %v9317_v29 = vrot.slane %v9315_v52, 5  ;;  %v10016_v52 = vld [vmem:[#allocation2 + $0xcc] sm:$0xe] }
 0x4eb   : > { %12916 = vmatprep.subr.bf16.mxu1 %v13747_v63  ;;  %v9359_v36 = vrot.slane %v9357_v23, 4  ;;  %v11633_v12 = vrot.slane %v10016_v52, 9  ;;  %v17311_v23 = vrot.slane %v9377_v19, 5 }
 0x4ec   : > { %v17287_v0 = vrot.slane %v9353_v47, 5 }
 0x4ee   : > { %12917 = vmatpush3.bf16.msra.mxu1 %v13747_v63  ;;  %v9303_v63 = vrot.slane %v9302_v8, 4  ;;  %v9360_v8 = vor.u32 %v9359_v36, %v17287_v0 }
 0x4ef   : > { %12918 = vmatprep.subr.bf16.mxu1 %v13750_v62 }
 0x4f0   : > { %v9308_v41 = vsel %vm13919_vm2, %v9303_v63, %v9307_v2  ;;  %v9383_v63 = vrot.slane %v9381_v57, 4  ;;  %v9361_v19 = vrot.slane %v9360_v8, 4  ;;  %v17945_v57 = vld [vmem:[#allocation34_spill] sm:$0xff] }
 0x4f1   : > { %12887 = vmatmul.mubr.bf16.gmra.mrb[8].mxu1 %v13743_v15 }
 0x4f2   : > { %12890 = vmatprep.mubr.bf16.mxu1 %v13745_v61  ;;  %12919 = vmatpush3.bf16.msra.mxu1 %v13750_v62  ;;  %v17940_v62 = vld [vmem:[#allocation28_spill] sm:$0xff]  ;;  %v9256_v61 = vld [vmem:[#allocation2 + $0x3c] sm:$0xf]  ;;  %v9384_v54 = vor.u32 %v9383_v63, %v17311_v23 }
 0x4f3   : > { %12920 = vmatprep.subr.bf16.mxu1 %v13753_v4  ;;  %v9339_v15 = vshll.u32 %v17940_v62, 16  ;;  %v9371_v51 = vshll.u32 %v9256_v61, 16  ;;  %v13758_v62 = vld [vmem:[#allocation2 + $0xcc] sm:$0xff]  }
 0x4f5   : > { %v9373_v47 = vrot.slane %v9371_v51, 5 }
 0x4f6   : > { %12921 = vmatpush3.bf16.msra.mxu1 %v13753_v4  ;;  %v9346_v4 = vrot.slane %v9344_v17, 4 }
 0x4f7   : > { %12922 = vmatprep.subr.bf16.mxu1 %v13756_v39 }
 0x4f9   : > { %12891 = vmatmul.mubr.bf16.gmra.mrb[12].mxu1 %v13746_v13  ;;  %v17284_v13 = vrot.slane %v9326_v3, 4  ;;  %v17944_v3 = vld [vmem:[#allocation37_spill] sm:$0xff] }
 0x4fa   : > { %12894 = vmatprep.mubr.bf16.mxu1 %v13748_v6  ;;  %12923 = vmatpush3.bf16.msra.mxu1 %v13756_v39  ;;  %v9318_v39 = vsel %vm13919_vm2, %v9313_v9, %v9317_v29  ;;  %v9349_v6 = vrot.slane %v9347_v11, 5  ;;  %v9429_v11 = vshrl.u32 %v17944_v3, 16 }
 0x4fb   : > { %12924 = vmatprep.subr.bf16.mxu1 %v13759_v34  ;;  %v11594_v50 = vcombine.low %v9308_v41, %v9318_v39  ;;  %v9332_v48 = vsel %vm13919_vm2, %v17284_v13, %v17277_v37  ;;  %v9407_v13 = vrot.slane %v9405_v27, 4 }
 0x4fc   : > { %v9350_v22 = vor.u32 %v9349_v6, %v9346_v4  ;;  %v9395_v4 = vshll.u32 %v9259_v5, 16  ;;  %v9431_v42 = vrot.slane %v9429_v11, 4 }
 0x4fe   : > { %12925 = vmatpush3.bf16.msra.mxu1 %v13759_v34  ;;  %v9336_v34 = vor.u32 %v9335_v20, %v17277_v37  ;;  %v9262_v37 = vld [vmem:[#allocation2 + $0x54] sm:$0xf]  ;;  %v9425_v20 = vshll.u32 %v17944_v3, 16  ;;  %v9351_v26 = vrot.slane %v9350_v22, 4 }
 0x4ff   : > { %12958 = vmatprep.subr.bf16.mxu1 %v17269_v24  ;;  %v9419_v6 = vshll.u32 %v9262_v37, 16 }
 0x500   : > { %v9337_v2 = vrot.slane %v9336_v34, 4  ;;  %v9416_v34 = vshrl.u32 %v9262_v37, 16  ;;  %v17323_v41 = vrot.slane %v9425_v20, 5  ;;  %v13808_v20 = vld [vmem:[#allocation2 + $0x50] sm:$0x1] }
 0x501   : > { %12895 = vmatmul.mubr.bf16.gmra.mrb[16].mxu1 %v13749_v25  ;;  %v17291_v25 = vrot.slane %v9339_v15, 5  ;;  %v9392_v15 = vshrl.u32 %v9259_v5, 16  ;;  %v9387_v5 = vshll.u32 %v17945_v57, 16  ;;  %v9411_v11 = vshll.u32 %v13808_v20, 16 }
 0x502   : > { %12898 = vmatprep.mubr.bf16.mxu1 %v13751_v14  ;;  %v9368_v14 = vshrl.u32 %v9256_v61, 16  ;;  %v17313_v61 = vrot.slane %v9401_v7, 5  ;;  %v9397_v7 = vrot.slane %v9395_v4, 5  ;;  %v9418_v52 = vrot.slane %v9416_v34, 4 }
 0x503   : > { %v9342_v51 = vsel %vm13919_vm2, %v9337_v2, %v17291_v25  ;;  %v9432_v37 = vor.u32 %v9431_v42, %v17323_v41  ;;  %v17946_v25 = vld [vmem:[#allocation40_spill] sm:$0xff]  ;;  %v9389_v63 = vrot.slane %v9387_v5, 5 }
 0x504   : > { %v9370_v9 = vrot.slane %v9368_v14, 4  ;;  %v9265_v14 = vld [vmem:[#allocation2 + $0x60] sm:$0xf]  ;;  %v9408_v27 = vor.u32 %v9407_v13, %v17313_v61  ;;  %v9449_v2 = vshll.u32 %v17946_v25, 16  ;;  %v9453_v22 = vshrl.u32 %v17946_v25, 16 }
 0x505   : > { %v9443_v3 = vshll.u32 %v9265_v14, 16  ;;  %v11595_v8 = vcombine.low %v9332_v48, %v9342_v51  ;;  %v13761_v48 = vld [vmem:[%s17581_s3 + $0x208] sm:$0xff]  }
 0x506   : > { %v9374_v55 = vor.u32 %v9373_v47, %v9370_v9  ;;  %v9356_v9 = vsel %vm13919_vm2, %v9351_v26, %v17287_v0  ;;  %v9385_v47 = vrot.slane %v9384_v54, 4  ;;  %v9409_v4 = vrot.slane %v9408_v27, 4  ;;  %v9271_v27 = vld [vmem:[#allocation2 + $0x78] sm:$0xf] }
 0x507   : > { %v9433_v0 = vrot.slane %v9432_v37, 4  ;;  %v9445_v42 = vrot.slane %v9443_v3, 5  ;;  %v9413_v26 = vrot.slane %v9411_v11, 5  ;;  %v9491_v20 = vshll.u32 %v9271_v27, 16 }
 0x509   : > { %12899 = vmatmul.mubr.bf16.gmra.mrb[20].mxu1 %v13752_v45  ;;  %v17303_v45 = vld [vmem:[#allocation2 + $0xd4] sm:$0x1] }
 0x50a   : > { %12902 = vmatprep.mubr.bf16.mxu1 %v13754_v10  ;;  %v10172_v10 = vrot.slane %v17301_v46, 5  ;;  %v10175_v17 = vrot.slane %v17303_v45, 5 }
 0x50c   : > { %v10174_v29 = vrot.slane %v10172_v10, 4  ;;  %v17317_v39 = vsel %vm14252_vm5, %v11633_v12, %v10172_v10  ;;  %v9421_v10 = vrot.slane %v9419_v6, 5  ;;  %v9375_v12 = vrot.slane %v9374_v55, 4  ;;  %v9268_v6 = vld [vmem:[#allocation2 + $0x6c] sm:$0xf] }
 0x50e   : > { %v17321_v36 = vsel %vm14252_vm5, %v10174_v29, %v10175_v17  ;;  %v9440_v17 = vshrl.u32 %v9265_v14, 16  ;;  %v17947_v29 = vld [vmem:[#allocation38_spill] sm:$0xff]  ;;  %v9422_v13 = vor.u32 %v9421_v10, %v9418_v52  ;;  %v17345_v14 = vrot.slane %v9449_v2, 5 }
 0x50f   : > { %v9380_v55 = vsel %vm13919_vm2, %v9375_v12, %v17311_v23  ;;  %v9390_v52 = vsel %vm13919_vm2, %v9385_v47, %v9389_v63  ;;  %v13762_v23 = vld [vmem:[%s17581_s3 + $0x210] sm:$0xff]   ;;  %v13810_v47 = vld [vmem:[#allocation2 + $0x7c] sm:$0xf] }
 0x510   : > { %v9442_v34 = vrot.slane %v9440_v17, 4  ;;  %v9414_v17 = vsel %vm13919_vm2, %v9409_v4, %v9413_v26  ;;  %v9423_v37 = vrot.slane %v9422_v13, 4  ;;  %v9497_v63 = vshll.u32 %v13810_v47, 16 }
 0x511   : > { %12903 = vmatmul.mubr.bf16.gmra.mrb[24].mxu1 %v13755_v33  ;;  %v9365_v33 = vrot.slane %v9363_v49, 5  ;;  %v9394_v49 = vrot.slane %v9392_v15, 4 }
 0x512   : > { %12906 = vmatprep.mubr.bf16.mxu1 %v13757_v53  ;;  %v11665_v53 = vcombine.low %v17317_v39, %v17321_v36  ;;  %v9446_v25 = vor.u32 %v9445_v42, %v9442_v34  ;;  %v9428_v4 = vsel %vm13919_vm2, %v9423_v37, %v17323_v41  ;;  %v13763_v42 = vld [vmem:[%s17581_s3 + $0x218] sm:$0xff]  }
 0x513   : > { %v9398_v15 = vor.u32 %v9397_v7, %v9394_v49  ;;  %v9464_v49 = vshrl.u32 %v9268_v6, 16  ;;  %v9467_v7 = vshll.u32 %v9268_v6, 16 }
 0x514   : > { %v9447_v6 = vrot.slane %v9446_v25, 4  ;;  %v13813_v25 = vld [vmem:[#allocation2 + $0x94] sm:$0xf] }
 0x515   : > { %v9399_v10 = vrot.slane %v9398_v15, 4  ;;  %v9466_v11 = vrot.slane %v9464_v49, 4  ;;  %v9469_v12 = vrot.slane %v9467_v7, 5 }
 0x517   : > { %v9404_v15 = vsel %vm13919_vm2, %v9399_v10, %v17313_v61  ;;  %v9493_v61 = vrot.slane %v9491_v20, 5 }
 0x518   : > { %v11598_v13 = vcombine.low %v9404_v15, %v9414_v17  ;;  %v13764_v17 = vld [vmem:[%s17581_s3 + $0x220] sm:$0xff]  }
 0x519   : > { %12907 = vmatmul.mubr.bf16.gmra.mrb[28].mxu1 %v13758_v62  ;;  %v9435_v62 = vshll.u32 %v17947_v29, 16  ;;  %v9501_v29 = vshrl.u32 %v13810_v47, 16  ;;  %v13814_v47 = vld [vmem:[#allocation2 + $0x80] sm:$0x1] }
 0x51a   : > { %12926 = vmatprep.mubr.bf16.mxu1 %v11594_v50  ;;  %v9366_v50 = vsel %vm13919_vm2, %v9361_v19, %v9365_v33  ;;  %v9455_v33 = vrot.slane %v9453_v22, 4  ;;  %v17948_v19 = vld [vmem:[#allocation43_spill] sm:$0xff] }
 0x51b   : > { %v11596_v51 = vcombine.low %v9356_v9, %v9366_v50  ;;  %v9473_v57 = vshll.u32 %v17948_v19, 16  ;;  %v9477_v5 = vshrl.u32 %v17948_v19, 16  ;;  %v9437_v54 = vrot.slane %v9435_v62, 5 }
 0x51c   : > { %v9456_v2 = vor.u32 %v9455_v33, %v17345_v14  ;;  %v9488_v50 = vshrl.u32 %v9271_v27, 16  ;;  %v11597_v62 = vcombine.low %v9380_v55, %v9390_v52  ;;  %v9274_v33 = vld [vmem:[#allocation2 + $0x84] sm:$0xf]  ;;  %v17375_v55 = vrot.slane %v9497_v63, 5  ;;  %v13812_v27 = vld [vmem:[#allocation2 + $0x88] sm:$0xf] }
 0x51d   : > { %v9438_v3 = vsel %vm13919_vm2, %v9433_v0, %v9437_v54  ;;  %v9479_v9 = vrot.slane %v9477_v5, 4  ;;  %v13811_v5 = vld [vmem:[#allocation2 + $0x74] sm:$0x1]  ;;  %v9503_v54 = vrot.slane %v9501_v29, 4  ;;  %v9512_v49 = vshrl.u32 %v9274_v33, 16 }
 0x51e   : > { %v11599_v34 = vcombine.low %v9428_v4, %v9438_v3  ;;  %v9490_v19 = vrot.slane %v9488_v50, 4  ;;  %v9483_v41 = vshll.u32 %v13811_v5, 16  ;;  %v9515_v7 = vshll.u32 %v9274_v33, 16 }
 0x51f   : > { %v9521_v52 = vshll.u32 %v13812_v27, 16  ;;  %v9525_v10 = vshrl.u32 %v13812_v27, 16  ;;  %v9507_v63 = vshll.u32 %v13814_v47, 16  ;;  %v9514_v29 = vrot.slane %v9512_v49, 4 }
 0x520   : > { %v9494_v50 = vor.u32 %v9493_v61, %v9490_v19 }
 0x521   : > { %12927 = vmatmul.mubr.bf16.vlgmr.msra.gmra.mrb[0].mxu1 %v11595_v8  ;;  %v17363_v8 = vrot.slane %v9473_v57, 5  ;;  %v9470_v57 = vor.u32 %v9469_v12, %v9466_v11  ;;  %v9485_v11 = vrot.slane %v9483_v41, 5  ;;  %v9504_v12 = vor.u32 %v9503_v54, %v17375_v55 }
 0x522   : > { %12930 = vmatprep.mubr.bf16.mxu1 %v11596_v51  ;;  %12959 = vmatpush3.bf16.msra.mxu1 %v17269_v24  ;;  %v13809_v24 = vld [vmem:[#allocation2 + $0x68] sm:$0x1]  ;;  %v9457_v51 = vrot.slane %v9456_v2, 4  ;;  %v9545_v2 = vshll.u32 %v13813_v25, 16  ;;  %v17386_v15 = vrot.slane %v9521_v52, 5  ;;  %v9527_v4 = vrot.slane %v9525_v10, 4 }
 0x523   : > { %12960 = vmatprep.subr.bf16.mxu1 %v13761_v48  ;;  %v9459_v22 = vshll.u32 %v13809_v24, 16  ;;  %v9480_v26 = vor.u32 %v9479_v9, %v17363_v8  ;;  %v9549_v24 = vshrl.u32 %v13813_v25, 16  ;;  %v9471_v20 = vrot.slane %v9470_v57, 4  ;;  %v13815_v10 = vld [vmem:[#allocation2 + $0x8c] sm:$0x1] }
 0x524   : > { %v17388_v33 = vrot.slane %v9545_v2, 5  ;;  %v9495_v19 = vrot.slane %v9494_v50, 4  ;;  %v9528_v5 = vor.u32 %v9527_v4, %v17386_v15  ;;  %v9283_v2 = vld [vmem:[#allocation2 + $0xa8] sm:$0xf] }
 0x525   : > { %v9461_v0 = vrot.slane %v9459_v22, 5  ;;  %v9452_v22 = vsel %vm13919_vm2, %v9447_v6, %v17345_v14  ;;  %v9481_v9 = vrot.slane %v9480_v26, 4  ;;  %v9476_v61 = vsel %vm13919_vm2, %v9471_v20, %v17363_v8 }
 0x526   : > { %12961 = vmatpush3.bf16.msra.mxu1 %v13761_v48  ;;  %v9277_v48 = vld [vmem:[#allocation2 + $0x90] sm:$0xf]  ;;  %v9500_v8 = vsel %vm13919_vm2, %v9495_v19, %v17375_v55  ;;  %v9587_v4 = vshll.u32 %v9283_v2, 16 }
 0x527   : > { %12962 = vmatprep.subr.bf16.mxu1 %v13762_v23  ;;  %v9536_v37 = vshrl.u32 %v9277_v48, 16  ;;  %v9539_v3 = vshll.u32 %v9277_v48, 16  ;;  %v9505_v48 = vrot.slane %v9504_v12, 4  ;;  %v9529_v12 = vrot.slane %v9528_v5, 4 }
 0x529   : > { %12931 = vmatmul.mubr.bf16.gmra.mrb[4].mxu1 %v11597_v62  ;;  %v9517_v62 = vrot.slane %v9515_v7, 5  ;;  %v9538_v14 = vrot.slane %v9536_v37, 4  ;;  %v9541_v6 = vrot.slane %v9539_v3, 5  ;;  %v9509_v7 = vrot.slane %v9507_v63, 5  ;;  %v13816_v3 = vld [vmem:[#allocation2 + $0xa0] sm:$0xf] }
 0x52a   : > { %12934 = vmatprep.mubr.bf16.mxu1 %v11598_v13  ;;  %12963 = vmatpush3.bf16.msra.mxu1 %v13762_v23  ;;  %v9462_v23 = vsel %vm13919_vm2, %v9457_v51, %v9461_v0  ;;  %v9280_v13 = vld [vmem:[#allocation2 + $0x9c] sm:$0xf]  ;;  %v9551_v0 = vrot.slane %v9549_v24, 4  ;;  %v13765_v51 = vld [vmem:[%s17581_s3 + $0x228] sm:$0xff]   ;;  %v9531_v37 = vshll.u32 %v13815_v10, 16  ;;  %v9573_v25 = vshrl.u32 %v13816_v3, 16 }
 0x52b   : > { %12964 = vmatprep.subr.bf16.mxu1 %v13763_v42  ;;  %v11600_v26 = vcombine.low %v9452_v22, %v9462_v23  ;;  %v9518_v57 = vor.u32 %v9517_v62, %v9514_v29  ;;  %v9560_v41 = vshrl.u32 %v9280_v13, 16  ;;  %v9563_v54 = vshll.u32 %v9280_v13, 16  ;;  %v13817_v22 = vld [vmem:[#allocation2 + $0x98] sm:$0x1] }
 0x52c   : > { %v9542_v27 = vor.u32 %v9541_v6, %v9538_v14  ;;  %v9552_v52 = vor.u32 %v9551_v0, %v17388_v33  ;;  %v9510_v24 = vsel %vm13919_vm2, %v9505_v48, %v9509_v7  ;;  %v9555_v23 = vshll.u32 %v13817_v22, 16  ;;  %v13767_v13 = vld [vmem:[%s17581_s3 + $0x238] sm:$0xff]  }
 0x52d   : > { %v9562_v47 = vrot.slane %v9560_v41, 4  ;;  %v9565_v63 = vrot.slane %v9563_v54, 5  ;;  %v9584_v62 = vshrl.u32 %v9283_v2, 16  ;;  %v11602_v14 = vcombine.low %v9500_v8, %v9510_v24  ;;  %v13819_v41 = vld [vmem:[#allocation2 + $0xa4] sm:$0x1] }
 0x52e   : > { %12965 = vmatpush3.bf16.msra.mxu1 %v13763_v42  ;;  %v9486_v42 = vsel %vm13919_vm2, %v9481_v9, %v9485_v11  ;;  %v13818_v9 = vld [vmem:[#allocation2 + $0xac] sm:$0xf]  ;;  %v9519_v11 = vrot.slane %v9518_v57, 4  ;;  %v9543_v55 = vrot.slane %v9542_v27, 4  ;;  %v9553_v29 = vrot.slane %v9552_v52, 4 }
 0x52f   : > { %12966 = vmatprep.subr.bf16.mxu1 %v13764_v17  ;;  %v11601_v49 = vcombine.low %v9476_v61, %v9486_v42  ;;  %v9593_v50 = vshll.u32 %v13818_v9, 16  ;;  %v9597_v20 = vshrl.u32 %v13818_v9, 16  ;;  %v9533_v6 = vrot.slane %v9531_v37, 5  ;;  %v13820_v10 = vld [vmem:[#allocation2 + $0xb8] sm:$0xf] }
 0x530   : > { %v9557_v42 = vrot.slane %v9555_v23, 5  ;;  %v9524_v48 = vsel %vm13919_vm2, %v9519_v11, %v17386_v15  ;;  %v9566_v5 = vor.u32 %v9565_v63, %v9562_v47  ;;  %v9579_v54 = vshll.u32 %v13819_v41, 16  ;;  %v13821_v2 = vld [vmem:[#allocation2 + $0xc4] sm:$0xf]  ;;  %v13822_v11 = vld [vmem:[#allocation2 + $0xb0] sm:$0x1] }
 0x531   : > { %12935 = vmatmul.mubr.bf16.gmra.mrb[8].mxu1 %v11599_v34  ;;  %v13766_v34 = vld [vmem:[%s17581_s3 + $0x230] sm:$0xff]   ;;  %v17413_v19 = vrot.slane %v9593_v50, 5  ;;  %v9599_v61 = vrot.slane %v9597_v20, 4  ;;  %v9534_v57 = vsel %vm13919_vm2, %v9529_v12, %v9533_v6  ;;  %v9586_v27 = vrot.slane %v9584_v62, 4 }
 0x532   : > { %12938 = vmatprep.mubr.bf16.mxu1 %v11600_v26  ;;  %12967 = vmatpush3.bf16.msra.mxu1 %v13764_v17  ;;  %v9569_v17 = vshll.u32 %v13816_v3, 16  ;;  %v9575_v26 = vrot.slane %v9573_v25, 4  ;;  %v9558_v7 = vsel %vm13919_vm2, %v9553_v29, %v9557_v42  ;;  %v9589_v52 = vrot.slane %v9587_v4, 5 }
 0x533   : > { %12968 = vmatprep.subr.bf16.mxu1 %v13765_v51  ;;  %v9617_v37 = vshll.u32 %v13820_v10, 16  ;;  %v9621_v3 = vshrl.u32 %v13820_v10, 16  ;;  %v9600_v25 = vor.u32 %v9599_v61, %v17413_v19  ;;  %v9641_v24 = vshll.u32 %v13821_v2, 16  ;;  %v13823_v10 = vld [vmem:[#allocation2 + $0xbc] sm:$0x1] }
 0x534   : > { %v17411_v0 = vrot.slane %v9569_v17, 5  ;;  %v9289_v17 = vld [vmem:[#allocation2 + $0xc0] sm:$0xf]  ;;  %v9645_v22 = vshrl.u32 %v13821_v2, 16  ;;  %v9567_v9 = vrot.slane %v9566_v5, 4  ;;  %v9581_v50 = vrot.slane %v9579_v54, 5 }
 0x535   : > { %v9590_v20 = vor.u32 %v9589_v52, %v9586_v27  ;;  %v9603_v12 = vshll.u32 %v13822_v11, 16  ;;  %v9632_v47 = vshrl.u32 %v9289_v17, 16  ;;  %v9635_v63 = vshll.u32 %v9289_v17, 16 }
 0x536   : > { %12969 = vmatpush3.bf16.msra.mxu1 %v13765_v51  ;;  %v9286_v51 = vld [vmem:[#allocation2 + $0xb4] sm:$0xf]  ;;  %v9576_v8 = vor.u32 %v9575_v26, %v17411_v0  ;;  %v9619_v4 = vrot.slane %v9617_v37, 5  ;;  %v9601_v6 = vrot.slane %v9600_v25, 4  ;;  %v9643_v42 = vrot.slane %v9641_v24, 5 }
 0x537   : > { %12970 = vmatprep.subr.bf16.mxu1 %v13766_v34  ;;  %v9608_v15 = vshrl.u32 %v9286_v51, 16  ;;  %v9647_v61 = vrot.slane %v9645_v22, 4  ;;  %v9591_v5 = vrot.slane %v9590_v20, 4  ;;  %v9605_v41 = vrot.slane %v9603_v12, 5  ;;  %v13824_v22 = vld [vmem:[#allocation2 + $0xc8] sm:$0x1] }
 0x538   : > { %v9577_v29 = vrot.slane %v9576_v8, 4  ;;  %v9634_v54 = vrot.slane %v9632_v47, 4  ;;  %v9627_v37 = vshll.u32 %v13823_v10, 16  ;;  %v17959_v10 = vld [vmem:[#allocation44_spill] sm:$0xff] }
 0x539   : > { %12939 = vmatmul.mubr.bf16.gmra.mrb[12].mxu1 %v11601_v49  ;;  %v9548_v49 = vsel %vm13919_vm2, %v9543_v55, %v17388_v33  ;;  %v11603_v33 = vcombine.low %v9524_v48, %v9534_v57  ;;  %v9292_v55 = vld [vmem:[#allocation2 + $0xcc] sm:$0xf]  ;;  %v9610_v62 = vrot.slane %v9608_v15, 4  ;;  %v9669_v57 = vshrl.u32 %v17301_v46, 16 }
 0x53a   : > { %12942 = vmatprep.mubr.bf16.mxu1 %v11602_v14  ;;  %12971 = vmatpush3.bf16.msra.mxu1 %v13766_v34  ;;  %v9611_v34 = vshll.u32 %v9286_v51, 16  ;;  %v11604_v23 = vcombine.low %v9548_v49, %v9558_v7  ;;  %v9623_v14 = vrot.slane %v9621_v3, 4  ;;  %v9656_v51 = vshrl.u32 %v9292_v55, 16 }
 0x53b   : > { %12972 = vmatprep.subr.bf16.mxu1 %v13767_v13  ;;  %v9659_v48 = vshll.u32 %v9292_v55, 16  ;;  %v9637_v49 = vrot.slane %v9635_v63, 5  ;;  %v9572_v7 = vsel %vm13919_vm2, %v9567_v9, %v17411_v0  ;;  %v9582_v27 = vsel %vm13919_vm2, %v9577_v29, %v9581_v50 }
 0x53c   : > { %v9613_v26 = vrot.slane %v9611_v34, 5  ;;  %v9624_v52 = vor.u32 %v9623_v14, %v9619_v4  ;;  %v9606_v8 = vsel %vm13919_vm2, %v9601_v6, %v9605_v41  ;;  %v9648_v3 = vor.u32 %v9647_v61, %v9643_v42  ;;  %v17949_v41 = vld [vmem:[#allocation32_spill] sm:$0xff] }
 0x53d   : > { %v9661_v17 = vrot.slane %v9659_v48, 5  ;;  %v9671_v34 = vrot.slane %v9669_v57, 4  ;;  %v11605_v2 = vcombine.low %v9572_v7, %v9582_v27  ;;  %v9596_v0 = vsel %vm13919_vm2, %v9591_v5, %v17413_v19  ;;  %v17953_v7 = vld [vmem:[#allocation36_spill] sm:$0xff] }
 0x53e   : > { %12973 = vmatpush3.bf16.msra.mxu1 %v13767_v13  ;;  %v9665_v13 = vshll.u32 %v17301_v46, 16  ;;  %v9614_v15 = vor.u32 %v9613_v26, %v9610_v62  ;;  %v9658_v46 = vrot.slane %v9656_v51, 4  ;;  %v9638_v24 = vor.u32 %v9637_v49, %v9634_v54  ;;  %v17952_v49 = vld [vmem:[#allocation35_spill] sm:$0xff] }
 0x53f   : > { %v9625_v9 = vrot.slane %v9624_v52, 4  ;;  %v9629_v50 = vrot.slane %v9627_v37, 5  ;;  %v9649_v20 = vrot.slane %v9648_v3, 4  ;;  %v9675_v63 = vshll.u32 %v17303_v45, 16  ;;  %v17956_v52 = vld [vmem:[#allocation41_spill] sm:$0xff]  ;;  %v17962_v3 = vld [vmem:[#allocation46_spill] sm:$0xff] }
 0x540   : > { %v9667_v25 = vrot.slane %v9665_v13, 5  ;;  %v9615_v11 = vrot.slane %v9614_v15, 4  ;;  %v9662_v12 = vor.u32 %v9661_v17, %v9658_v46  ;;  %v9639_v55 = vrot.slane %v9638_v24, 4  ;;  %v17958_v15 = vld [vmem:[#allocation42_spill] sm:$0xff] }
 0x541   : > { %12943 = vmatmul.mubr.bf16.gmra.mrb[16].mxu1 %v11603_v33  ;;  %v9651_v33 = vshll.u32 %v13824_v22, 16  ;;  %v9630_v62 = vsel %vm13919_vm2, %v9625_v9, %v9629_v50  ;;  %v9677_v61 = vrot.slane %v9675_v63, 5  ;;  %v17954_v27 = vcombine.low %v17952_v49, %v17953_v7  ;;  %v17969_v24 = vld [vmem:[#allocation50_spill] sm:$0xff]  ;;  %v17973_v9 = vld [vmem:[#allocation52_spill] sm:$0xff]  ;;  %v17974_v50 = vld [vmem:[#allocation53_spill] sm:$0xff] }
 0x542   : > { %12946 = vmatprep.mubr.bf16.mxu1 %v11604_v23  ;;  %v11606_v23 = vcombine.low %v9596_v0, %v9606_v8  ;;  %v9672_v47 = vor.u32 %v9671_v34, %v9667_v25  ;;  %v9620_v14 = vsel %vm13919_vm2, %v9615_v11, %v9619_v4  ;;  %v9663_v6 = vrot.slane %v9662_v12, 4  ;;  %v17950_v4 = vld [vmem:[#allocation33_spill] sm:$0xff]  ;;  %v17966_v34 = vld [vmem:[#allocation48_spill] sm:$0xff] }
 0x543   : > { %v9653_v29 = vrot.slane %v9651_v33, 5  ;;  %v11607_v51 = vcombine.low %v9620_v14, %v9630_v62  ;;  %v9644_v48 = vsel %vm13919_vm2, %v9639_v55, %v9643_v42  ;;  %v17951_v54 = vcombine.low %v17949_v41, %v17950_v4  ;;  %v17955_v42 = vld [vmem:[#allocation39_spill] sm:$0xff]  ;;  %v17968_v0 = vld [vmem:[#allocation49_spill] sm:$0xff] }
 0x544   : > { %v9673_v26 = vrot.slane %v9672_v47, 4  ;;  %v9668_v45 = vsel %vm13919_vm2, %v9663_v6, %v9667_v25  ;;  %v17957_v8 = vcombine.low %v17955_v42, %v17956_v52  ;;  %v17960_v37 = vcombine.low %v17958_v15, %v17959_v10  ;;  %v17965_v25 = vld [vmem:[#allocation47_spill] sm:$0xff] }
 0x545   : > { %v9654_v19 = vsel %vm13919_vm2, %v9649_v20, %v9653_v29  ;;  %v17963_v46 = vcombine.low %v17961_v1, %v17962_v3  ;;  %v17964_v17 = vcombine.low %v16942_v38, %v16949_v30  ;;  %v17970_v22 = vcombine.low %v17968_v0, %v17969_v24  ;;  %v17971_v33 = vld [vmem:[#allocation51_spill] sm:$0xff] }
 0x546   : > { %v11608_v13 = vcombine.low %v9644_v48, %v9654_v19  ;;  %v9678_v57 = vsel %vm13919_vm2, %v9673_v26, %v9677_v61  ;;  %v17975_v20 = vcombine.low %v17973_v9, %v17974_v50  ;;  %v17976_v38 = vcombine.low %v17011_v31, %v17015_v56 }
 0x547   : > { %v11609_v5 = vcombine.low %v9668_v45, %v9678_v57  ;;  %v17977_v30 = vcombine.low %v17019_v32, %v17025_v18 }
 0x549   : > { %12947 = vmatmul.mubr.bf16.gmra.mrb[20].mxu1 %v11605_v2  ;;  %v17967_v2 = vcombine.low %v17965_v25, %v17966_v34 }
 0x54a   : > { %12950 = vmatprep.mubr.bf16.mxu1 %v11606_v23  ;;  %v17972_v23 = vcombine.low %v16984_v16, %v17971_v33  ;;  %v17503_v16 = vld [vmem:[%s17582_s4] ss:$0 sm:$0xff] }
 0x551   : > { %12951 = vmatmul.mubr.bf16.gmra.mrb[24].mxu1 %v11607_v51 }
 0x552   : > { %12954 = vmatprep.mubr.bf16.mxu1 %v11608_v13 }
 0x559   : > { %12955 = vmatmul.mubr.bf16.gmra.mrb[28].mxu1 %v11609_v5 }
 0x55a   : > { %12974 = vmatprep.mubr.bf16.mxu1 %v17951_v54 }
 0x561   : > { %12975 = vmatmul.mubr.bf16.vlgmr.msra.gmra.mrb[0].mxu1 %v17954_v27 }
 0x562   : > { %12978 = vmatprep.mubr.bf16.mxu1 %v17957_v8 }
 0x569   : > { %12979 = vmatmul.mubr.bf16.gmra.mrb[4].mxu1 %v17960_v37 }
 0x56a   : > { %12982 = vmatprep.mubr.bf16.mxu1 %v17963_v46 }
 0x571   : > { %12983 = vmatmul.mubr.bf16.gmra.mrb[8].mxu1 %v17964_v17 }
 0x572   : > { %12986 = vmatprep.mubr.bf16.mxu1 %v17967_v2 }
 0x579   : > { %12987 = vmatmul.mubr.bf16.gmra.mrb[12].mxu1 %v17970_v22 }
 0x57a   : > { %12990 = vmatprep.mubr.bf16.mxu1 %v17972_v23 }
 0x581   : > { %12991 = vmatmul.mubr.bf16.gmra.mrb[16].mxu1 %v17975_v20 }
 0x582   : > { %12994 = vmatprep.mubr.bf16.mxu1 %v17976_v38 }
 0x589   : > { %12995 = vmatmul.mubr.bf16.gmra.mrb[20].mxu1 %v17977_v30 }
 0x58a   : > { %12998 = vmatprep.mubr.bf16.mxu1 %v11662_v60 }
 0x591   : > { %12999 = vmatmul.mubr.bf16.gmra.mrb[24].mxu1 %v11663_v35 }
 0x592   : > { %13002 = vmatprep.mubr.bf16.mxu1 %v11664_v40 }
 0x599   : > { %13003 = vmatmul.mubr.bf16.gmra.mrb[28].mxu1 %v11665_v53 }
 0x634   : > { %v12976_v18 = vpop.f32.mrb[0].mxu1 }
 0x635   : > { %v10508_v31 = vadd.f32 %v12976_v18, %v17503_v16  ;;  %v10340_v56 = vpop.f32.mrb[1].mxu1 }
 0x636   : > { %v10506_v32 = vadd.f32 %v17503_v16, %v10340_v56  ;;  %v12977_v43 = vpop.f32.mrb[2].mxu1 }
 0x637   : > { %v10540_v28 = vmax.f32 %v10508_v31, 0.0  ;;  %v10509_v21 = vadd.f32 %v12977_v43, %v17503_v16  ;;  %v10343_v60 = vpop.f32.mrb[3].mxu1 }
 0x638   : > { %v10538_v59 = vmax.f32 %v10506_v32, 0.0  ;;  %v10507_v35 = vadd.f32 %v17503_v16, %v10343_v60 }
 0x639   : > { %10572 = vst [vmem:[%s17510_s27 + $0x10] sm:$0xff] %v10540_v28  ;;  %v10541_v58 = vmax.f32 %v10509_v21, 0.0 }
 0x63a   : > { %10570 = vst [vmem:[%s17510_s27] sm:$0xff] %v10538_v59  ;;  %v10539_v44 = vmax.f32 %v10507_v35, 0.0 }
 0x63b   : > { %10573 = vst [vmem:[%s17510_s27 + $0x18] sm:$0xff] %v10541_v58 }
 0x63c   : > { %10571 = vst [vmem:[%s17510_s27 + $0x8] sm:$0xff] %v10539_v44  ;;  %v12980_v40 = vpop.f32.mrb[4].mxu1 }
 0x63d   : > { %v10512_v39 = vadd.f32 %v12980_v40, %v17503_v16  ;;  %v10356_v36 = vpop.f32.mrb[5].mxu1 }
 0x63e   : > { %v10510_v53 = vadd.f32 %v17503_v16, %v10356_v36  ;;  %v12981_v11 = vpop.f32.mrb[6].mxu1 }
 0x63f   : > { %v10544_v12 = vmax.f32 %v10512_v39, 0.0  ;;  %v10513_v47 = vadd.f32 %v12981_v11, %v17503_v16  ;;  %v10359_v63 = vpop.f32.mrb[7].mxu1 }
 0x640   : > { %v10542_v55 = vmax.f32 %v10510_v53, 0.0  ;;  %v10511_v29 = vadd.f32 %v17503_v16, %v10359_v63 }
 0x641   : > { %10576 = vst [vmem:[%s17510_s27 + $0x30] sm:$0xff] %v10544_v12  ;;  %v10545_v62 = vmax.f32 %v10513_v47, 0.0 }
 0x642   : > { %10574 = vst [vmem:[%s17510_s27 + $0x20] sm:$0xff] %v10542_v55  ;;  %v10543_v19 = vmax.f32 %v10511_v29, 0.0 }
 0x643   : > { %10577 = vst [vmem:[%s17510_s27 + $0x38] sm:$0xff] %v10545_v62 }
 0x644   : > { %10575 = vst [vmem:[%s17510_s27 + $0x28] sm:$0xff] %v10543_v19  ;;  %v12984_v14 = vpop.f32.mrb[8].mxu1 }
 0x645   : > { %v10516_v6 = vadd.f32 %v12984_v14, %v17503_v16  ;;  %v10372_v26 = vpop.f32.mrb[9].mxu1 }
 0x646   : > { %v10514_v61 = vadd.f32 %v17503_v16, %v10372_v26  ;;  %v12985_v51 = vpop.f32.mrb[10].mxu1 }
 0x647   : > { %v10548_v48 = vmax.f32 %v10516_v6, 0.0  ;;  %v10517_v13 = vadd.f32 %v12985_v51, %v17503_v16  ;;  %v10375_v45 = vpop.f32.mrb[11].mxu1 }
 0x648   : > { %v10546_v57 = vmax.f32 %v10514_v61, 0.0  ;;  %v10515_v5 = vadd.f32 %v17503_v16, %v10375_v45 }
 0x649   : > { %10580 = vst [vmem:[%s17510_s27 + $0x50] sm:$0xff] %v10548_v48  ;;  %v10549_v41 = vmax.f32 %v10517_v13, 0.0 }
 0x64a   : > { %10578 = vst [vmem:[%s17510_s27 + $0x40] sm:$0xff] %v10546_v57  ;;  %v10547_v4 = vmax.f32 %v10515_v5, 0.0 }
 0x64b   : > { %10581 = vst [vmem:[%s17510_s27 + $0x58] sm:$0xff] %v10549_v41 }
 0x64c   : > { %10579 = vst [vmem:[%s17510_s27 + $0x48] sm:$0xff] %v10547_v4  ;;  %v12988_v54 = vpop.f32.mrb[12].mxu1 }
 0x64d   : > { %v10520_v49 = vadd.f32 %v12988_v54, %v17503_v16  ;;  %v10388_v7 = vpop.f32.mrb[13].mxu1 }
 0x64e   : > { %v10518_v27 = vadd.f32 %v17503_v16, %v10388_v7  ;;  %v12989_v42 = vpop.f32.mrb[14].mxu1 }
 0x64f   : > { %v10552_v52 = vmax.f32 %v10520_v49, 0.0  ;;  %v10521_v8 = vadd.f32 %v12989_v42, %v17503_v16  ;;  %v10391_v15 = vpop.f32.mrb[15].mxu1 }
 0x650   : > { %v10550_v10 = vmax.f32 %v10518_v27, 0.0  ;;  %v10519_v37 = vadd.f32 %v17503_v16, %v10391_v15 }
 0x651   : > { %10584 = vst [vmem:[%s17510_s27 + $0x70] sm:$0xff] %v10552_v52  ;;  %v10553_v1 = vmax.f32 %v10521_v8, 0.0 }
 0x652   : > { %10582 = vst [vmem:[%s17510_s27 + $0x60] sm:$0xff] %v10550_v10  ;;  %v10551_v3 = vmax.f32 %v10519_v37, 0.0 }
 0x653   : > { %10585 = vst [vmem:[%s17510_s27 + $0x78] sm:$0xff] %v10553_v1 }
 0x654   : > { %10583 = vst [vmem:[%s17510_s27 + $0x68] sm:$0xff] %v10551_v3  ;;  %v12992_v46 = vpop.f32.mrb[16].mxu1 }
 0x655   : > { %v10524_v17 = vadd.f32 %v12992_v46, %v17503_v16  ;;  %v10404_v25 = vpop.f32.mrb[17].mxu1 }
 0x656   : > { %v10522_v34 = vadd.f32 %v17503_v16, %v10404_v25  ;;  %v12993_v2 = vpop.f32.mrb[18].mxu1 }
 0x657   : > { %v10556_v0 = vmax.f32 %v10524_v17, 0.0  ;;  %v10525_v24 = vadd.f32 %v12993_v2, %v17503_v16  ;;  %v10407_v22 = vpop.f32.mrb[19].mxu1 }
 0x658   : > { %v10554_v33 = vmax.f32 %v10522_v34, 0.0  ;;  %v10523_v23 = vadd.f32 %v17503_v16, %v10407_v22 }
 0x659   : > { %10588 = vst [vmem:[%s17510_s27 + $0x90] sm:$0xff] %v10556_v0  ;;  %v10557_v9 = vmax.f32 %v10525_v24, 0.0 }
 0x65a   : > { %10586 = vst [vmem:[%s17510_s27 + $0x80] sm:$0xff] %v10554_v33  ;;  %v10555_v50 = vmax.f32 %v10523_v23, 0.0 }
 0x65b   : > { %10589 = vst [vmem:[%s17510_s27 + $0x98] sm:$0xff] %v10557_v9 }
 0x65c   : > { %10587 = vst [vmem:[%s17510_s27 + $0x88] sm:$0xff] %v10555_v50  ;;  %v12996_v20 = vpop.f32.mrb[20].mxu1 }
 0x65d   : > { %v10528_v38 = vadd.f32 %v12996_v20, %v17503_v16  ;;  %v10420_v30 = vpop.f32.mrb[21].mxu1 }
 0x65e   : > { %v10526_v18 = vadd.f32 %v17503_v16, %v10420_v30  ;;  %v12997_v31 = vpop.f32.mrb[22].mxu1 }
 0x65f   : > { %v10560_v56 = vmax.f32 %v10528_v38, 0.0  ;;  %v10529_v32 = vadd.f32 %v12997_v31, %v17503_v16  ;;  %v10423_v43 = vpop.f32.mrb[23].mxu1 }
 0x660   : > { %v10558_v28 = vmax.f32 %v10526_v18, 0.0  ;;  %v10527_v21 = vadd.f32 %v17503_v16, %v10423_v43 }
 0x661   : > { %10592 = vst [vmem:[%s17510_s27 + $0xb0] sm:$0xff] %v10560_v56  ;;  %v10561_v60 = vmax.f32 %v10529_v32, 0.0 }
 0x662   : > { %10590 = vst [vmem:[%s17510_s27 + $0xa0] sm:$0xff] %v10558_v28  ;;  %v10559_v59 = vmax.f32 %v10527_v21, 0.0 }
 0x663   : > { %10593 = vst [vmem:[%s17510_s27 + $0xb8] sm:$0xff] %v10561_v60 }
 0x664   : > { %10591 = vst [vmem:[%s17510_s27 + $0xa8] sm:$0xff] %v10559_v59  ;;  %v13000_v35 = vpop.f32.mrb[24].mxu1 }
 0x665   : > { %v10532_v58 = vadd.f32 %v13000_v35, %v17503_v16  ;;  %v10436_v44 = vpop.f32.mrb[25].mxu1 }
 0x666   : > { %v10530_v40 = vadd.f32 %v17503_v16, %v10436_v44  ;;  %v13001_v39 = vpop.f32.mrb[26].mxu1 }
 0x667   : > { %v10564_v36 = vmax.f32 %v10532_v58, 0.0  ;;  %v10533_v53 = vadd.f32 %v13001_v39, %v17503_v16  ;;  %v10439_v11 = vpop.f32.mrb[27].mxu1 }
 0x668   : > { %v10562_v12 = vmax.f32 %v10530_v40, 0.0  ;;  %v10531_v47 = vadd.f32 %v17503_v16, %v10439_v11 }
 0x669   : > { %10596 = vst [vmem:[%s17510_s27 + $0xd0] sm:$0xff] %v10564_v36  ;;  %v10565_v63 = vmax.f32 %v10533_v53, 0.0 }
 0x66a   : > { %10594 = vst [vmem:[%s17510_s27 + $0xc0] sm:$0xff] %v10562_v12  ;;  %v10563_v55 = vmax.f32 %v10531_v47, 0.0 }
 0x66b   : > { %10597 = vst [vmem:[%s17510_s27 + $0xd8] sm:$0xff] %v10565_v63 }
 0x66c   : > { %10595 = vst [vmem:[%s17510_s27 + $0xc8] sm:$0xff] %v10563_v55  ;;  %v13004_v29 = vpop.f32.mrb[28].mxu1 }
 0x66d   : > { %v10536_v62 = vadd.f32 %v13004_v29, %v17503_v16  ;;  %v10452_v19 = vpop.f32.mrb[29].mxu1 }
 0x66e   : > { %v10534_v14 = vadd.f32 %v17503_v16, %v10452_v19  ;;  %v13005_v6 = vpop.f32.mrb[30].mxu1 }
 0x66f   : > { %v10568_v26 = vmax.f32 %v10536_v62, 0.0  ;;  %v10537_v61 = vadd.f32 %v13005_v6, %v17503_v16  ;;  %v10455_v51 = vpop.f32.mrb[31].mxu1 }
 0x670   : > { %v10566_v48 = vmax.f32 %v10534_v14, 0.0  ;;  %v10535_v13 = vadd.f32 %v17503_v16, %v10455_v51 }
 0x671   : > { %10600 = vst [vmem:[%s17510_s27 + $0xf0] sm:$0xff] %v10568_v26  ;;  %v10569_v45 = vmax.f32 %v10537_v61, 0.0 }
 0x672   : > { %10598 = vst [vmem:[%s17510_s27 + $0xe0] sm:$0xff] %v10566_v48  ;;  %v10567_v57 = vmax.f32 %v10535_v13, 0.0 }
 0x673   : > { %10601 = vst [vmem:[%s17510_s27 + $0xf8] sm:$0xff] %v10569_v45 }
 0x674   : > { %10599 = vst [vmem:[%s17510_s27 + $0xe8] sm:$0xff] %v10567_v57 }
 0x675 PF: > { %s15_s18 = sadd.s32 1, %s13831_s18  }
 0x676   : > { %p12_p4 = scmp.ge.s32.totalorder %s15_s18, 4  }
 0x678   :  { %14 = sbr.rel (!%p12_p4) target bundleno = 1 (0x1), region = 90 }

</bundles_post_ra>
